<compile_context>
chip_gen: v7x
topology: tpu7x:2x2x1
jax: 0.10.0
libtpu: 0.0.40
codegen_flags: <defaults>
</compile_context>

<pallas_src>
import functools

import jax
import jax.numpy as jnp
from jax import lax
from jax.experimental import pallas as pl
from jax.experimental.pallas import tpu as pltpu


def _sepconv_kernel(wf_ref, bf_ref, x_ref, o_ref, *, cin, cout, kernel_size,
                    stride, h_out, w_out):
    """Fused depthwise+pointwise conv for one batch element (NCHW).

    wf_ref: (Cin*k*k*Cout,) f32 SMEM  fused taps, idx ((ci*k+i)*k+j)*Cout+co
    bf_ref: (Cout,)         f32 SMEM  fused bias
    x_ref : (1, Cin, Hp, Wp)    VMEM  padded input
    o_ref : (1, Cout, H_out, W_out)   output
    """
    k = kernel_size
    h_span = (h_out - 1) * stride + 1

    accs = [jnp.zeros((h_out, w_out), jnp.float32) for _ in range(cout)]
    for ci in range(cin):
        for i in range(k):
            for j in range(k):
                # (h_out, w_out) input window for this (channel, tap).
                # All slice starts/sizes are static Python ints.
                rows = x_ref[0, ci, i:i + h_span, j:j + w_out]
                win = rows if stride == 1 else rows[::stride]
                base = ((ci * k + i) * k + j) * cout
                for co in range(cout):
                    # SMEM scalar * vector broadcast multiply-add on the VPU.
                    accs[co] = accs[co] + win * wf_ref[base + co]
    for co in range(cout):
        o_ref[0, co] = (accs[co] + bf_ref[co]).astype(o_ref.dtype)


def _pad_amounts(C, kernel_size, stride, padding):
    # Mirrors pad2d() from the PyTorch module.
    pad_t = int(0.5 * (kernel_size - 1))
    if padding == 'SAME':
        pad_c = int(0.5 * (stride * C - 1 + kernel_size - C))
    else:
        pad_c = 0
    return pad_t, pad_c


def sepconv_pallas(x_nchw, dw_weight, dw_bias, pw_weight, pw_bias,
                   kernel_size, stride, padding):
    """x_nchw: (B, Cin, C_freq, T).  Returns (B, Cout, H_out, W_out) NCHW."""
    B, cin, C, T = x_nchw.shape
    k = kernel_size
    cout = pw_weight.shape[0]
    pad_t, pad_c = _pad_amounts(C, k, stride, padding)

    # F.pad equivalent, directly in NCHW (no layout transposes anywhere).
    x = jnp.pad(x_nchw.astype(jnp.float32),
                ((0, 0), (0, 0), (pad_c, pad_c), (pad_t, pad_t)))
    Hp, Wp = C + 2 * pad_c, T + 2 * pad_t
    h_out = (Hp - k) // stride + 1
    w_out = Wp - k + 1

    # Fuse depthwise into pointwise (both linear):
    #   out[co] = sum_{ci,i,j} (pw[co,ci]*dw[ci,i,j]) * x[ci, h*s+i, w+j]
    #             + (pw[co,:] @ dw_bias + pw_bias[co])
    dw3d = dw_weight[:, 0, :, :].astype(jnp.float32)            # (Cin, k, k)
    pw2d = pw_weight[:, :, 0, 0].astype(jnp.float32)            # (Cout, Cin)
    wf = dw3d[:, :, :, None] * jnp.transpose(pw2d)[:, None, None, :]
    wf_flat = wf.reshape(-1)                                    # (Cin*k*k*Cout,)
    bf = pw2d @ dw_bias.astype(jnp.float32) + pw_bias.astype(jnp.float32)

    kernel = functools.partial(_sepconv_kernel, cin=cin, cout=cout,
                               kernel_size=k, stride=stride,
                               h_out=h_out, w_out=w_out)

    # TODO(synk): for very long T, tile the W (time) axis with a (k-1) halo so
    # the per-step input/output blocks stay well under v7x's 64 MiB VMEM.
    out = pl.pallas_call(
        kernel,
        out_shape=jax.ShapeDtypeStruct((B, cout, h_out, w_out), jnp.float32),
        grid_spec=pltpu.PrefetchScalarGridSpec(
            num_scalar_prefetch=0,
            grid=(B,),
            in_specs=[
                pl.BlockSpec(memory_space=pltpu.MemorySpace.SMEM),   # fused taps
                pl.BlockSpec(memory_space=pltpu.MemorySpace.SMEM),   # fused bias
                pl.BlockSpec((1, cin, Hp, Wp), lambda b: (b, 0, 0, 0)),
            ],
            out_specs=pl.BlockSpec((1, cout, h_out, w_out),
                                   lambda b: (b, 0, 0, 0)),
        ),
        compiler_params=pltpu.CompilerParams(
            dimension_semantics=("parallel",),
            vmem_limit_bytes=48 * 1024 * 1024),
    )(wf_flat, bf, x)
    return out


def sepconv_ref(x_nchw, dw_weight, dw_bias, pw_weight, pw_bias,
                kernel_size, stride, padding):
    """Pure-JAX reference mirroring the PyTorch forward (for verification)."""
    B, cin, C, T = x_nchw.shape
    pad_t, pad_c = _pad_amounts(C, kernel_size, stride, padding)
    x = jnp.pad(x_nchw, ((0, 0), (0, 0), (pad_c, pad_c), (pad_t, pad_t)))
    h = lax.conv_general_dilated(
        x, dw_weight, window_strides=(stride, 1), padding='VALID',
        dimension_numbers=('NCHW', 'OIHW', 'NCHW'), feature_group_count=cin)
    h = h + dw_bias[None, :, None, None]
    h = lax.conv_general_dilated(
        h, pw_weight, window_strides=(1, 1), padding='VALID',
        dimension_numbers=('NCHW', 'OIHW', 'NCHW'))
    h = h + pw_bias[None, :, None, None]
    return h


if __name__ == "__main__":
    B, Cin, Cout = 2, 4, 8
    C_freq, T = 16, 16
    kernel_size, stride = 3, 1
    padding = 'SAME'

    key = jax.random.PRNGKey(0)
    kx, k1, k2, k3, k4 = jax.random.split(key, 5)

    x = jax.random.normal(kx, (B, Cin, C_freq, T), dtype=jnp.float32)
    # Deterministic synthetic parameters (shapes match nn.Conv2d in __init__).
    dw_weight = 0.1 * jax.random.normal(
        k1, (Cin, 1, kernel_size, kernel_size), dtype=jnp.float32)   # depthwise
    dw_bias = 0.1 * jax.random.normal(k2, (Cin,), dtype=jnp.float32)
    pw_weight = 0.1 * jax.random.normal(
        k3, (Cout, Cin, 1, 1), dtype=jnp.float32)                    # pointwise
    pw_bias = 0.1 * jax.random.normal(k4, (Cout,), dtype=jnp.float32)

    out = sepconv_pallas(x, dw_weight, dw_bias, pw_weight, pw_bias,
                         kernel_size, stride, padding)
    out = jax.block_until_ready(out)

    ref = jax.block_until_ready(
        sepconv_ref(x, dw_weight, dw_bias, pw_weight, pw_bias,
                    kernel_size, stride, padding))

    assert out.shape == ref.shape, (out.shape, ref.shape)
    assert jnp.allclose(out, ref, atol=1e-4, rtol=1e-4), \
        float(jnp.max(jnp.abs(out - ref)))
    print("KERNEL_OK")
</pallas_src>

<mosaic_0001>
module attributes {stable_mosaic.version = 11 : i64} {
  func.func @_sepconv_kernel(%arg0: i32, %arg1: memref<288xf32, #tpu.memory_space<smem>>, %arg2: memref<8xf32, #tpu.memory_space<smem>>, %arg3: memref<1x4x18x18xf32, #tpu.memory_space<vmem>>, %arg4: memref<1x8x16x16xf32, #tpu.memory_space<vmem>>) attributes {dimension_semantics = [#tpu.dimension_semantics<parallel>], iteration_bounds = array<i64: 2>, scalar_prefetch = 0 : i64, scratch_operands = 0 : i64, tpu.core_type = #tpu.core_type<tc>, window_params = [{transform_indices = @transform_0, window_bounds = array<i64: 288>}, {transform_indices = @transform_1, window_bounds = array<i64: 8>}, {transform_indices = @transform_2, window_bounds = array<i64: 1, 4, 18, 18>}, {transform_indices = @transform_3, window_bounds = array<i64: 1, 8, 16, 16>}]} {
    %cst = arith.constant 0.000000e+00 : f32
    %0 = vector.broadcast %cst : f32 to vector<16x16xf32>
    %cst_0 = arith.constant 0.000000e+00 : f32
    %1 = vector.broadcast %cst_0 : f32 to vector<16x16xf32>
    %cst_1 = arith.constant 0.000000e+00 : f32
    %2 = vector.broadcast %cst_1 : f32 to vector<16x16xf32>
    %cst_2 = arith.constant 0.000000e+00 : f32
    %3 = vector.broadcast %cst_2 : f32 to vector<16x16xf32>
    %cst_3 = arith.constant 0.000000e+00 : f32
    %4 = vector.broadcast %cst_3 : f32 to vector<16x16xf32>
    %cst_4 = arith.constant 0.000000e+00 : f32
    %5 = vector.broadcast %cst_4 : f32 to vector<16x16xf32>
    %cst_5 = arith.constant 0.000000e+00 : f32
    %6 = vector.broadcast %cst_5 : f32 to vector<16x16xf32>
    %cst_6 = arith.constant 0.000000e+00 : f32
    %7 = vector.broadcast %cst_6 : f32 to vector<16x16xf32>
    %c0 = arith.constant 0 : index
    %c0_7 = arith.constant 0 : index
    %c0_8 = arith.constant 0 : index
    %c0_9 = arith.constant 0 : index
    %8 = vector.load %arg3[%c0, %c0_7, %c0_8, %c0_9] : memref<1x4x18x18xf32, #tpu.memory_space<vmem>>, vector<1x1x16x16xf32>
    %9 = vector.shape_cast %8 : vector<1x1x16x16xf32> to vector<16x16xf32>
    %c0_10 = arith.constant 0 : index
    %10 = memref.load %arg1[%c0_10] : memref<288xf32, #tpu.memory_space<smem>>
    %11 = vector.broadcast %10 : f32 to vector<16x16xf32>
    %12 = arith.mulf %9, %11 : vector<16x16xf32>
    %13 = arith.addf %0, %12 : vector<16x16xf32>
    %c1 = arith.constant 1 : index
    %14 = memref.load %arg1[%c1] : memref<288xf32, #tpu.memory_space<smem>>
    %15 = vector.broadcast %14 : f32 to vector<16x16xf32>
    %16 = arith.mulf %9, %15 : vector<16x16xf32>
    %17 = arith.addf %1, %16 : vector<16x16xf32>
    %c2 = arith.constant 2 : index
    %18 = memref.load %arg1[%c2] : memref<288xf32, #tpu.memory_space<smem>>
    %19 = vector.broadcast %18 : f32 to vector<16x16xf32>
    %20 = arith.mulf %9, %19 : vector<16x16xf32>
    %21 = arith.addf %2, %20 : vector<16x16xf32>
    %c3 = arith.constant 3 : index
    %22 = memref.load %arg1[%c3] : memref<288xf32, #tpu.memory_space<smem>>
    %23 = vector.broadcast %22 : f32 to vector<16x16xf32>
    %24 = arith.mulf %9, %23 : vector<16x16xf32>
    %25 = arith.addf %3, %24 : vector<16x16xf32>
    %c4 = arith.constant 4 : index
    %26 = memref.load %arg1[%c4] : memref<288xf32, #tpu.memory_space<smem>>
    %27 = vector.broadcast %26 : f32 to vector<16x16xf32>
    %28 = arith.mulf %9, %27 : vector<16x16xf32>
    %29 = arith.addf %4, %28 : vector<16x16xf32>
    %c5 = arith.constant 5 : index
    %30 = memref.load %arg1[%c5] : memref<288xf32, #tpu.memory_space<smem>>
    %31 = vector.broadcast %30 : f32 to vector<16x16xf32>
    %32 = arith.mulf %9, %31 : vector<16x16xf32>
    %33 = arith.addf %5, %32 : vector<16x16xf32>
    %c6 = arith.constant 6 : index
    %34 = memref.load %arg1[%c6] : memref<288xf32, #tpu.memory_space<smem>>
    %35 = vector.broadcast %34 : f32 to vector<16x16xf32>
    %36 = arith.mulf %9, %35 : vector<16x16xf32>
    %37 = arith.addf %6, %36 : vector<16x16xf32>
    %c7 = arith.constant 7 : index
    %38 = memref.load %arg1[%c7] : memref<288xf32, #tpu.memory_space<smem>>
    %39 = vector.broadcast %38 : f32 to vector<16x16xf32>
    %40 = arith.mulf %9, %39 : vector<16x16xf32>
    %41 = arith.addf %7, %40 : vector<16x16xf32>
    %c0_11 = arith.constant 0 : index
    %c0_12 = arith.constant 0 : index
    %c0_13 = arith.constant 0 : index
    %c1_14 = arith.constant 1 : index
    %42 = vector.load %arg3[%c0_11, %c0_12, %c0_13, %c1_14] : memref<1x4x18x18xf32, #tpu.memory_space<vmem>>, vector<1x1x16x16xf32>
    %43 = vector.shape_cast %42 : vector<1x1x16x16xf32> to vector<16x16xf32>
    %c8 = arith.constant 8 : index
    %44 = memref.load %arg1[%c8] : memref<288xf32, #tpu.memory_space<smem>>
    %45 = vector.broadcast %44 : f32 to vector<16x16xf32>
    %46 = arith.mulf %43, %45 : vector<16x16xf32>
    %47 = arith.addf %13, %46 : vector<16x16xf32>
    %c9 = arith.constant 9 : index
    %48 = memref.load %arg1[%c9] : memref<288xf32, #tpu.memory_space<smem>>
    %49 = vector.broadcast %48 : f32 to vector<16x16xf32>
    %50 = arith.mulf %43, %49 : vector<16x16xf32>
    %51 = arith.addf %17, %50 : vector<16x16xf32>
    %c10 = arith.constant 10 : index
    %52 = memref.load %arg1[%c10] : memref<288xf32, #tpu.memory_space<smem>>
    %53 = vector.broadcast %52 : f32 to vector<16x16xf32>
    %54 = arith.mulf %43, %53 : vector<16x16xf32>
    %55 = arith.addf %21, %54 : vector<16x16xf32>
    %c11 = arith.constant 11 : index
    %56 = memref.load %arg1[%c11] : memref<288xf32, #tpu.memory_space<smem>>
    %57 = vector.broadcast %56 : f32 to vector<16x16xf32>
    %58 = arith.mulf %43, %57 : vector<16x16xf32>
    %59 = arith.addf %25, %58 : vector<16x16xf32>
    %c12 = arith.constant 12 : index
    %60 = memref.load %arg1[%c12] : memref<288xf32, #tpu.memory_space<smem>>
    %61 = vector.broadcast %60 : f32 to vector<16x16xf32>
    %62 = arith.mulf %43, %61 : vector<16x16xf32>
    %63 = arith.addf %29, %62 : vector<16x16xf32>
    %c13 = arith.constant 13 : index
    %64 = memref.load %arg1[%c13] : memref<288xf32, #tpu.memory_space<smem>>
    %65 = vector.broadcast %64 : f32 to vector<16x16xf32>
    %66 = arith.mulf %43, %65 : vector<16x16xf32>
    %67 = arith.addf %33, %66 : vector<16x16xf32>
    %c14 = arith.constant 14 : index
    %68 = memref.load %arg1[%c14] : memref<288xf32, #tpu.memory_space<smem>>
    %69 = vector.broadcast %68 : f32 to vector<16x16xf32>
    %70 = arith.mulf %43, %69 : vector<16x16xf32>
    %71 = arith.addf %37, %70 : vector<16x16xf32>
    %c15 = arith.constant 15 : index
    %72 = memref.load %arg1[%c15] : memref<288xf32, #tpu.memory_space<smem>>
    %73 = vector.broadcast %72 : f32 to vector<16x16xf32>
    %74 = arith.mulf %43, %73 : vector<16x16xf32>
    %75 = arith.addf %41, %74 : vector<16x16xf32>
    %c0_15 = arith.constant 0 : index
    %c0_16 = arith.constant 0 : index
    %c0_17 = arith.constant 0 : index
    %c2_18 = arith.constant 2 : index
    %76 = vector.load %arg3[%c0_15, %c0_16, %c0_17, %c2_18] : memref<1x4x18x18xf32, #tpu.memory_space<vmem>>, vector<1x1x16x16xf32>
    %77 = vector.shape_cast %76 : vector<1x1x16x16xf32> to vector<16x16xf32>
    %c16 = arith.constant 16 : index
    %78 = memref.load %arg1[%c16] : memref<288xf32, #tpu.memory_space<smem>>
    %79 = vector.broadcast %78 : f32 to vector<16x16xf32>
    %80 = arith.mulf %77, %79 : vector<16x16xf32>
    %81 = arith.addf %47, %80 : vector<16x16xf32>
    %c17 = arith.constant 17 : index
    %82 = memref.load %arg1[%c17] : memref<288xf32, #tpu.memory_space<smem>>
    %83 = vector.broadcast %82 : f32 to vector<16x16xf32>
    %84 = arith.mulf %77, %83 : vector<16x16xf32>
    %85 = arith.addf %51, %84 : vector<16x16xf32>
    %c18 = arith.constant 18 : index
    %86 = memref.load %arg1[%c18] : memref<288xf32, #tpu.memory_space<smem>>
    %87 = vector.broadcast %86 : f32 to vector<16x16xf32>
    %88 = arith.mulf %77, %87 : vector<16x16xf32>
    %89 = arith.addf %55, %88 : vector<16x16xf32>
    %c19 = arith.constant 19 : index
    %90 = memref.load %arg1[%c19] : memref<288xf32, #tpu.memory_space<smem>>
    %91 = vector.broadcast %90 : f32 to vector<16x16xf32>
    %92 = arith.mulf %77, %91 : vector<16x16xf32>
    %93 = arith.addf %59, %92 : vector<16x16xf32>
    %c20 = arith.constant 20 : index
    %94 = memref.load %arg1[%c20] : memref<288xf32, #tpu.memory_space<smem>>
    %95 = vector.broadcast %94 : f32 to vector<16x16xf32>
    %96 = arith.mulf %77, %95 : vector<16x16xf32>
    %97 = arith.addf %63, %96 : vector<16x16xf32>
    %c21 = arith.constant 21 : index
    %98 = memref.load %arg1[%c21] : memref<288xf32, #tpu.memory_space<smem>>
    %99 = vector.broadcast %98 : f32 to vector<16x16xf32>
    %100 = arith.mulf %77, %99 : vector<16x16xf32>
    %101 = arith.addf %67, %100 : vector<16x16xf32>
    %c22 = arith.constant 22 : index
    %102 = memref.load %arg1[%c22] : memref<288xf32, #tpu.memory_space<smem>>
    %103 = vector.broadcast %102 : f32 to vector<16x16xf32>
    %104 = arith.mulf %77, %103 : vector<16x16xf32>
    %105 = arith.addf %71, %104 : vector<16x16xf32>
    %c23 = arith.constant 23 : index
    %106 = memref.load %arg1[%c23] : memref<288xf32, #tpu.memory_space<smem>>
    %107 = vector.broadcast %106 : f32 to vector<16x16xf32>
    %108 = arith.mulf %77, %107 : vector<16x16xf32>
    %109 = arith.addf %75, %108 : vector<16x16xf32>
    %c0_19 = arith.constant 0 : index
    %c0_20 = arith.constant 0 : index
    %c1_21 = arith.constant 1 : index
    %c0_22 = arith.constant 0 : index
    %110 = vector.load %arg3[%c0_19, %c0_20, %c1_21, %c0_22] : memref<1x4x18x18xf32, #tpu.memory_space<vmem>>, vector<1x1x16x16xf32>
    %111 = vector.shape_cast %110 : vector<1x1x16x16xf32> to vector<16x16xf32>
    %c24 = arith.constant 24 : index
    %112 = memref.load %arg1[%c24] : memref<288xf32, #tpu.memory_space<smem>>
    %113 = vector.broadcast %112 : f32 to vector<16x16xf32>
    %114 = arith.mulf %111, %113 : vector<16x16xf32>
    %115 = arith.addf %81, %114 : vector<16x16xf32>
    %c25 = arith.constant 25 : index
    %116 = memref.load %arg1[%c25] : memref<288xf32, #tpu.memory_space<smem>>
    %117 = vector.broadcast %116 : f32 to vector<16x16xf32>
    %118 = arith.mulf %111, %117 : vector<16x16xf32>
    %119 = arith.addf %85, %118 : vector<16x16xf32>
    %c26 = arith.constant 26 : index
    %120 = memref.load %arg1[%c26] : memref<288xf32, #tpu.memory_space<smem>>
    %121 = vector.broadcast %120 : f32 to vector<16x16xf32>
    %122 = arith.mulf %111, %121 : vector<16x16xf32>
    %123 = arith.addf %89, %122 : vector<16x16xf32>
    %c27 = arith.constant 27 : index
    %124 = memref.load %arg1[%c27] : memref<288xf32, #tpu.memory_space<smem>>
    %125 = vector.broadcast %124 : f32 to vector<16x16xf32>
    %126 = arith.mulf %111, %125 : vector<16x16xf32>
    %127 = arith.addf %93, %126 : vector<16x16xf32>
    %c28 = arith.constant 28 : index
    %128 = memref.load %arg1[%c28] : memref<288xf32, #tpu.memory_space<smem>>
    %129 = vector.broadcast %128 : f32 to vector<16x16xf32>
    %130 = arith.mulf %111, %129 : vector<16x16xf32>
    %131 = arith.addf %97, %130 : vector<16x16xf32>
    %c29 = arith.constant 29 : index
    %132 = memref.load %arg1[%c29] : memref<288xf32, #tpu.memory_space<smem>>
    %133 = vector.broadcast %132 : f32 to vector<16x16xf32>
    %134 = arith.mulf %111, %133 : vector<16x16xf32>
    %135 = arith.addf %101, %134 : vector<16x16xf32>
    %c30 = arith.constant 30 : index
    %136 = memref.load %arg1[%c30] : memref<288xf32, #tpu.memory_space<smem>>
    %137 = vector.broadcast %136 : f32 to vector<16x16xf32>
    %138 = arith.mulf %111, %137 : vector<16x16xf32>
    %139 = arith.addf %105, %138 : vector<16x16xf32>
    %c31 = arith.constant 31 : index
    %140 = memref.load %arg1[%c31] : memref<288xf32, #tpu.memory_space<smem>>
    %141 = vector.broadcast %140 : f32 to vector<16x16xf32>
    %142 = arith.mulf %111, %141 : vector<16x16xf32>
    %143 = arith.addf %109, %142 : vector<16x16xf32>
    %c0_23 = arith.constant 0 : index
    %c0_24 = arith.constant 0 : index
    %c1_25 = arith.constant 1 : index
    %c1_26 = arith.constant 1 : index
    %144 = vector.load %arg3[%c0_23, %c0_24, %c1_25, %c1_26] : memref<1x4x18x18xf32, #tpu.memory_space<vmem>>, vector<1x1x16x16xf32>
    %145 = vector.shape_cast %144 : vector<1x1x16x16xf32> to vector<16x16xf32>
    %c32 = arith.constant 32 : index
    %146 = memref.load %arg1[%c32] : memref<288xf32, #tpu.memory_space<smem>>
    %147 = vector.broadcast %146 : f32 to vector<16x16xf32>
    %148 = arith.mulf %145, %147 : vector<16x16xf32>
    %149 = arith.addf %115, %148 : vector<16x16xf32>
    %c33 = arith.constant 33 : index
    %150 = memref.load %arg1[%c33] : memref<288xf32, #tpu.memory_space<smem>>
    %151 = vector.broadcast %150 : f32 to vector<16x16xf32>
    %152 = arith.mulf %145, %151 : vector<16x16xf32>
    %153 = arith.addf %119, %152 : vector<16x16xf32>
    %c34 = arith.constant 34 : index
    %154 = memref.load %arg1[%c34] : memref<288xf32, #tpu.memory_space<smem>>
    %155 = vector.broadcast %154 : f32 to vector<16x16xf32>
    %156 = arith.mulf %145, %155 : vector<16x16xf32>
    %157 = arith.addf %123, %156 : vector<16x16xf32>
    %c35 = arith.constant 35 : index
    %158 = memref.load %arg1[%c35] : memref<288xf32, #tpu.memory_space<smem>>
    %159 = vector.broadcast %158 : f32 to vector<16x16xf32>
    %160 = arith.mulf %145, %159 : vector<16x16xf32>
    %161 = arith.addf %127, %160 : vector<16x16xf32>
    %c36 = arith.constant 36 : index
    %162 = memref.load %arg1[%c36] : memref<288xf32, #tpu.memory_space<smem>>
    %163 = vector.broadcast %162 : f32 to vector<16x16xf32>
    %164 = arith.mulf %145, %163 : vector<16x16xf32>
    %165 = arith.addf %131, %164 : vector<16x16xf32>
    %c37 = arith.constant 37 : index
    %166 = memref.load %arg1[%c37] : memref<288xf32, #tpu.memory_space<smem>>
    %167 = vector.broadcast %166 : f32 to vector<16x16xf32>
    %168 = arith.mulf %145, %167 : vector<16x16xf32>
    %169 = arith.addf %135, %168 : vector<16x16xf32>
    %c38 = arith.constant 38 : index
    %170 = memref.load %arg1[%c38] : memref<288xf32, #tpu.memory_space<smem>>
    %171 = vector.broadcast %170 : f32 to vector<16x16xf32>
    %172 = arith.mulf %145, %171 : vector<16x16xf32>
    %173 = arith.addf %139, %172 : vector<16x16xf32>
    %c39 = arith.constant 39 : index
    %174 = memref.load %arg1[%c39] : memref<288xf32, #tpu.memory_space<smem>>
    %175 = vector.broadcast %174 : f32 to vector<16x16xf32>
    %176 = arith.mulf %145, %175 : vector<16x16xf32>
    %177 = arith.addf %143, %176 : vector<16x16xf32>
    %c0_27 = arith.constant 0 : index
    %c0_28 = arith.constant 0 : index
    %c1_29 = arith.constant 1 : index
    %c2_30 = arith.constant 2 : index
    %178 = vector.load %arg3[%c0_27, %c0_28, %c1_29, %c2_30] : memref<1x4x18x18xf32, #tpu.memory_space<vmem>>, vector<1x1x16x16xf32>
    %179 = vector.shape_cast %178 : vector<1x1x16x16xf32> to vector<16x16xf32>
    %c40 = arith.constant 40 : index
    %180 = memref.load %arg1[%c40] : memref<288xf32, #tpu.memory_space<smem>>
    %181 = vector.broadcast %180 : f32 to vector<16x16xf32>
    %182 = arith.mulf %179, %181 : vector<16x16xf32>
    %183 = arith.addf %149, %182 : vector<16x16xf32>
    %c41 = arith.constant 41 : index
    %184 = memref.load %arg1[%c41] : memref<288xf32, #tpu.memory_space<smem>>
    %185 = vector.broadcast %184 : f32 to vector<16x16xf32>
    %186 = arith.mulf %179, %185 : vector<16x16xf32>
    %187 = arith.addf %153, %186 : vector<16x16xf32>
    %c42 = arith.constant 42 : index
    %188 = memref.load %arg1[%c42] : memref<288xf32, #tpu.memory_space<smem>>
    %189 = vector.broadcast %188 : f32 to vector<16x16xf32>
    %190 = arith.mulf %179, %189 : vector<16x16xf32>
    %191 = arith.addf %157, %190 : vector<16x16xf32>
    %c43 = arith.constant 43 : index
    %192 = memref.load %arg1[%c43] : memref<288xf32, #tpu.memory_space<smem>>
    %193 = vector.broadcast %192 : f32 to vector<16x16xf32>
    %194 = arith.mulf %179, %193 : vector<16x16xf32>
    %195 = arith.addf %161, %194 : vector<16x16xf32>
    %c44 = arith.constant 44 : index
    %196 = memref.load %arg1[%c44] : memref<288xf32, #tpu.memory_space<smem>>
    %197 = vector.broadcast %196 : f32 to vector<16x16xf32>
    %198 = arith.mulf %179, %197 : vector<16x16xf32>
    %199 = arith.addf %165, %198 : vector<16x16xf32>
    %c45 = arith.constant 45 : index
    %200 = memref.load %arg1[%c45] : memref<288xf32, #tpu.memory_space<smem>>
    %201 = vector.broadcast %200 : f32 to vector<16x16xf32>
    %202 = arith.mulf %179, %201 : vector<16x16xf32>
    %203 = arith.addf %169, %202 : vector<16x16xf32>
    %c46 = arith.constant 46 : index
    %204 = memref.load %arg1[%c46] : memref<288xf32, #tpu.memory_space<smem>>
    %205 = vector.broadcast %204 : f32 to vector<16x16xf32>
    %206 = arith.mulf %179, %205 : vector<16x16xf32>
    %207 = arith.addf %173, %206 : vector<16x16xf32>
    %c47 = arith.constant 47 : index
    %208 = memref.load %arg1[%c47] : memref<288xf32, #tpu.memory_space<smem>>
    %209 = vector.broadcast %208 : f32 to vector<16x16xf32>
    %210 = arith.mulf %179, %209 : vector<16x16xf32>
    %211 = arith.addf %177, %210 : vector<16x16xf32>
    %c0_31 = arith.constant 0 : index
    %c0_32 = arith.constant 0 : index
    %c2_33 = arith.constant 2 : index
    %c0_34 = arith.constant 0 : index
    %212 = vector.load %arg3[%c0_31, %c0_32, %c2_33, %c0_34] : memref<1x4x18x18xf32, #tpu.memory_space<vmem>>, vector<1x1x16x16xf32>
    %213 = vector.shape_cast %212 : vector<1x1x16x16xf32> to vector<16x16xf32>
    %c48 = arith.constant 48 : index
    %214 = memref.load %arg1[%c48] : memref<288xf32, #tpu.memory_space<smem>>
    %215 = vector.broadcast %214 : f32 to vector<16x16xf32>
    %216 = arith.mulf %213, %215 : vector<16x16xf32>
    %217 = arith.addf %183, %216 : vector<16x16xf32>
    %c49 = arith.constant 49 : index
    %218 = memref.load %arg1[%c49] : memref<288xf32, #tpu.memory_space<smem>>
    %219 = vector.broadcast %218 : f32 to vector<16x16xf32>
    %220 = arith.mulf %213, %219 : vector<16x16xf32>
    %221 = arith.addf %187, %220 : vector<16x16xf32>
    %c50 = arith.constant 50 : index
    %222 = memref.load %arg1[%c50] : memref<288xf32, #tpu.memory_space<smem>>
    %223 = vector.broadcast %222 : f32 to vector<16x16xf32>
    %224 = arith.mulf %213, %223 : vector<16x16xf32>
    %225 = arith.addf %191, %224 : vector<16x16xf32>
    %c51 = arith.constant 51 : index
    %226 = memref.load %arg1[%c51] : memref<288xf32, #tpu.memory_space<smem>>
    %227 = vector.broadcast %226 : f32 to vector<16x16xf32>
    %228 = arith.mulf %213, %227 : vector<16x16xf32>
    %229 = arith.addf %195, %228 : vector<16x16xf32>
    %c52 = arith.constant 52 : index
    %230 = memref.load %arg1[%c52] : memref<288xf32, #tpu.memory_space<smem>>
    %231 = vector.broadcast %230 : f32 to vector<16x16xf32>
    %232 = arith.mulf %213, %231 : vector<16x16xf32>
    %233 = arith.addf %199, %232 : vector<16x16xf32>
    %c53 = arith.constant 53 : index
    %234 = memref.load %arg1[%c53] : memref<288xf32, #tpu.memory_space<smem>>
    %235 = vector.broadcast %234 : f32 to vector<16x16xf32>
    %236 = arith.mulf %213, %235 : vector<16x16xf32>
    %237 = arith.addf %203, %236 : vector<16x16xf32>
    %c54 = arith.constant 54 : index
    %238 = memref.load %arg1[%c54] : memref<288xf32, #tpu.memory_space<smem>>
    %239 = vector.broadcast %238 : f32 to vector<16x16xf32>
    %240 = arith.mulf %213, %239 : vector<16x16xf32>
    %241 = arith.addf %207, %240 : vector<16x16xf32>
    %c55 = arith.constant 55 : index
    %242 = memref.load %arg1[%c55] : memref<288xf32, #tpu.memory_space<smem>>
    %243 = vector.broadcast %242 : f32 to vector<16x16xf32>
    %244 = arith.mulf %213, %243 : vector<16x16xf32>
    %245 = arith.addf %211, %244 : vector<16x16xf32>
    %c0_35 = arith.constant 0 : index
    %c0_36 = arith.constant 0 : index
    %c2_37 = arith.constant 2 : index
    %c1_38 = arith.constant 1 : index
    %246 = vector.load %arg3[%c0_35, %c0_36, %c2_37, %c1_38] : memref<1x4x18x18xf32, #tpu.memory_space<vmem>>, vector<1x1x16x16xf32>
    %247 = vector.shape_cast %246 : vector<1x1x16x16xf32> to vector<16x16xf32>
    %c56 = arith.constant 56 : index
    %248 = memref.load %arg1[%c56] : memref<288xf32, #tpu.memory_space<smem>>
    %249 = vector.broadcast %248 : f32 to vector<16x16xf32>
    %250 = arith.mulf %247, %249 : vector<16x16xf32>
    %251 = arith.addf %217, %250 : vector<16x16xf32>
    %c57 = arith.constant 57 : index
    %252 = memref.load %arg1[%c57] : memref<288xf32, #tpu.memory_space<smem>>
    %253 = vector.broadcast %252 : f32 to vector<16x16xf32>
    %254 = arith.mulf %247, %253 : vector<16x16xf32>
    %255 = arith.addf %221, %254 : vector<16x16xf32>
    %c58 = arith.constant 58 : index
    %256 = memref.load %arg1[%c58] : memref<288xf32, #tpu.memory_space<smem>>
    %257 = vector.broadcast %256 : f32 to vector<16x16xf32>
    %258 = arith.mulf %247, %257 : vector<16x16xf32>
    %259 = arith.addf %225, %258 : vector<16x16xf32>
    %c59 = arith.constant 59 : index
    %260 = memref.load %arg1[%c59] : memref<288xf32, #tpu.memory_space<smem>>
    %261 = vector.broadcast %260 : f32 to vector<16x16xf32>
    %262 = arith.mulf %247, %261 : vector<16x16xf32>
    %263 = arith.addf %229, %262 : vector<16x16xf32>
    %c60 = arith.constant 60 : index
    %264 = memref.load %arg1[%c60] : memref<288xf32, #tpu.memory_space<smem>>
    %265 = vector.broadcast %264 : f32 to vector<16x16xf32>
    %266 = arith.mulf %247, %265 : vector<16x16xf32>
    %267 = arith.addf %233, %266 : vector<16x16xf32>
    %c61 = arith.constant 61 : index
    %268 = memref.load %arg1[%c61] : memref<288xf32, #tpu.memory_space<smem>>
    %269 = vector.broadcast %268 : f32 to vector<16x16xf32>
    %270 = arith.mulf %247, %269 : vector<16x16xf32>
    %271 = arith.addf %237, %270 : vector<16x16xf32>
    %c62 = arith.constant 62 : index
    %272 = memref.load %arg1[%c62] : memref<288xf32, #tpu.memory_space<smem>>
    %273 = vector.broadcast %272 : f32 to vector<16x16xf32>
    %274 = arith.mulf %247, %273 : vector<16x16xf32>
    %275 = arith.addf %241, %274 : vector<16x16xf32>
    %c63 = arith.constant 63 : index
    %276 = memref.load %arg1[%c63] : memref<288xf32, #tpu.memory_space<smem>>
    %277 = vector.broadcast %276 : f32 to vector<16x16xf32>
    %278 = arith.mulf %247, %277 : vector<16x16xf32>
    %279 = arith.addf %245, %278 : vector<16x16xf32>
    %c0_39 = arith.constant 0 : index
    %c0_40 = arith.constant 0 : index
    %c2_41 = arith.constant 2 : index
    %c2_42 = arith.constant 2 : index
    %280 = vector.load %arg3[%c0_39, %c0_40, %c2_41, %c2_42] : memref<1x4x18x18xf32, #tpu.memory_space<vmem>>, vector<1x1x16x16xf32>
    %281 = vector.shape_cast %280 : vector<1x1x16x16xf32> to vector<16x16xf32>
    %c64 = arith.constant 64 : index
    %282 = memref.load %arg1[%c64] : memref<288xf32, #tpu.memory_space<smem>>
    %283 = vector.broadcast %282 : f32 to vector<16x16xf32>
    %284 = arith.mulf %281, %283 : vector<16x16xf32>
    %285 = arith.addf %251, %284 : vector<16x16xf32>
    %c65 = arith.constant 65 : index
    %286 = memref.load %arg1[%c65] : memref<288xf32, #tpu.memory_space<smem>>
    %287 = vector.broadcast %286 : f32 to vector<16x16xf32>
    %288 = arith.mulf %281, %287 : vector<16x16xf32>
    %289 = arith.addf %255, %288 : vector<16x16xf32>
    %c66 = arith.constant 66 : index
    %290 = memref.load %arg1[%c66] : memref<288xf32, #tpu.memory_space<smem>>
    %291 = vector.broadcast %290 : f32 to vector<16x16xf32>
    %292 = arith.mulf %281, %291 : vector<16x16xf32>
    %293 = arith.addf %259, %292 : vector<16x16xf32>
    %c67 = arith.constant 67 : index
    %294 = memref.load %arg1[%c67] : memref<288xf32, #tpu.memory_space<smem>>
    %295 = vector.broadcast %294 : f32 to vector<16x16xf32>
    %296 = arith.mulf %281, %295 : vector<16x16xf32>
    %297 = arith.addf %263, %296 : vector<16x16xf32>
    %c68 = arith.constant 68 : index
    %298 = memref.load %arg1[%c68] : memref<288xf32, #tpu.memory_space<smem>>
    %299 = vector.broadcast %298 : f32 to vector<16x16xf32>
    %300 = arith.mulf %281, %299 : vector<16x16xf32>
    %301 = arith.addf %267, %300 : vector<16x16xf32>
    %c69 = arith.constant 69 : index
    %302 = memref.load %arg1[%c69] : memref<288xf32, #tpu.memory_space<smem>>
    %303 = vector.broadcast %302 : f32 to vector<16x16xf32>
    %304 = arith.mulf %281, %303 : vector<16x16xf32>
    %305 = arith.addf %271, %304 : vector<16x16xf32>
    %c70 = arith.constant 70 : index
    %306 = memref.load %arg1[%c70] : memref<288xf32, #tpu.memory_space<smem>>
    %307 = vector.broadcast %306 : f32 to vector<16x16xf32>
    %308 = arith.mulf %281, %307 : vector<16x16xf32>
    %309 = arith.addf %275, %308 : vector<16x16xf32>
    %c71 = arith.constant 71 : index
    %310 = memref.load %arg1[%c71] : memref<288xf32, #tpu.memory_space<smem>>
    %311 = vector.broadcast %310 : f32 to vector<16x16xf32>
    %312 = arith.mulf %281, %311 : vector<16x16xf32>
    %313 = arith.addf %279, %312 : vector<16x16xf32>
    %c0_43 = arith.constant 0 : index
    %c1_44 = arith.constant 1 : index
    %c0_45 = arith.constant 0 : index
    %c0_46 = arith.constant 0 : index
    %314 = vector.load %arg3[%c0_43, %c1_44, %c0_45, %c0_46] : memref<1x4x18x18xf32, #tpu.memory_space<vmem>>, vector<1x1x16x16xf32>
    %315 = vector.shape_cast %314 : vector<1x1x16x16xf32> to vector<16x16xf32>
    %c72 = arith.constant 72 : index
    %316 = memref.load %arg1[%c72] : memref<288xf32, #tpu.memory_space<smem>>
    %317 = vector.broadcast %316 : f32 to vector<16x16xf32>
    %318 = arith.mulf %315, %317 : vector<16x16xf32>
    %319 = arith.addf %285, %318 : vector<16x16xf32>
    %c73 = arith.constant 73 : index
    %320 = memref.load %arg1[%c73] : memref<288xf32, #tpu.memory_space<smem>>
    %321 = vector.broadcast %320 : f32 to vector<16x16xf32>
    %322 = arith.mulf %315, %321 : vector<16x16xf32>
    %323 = arith.addf %289, %322 : vector<16x16xf32>
    %c74 = arith.constant 74 : index
    %324 = memref.load %arg1[%c74] : memref<288xf32, #tpu.memory_space<smem>>
    %325 = vector.broadcast %324 : f32 to vector<16x16xf32>
    %326 = arith.mulf %315, %325 : vector<16x16xf32>
    %327 = arith.addf %293, %326 : vector<16x16xf32>
    %c75 = arith.constant 75 : index
    %328 = memref.load %arg1[%c75] : memref<288xf32, #tpu.memory_space<smem>>
    %329 = vector.broadcast %328 : f32 to vector<16x16xf32>
    %330 = arith.mulf %315, %329 : vector<16x16xf32>
    %331 = arith.addf %297, %330 : vector<16x16xf32>
    %c76 = arith.constant 76 : index
    %332 = memref.load %arg1[%c76] : memref<288xf32, #tpu.memory_space<smem>>
    %333 = vector.broadcast %332 : f32 to vector<16x16xf32>
    %334 = arith.mulf %315, %333 : vector<16x16xf32>
    %335 = arith.addf %301, %334 : vector<16x16xf32>
    %c77 = arith.constant 77 : index
    %336 = memref.load %arg1[%c77] : memref<288xf32, #tpu.memory_space<smem>>
    %337 = vector.broadcast %336 : f32 to vector<16x16xf32>
    %338 = arith.mulf %315, %337 : vector<16x16xf32>
    %339 = arith.addf %305, %338 : vector<16x16xf32>
    %c78 = arith.constant 78 : index
    %340 = memref.load %arg1[%c78] : memref<288xf32, #tpu.memory_space<smem>>
    %341 = vector.broadcast %340 : f32 to vector<16x16xf32>
    %342 = arith.mulf %315, %341 : vector<16x16xf32>
    %343 = arith.addf %309, %342 : vector<16x16xf32>
    %c79 = arith.constant 79 : index
    %344 = memref.load %arg1[%c79] : memref<288xf32, #tpu.memory_space<smem>>
    %345 = vector.broadcast %344 : f32 to vector<16x16xf32>
    %346 = arith.mulf %315, %345 : vector<16x16xf32>
    %347 = arith.addf %313, %346 : vector<16x16xf32>
    %c0_47 = arith.constant 0 : index
    %c1_48 = arith.constant 1 : index
    %c0_49 = arith.constant 0 : index
    %c1_50 = arith.constant 1 : index
    %348 = vector.load %arg3[%c0_47, %c1_48, %c0_49, %c1_50] : memref<1x4x18x18xf32, #tpu.memory_space<vmem>>, vector<1x1x16x16xf32>
    %349 = vector.shape_cast %348 : vector<1x1x16x16xf32> to vector<16x16xf32>
    %c80 = arith.constant 80 : index
    %350 = memref.load %arg1[%c80] : memref<288xf32, #tpu.memory_space<smem>>
    %351 = vector.broadcast %350 : f32 to vector<16x16xf32>
    %352 = arith.mulf %349, %351 : vector<16x16xf32>
    %353 = arith.addf %319, %352 : vector<16x16xf32>
    %c81 = arith.constant 81 : index
    %354 = memref.load %arg1[%c81] : memref<288xf32, #tpu.memory_space<smem>>
    %355 = vector.broadcast %354 : f32 to vector<16x16xf32>
    %356 = arith.mulf %349, %355 : vector<16x16xf32>
    %357 = arith.addf %323, %356 : vector<16x16xf32>
    %c82 = arith.constant 82 : index
    %358 = memref.load %arg1[%c82] : memref<288xf32, #tpu.memory_space<smem>>
    %359 = vector.broadcast %358 : f32 to vector<16x16xf32>
    %360 = arith.mulf %349, %359 : vector<16x16xf32>
    %361 = arith.addf %327, %360 : vector<16x16xf32>
    %c83 = arith.constant 83 : index
    %362 = memref.load %arg1[%c83] : memref<288xf32, #tpu.memory_space<smem>>
    %363 = vector.broadcast %362 : f32 to vector<16x16xf32>
    %364 = arith.mulf %349, %363 : vector<16x16xf32>
    %365 = arith.addf %331, %364 : vector<16x16xf32>
    %c84 = arith.constant 84 : index
    %366 = memref.load %arg1[%c84] : memref<288xf32, #tpu.memory_space<smem>>
    %367 = vector.broadcast %366 : f32 to vector<16x16xf32>
    %368 = arith.mulf %349, %367 : vector<16x16xf32>
    %369 = arith.addf %335, %368 : vector<16x16xf32>
    %c85 = arith.constant 85 : index
    %370 = memref.load %arg1[%c85] : memref<288xf32, #tpu.memory_space<smem>>
    %371 = vector.broadcast %370 : f32 to vector<16x16xf32>
    %372 = arith.mulf %349, %371 : vector<16x16xf32>
    %373 = arith.addf %339, %372 : vector<16x16xf32>
    %c86 = arith.constant 86 : index
    %374 = memref.load %arg1[%c86] : memref<288xf32, #tpu.memory_space<smem>>
    %375 = vector.broadcast %374 : f32 to vector<16x16xf32>
    %376 = arith.mulf %349, %375 : vector<16x16xf32>
    %377 = arith.addf %343, %376 : vector<16x16xf32>
    %c87 = arith.constant 87 : index
    %378 = memref.load %arg1[%c87] : memref<288xf32, #tpu.memory_space<smem>>
    %379 = vector.broadcast %378 : f32 to vector<16x16xf32>
    %380 = arith.mulf %349, %379 : vector<16x16xf32>
    %381 = arith.addf %347, %380 : vector<16x16xf32>
    %c0_51 = arith.constant 0 : index
    %c1_52 = arith.constant 1 : index
    %c0_53 = arith.constant 0 : index
    %c2_54 = arith.constant 2 : index
    %382 = vector.load %arg3[%c0_51, %c1_52, %c0_53, %c2_54] : memref<1x4x18x18xf32, #tpu.memory_space<vmem>>, vector<1x1x16x16xf32>
    %383 = vector.shape_cast %382 : vector<1x1x16x16xf32> to vector<16x16xf32>
    %c88 = arith.constant 88 : index
    %384 = memref.load %arg1[%c88] : memref<288xf32, #tpu.memory_space<smem>>
    %385 = vector.broadcast %384 : f32 to vector<16x16xf32>
    %386 = arith.mulf %383, %385 : vector<16x16xf32>
    %387 = arith.addf %353, %386 : vector<16x16xf32>
    %c89 = arith.constant 89 : index
    %388 = memref.load %arg1[%c89] : memref<288xf32, #tpu.memory_space<smem>>
    %389 = vector.broadcast %388 : f32 to vector<16x16xf32>
    %390 = arith.mulf %383, %389 : vector<16x16xf32>
    %391 = arith.addf %357, %390 : vector<16x16xf32>
    %c90 = arith.constant 90 : index
    %392 = memref.load %arg1[%c90] : memref<288xf32, #tpu.memory_space<smem>>
    %393 = vector.broadcast %392 : f32 to vector<16x16xf32>
    %394 = arith.mulf %383, %393 : vector<16x16xf32>
    %395 = arith.addf %361, %394 : vector<16x16xf32>
    %c91 = arith.constant 91 : index
    %396 = memref.load %arg1[%c91] : memref<288xf32, #tpu.memory_space<smem>>
    %397 = vector.broadcast %396 : f32 to vector<16x16xf32>
    %398 = arith.mulf %383, %397 : vector<16x16xf32>
    %399 = arith.addf %365, %398 : vector<16x16xf32>
    %c92 = arith.constant 92 : index
    %400 = memref.load %arg1[%c92] : memref<288xf32, #tpu.memory_space<smem>>
    %401 = vector.broadcast %400 : f32 to vector<16x16xf32>
    %402 = arith.mulf %383, %401 : vector<16x16xf32>
    %403 = arith.addf %369, %402 : vector<16x16xf32>
    %c93 = arith.constant 93 : index
    %404 = memref.load %arg1[%c93] : memref<288xf32, #tpu.memory_space<smem>>
    %405 = vector.broadcast %404 : f32 to vector<16x16xf32>
    %406 = arith.mulf %383, %405 : vector<16x16xf32>
    %407 = arith.addf %373, %406 : vector<16x16xf32>
    %c94 = arith.constant 94 : index
    %408 = memref.load %arg1[%c94] : memref<288xf32, #tpu.memory_space<smem>>
    %409 = vector.broadcast %408 : f32 to vector<16x16xf32>
    %410 = arith.mulf %383, %409 : vector<16x16xf32>
    %411 = arith.addf %377, %410 : vector<16x16xf32>
    %c95 = arith.constant 95 : index
    %412 = memref.load %arg1[%c95] : memref<288xf32, #tpu.memory_space<smem>>
    %413 = vector.broadcast %412 : f32 to vector<16x16xf32>
    %414 = arith.mulf %383, %413 : vector<16x16xf32>
    %415 = arith.addf %381, %414 : vector<16x16xf32>
    %c0_55 = arith.constant 0 : index
    %c1_56 = arith.constant 1 : index
    %c1_57 = arith.constant 1 : index
    %c0_58 = arith.constant 0 : index
    %416 = vector.load %arg3[%c0_55, %c1_56, %c1_57, %c0_58] : memref<1x4x18x18xf32, #tpu.memory_space<vmem>>, vector<1x1x16x16xf32>
    %417 = vector.shape_cast %416 : vector<1x1x16x16xf32> to vector<16x16xf32>
    %c96 = arith.constant 96 : index
    %418 = memref.load %arg1[%c96] : memref<288xf32, #tpu.memory_space<smem>>
    %419 = vector.broadcast %418 : f32 to vector<16x16xf32>
    %420 = arith.mulf %417, %419 : vector<16x16xf32>
    %421 = arith.addf %387, %420 : vector<16x16xf32>
    %c97 = arith.constant 97 : index
    %422 = memref.load %arg1[%c97] : memref<288xf32, #tpu.memory_space<smem>>
    %423 = vector.broadcast %422 : f32 to vector<16x16xf32>
    %424 = arith.mulf %417, %423 : vector<16x16xf32>
    %425 = arith.addf %391, %424 : vector<16x16xf32>
    %c98 = arith.constant 98 : index
    %426 = memref.load %arg1[%c98] : memref<288xf32, #tpu.memory_space<smem>>
    %427 = vector.broadcast %426 : f32 to vector<16x16xf32>
    %428 = arith.mulf %417, %427 : vector<16x16xf32>
    %429 = arith.addf %395, %428 : vector<16x16xf32>
    %c99 = arith.constant 99 : index
    %430 = memref.load %arg1[%c99] : memref<288xf32, #tpu.memory_space<smem>>
    %431 = vector.broadcast %430 : f32 to vector<16x16xf32>
    %432 = arith.mulf %417, %431 : vector<16x16xf32>
    %433 = arith.addf %399, %432 : vector<16x16xf32>
    %c100 = arith.constant 100 : index
    %434 = memref.load %arg1[%c100] : memref<288xf32, #tpu.memory_space<smem>>
    %435 = vector.broadcast %434 : f32 to vector<16x16xf32>
    %436 = arith.mulf %417, %435 : vector<16x16xf32>
    %437 = arith.addf %403, %436 : vector<16x16xf32>
    %c101 = arith.constant 101 : index
    %438 = memref.load %arg1[%c101] : memref<288xf32, #tpu.memory_space<smem>>
    %439 = vector.broadcast %438 : f32 to vector<16x16xf32>
    %440 = arith.mulf %417, %439 : vector<16x16xf32>
    %441 = arith.addf %407, %440 : vector<16x16xf32>
    %c102 = arith.constant 102 : index
    %442 = memref.load %arg1[%c102] : memref<288xf32, #tpu.memory_space<smem>>
    %443 = vector.broadcast %442 : f32 to vector<16x16xf32>
    %444 = arith.mulf %417, %443 : vector<16x16xf32>
    %445 = arith.addf %411, %444 : vector<16x16xf32>
    %c103 = arith.constant 103 : index
    %446 = memref.load %arg1[%c103] : memref<288xf32, #tpu.memory_space<smem>>
    %447 = vector.broadcast %446 : f32 to vector<16x16xf32>
    %448 = arith.mulf %417, %447 : vector<16x16xf32>
    %449 = arith.addf %415, %448 : vector<16x16xf32>
    %c0_59 = arith.constant 0 : index
    %c1_60 = arith.constant 1 : index
    %c1_61 = arith.constant 1 : index
    %c1_62 = arith.constant 1 : index
    %450 = vector.load %arg3[%c0_59, %c1_60, %c1_61, %c1_62] : memref<1x4x18x18xf32, #tpu.memory_space<vmem>>, vector<1x1x16x16xf32>
    %451 = vector.shape_cast %450 : vector<1x1x16x16xf32> to vector<16x16xf32>
    %c104 = arith.constant 104 : index
    %452 = memref.load %arg1[%c104] : memref<288xf32, #tpu.memory_space<smem>>
    %453 = vector.broadcast %452 : f32 to vector<16x16xf32>
    %454 = arith.mulf %451, %453 : vector<16x16xf32>
    %455 = arith.addf %421, %454 : vector<16x16xf32>
    %c105 = arith.constant 105 : index
    %456 = memref.load %arg1[%c105] : memref<288xf32, #tpu.memory_space<smem>>
    %457 = vector.broadcast %456 : f32 to vector<16x16xf32>
    %458 = arith.mulf %451, %457 : vector<16x16xf32>
    %459 = arith.addf %425, %458 : vector<16x16xf32>
    %c106 = arith.constant 106 : index
    %460 = memref.load %arg1[%c106] : memref<288xf32, #tpu.memory_space<smem>>
    %461 = vector.broadcast %460 : f32 to vector<16x16xf32>
    %462 = arith.mulf %451, %461 : vector<16x16xf32>
    %463 = arith.addf %429, %462 : vector<16x16xf32>
    %c107 = arith.constant 107 : index
    %464 = memref.load %arg1[%c107] : memref<288xf32, #tpu.memory_space<smem>>
    %465 = vector.broadcast %464 : f32 to vector<16x16xf32>
    %466 = arith.mulf %451, %465 : vector<16x16xf32>
    %467 = arith.addf %433, %466 : vector<16x16xf32>
    %c108 = arith.constant 108 : index
    %468 = memref.load %arg1[%c108] : memref<288xf32, #tpu.memory_space<smem>>
    %469 = vector.broadcast %468 : f32 to vector<16x16xf32>
    %470 = arith.mulf %451, %469 : vector<16x16xf32>
    %471 = arith.addf %437, %470 : vector<16x16xf32>
    %c109 = arith.constant 109 : index
    %472 = memref.load %arg1[%c109] : memref<288xf32, #tpu.memory_space<smem>>
    %473 = vector.broadcast %472 : f32 to vector<16x16xf32>
    %474 = arith.mulf %451, %473 : vector<16x16xf32>
    %475 = arith.addf %441, %474 : vector<16x16xf32>
    %c110 = arith.constant 110 : index
    %476 = memref.load %arg1[%c110] : memref<288xf32, #tpu.memory_space<smem>>
    %477 = vector.broadcast %476 : f32 to vector<16x16xf32>
    %478 = arith.mulf %451, %477 : vector<16x16xf32>
    %479 = arith.addf %445, %478 : vector<16x16xf32>
    %c111 = arith.constant 111 : index
    %480 = memref.load %arg1[%c111] : memref<288xf32, #tpu.memory_space<smem>>
    %481 = vector.broadcast %480 : f32 to vector<16x16xf32>
    %482 = arith.mulf %451, %481 : vector<16x16xf32>
    %483 = arith.addf %449, %482 : vector<16x16xf32>
    %c0_63 = arith.constant 0 : index
    %c1_64 = arith.constant 1 : index
    %c1_65 = arith.constant 1 : index
    %c2_66 = arith.constant 2 : index
    %484 = vector.load %arg3[%c0_63, %c1_64, %c1_65, %c2_66] : memref<1x4x18x18xf32, #tpu.memory_space<vmem>>, vector<1x1x16x16xf32>
    %485 = vector.shape_cast %484 : vector<1x1x16x16xf32> to vector<16x16xf32>
    %c112 = arith.constant 112 : index
    %486 = memref.load %arg1[%c112] : memref<288xf32, #tpu.memory_space<smem>>
    %487 = vector.broadcast %486 : f32 to vector<16x16xf32>
    %488 = arith.mulf %485, %487 : vector<16x16xf32>
    %489 = arith.addf %455, %488 : vector<16x16xf32>
    %c113 = arith.constant 113 : index
    %490 = memref.load %arg1[%c113] : memref<288xf32, #tpu.memory_space<smem>>
    %491 = vector.broadcast %490 : f32 to vector<16x16xf32>
    %492 = arith.mulf %485, %491 : vector<16x16xf32>
    %493 = arith.addf %459, %492 : vector<16x16xf32>
    %c114 = arith.constant 114 : index
    %494 = memref.load %arg1[%c114] : memref<288xf32, #tpu.memory_space<smem>>
    %495 = vector.broadcast %494 : f32 to vector<16x16xf32>
    %496 = arith.mulf %485, %495 : vector<16x16xf32>
    %497 = arith.addf %463, %496 : vector<16x16xf32>
    %c115 = arith.constant 115 : index
    %498 = memref.load %arg1[%c115] : memref<288xf32, #tpu.memory_space<smem>>
    %499 = vector.broadcast %498 : f32 to vector<16x16xf32>
    %500 = arith.mulf %485, %499 : vector<16x16xf32>
    %501 = arith.addf %467, %500 : vector<16x16xf32>
    %c116 = arith.constant 116 : index
    %502 = memref.load %arg1[%c116] : memref<288xf32, #tpu.memory_space<smem>>
    %503 = vector.broadcast %502 : f32 to vector<16x16xf32>
    %504 = arith.mulf %485, %503 : vector<16x16xf32>
    %505 = arith.addf %471, %504 : vector<16x16xf32>
    %c117 = arith.constant 117 : index
    %506 = memref.load %arg1[%c117] : memref<288xf32, #tpu.memory_space<smem>>
    %507 = vector.broadcast %506 : f32 to vector<16x16xf32>
    %508 = arith.mulf %485, %507 : vector<16x16xf32>
    %509 = arith.addf %475, %508 : vector<16x16xf32>
    %c118 = arith.constant 118 : index
    %510 = memref.load %arg1[%c118] : memref<288xf32, #tpu.memory_space<smem>>
    %511 = vector.broadcast %510 : f32 to vector<16x16xf32>
    %512 = arith.mulf %485, %511 : vector<16x16xf32>
    %513 = arith.addf %479, %512 : vector<16x16xf32>
    %c119 = arith.constant 119 : index
    %514 = memref.load %arg1[%c119] : memref<288xf32, #tpu.memory_space<smem>>
    %515 = vector.broadcast %514 : f32 to vector<16x16xf32>
    %516 = arith.mulf %485, %515 : vector<16x16xf32>
    %517 = arith.addf %483, %516 : vector<16x16xf32>
    %c0_67 = arith.constant 0 : index
    %c1_68 = arith.constant 1 : index
    %c2_69 = arith.constant 2 : index
    %c0_70 = arith.constant 0 : index
    %518 = vector.load %arg3[%c0_67, %c1_68, %c2_69, %c0_70] : memref<1x4x18x18xf32, #tpu.memory_space<vmem>>, vector<1x1x16x16xf32>
    %519 = vector.shape_cast %518 : vector<1x1x16x16xf32> to vector<16x16xf32>
    %c120 = arith.constant 120 : index
    %520 = memref.load %arg1[%c120] : memref<288xf32, #tpu.memory_space<smem>>
    %521 = vector.broadcast %520 : f32 to vector<16x16xf32>
    %522 = arith.mulf %519, %521 : vector<16x16xf32>
    %523 = arith.addf %489, %522 : vector<16x16xf32>
    %c121 = arith.constant 121 : index
    %524 = memref.load %arg1[%c121] : memref<288xf32, #tpu.memory_space<smem>>
    %525 = vector.broadcast %524 : f32 to vector<16x16xf32>
    %526 = arith.mulf %519, %525 : vector<16x16xf32>
    %527 = arith.addf %493, %526 : vector<16x16xf32>
    %c122 = arith.constant 122 : index
    %528 = memref.load %arg1[%c122] : memref<288xf32, #tpu.memory_space<smem>>
    %529 = vector.broadcast %528 : f32 to vector<16x16xf32>
    %530 = arith.mulf %519, %529 : vector<16x16xf32>
    %531 = arith.addf %497, %530 : vector<16x16xf32>
    %c123 = arith.constant 123 : index
    %532 = memref.load %arg1[%c123] : memref<288xf32, #tpu.memory_space<smem>>
    %533 = vector.broadcast %532 : f32 to vector<16x16xf32>
    %534 = arith.mulf %519, %533 : vector<16x16xf32>
    %535 = arith.addf %501, %534 : vector<16x16xf32>
    %c124 = arith.constant 124 : index
    %536 = memref.load %arg1[%c124] : memref<288xf32, #tpu.memory_space<smem>>
    %537 = vector.broadcast %536 : f32 to vector<16x16xf32>
    %538 = arith.mulf %519, %537 : vector<16x16xf32>
    %539 = arith.addf %505, %538 : vector<16x16xf32>
    %c125 = arith.constant 125 : index
    %540 = memref.load %arg1[%c125] : memref<288xf32, #tpu.memory_space<smem>>
    %541 = vector.broadcast %540 : f32 to vector<16x16xf32>
    %542 = arith.mulf %519, %541 : vector<16x16xf32>
    %543 = arith.addf %509, %542 : vector<16x16xf32>
    %c126 = arith.constant 126 : index
    %544 = memref.load %arg1[%c126] : memref<288xf32, #tpu.memory_space<smem>>
    %545 = vector.broadcast %544 : f32 to vector<16x16xf32>
    %546 = arith.mulf %519, %545 : vector<16x16xf32>
    %547 = arith.addf %513, %546 : vector<16x16xf32>
    %c127 = arith.constant 127 : index
    %548 = memref.load %arg1[%c127] : memref<288xf32, #tpu.memory_space<smem>>
    %549 = vector.broadcast %548 : f32 to vector<16x16xf32>
    %550 = arith.mulf %519, %549 : vector<16x16xf32>
    %551 = arith.addf %517, %550 : vector<16x16xf32>
    %c0_71 = arith.constant 0 : index
    %c1_72 = arith.constant 1 : index
    %c2_73 = arith.constant 2 : index
    %c1_74 = arith.constant 1 : index
    %552 = vector.load %arg3[%c0_71, %c1_72, %c2_73, %c1_74] : memref<1x4x18x18xf32, #tpu.memory_space<vmem>>, vector<1x1x16x16xf32>
    %553 = vector.shape_cast %552 : vector<1x1x16x16xf32> to vector<16x16xf32>
    %c128 = arith.constant 128 : index
    %554 = memref.load %arg1[%c128] : memref<288xf32, #tpu.memory_space<smem>>
    %555 = vector.broadcast %554 : f32 to vector<16x16xf32>
    %556 = arith.mulf %553, %555 : vector<16x16xf32>
    %557 = arith.addf %523, %556 : vector<16x16xf32>
    %c129 = arith.constant 129 : index
    %558 = memref.load %arg1[%c129] : memref<288xf32, #tpu.memory_space<smem>>
    %559 = vector.broadcast %558 : f32 to vector<16x16xf32>
    %560 = arith.mulf %553, %559 : vector<16x16xf32>
    %561 = arith.addf %527, %560 : vector<16x16xf32>
    %c130 = arith.constant 130 : index
    %562 = memref.load %arg1[%c130] : memref<288xf32, #tpu.memory_space<smem>>
    %563 = vector.broadcast %562 : f32 to vector<16x16xf32>
    %564 = arith.mulf %553, %563 : vector<16x16xf32>
    %565 = arith.addf %531, %564 : vector<16x16xf32>
    %c131 = arith.constant 131 : index
    %566 = memref.load %arg1[%c131] : memref<288xf32, #tpu.memory_space<smem>>
    %567 = vector.broadcast %566 : f32 to vector<16x16xf32>
    %568 = arith.mulf %553, %567 : vector<16x16xf32>
    %569 = arith.addf %535, %568 : vector<16x16xf32>
    %c132 = arith.constant 132 : index
    %570 = memref.load %arg1[%c132] : memref<288xf32, #tpu.memory_space<smem>>
    %571 = vector.broadcast %570 : f32 to vector<16x16xf32>
    %572 = arith.mulf %553, %571 : vector<16x16xf32>
    %573 = arith.addf %539, %572 : vector<16x16xf32>
    %c133 = arith.constant 133 : index
    %574 = memref.load %arg1[%c133] : memref<288xf32, #tpu.memory_space<smem>>
    %575 = vector.broadcast %574 : f32 to vector<16x16xf32>
    %576 = arith.mulf %553, %575 : vector<16x16xf32>
    %577 = arith.addf %543, %576 : vector<16x16xf32>
    %c134 = arith.constant 134 : index
    %578 = memref.load %arg1[%c134] : memref<288xf32, #tpu.memory_space<smem>>
    %579 = vector.broadcast %578 : f32 to vector<16x16xf32>
    %580 = arith.mulf %553, %579 : vector<16x16xf32>
    %581 = arith.addf %547, %580 : vector<16x16xf32>
    %c135 = arith.constant 135 : index
    %582 = memref.load %arg1[%c135] : memref<288xf32, #tpu.memory_space<smem>>
    %583 = vector.broadcast %582 : f32 to vector<16x16xf32>
    %584 = arith.mulf %553, %583 : vector<16x16xf32>
    %585 = arith.addf %551, %584 : vector<16x16xf32>
    %c0_75 = arith.constant 0 : index
    %c1_76 = arith.constant 1 : index
    %c2_77 = arith.constant 2 : index
    %c2_78 = arith.constant 2 : index
    %586 = vector.load %arg3[%c0_75, %c1_76, %c2_77, %c2_78] : memref<1x4x18x18xf32, #tpu.memory_space<vmem>>, vector<1x1x16x16xf32>
    %587 = vector.shape_cast %586 : vector<1x1x16x16xf32> to vector<16x16xf32>
    %c136 = arith.constant 136 : index
    %588 = memref.load %arg1[%c136] : memref<288xf32, #tpu.memory_space<smem>>
    %589 = vector.broadcast %588 : f32 to vector<16x16xf32>
    %590 = arith.mulf %587, %589 : vector<16x16xf32>
    %591 = arith.addf %557, %590 : vector<16x16xf32>
    %c137 = arith.constant 137 : index
    %592 = memref.load %arg1[%c137] : memref<288xf32, #tpu.memory_space<smem>>
    %593 = vector.broadcast %592 : f32 to vector<16x16xf32>
    %594 = arith.mulf %587, %593 : vector<16x16xf32>
    %595 = arith.addf %561, %594 : vector<16x16xf32>
    %c138 = arith.constant 138 : index
    %596 = memref.load %arg1[%c138] : memref<288xf32, #tpu.memory_space<smem>>
    %597 = vector.broadcast %596 : f32 to vector<16x16xf32>
    %598 = arith.mulf %587, %597 : vector<16x16xf32>
    %599 = arith.addf %565, %598 : vector<16x16xf32>
    %c139 = arith.constant 139 : index
    %600 = memref.load %arg1[%c139] : memref<288xf32, #tpu.memory_space<smem>>
    %601 = vector.broadcast %600 : f32 to vector<16x16xf32>
    %602 = arith.mulf %587, %601 : vector<16x16xf32>
    %603 = arith.addf %569, %602 : vector<16x16xf32>
    %c140 = arith.constant 140 : index
    %604 = memref.load %arg1[%c140] : memref<288xf32, #tpu.memory_space<smem>>
    %605 = vector.broadcast %604 : f32 to vector<16x16xf32>
    %606 = arith.mulf %587, %605 : vector<16x16xf32>
    %607 = arith.addf %573, %606 : vector<16x16xf32>
    %c141 = arith.constant 141 : index
    %608 = memref.load %arg1[%c141] : memref<288xf32, #tpu.memory_space<smem>>
    %609 = vector.broadcast %608 : f32 to vector<16x16xf32>
    %610 = arith.mulf %587, %609 : vector<16x16xf32>
    %611 = arith.addf %577, %610 : vector<16x16xf32>
    %c142 = arith.constant 142 : index
    %612 = memref.load %arg1[%c142] : memref<288xf32, #tpu.memory_space<smem>>
    %613 = vector.broadcast %612 : f32 to vector<16x16xf32>
    %614 = arith.mulf %587, %613 : vector<16x16xf32>
    %615 = arith.addf %581, %614 : vector<16x16xf32>
    %c143 = arith.constant 143 : index
    %616 = memref.load %arg1[%c143] : memref<288xf32, #tpu.memory_space<smem>>
    %617 = vector.broadcast %616 : f32 to vector<16x16xf32>
    %618 = arith.mulf %587, %617 : vector<16x16xf32>
    %619 = arith.addf %585, %618 : vector<16x16xf32>
    %c0_79 = arith.constant 0 : index
    %c2_80 = arith.constant 2 : index
    %c0_81 = arith.constant 0 : index
    %c0_82 = arith.constant 0 : index
    %620 = vector.load %arg3[%c0_79, %c2_80, %c0_81, %c0_82] : memref<1x4x18x18xf32, #tpu.memory_space<vmem>>, vector<1x1x16x16xf32>
    %621 = vector.shape_cast %620 : vector<1x1x16x16xf32> to vector<16x16xf32>
    %c144 = arith.constant 144 : index
    %622 = memref.load %arg1[%c144] : memref<288xf32, #tpu.memory_space<smem>>
    %623 = vector.broadcast %622 : f32 to vector<16x16xf32>
    %624 = arith.mulf %621, %623 : vector<16x16xf32>
    %625 = arith.addf %591, %624 : vector<16x16xf32>
    %c145 = arith.constant 145 : index
    %626 = memref.load %arg1[%c145] : memref<288xf32, #tpu.memory_space<smem>>
    %627 = vector.broadcast %626 : f32 to vector<16x16xf32>
    %628 = arith.mulf %621, %627 : vector<16x16xf32>
    %629 = arith.addf %595, %628 : vector<16x16xf32>
    %c146 = arith.constant 146 : index
    %630 = memref.load %arg1[%c146] : memref<288xf32, #tpu.memory_space<smem>>
    %631 = vector.broadcast %630 : f32 to vector<16x16xf32>
    %632 = arith.mulf %621, %631 : vector<16x16xf32>
    %633 = arith.addf %599, %632 : vector<16x16xf32>
    %c147 = arith.constant 147 : index
    %634 = memref.load %arg1[%c147] : memref<288xf32, #tpu.memory_space<smem>>
    %635 = vector.broadcast %634 : f32 to vector<16x16xf32>
    %636 = arith.mulf %621, %635 : vector<16x16xf32>
    %637 = arith.addf %603, %636 : vector<16x16xf32>
    %c148 = arith.constant 148 : index
    %638 = memref.load %arg1[%c148] : memref<288xf32, #tpu.memory_space<smem>>
    %639 = vector.broadcast %638 : f32 to vector<16x16xf32>
    %640 = arith.mulf %621, %639 : vector<16x16xf32>
    %641 = arith.addf %607, %640 : vector<16x16xf32>
    %c149 = arith.constant 149 : index
    %642 = memref.load %arg1[%c149] : memref<288xf32, #tpu.memory_space<smem>>
    %643 = vector.broadcast %642 : f32 to vector<16x16xf32>
    %644 = arith.mulf %621, %643 : vector<16x16xf32>
    %645 = arith.addf %611, %644 : vector<16x16xf32>
    %c150 = arith.constant 150 : index
    %646 = memref.load %arg1[%c150] : memref<288xf32, #tpu.memory_space<smem>>
    %647 = vector.broadcast %646 : f32 to vector<16x16xf32>
    %648 = arith.mulf %621, %647 : vector<16x16xf32>
    %649 = arith.addf %615, %648 : vector<16x16xf32>
    %c151 = arith.constant 151 : index
    %650 = memref.load %arg1[%c151] : memref<288xf32, #tpu.memory_space<smem>>
    %651 = vector.broadcast %650 : f32 to vector<16x16xf32>
    %652 = arith.mulf %621, %651 : vector<16x16xf32>
    %653 = arith.addf %619, %652 : vector<16x16xf32>
    %c0_83 = arith.constant 0 : index
    %c2_84 = arith.constant 2 : index
    %c0_85 = arith.constant 0 : index
    %c1_86 = arith.constant 1 : index
    %654 = vector.load %arg3[%c0_83, %c2_84, %c0_85, %c1_86] : memref<1x4x18x18xf32, #tpu.memory_space<vmem>>, vector<1x1x16x16xf32>
    %655 = vector.shape_cast %654 : vector<1x1x16x16xf32> to vector<16x16xf32>
    %c152 = arith.constant 152 : index
    %656 = memref.load %arg1[%c152] : memref<288xf32, #tpu.memory_space<smem>>
    %657 = vector.broadcast %656 : f32 to vector<16x16xf32>
    %658 = arith.mulf %655, %657 : vector<16x16xf32>
    %659 = arith.addf %625, %658 : vector<16x16xf32>
    %c153 = arith.constant 153 : index
    %660 = memref.load %arg1[%c153] : memref<288xf32, #tpu.memory_space<smem>>
    %661 = vector.broadcast %660 : f32 to vector<16x16xf32>
    %662 = arith.mulf %655, %661 : vector<16x16xf32>
    %663 = arith.addf %629, %662 : vector<16x16xf32>
    %c154 = arith.constant 154 : index
    %664 = memref.load %arg1[%c154] : memref<288xf32, #tpu.memory_space<smem>>
    %665 = vector.broadcast %664 : f32 to vector<16x16xf32>
    %666 = arith.mulf %655, %665 : vector<16x16xf32>
    %667 = arith.addf %633, %666 : vector<16x16xf32>
    %c155 = arith.constant 155 : index
    %668 = memref.load %arg1[%c155] : memref<288xf32, #tpu.memory_space<smem>>
    %669 = vector.broadcast %668 : f32 to vector<16x16xf32>
    %670 = arith.mulf %655, %669 : vector<16x16xf32>
    %671 = arith.addf %637, %670 : vector<16x16xf32>
    %c156 = arith.constant 156 : index
    %672 = memref.load %arg1[%c156] : memref<288xf32, #tpu.memory_space<smem>>
    %673 = vector.broadcast %672 : f32 to vector<16x16xf32>
    %674 = arith.mulf %655, %673 : vector<16x16xf32>
    %675 = arith.addf %641, %674 : vector<16x16xf32>
    %c157 = arith.constant 157 : index
    %676 = memref.load %arg1[%c157] : memref<288xf32, #tpu.memory_space<smem>>
    %677 = vector.broadcast %676 : f32 to vector<16x16xf32>
    %678 = arith.mulf %655, %677 : vector<16x16xf32>
    %679 = arith.addf %645, %678 : vector<16x16xf32>
    %c158 = arith.constant 158 : index
    %680 = memref.load %arg1[%c158] : memref<288xf32, #tpu.memory_space<smem>>
    %681 = vector.broadcast %680 : f32 to vector<16x16xf32>
    %682 = arith.mulf %655, %681 : vector<16x16xf32>
    %683 = arith.addf %649, %682 : vector<16x16xf32>
    %c159 = arith.constant 159 : index
    %684 = memref.load %arg1[%c159] : memref<288xf32, #tpu.memory_space<smem>>
    %685 = vector.broadcast %684 : f32 to vector<16x16xf32>
    %686 = arith.mulf %655, %685 : vector<16x16xf32>
    %687 = arith.addf %653, %686 : vector<16x16xf32>
    %c0_87 = arith.constant 0 : index
    %c2_88 = arith.constant 2 : index
    %c0_89 = arith.constant 0 : index
    %c2_90 = arith.constant 2 : index
    %688 = vector.load %arg3[%c0_87, %c2_88, %c0_89, %c2_90] : memref<1x4x18x18xf32, #tpu.memory_space<vmem>>, vector<1x1x16x16xf32>
    %689 = vector.shape_cast %688 : vector<1x1x16x16xf32> to vector<16x16xf32>
    %c160 = arith.constant 160 : index
    %690 = memref.load %arg1[%c160] : memref<288xf32, #tpu.memory_space<smem>>
    %691 = vector.broadcast %690 : f32 to vector<16x16xf32>
    %692 = arith.mulf %689, %691 : vector<16x16xf32>
    %693 = arith.addf %659, %692 : vector<16x16xf32>
    %c161 = arith.constant 161 : index
    %694 = memref.load %arg1[%c161] : memref<288xf32, #tpu.memory_space<smem>>
    %695 = vector.broadcast %694 : f32 to vector<16x16xf32>
    %696 = arith.mulf %689, %695 : vector<16x16xf32>
    %697 = arith.addf %663, %696 : vector<16x16xf32>
    %c162 = arith.constant 162 : index
    %698 = memref.load %arg1[%c162] : memref<288xf32, #tpu.memory_space<smem>>
    %699 = vector.broadcast %698 : f32 to vector<16x16xf32>
    %700 = arith.mulf %689, %699 : vector<16x16xf32>
    %701 = arith.addf %667, %700 : vector<16x16xf32>
    %c163 = arith.constant 163 : index
    %702 = memref.load %arg1[%c163] : memref<288xf32, #tpu.memory_space<smem>>
    %703 = vector.broadcast %702 : f32 to vector<16x16xf32>
    %704 = arith.mulf %689, %703 : vector<16x16xf32>
    %705 = arith.addf %671, %704 : vector<16x16xf32>
    %c164 = arith.constant 164 : index
    %706 = memref.load %arg1[%c164] : memref<288xf32, #tpu.memory_space<smem>>
    %707 = vector.broadcast %706 : f32 to vector<16x16xf32>
    %708 = arith.mulf %689, %707 : vector<16x16xf32>
    %709 = arith.addf %675, %708 : vector<16x16xf32>
    %c165 = arith.constant 165 : index
    %710 = memref.load %arg1[%c165] : memref<288xf32, #tpu.memory_space<smem>>
    %711 = vector.broadcast %710 : f32 to vector<16x16xf32>
    %712 = arith.mulf %689, %711 : vector<16x16xf32>
    %713 = arith.addf %679, %712 : vector<16x16xf32>
    %c166 = arith.constant 166 : index
    %714 = memref.load %arg1[%c166] : memref<288xf32, #tpu.memory_space<smem>>
    %715 = vector.broadcast %714 : f32 to vector<16x16xf32>
    %716 = arith.mulf %689, %715 : vector<16x16xf32>
    %717 = arith.addf %683, %716 : vector<16x16xf32>
    %c167 = arith.constant 167 : index
    %718 = memref.load %arg1[%c167] : memref<288xf32, #tpu.memory_space<smem>>
    %719 = vector.broadcast %718 : f32 to vector<16x16xf32>
    %720 = arith.mulf %689, %719 : vector<16x16xf32>
    %721 = arith.addf %687, %720 : vector<16x16xf32>
    %c0_91 = arith.constant 0 : index
    %c2_92 = arith.constant 2 : index
    %c1_93 = arith.constant 1 : index
    %c0_94 = arith.constant 0 : index
    %722 = vector.load %arg3[%c0_91, %c2_92, %c1_93, %c0_94] : memref<1x4x18x18xf32, #tpu.memory_space<vmem>>, vector<1x1x16x16xf32>
    %723 = vector.shape_cast %722 : vector<1x1x16x16xf32> to vector<16x16xf32>
    %c168 = arith.constant 168 : index
    %724 = memref.load %arg1[%c168] : memref<288xf32, #tpu.memory_space<smem>>
    %725 = vector.broadcast %724 : f32 to vector<16x16xf32>
    %726 = arith.mulf %723, %725 : vector<16x16xf32>
    %727 = arith.addf %693, %726 : vector<16x16xf32>
    %c169 = arith.constant 169 : index
    %728 = memref.load %arg1[%c169] : memref<288xf32, #tpu.memory_space<smem>>
    %729 = vector.broadcast %728 : f32 to vector<16x16xf32>
    %730 = arith.mulf %723, %729 : vector<16x16xf32>
    %731 = arith.addf %697, %730 : vector<16x16xf32>
    %c170 = arith.constant 170 : index
    %732 = memref.load %arg1[%c170] : memref<288xf32, #tpu.memory_space<smem>>
    %733 = vector.broadcast %732 : f32 to vector<16x16xf32>
    %734 = arith.mulf %723, %733 : vector<16x16xf32>
    %735 = arith.addf %701, %734 : vector<16x16xf32>
    %c171 = arith.constant 171 : index
    %736 = memref.load %arg1[%c171] : memref<288xf32, #tpu.memory_space<smem>>
    %737 = vector.broadcast %736 : f32 to vector<16x16xf32>
    %738 = arith.mulf %723, %737 : vector<16x16xf32>
    %739 = arith.addf %705, %738 : vector<16x16xf32>
    %c172 = arith.constant 172 : index
    %740 = memref.load %arg1[%c172] : memref<288xf32, #tpu.memory_space<smem>>
    %741 = vector.broadcast %740 : f32 to vector<16x16xf32>
    %742 = arith.mulf %723, %741 : vector<16x16xf32>
    %743 = arith.addf %709, %742 : vector<16x16xf32>
    %c173 = arith.constant 173 : index
    %744 = memref.load %arg1[%c173] : memref<288xf32, #tpu.memory_space<smem>>
    %745 = vector.broadcast %744 : f32 to vector<16x16xf32>
    %746 = arith.mulf %723, %745 : vector<16x16xf32>
    %747 = arith.addf %713, %746 : vector<16x16xf32>
    %c174 = arith.constant 174 : index
    %748 = memref.load %arg1[%c174] : memref<288xf32, #tpu.memory_space<smem>>
    %749 = vector.broadcast %748 : f32 to vector<16x16xf32>
    %750 = arith.mulf %723, %749 : vector<16x16xf32>
    %751 = arith.addf %717, %750 : vector<16x16xf32>
    %c175 = arith.constant 175 : index
    %752 = memref.load %arg1[%c175] : memref<288xf32, #tpu.memory_space<smem>>
    %753 = vector.broadcast %752 : f32 to vector<16x16xf32>
    %754 = arith.mulf %723, %753 : vector<16x16xf32>
    %755 = arith.addf %721, %754 : vector<16x16xf32>
    %c0_95 = arith.constant 0 : index
    %c2_96 = arith.constant 2 : index
    %c1_97 = arith.constant 1 : index
    %c1_98 = arith.constant 1 : index
    %756 = vector.load %arg3[%c0_95, %c2_96, %c1_97, %c1_98] : memref<1x4x18x18xf32, #tpu.memory_space<vmem>>, vector<1x1x16x16xf32>
    %757 = vector.shape_cast %756 : vector<1x1x16x16xf32> to vector<16x16xf32>
    %c176 = arith.constant 176 : index
    %758 = memref.load %arg1[%c176] : memref<288xf32, #tpu.memory_space<smem>>
    %759 = vector.broadcast %758 : f32 to vector<16x16xf32>
    %760 = arith.mulf %757, %759 : vector<16x16xf32>
    %761 = arith.addf %727, %760 : vector<16x16xf32>
    %c177 = arith.constant 177 : index
    %762 = memref.load %arg1[%c177] : memref<288xf32, #tpu.memory_space<smem>>
    %763 = vector.broadcast %762 : f32 to vector<16x16xf32>
    %764 = arith.mulf %757, %763 : vector<16x16xf32>
    %765 = arith.addf %731, %764 : vector<16x16xf32>
    %c178 = arith.constant 178 : index
    %766 = memref.load %arg1[%c178] : memref<288xf32, #tpu.memory_space<smem>>
    %767 = vector.broadcast %766 : f32 to vector<16x16xf32>
    %768 = arith.mulf %757, %767 : vector<16x16xf32>
    %769 = arith.addf %735, %768 : vector<16x16xf32>
    %c179 = arith.constant 179 : index
    %770 = memref.load %arg1[%c179] : memref<288xf32, #tpu.memory_space<smem>>
    %771 = vector.broadcast %770 : f32 to vector<16x16xf32>
    %772 = arith.mulf %757, %771 : vector<16x16xf32>
    %773 = arith.addf %739, %772 : vector<16x16xf32>
    %c180 = arith.constant 180 : index
    %774 = memref.load %arg1[%c180] : memref<288xf32, #tpu.memory_space<smem>>
    %775 = vector.broadcast %774 : f32 to vector<16x16xf32>
    %776 = arith.mulf %757, %775 : vector<16x16xf32>
    %777 = arith.addf %743, %776 : vector<16x16xf32>
    %c181 = arith.constant 181 : index
    %778 = memref.load %arg1[%c181] : memref<288xf32, #tpu.memory_space<smem>>
    %779 = vector.broadcast %778 : f32 to vector<16x16xf32>
    %780 = arith.mulf %757, %779 : vector<16x16xf32>
    %781 = arith.addf %747, %780 : vector<16x16xf32>
    %c182 = arith.constant 182 : index
    %782 = memref.load %arg1[%c182] : memref<288xf32, #tpu.memory_space<smem>>
    %783 = vector.broadcast %782 : f32 to vector<16x16xf32>
    %784 = arith.mulf %757, %783 : vector<16x16xf32>
    %785 = arith.addf %751, %784 : vector<16x16xf32>
    %c183 = arith.constant 183 : index
    %786 = memref.load %arg1[%c183] : memref<288xf32, #tpu.memory_space<smem>>
    %787 = vector.broadcast %786 : f32 to vector<16x16xf32>
    %788 = arith.mulf %757, %787 : vector<16x16xf32>
    %789 = arith.addf %755, %788 : vector<16x16xf32>
    %c0_99 = arith.constant 0 : index
    %c2_100 = arith.constant 2 : index
    %c1_101 = arith.constant 1 : index
    %c2_102 = arith.constant 2 : index
    %790 = vector.load %arg3[%c0_99, %c2_100, %c1_101, %c2_102] : memref<1x4x18x18xf32, #tpu.memory_space<vmem>>, vector<1x1x16x16xf32>
    %791 = vector.shape_cast %790 : vector<1x1x16x16xf32> to vector<16x16xf32>
    %c184 = arith.constant 184 : index
    %792 = memref.load %arg1[%c184] : memref<288xf32, #tpu.memory_space<smem>>
    %793 = vector.broadcast %792 : f32 to vector<16x16xf32>
    %794 = arith.mulf %791, %793 : vector<16x16xf32>
    %795 = arith.addf %761, %794 : vector<16x16xf32>
    %c185 = arith.constant 185 : index
    %796 = memref.load %arg1[%c185] : memref<288xf32, #tpu.memory_space<smem>>
    %797 = vector.broadcast %796 : f32 to vector<16x16xf32>
    %798 = arith.mulf %791, %797 : vector<16x16xf32>
    %799 = arith.addf %765, %798 : vector<16x16xf32>
    %c186 = arith.constant 186 : index
    %800 = memref.load %arg1[%c186] : memref<288xf32, #tpu.memory_space<smem>>
    %801 = vector.broadcast %800 : f32 to vector<16x16xf32>
    %802 = arith.mulf %791, %801 : vector<16x16xf32>
    %803 = arith.addf %769, %802 : vector<16x16xf32>
    %c187 = arith.constant 187 : index
    %804 = memref.load %arg1[%c187] : memref<288xf32, #tpu.memory_space<smem>>
    %805 = vector.broadcast %804 : f32 to vector<16x16xf32>
    %806 = arith.mulf %791, %805 : vector<16x16xf32>
    %807 = arith.addf %773, %806 : vector<16x16xf32>
    %c188 = arith.constant 188 : index
    %808 = memref.load %arg1[%c188] : memref<288xf32, #tpu.memory_space<smem>>
    %809 = vector.broadcast %808 : f32 to vector<16x16xf32>
    %810 = arith.mulf %791, %809 : vector<16x16xf32>
    %811 = arith.addf %777, %810 : vector<16x16xf32>
    %c189 = arith.constant 189 : index
    %812 = memref.load %arg1[%c189] : memref<288xf32, #tpu.memory_space<smem>>
    %813 = vector.broadcast %812 : f32 to vector<16x16xf32>
    %814 = arith.mulf %791, %813 : vector<16x16xf32>
    %815 = arith.addf %781, %814 : vector<16x16xf32>
    %c190 = arith.constant 190 : index
    %816 = memref.load %arg1[%c190] : memref<288xf32, #tpu.memory_space<smem>>
    %817 = vector.broadcast %816 : f32 to vector<16x16xf32>
    %818 = arith.mulf %791, %817 : vector<16x16xf32>
    %819 = arith.addf %785, %818 : vector<16x16xf32>
    %c191 = arith.constant 191 : index
    %820 = memref.load %arg1[%c191] : memref<288xf32, #tpu.memory_space<smem>>
    %821 = vector.broadcast %820 : f32 to vector<16x16xf32>
    %822 = arith.mulf %791, %821 : vector<16x16xf32>
    %823 = arith.addf %789, %822 : vector<16x16xf32>
    %c0_103 = arith.constant 0 : index
    %c2_104 = arith.constant 2 : index
    %c2_105 = arith.constant 2 : index
    %c0_106 = arith.constant 0 : index
    %824 = vector.load %arg3[%c0_103, %c2_104, %c2_105, %c0_106] : memref<1x4x18x18xf32, #tpu.memory_space<vmem>>, vector<1x1x16x16xf32>
    %825 = vector.shape_cast %824 : vector<1x1x16x16xf32> to vector<16x16xf32>
    %c192 = arith.constant 192 : index
    %826 = memref.load %arg1[%c192] : memref<288xf32, #tpu.memory_space<smem>>
    %827 = vector.broadcast %826 : f32 to vector<16x16xf32>
    %828 = arith.mulf %825, %827 : vector<16x16xf32>
    %829 = arith.addf %795, %828 : vector<16x16xf32>
    %c193 = arith.constant 193 : index
    %830 = memref.load %arg1[%c193] : memref<288xf32, #tpu.memory_space<smem>>
    %831 = vector.broadcast %830 : f32 to vector<16x16xf32>
    %832 = arith.mulf %825, %831 : vector<16x16xf32>
    %833 = arith.addf %799, %832 : vector<16x16xf32>
    %c194 = arith.constant 194 : index
    %834 = memref.load %arg1[%c194] : memref<288xf32, #tpu.memory_space<smem>>
    %835 = vector.broadcast %834 : f32 to vector<16x16xf32>
    %836 = arith.mulf %825, %835 : vector<16x16xf32>
    %837 = arith.addf %803, %836 : vector<16x16xf32>
    %c195 = arith.constant 195 : index
    %838 = memref.load %arg1[%c195] : memref<288xf32, #tpu.memory_space<smem>>
    %839 = vector.broadcast %838 : f32 to vector<16x16xf32>
    %840 = arith.mulf %825, %839 : vector<16x16xf32>
    %841 = arith.addf %807, %840 : vector<16x16xf32>
    %c196 = arith.constant 196 : index
    %842 = memref.load %arg1[%c196] : memref<288xf32, #tpu.memory_space<smem>>
    %843 = vector.broadcast %842 : f32 to vector<16x16xf32>
    %844 = arith.mulf %825, %843 : vector<16x16xf32>
    %845 = arith.addf %811, %844 : vector<16x16xf32>
    %c197 = arith.constant 197 : index
    %846 = memref.load %arg1[%c197] : memref<288xf32, #tpu.memory_space<smem>>
    %847 = vector.broadcast %846 : f32 to vector<16x16xf32>
    %848 = arith.mulf %825, %847 : vector<16x16xf32>
    %849 = arith.addf %815, %848 : vector<16x16xf32>
    %c198 = arith.constant 198 : index
    %850 = memref.load %arg1[%c198] : memref<288xf32, #tpu.memory_space<smem>>
    %851 = vector.broadcast %850 : f32 to vector<16x16xf32>
    %852 = arith.mulf %825, %851 : vector<16x16xf32>
    %853 = arith.addf %819, %852 : vector<16x16xf32>
    %c199 = arith.constant 199 : index
    %854 = memref.load %arg1[%c199] : memref<288xf32, #tpu.memory_space<smem>>
    %855 = vector.broadcast %854 : f32 to vector<16x16xf32>
    %856 = arith.mulf %825, %855 : vector<16x16xf32>
    %857 = arith.addf %823, %856 : vector<16x16xf32>
    %c0_107 = arith.constant 0 : index
    %c2_108 = arith.constant 2 : index
    %c2_109 = arith.constant 2 : index
    %c1_110 = arith.constant 1 : index
    %858 = vector.load %arg3[%c0_107, %c2_108, %c2_109, %c1_110] : memref<1x4x18x18xf32, #tpu.memory_space<vmem>>, vector<1x1x16x16xf32>
    %859 = vector.shape_cast %858 : vector<1x1x16x16xf32> to vector<16x16xf32>
    %c200 = arith.constant 200 : index
    %860 = memref.load %arg1[%c200] : memref<288xf32, #tpu.memory_space<smem>>
    %861 = vector.broadcast %860 : f32 to vector<16x16xf32>
    %862 = arith.mulf %859, %861 : vector<16x16xf32>
    %863 = arith.addf %829, %862 : vector<16x16xf32>
    %c201 = arith.constant 201 : index
    %864 = memref.load %arg1[%c201] : memref<288xf32, #tpu.memory_space<smem>>
    %865 = vector.broadcast %864 : f32 to vector<16x16xf32>
    %866 = arith.mulf %859, %865 : vector<16x16xf32>
    %867 = arith.addf %833, %866 : vector<16x16xf32>
    %c202 = arith.constant 202 : index
    %868 = memref.load %arg1[%c202] : memref<288xf32, #tpu.memory_space<smem>>
    %869 = vector.broadcast %868 : f32 to vector<16x16xf32>
    %870 = arith.mulf %859, %869 : vector<16x16xf32>
    %871 = arith.addf %837, %870 : vector<16x16xf32>
    %c203 = arith.constant 203 : index
    %872 = memref.load %arg1[%c203] : memref<288xf32, #tpu.memory_space<smem>>
    %873 = vector.broadcast %872 : f32 to vector<16x16xf32>
    %874 = arith.mulf %859, %873 : vector<16x16xf32>
    %875 = arith.addf %841, %874 : vector<16x16xf32>
    %c204 = arith.constant 204 : index
    %876 = memref.load %arg1[%c204] : memref<288xf32, #tpu.memory_space<smem>>
    %877 = vector.broadcast %876 : f32 to vector<16x16xf32>
    %878 = arith.mulf %859, %877 : vector<16x16xf32>
    %879 = arith.addf %845, %878 : vector<16x16xf32>
    %c205 = arith.constant 205 : index
    %880 = memref.load %arg1[%c205] : memref<288xf32, #tpu.memory_space<smem>>
    %881 = vector.broadcast %880 : f32 to vector<16x16xf32>
    %882 = arith.mulf %859, %881 : vector<16x16xf32>
    %883 = arith.addf %849, %882 : vector<16x16xf32>
    %c206 = arith.constant 206 : index
    %884 = memref.load %arg1[%c206] : memref<288xf32, #tpu.memory_space<smem>>
    %885 = vector.broadcast %884 : f32 to vector<16x16xf32>
    %886 = arith.mulf %859, %885 : vector<16x16xf32>
    %887 = arith.addf %853, %886 : vector<16x16xf32>
    %c207 = arith.constant 207 : index
    %888 = memref.load %arg1[%c207] : memref<288xf32, #tpu.memory_space<smem>>
    %889 = vector.broadcast %888 : f32 to vector<16x16xf32>
    %890 = arith.mulf %859, %889 : vector<16x16xf32>
    %891 = arith.addf %857, %890 : vector<16x16xf32>
    %c0_111 = arith.constant 0 : index
    %c2_112 = arith.constant 2 : index
    %c2_113 = arith.constant 2 : index
    %c2_114 = arith.constant 2 : index
    %892 = vector.load %arg3[%c0_111, %c2_112, %c2_113, %c2_114] : memref<1x4x18x18xf32, #tpu.memory_space<vmem>>, vector<1x1x16x16xf32>
    %893 = vector.shape_cast %892 : vector<1x1x16x16xf32> to vector<16x16xf32>
    %c208 = arith.constant 208 : index
    %894 = memref.load %arg1[%c208] : memref<288xf32, #tpu.memory_space<smem>>
    %895 = vector.broadcast %894 : f32 to vector<16x16xf32>
    %896 = arith.mulf %893, %895 : vector<16x16xf32>
    %897 = arith.addf %863, %896 : vector<16x16xf32>
    %c209 = arith.constant 209 : index
    %898 = memref.load %arg1[%c209] : memref<288xf32, #tpu.memory_space<smem>>
    %899 = vector.broadcast %898 : f32 to vector<16x16xf32>
    %900 = arith.mulf %893, %899 : vector<16x16xf32>
    %901 = arith.addf %867, %900 : vector<16x16xf32>
    %c210 = arith.constant 210 : index
    %902 = memref.load %arg1[%c210] : memref<288xf32, #tpu.memory_space<smem>>
    %903 = vector.broadcast %902 : f32 to vector<16x16xf32>
    %904 = arith.mulf %893, %903 : vector<16x16xf32>
    %905 = arith.addf %871, %904 : vector<16x16xf32>
    %c211 = arith.constant 211 : index
    %906 = memref.load %arg1[%c211] : memref<288xf32, #tpu.memory_space<smem>>
    %907 = vector.broadcast %906 : f32 to vector<16x16xf32>
    %908 = arith.mulf %893, %907 : vector<16x16xf32>
    %909 = arith.addf %875, %908 : vector<16x16xf32>
    %c212 = arith.constant 212 : index
    %910 = memref.load %arg1[%c212] : memref<288xf32, #tpu.memory_space<smem>>
    %911 = vector.broadcast %910 : f32 to vector<16x16xf32>
    %912 = arith.mulf %893, %911 : vector<16x16xf32>
    %913 = arith.addf %879, %912 : vector<16x16xf32>
    %c213 = arith.constant 213 : index
    %914 = memref.load %arg1[%c213] : memref<288xf32, #tpu.memory_space<smem>>
    %915 = vector.broadcast %914 : f32 to vector<16x16xf32>
    %916 = arith.mulf %893, %915 : vector<16x16xf32>
    %917 = arith.addf %883, %916 : vector<16x16xf32>
    %c214 = arith.constant 214 : index
    %918 = memref.load %arg1[%c214] : memref<288xf32, #tpu.memory_space<smem>>
    %919 = vector.broadcast %918 : f32 to vector<16x16xf32>
    %920 = arith.mulf %893, %919 : vector<16x16xf32>
    %921 = arith.addf %887, %920 : vector<16x16xf32>
    %c215 = arith.constant 215 : index
    %922 = memref.load %arg1[%c215] : memref<288xf32, #tpu.memory_space<smem>>
    %923 = vector.broadcast %922 : f32 to vector<16x16xf32>
    %924 = arith.mulf %893, %923 : vector<16x16xf32>
    %925 = arith.addf %891, %924 : vector<16x16xf32>
    %c0_115 = arith.constant 0 : index
    %c3_116 = arith.constant 3 : index
    %c0_117 = arith.constant 0 : index
    %c0_118 = arith.constant 0 : index
    %926 = vector.load %arg3[%c0_115, %c3_116, %c0_117, %c0_118] : memref<1x4x18x18xf32, #tpu.memory_space<vmem>>, vector<1x1x16x16xf32>
    %927 = vector.shape_cast %926 : vector<1x1x16x16xf32> to vector<16x16xf32>
    %c216 = arith.constant 216 : index
    %928 = memref.load %arg1[%c216] : memref<288xf32, #tpu.memory_space<smem>>
    %929 = vector.broadcast %928 : f32 to vector<16x16xf32>
    %930 = arith.mulf %927, %929 : vector<16x16xf32>
    %931 = arith.addf %897, %930 : vector<16x16xf32>
    %c217 = arith.constant 217 : index
    %932 = memref.load %arg1[%c217] : memref<288xf32, #tpu.memory_space<smem>>
    %933 = vector.broadcast %932 : f32 to vector<16x16xf32>
    %934 = arith.mulf %927, %933 : vector<16x16xf32>
    %935 = arith.addf %901, %934 : vector<16x16xf32>
    %c218 = arith.constant 218 : index
    %936 = memref.load %arg1[%c218] : memref<288xf32, #tpu.memory_space<smem>>
    %937 = vector.broadcast %936 : f32 to vector<16x16xf32>
    %938 = arith.mulf %927, %937 : vector<16x16xf32>
    %939 = arith.addf %905, %938 : vector<16x16xf32>
    %c219 = arith.constant 219 : index
    %940 = memref.load %arg1[%c219] : memref<288xf32, #tpu.memory_space<smem>>
    %941 = vector.broadcast %940 : f32 to vector<16x16xf32>
    %942 = arith.mulf %927, %941 : vector<16x16xf32>
    %943 = arith.addf %909, %942 : vector<16x16xf32>
    %c220 = arith.constant 220 : index
    %944 = memref.load %arg1[%c220] : memref<288xf32, #tpu.memory_space<smem>>
    %945 = vector.broadcast %944 : f32 to vector<16x16xf32>
    %946 = arith.mulf %927, %945 : vector<16x16xf32>
    %947 = arith.addf %913, %946 : vector<16x16xf32>
    %c221 = arith.constant 221 : index
    %948 = memref.load %arg1[%c221] : memref<288xf32, #tpu.memory_space<smem>>
    %949 = vector.broadcast %948 : f32 to vector<16x16xf32>
    %950 = arith.mulf %927, %949 : vector<16x16xf32>
    %951 = arith.addf %917, %950 : vector<16x16xf32>
    %c222 = arith.constant 222 : index
    %952 = memref.load %arg1[%c222] : memref<288xf32, #tpu.memory_space<smem>>
    %953 = vector.broadcast %952 : f32 to vector<16x16xf32>
    %954 = arith.mulf %927, %953 : vector<16x16xf32>
    %955 = arith.addf %921, %954 : vector<16x16xf32>
    %c223 = arith.constant 223 : index
    %956 = memref.load %arg1[%c223] : memref<288xf32, #tpu.memory_space<smem>>
    %957 = vector.broadcast %956 : f32 to vector<16x16xf32>
    %958 = arith.mulf %927, %957 : vector<16x16xf32>
    %959 = arith.addf %925, %958 : vector<16x16xf32>
    %c0_119 = arith.constant 0 : index
    %c3_120 = arith.constant 3 : index
    %c0_121 = arith.constant 0 : index
    %c1_122 = arith.constant 1 : index
    %960 = vector.load %arg3[%c0_119, %c3_120, %c0_121, %c1_122] : memref<1x4x18x18xf32, #tpu.memory_space<vmem>>, vector<1x1x16x16xf32>
    %961 = vector.shape_cast %960 : vector<1x1x16x16xf32> to vector<16x16xf32>
    %c224 = arith.constant 224 : index
    %962 = memref.load %arg1[%c224] : memref<288xf32, #tpu.memory_space<smem>>
    %963 = vector.broadcast %962 : f32 to vector<16x16xf32>
    %964 = arith.mulf %961, %963 : vector<16x16xf32>
    %965 = arith.addf %931, %964 : vector<16x16xf32>
    %c225 = arith.constant 225 : index
    %966 = memref.load %arg1[%c225] : memref<288xf32, #tpu.memory_space<smem>>
    %967 = vector.broadcast %966 : f32 to vector<16x16xf32>
    %968 = arith.mulf %961, %967 : vector<16x16xf32>
    %969 = arith.addf %935, %968 : vector<16x16xf32>
    %c226 = arith.constant 226 : index
    %970 = memref.load %arg1[%c226] : memref<288xf32, #tpu.memory_space<smem>>
    %971 = vector.broadcast %970 : f32 to vector<16x16xf32>
    %972 = arith.mulf %961, %971 : vector<16x16xf32>
    %973 = arith.addf %939, %972 : vector<16x16xf32>
    %c227 = arith.constant 227 : index
    %974 = memref.load %arg1[%c227] : memref<288xf32, #tpu.memory_space<smem>>
    %975 = vector.broadcast %974 : f32 to vector<16x16xf32>
    %976 = arith.mulf %961, %975 : vector<16x16xf32>
    %977 = arith.addf %943, %976 : vector<16x16xf32>
    %c228 = arith.constant 228 : index
    %978 = memref.load %arg1[%c228] : memref<288xf32, #tpu.memory_space<smem>>
    %979 = vector.broadcast %978 : f32 to vector<16x16xf32>
    %980 = arith.mulf %961, %979 : vector<16x16xf32>
    %981 = arith.addf %947, %980 : vector<16x16xf32>
    %c229 = arith.constant 229 : index
    %982 = memref.load %arg1[%c229] : memref<288xf32, #tpu.memory_space<smem>>
    %983 = vector.broadcast %982 : f32 to vector<16x16xf32>
    %984 = arith.mulf %961, %983 : vector<16x16xf32>
    %985 = arith.addf %951, %984 : vector<16x16xf32>
    %c230 = arith.constant 230 : index
    %986 = memref.load %arg1[%c230] : memref<288xf32, #tpu.memory_space<smem>>
    %987 = vector.broadcast %986 : f32 to vector<16x16xf32>
    %988 = arith.mulf %961, %987 : vector<16x16xf32>
    %989 = arith.addf %955, %988 : vector<16x16xf32>
    %c231 = arith.constant 231 : index
    %990 = memref.load %arg1[%c231] : memref<288xf32, #tpu.memory_space<smem>>
    %991 = vector.broadcast %990 : f32 to vector<16x16xf32>
    %992 = arith.mulf %961, %991 : vector<16x16xf32>
    %993 = arith.addf %959, %992 : vector<16x16xf32>
    %c0_123 = arith.constant 0 : index
    %c3_124 = arith.constant 3 : index
    %c0_125 = arith.constant 0 : index
    %c2_126 = arith.constant 2 : index
    %994 = vector.load %arg3[%c0_123, %c3_124, %c0_125, %c2_126] : memref<1x4x18x18xf32, #tpu.memory_space<vmem>>, vector<1x1x16x16xf32>
    %995 = vector.shape_cast %994 : vector<1x1x16x16xf32> to vector<16x16xf32>
    %c232 = arith.constant 232 : index
    %996 = memref.load %arg1[%c232] : memref<288xf32, #tpu.memory_space<smem>>
    %997 = vector.broadcast %996 : f32 to vector<16x16xf32>
    %998 = arith.mulf %995, %997 : vector<16x16xf32>
    %999 = arith.addf %965, %998 : vector<16x16xf32>
    %c233 = arith.constant 233 : index
    %1000 = memref.load %arg1[%c233] : memref<288xf32, #tpu.memory_space<smem>>
    %1001 = vector.broadcast %1000 : f32 to vector<16x16xf32>
    %1002 = arith.mulf %995, %1001 : vector<16x16xf32>
    %1003 = arith.addf %969, %1002 : vector<16x16xf32>
    %c234 = arith.constant 234 : index
    %1004 = memref.load %arg1[%c234] : memref<288xf32, #tpu.memory_space<smem>>
    %1005 = vector.broadcast %1004 : f32 to vector<16x16xf32>
    %1006 = arith.mulf %995, %1005 : vector<16x16xf32>
    %1007 = arith.addf %973, %1006 : vector<16x16xf32>
    %c235 = arith.constant 235 : index
    %1008 = memref.load %arg1[%c235] : memref<288xf32, #tpu.memory_space<smem>>
    %1009 = vector.broadcast %1008 : f32 to vector<16x16xf32>
    %1010 = arith.mulf %995, %1009 : vector<16x16xf32>
    %1011 = arith.addf %977, %1010 : vector<16x16xf32>
    %c236 = arith.constant 236 : index
    %1012 = memref.load %arg1[%c236] : memref<288xf32, #tpu.memory_space<smem>>
    %1013 = vector.broadcast %1012 : f32 to vector<16x16xf32>
    %1014 = arith.mulf %995, %1013 : vector<16x16xf32>
    %1015 = arith.addf %981, %1014 : vector<16x16xf32>
    %c237 = arith.constant 237 : index
    %1016 = memref.load %arg1[%c237] : memref<288xf32, #tpu.memory_space<smem>>
    %1017 = vector.broadcast %1016 : f32 to vector<16x16xf32>
    %1018 = arith.mulf %995, %1017 : vector<16x16xf32>
    %1019 = arith.addf %985, %1018 : vector<16x16xf32>
    %c238 = arith.constant 238 : index
    %1020 = memref.load %arg1[%c238] : memref<288xf32, #tpu.memory_space<smem>>
    %1021 = vector.broadcast %1020 : f32 to vector<16x16xf32>
    %1022 = arith.mulf %995, %1021 : vector<16x16xf32>
    %1023 = arith.addf %989, %1022 : vector<16x16xf32>
    %c239 = arith.constant 239 : index
    %1024 = memref.load %arg1[%c239] : memref<288xf32, #tpu.memory_space<smem>>
    %1025 = vector.broadcast %1024 : f32 to vector<16x16xf32>
    %1026 = arith.mulf %995, %1025 : vector<16x16xf32>
    %1027 = arith.addf %993, %1026 : vector<16x16xf32>
    %c0_127 = arith.constant 0 : index
    %c3_128 = arith.constant 3 : index
    %c1_129 = arith.constant 1 : index
    %c0_130 = arith.constant 0 : index
    %1028 = vector.load %arg3[%c0_127, %c3_128, %c1_129, %c0_130] : memref<1x4x18x18xf32, #tpu.memory_space<vmem>>, vector<1x1x16x16xf32>
    %1029 = vector.shape_cast %1028 : vector<1x1x16x16xf32> to vector<16x16xf32>
    %c240 = arith.constant 240 : index
    %1030 = memref.load %arg1[%c240] : memref<288xf32, #tpu.memory_space<smem>>
    %1031 = vector.broadcast %1030 : f32 to vector<16x16xf32>
    %1032 = arith.mulf %1029, %1031 : vector<16x16xf32>
    %1033 = arith.addf %999, %1032 : vector<16x16xf32>
    %c241 = arith.constant 241 : index
    %1034 = memref.load %arg1[%c241] : memref<288xf32, #tpu.memory_space<smem>>
    %1035 = vector.broadcast %1034 : f32 to vector<16x16xf32>
    %1036 = arith.mulf %1029, %1035 : vector<16x16xf32>
    %1037 = arith.addf %1003, %1036 : vector<16x16xf32>
    %c242 = arith.constant 242 : index
    %1038 = memref.load %arg1[%c242] : memref<288xf32, #tpu.memory_space<smem>>
    %1039 = vector.broadcast %1038 : f32 to vector<16x16xf32>
    %1040 = arith.mulf %1029, %1039 : vector<16x16xf32>
    %1041 = arith.addf %1007, %1040 : vector<16x16xf32>
    %c243 = arith.constant 243 : index
    %1042 = memref.load %arg1[%c243] : memref<288xf32, #tpu.memory_space<smem>>
    %1043 = vector.broadcast %1042 : f32 to vector<16x16xf32>
    %1044 = arith.mulf %1029, %1043 : vector<16x16xf32>
    %1045 = arith.addf %1011, %1044 : vector<16x16xf32>
    %c244 = arith.constant 244 : index
    %1046 = memref.load %arg1[%c244] : memref<288xf32, #tpu.memory_space<smem>>
    %1047 = vector.broadcast %1046 : f32 to vector<16x16xf32>
    %1048 = arith.mulf %1029, %1047 : vector<16x16xf32>
    %1049 = arith.addf %1015, %1048 : vector<16x16xf32>
    %c245 = arith.constant 245 : index
    %1050 = memref.load %arg1[%c245] : memref<288xf32, #tpu.memory_space<smem>>
    %1051 = vector.broadcast %1050 : f32 to vector<16x16xf32>
    %1052 = arith.mulf %1029, %1051 : vector<16x16xf32>
    %1053 = arith.addf %1019, %1052 : vector<16x16xf32>
    %c246 = arith.constant 246 : index
    %1054 = memref.load %arg1[%c246] : memref<288xf32, #tpu.memory_space<smem>>
    %1055 = vector.broadcast %1054 : f32 to vector<16x16xf32>
    %1056 = arith.mulf %1029, %1055 : vector<16x16xf32>
    %1057 = arith.addf %1023, %1056 : vector<16x16xf32>
    %c247 = arith.constant 247 : index
    %1058 = memref.load %arg1[%c247] : memref<288xf32, #tpu.memory_space<smem>>
    %1059 = vector.broadcast %1058 : f32 to vector<16x16xf32>
    %1060 = arith.mulf %1029, %1059 : vector<16x16xf32>
    %1061 = arith.addf %1027, %1060 : vector<16x16xf32>
    %c0_131 = arith.constant 0 : index
    %c3_132 = arith.constant 3 : index
    %c1_133 = arith.constant 1 : index
    %c1_134 = arith.constant 1 : index
    %1062 = vector.load %arg3[%c0_131, %c3_132, %c1_133, %c1_134] : memref<1x4x18x18xf32, #tpu.memory_space<vmem>>, vector<1x1x16x16xf32>
    %1063 = vector.shape_cast %1062 : vector<1x1x16x16xf32> to vector<16x16xf32>
    %c248 = arith.constant 248 : index
    %1064 = memref.load %arg1[%c248] : memref<288xf32, #tpu.memory_space<smem>>
    %1065 = vector.broadcast %1064 : f32 to vector<16x16xf32>
    %1066 = arith.mulf %1063, %1065 : vector<16x16xf32>
    %1067 = arith.addf %1033, %1066 : vector<16x16xf32>
    %c249 = arith.constant 249 : index
    %1068 = memref.load %arg1[%c249] : memref<288xf32, #tpu.memory_space<smem>>
    %1069 = vector.broadcast %1068 : f32 to vector<16x16xf32>
    %1070 = arith.mulf %1063, %1069 : vector<16x16xf32>
    %1071 = arith.addf %1037, %1070 : vector<16x16xf32>
    %c250 = arith.constant 250 : index
    %1072 = memref.load %arg1[%c250] : memref<288xf32, #tpu.memory_space<smem>>
    %1073 = vector.broadcast %1072 : f32 to vector<16x16xf32>
    %1074 = arith.mulf %1063, %1073 : vector<16x16xf32>
    %1075 = arith.addf %1041, %1074 : vector<16x16xf32>
    %c251 = arith.constant 251 : index
    %1076 = memref.load %arg1[%c251] : memref<288xf32, #tpu.memory_space<smem>>
    %1077 = vector.broadcast %1076 : f32 to vector<16x16xf32>
    %1078 = arith.mulf %1063, %1077 : vector<16x16xf32>
    %1079 = arith.addf %1045, %1078 : vector<16x16xf32>
    %c252 = arith.constant 252 : index
    %1080 = memref.load %arg1[%c252] : memref<288xf32, #tpu.memory_space<smem>>
    %1081 = vector.broadcast %1080 : f32 to vector<16x16xf32>
    %1082 = arith.mulf %1063, %1081 : vector<16x16xf32>
    %1083 = arith.addf %1049, %1082 : vector<16x16xf32>
    %c253 = arith.constant 253 : index
    %1084 = memref.load %arg1[%c253] : memref<288xf32, #tpu.memory_space<smem>>
    %1085 = vector.broadcast %1084 : f32 to vector<16x16xf32>
    %1086 = arith.mulf %1063, %1085 : vector<16x16xf32>
    %1087 = arith.addf %1053, %1086 : vector<16x16xf32>
    %c254 = arith.constant 254 : index
    %1088 = memref.load %arg1[%c254] : memref<288xf32, #tpu.memory_space<smem>>
    %1089 = vector.broadcast %1088 : f32 to vector<16x16xf32>
    %1090 = arith.mulf %1063, %1089 : vector<16x16xf32>
    %1091 = arith.addf %1057, %1090 : vector<16x16xf32>
    %c255 = arith.constant 255 : index
    %1092 = memref.load %arg1[%c255] : memref<288xf32, #tpu.memory_space<smem>>
    %1093 = vector.broadcast %1092 : f32 to vector<16x16xf32>
    %1094 = arith.mulf %1063, %1093 : vector<16x16xf32>
    %1095 = arith.addf %1061, %1094 : vector<16x16xf32>
    %c0_135 = arith.constant 0 : index
    %c3_136 = arith.constant 3 : index
    %c1_137 = arith.constant 1 : index
    %c2_138 = arith.constant 2 : index
    %1096 = vector.load %arg3[%c0_135, %c3_136, %c1_137, %c2_138] : memref<1x4x18x18xf32, #tpu.memory_space<vmem>>, vector<1x1x16x16xf32>
    %1097 = vector.shape_cast %1096 : vector<1x1x16x16xf32> to vector<16x16xf32>
    %c256 = arith.constant 256 : index
    %1098 = memref.load %arg1[%c256] : memref<288xf32, #tpu.memory_space<smem>>
    %1099 = vector.broadcast %1098 : f32 to vector<16x16xf32>
    %1100 = arith.mulf %1097, %1099 : vector<16x16xf32>
    %1101 = arith.addf %1067, %1100 : vector<16x16xf32>
    %c257 = arith.constant 257 : index
    %1102 = memref.load %arg1[%c257] : memref<288xf32, #tpu.memory_space<smem>>
    %1103 = vector.broadcast %1102 : f32 to vector<16x16xf32>
    %1104 = arith.mulf %1097, %1103 : vector<16x16xf32>
    %1105 = arith.addf %1071, %1104 : vector<16x16xf32>
    %c258 = arith.constant 258 : index
    %1106 = memref.load %arg1[%c258] : memref<288xf32, #tpu.memory_space<smem>>
    %1107 = vector.broadcast %1106 : f32 to vector<16x16xf32>
    %1108 = arith.mulf %1097, %1107 : vector<16x16xf32>
    %1109 = arith.addf %1075, %1108 : vector<16x16xf32>
    %c259 = arith.constant 259 : index
    %1110 = memref.load %arg1[%c259] : memref<288xf32, #tpu.memory_space<smem>>
    %1111 = vector.broadcast %1110 : f32 to vector<16x16xf32>
    %1112 = arith.mulf %1097, %1111 : vector<16x16xf32>
    %1113 = arith.addf %1079, %1112 : vector<16x16xf32>
    %c260 = arith.constant 260 : index
    %1114 = memref.load %arg1[%c260] : memref<288xf32, #tpu.memory_space<smem>>
    %1115 = vector.broadcast %1114 : f32 to vector<16x16xf32>
    %1116 = arith.mulf %1097, %1115 : vector<16x16xf32>
    %1117 = arith.addf %1083, %1116 : vector<16x16xf32>
    %c261 = arith.constant 261 : index
    %1118 = memref.load %arg1[%c261] : memref<288xf32, #tpu.memory_space<smem>>
    %1119 = vector.broadcast %1118 : f32 to vector<16x16xf32>
    %1120 = arith.mulf %1097, %1119 : vector<16x16xf32>
    %1121 = arith.addf %1087, %1120 : vector<16x16xf32>
    %c262 = arith.constant 262 : index
    %1122 = memref.load %arg1[%c262] : memref<288xf32, #tpu.memory_space<smem>>
    %1123 = vector.broadcast %1122 : f32 to vector<16x16xf32>
    %1124 = arith.mulf %1097, %1123 : vector<16x16xf32>
    %1125 = arith.addf %1091, %1124 : vector<16x16xf32>
    %c263 = arith.constant 263 : index
    %1126 = memref.load %arg1[%c263] : memref<288xf32, #tpu.memory_space<smem>>
    %1127 = vector.broadcast %1126 : f32 to vector<16x16xf32>
    %1128 = arith.mulf %1097, %1127 : vector<16x16xf32>
    %1129 = arith.addf %1095, %1128 : vector<16x16xf32>
    %c0_139 = arith.constant 0 : index
    %c3_140 = arith.constant 3 : index
    %c2_141 = arith.constant 2 : index
    %c0_142 = arith.constant 0 : index
    %1130 = vector.load %arg3[%c0_139, %c3_140, %c2_141, %c0_142] : memref<1x4x18x18xf32, #tpu.memory_space<vmem>>, vector<1x1x16x16xf32>
    %1131 = vector.shape_cast %1130 : vector<1x1x16x16xf32> to vector<16x16xf32>
    %c264 = arith.constant 264 : index
    %1132 = memref.load %arg1[%c264] : memref<288xf32, #tpu.memory_space<smem>>
    %1133 = vector.broadcast %1132 : f32 to vector<16x16xf32>
    %1134 = arith.mulf %1131, %1133 : vector<16x16xf32>
    %1135 = arith.addf %1101, %1134 : vector<16x16xf32>
    %c265 = arith.constant 265 : index
    %1136 = memref.load %arg1[%c265] : memref<288xf32, #tpu.memory_space<smem>>
    %1137 = vector.broadcast %1136 : f32 to vector<16x16xf32>
    %1138 = arith.mulf %1131, %1137 : vector<16x16xf32>
    %1139 = arith.addf %1105, %1138 : vector<16x16xf32>
    %c266 = arith.constant 266 : index
    %1140 = memref.load %arg1[%c266] : memref<288xf32, #tpu.memory_space<smem>>
    %1141 = vector.broadcast %1140 : f32 to vector<16x16xf32>
    %1142 = arith.mulf %1131, %1141 : vector<16x16xf32>
    %1143 = arith.addf %1109, %1142 : vector<16x16xf32>
    %c267 = arith.constant 267 : index
    %1144 = memref.load %arg1[%c267] : memref<288xf32, #tpu.memory_space<smem>>
    %1145 = vector.broadcast %1144 : f32 to vector<16x16xf32>
    %1146 = arith.mulf %1131, %1145 : vector<16x16xf32>
    %1147 = arith.addf %1113, %1146 : vector<16x16xf32>
    %c268 = arith.constant 268 : index
    %1148 = memref.load %arg1[%c268] : memref<288xf32, #tpu.memory_space<smem>>
    %1149 = vector.broadcast %1148 : f32 to vector<16x16xf32>
    %1150 = arith.mulf %1131, %1149 : vector<16x16xf32>
    %1151 = arith.addf %1117, %1150 : vector<16x16xf32>
    %c269 = arith.constant 269 : index
    %1152 = memref.load %arg1[%c269] : memref<288xf32, #tpu.memory_space<smem>>
    %1153 = vector.broadcast %1152 : f32 to vector<16x16xf32>
    %1154 = arith.mulf %1131, %1153 : vector<16x16xf32>
    %1155 = arith.addf %1121, %1154 : vector<16x16xf32>
    %c270 = arith.constant 270 : index
    %1156 = memref.load %arg1[%c270] : memref<288xf32, #tpu.memory_space<smem>>
    %1157 = vector.broadcast %1156 : f32 to vector<16x16xf32>
    %1158 = arith.mulf %1131, %1157 : vector<16x16xf32>
    %1159 = arith.addf %1125, %1158 : vector<16x16xf32>
    %c271 = arith.constant 271 : index
    %1160 = memref.load %arg1[%c271] : memref<288xf32, #tpu.memory_space<smem>>
    %1161 = vector.broadcast %1160 : f32 to vector<16x16xf32>
    %1162 = arith.mulf %1131, %1161 : vector<16x16xf32>
    %1163 = arith.addf %1129, %1162 : vector<16x16xf32>
    %c0_143 = arith.constant 0 : index
    %c3_144 = arith.constant 3 : index
    %c2_145 = arith.constant 2 : index
    %c1_146 = arith.constant 1 : index
    %1164 = vector.load %arg3[%c0_143, %c3_144, %c2_145, %c1_146] : memref<1x4x18x18xf32, #tpu.memory_space<vmem>>, vector<1x1x16x16xf32>
    %1165 = vector.shape_cast %1164 : vector<1x1x16x16xf32> to vector<16x16xf32>
    %c272 = arith.constant 272 : index
    %1166 = memref.load %arg1[%c272] : memref<288xf32, #tpu.memory_space<smem>>
    %1167 = vector.broadcast %1166 : f32 to vector<16x16xf32>
    %1168 = arith.mulf %1165, %1167 : vector<16x16xf32>
    %1169 = arith.addf %1135, %1168 : vector<16x16xf32>
    %c273 = arith.constant 273 : index
    %1170 = memref.load %arg1[%c273] : memref<288xf32, #tpu.memory_space<smem>>
    %1171 = vector.broadcast %1170 : f32 to vector<16x16xf32>
    %1172 = arith.mulf %1165, %1171 : vector<16x16xf32>
    %1173 = arith.addf %1139, %1172 : vector<16x16xf32>
    %c274 = arith.constant 274 : index
    %1174 = memref.load %arg1[%c274] : memref<288xf32, #tpu.memory_space<smem>>
    %1175 = vector.broadcast %1174 : f32 to vector<16x16xf32>
    %1176 = arith.mulf %1165, %1175 : vector<16x16xf32>
    %1177 = arith.addf %1143, %1176 : vector<16x16xf32>
    %c275 = arith.constant 275 : index
    %1178 = memref.load %arg1[%c275] : memref<288xf32, #tpu.memory_space<smem>>
    %1179 = vector.broadcast %1178 : f32 to vector<16x16xf32>
    %1180 = arith.mulf %1165, %1179 : vector<16x16xf32>
    %1181 = arith.addf %1147, %1180 : vector<16x16xf32>
    %c276 = arith.constant 276 : index
    %1182 = memref.load %arg1[%c276] : memref<288xf32, #tpu.memory_space<smem>>
    %1183 = vector.broadcast %1182 : f32 to vector<16x16xf32>
    %1184 = arith.mulf %1165, %1183 : vector<16x16xf32>
    %1185 = arith.addf %1151, %1184 : vector<16x16xf32>
    %c277 = arith.constant 277 : index
    %1186 = memref.load %arg1[%c277] : memref<288xf32, #tpu.memory_space<smem>>
    %1187 = vector.broadcast %1186 : f32 to vector<16x16xf32>
    %1188 = arith.mulf %1165, %1187 : vector<16x16xf32>
    %1189 = arith.addf %1155, %1188 : vector<16x16xf32>
    %c278 = arith.constant 278 : index
    %1190 = memref.load %arg1[%c278] : memref<288xf32, #tpu.memory_space<smem>>
    %1191 = vector.broadcast %1190 : f32 to vector<16x16xf32>
    %1192 = arith.mulf %1165, %1191 : vector<16x16xf32>
    %1193 = arith.addf %1159, %1192 : vector<16x16xf32>
    %c279 = arith.constant 279 : index
    %1194 = memref.load %arg1[%c279] : memref<288xf32, #tpu.memory_space<smem>>
    %1195 = vector.broadcast %1194 : f32 to vector<16x16xf32>
    %1196 = arith.mulf %1165, %1195 : vector<16x16xf32>
    %1197 = arith.addf %1163, %1196 : vector<16x16xf32>
    %c0_147 = arith.constant 0 : index
    %c3_148 = arith.constant 3 : index
    %c2_149 = arith.constant 2 : index
    %c2_150 = arith.constant 2 : index
    %1198 = vector.load %arg3[%c0_147, %c3_148, %c2_149, %c2_150] : memref<1x4x18x18xf32, #tpu.memory_space<vmem>>, vector<1x1x16x16xf32>
    %1199 = vector.shape_cast %1198 : vector<1x1x16x16xf32> to vector<16x16xf32>
    %c280 = arith.constant 280 : index
    %1200 = memref.load %arg1[%c280] : memref<288xf32, #tpu.memory_space<smem>>
    %1201 = vector.broadcast %1200 : f32 to vector<16x16xf32>
    %1202 = arith.mulf %1199, %1201 : vector<16x16xf32>
    %1203 = arith.addf %1169, %1202 : vector<16x16xf32>
    %c281 = arith.constant 281 : index
    %1204 = memref.load %arg1[%c281] : memref<288xf32, #tpu.memory_space<smem>>
    %1205 = vector.broadcast %1204 : f32 to vector<16x16xf32>
    %1206 = arith.mulf %1199, %1205 : vector<16x16xf32>
    %1207 = arith.addf %1173, %1206 : vector<16x16xf32>
    %c282 = arith.constant 282 : index
    %1208 = memref.load %arg1[%c282] : memref<288xf32, #tpu.memory_space<smem>>
    %1209 = vector.broadcast %1208 : f32 to vector<16x16xf32>
    %1210 = arith.mulf %1199, %1209 : vector<16x16xf32>
    %1211 = arith.addf %1177, %1210 : vector<16x16xf32>
    %c283 = arith.constant 283 : index
    %1212 = memref.load %arg1[%c283] : memref<288xf32, #tpu.memory_space<smem>>
    %1213 = vector.broadcast %1212 : f32 to vector<16x16xf32>
    %1214 = arith.mulf %1199, %1213 : vector<16x16xf32>
    %1215 = arith.addf %1181, %1214 : vector<16x16xf32>
    %c284 = arith.constant 284 : index
    %1216 = memref.load %arg1[%c284] : memref<288xf32, #tpu.memory_space<smem>>
    %1217 = vector.broadcast %1216 : f32 to vector<16x16xf32>
    %1218 = arith.mulf %1199, %1217 : vector<16x16xf32>
    %1219 = arith.addf %1185, %1218 : vector<16x16xf32>
    %c285 = arith.constant 285 : index
    %1220 = memref.load %arg1[%c285] : memref<288xf32, #tpu.memory_space<smem>>
    %1221 = vector.broadcast %1220 : f32 to vector<16x16xf32>
    %1222 = arith.mulf %1199, %1221 : vector<16x16xf32>
    %1223 = arith.addf %1189, %1222 : vector<16x16xf32>
    %c286 = arith.constant 286 : index
    %1224 = memref.load %arg1[%c286] : memref<288xf32, #tpu.memory_space<smem>>
    %1225 = vector.broadcast %1224 : f32 to vector<16x16xf32>
    %1226 = arith.mulf %1199, %1225 : vector<16x16xf32>
    %1227 = arith.addf %1193, %1226 : vector<16x16xf32>
    %c287 = arith.constant 287 : index
    %1228 = memref.load %arg1[%c287] : memref<288xf32, #tpu.memory_space<smem>>
    %1229 = vector.broadcast %1228 : f32 to vector<16x16xf32>
    %1230 = arith.mulf %1199, %1229 : vector<16x16xf32>
    %1231 = arith.addf %1197, %1230 : vector<16x16xf32>
    %c0_151 = arith.constant 0 : index
    %1232 = memref.load %arg2[%c0_151] : memref<8xf32, #tpu.memory_space<smem>>
    %1233 = vector.broadcast %1232 : f32 to vector<16x16xf32>
    %1234 = arith.addf %1203, %1233 : vector<16x16xf32>
    %c0_152 = arith.constant 0 : index
    %c0_153 = arith.constant 0 : index
    %c0_154 = arith.constant 0 : index
    %c0_155 = arith.constant 0 : index
    %1235 = vector.load %arg4[%c0_152, %c0_153, %c0_154, %c0_155] : memref<1x8x16x16xf32, #tpu.memory_space<vmem>>, vector<1x1x16x16xf32>
    %1236 = vector.shape_cast %1235 : vector<1x1x16x16xf32> to vector<16x16xf32>
    %1237 = vector.shape_cast %1234 : vector<16x16xf32> to vector<1x1x16x16xf32>
    tpu.vector_store %arg4[%c0_152, %c0_153, %c0_154, %c0_155], %1237 {strides = array<i32>} : memref<1x8x16x16xf32, #tpu.memory_space<vmem>>, vector<1x1x16x16xf32>,
    %c1_156 = arith.constant 1 : index
    %1238 = memref.load %arg2[%c1_156] : memref<8xf32, #tpu.memory_space<smem>>
    %1239 = vector.broadcast %1238 : f32 to vector<16x16xf32>
    %1240 = arith.addf %1207, %1239 : vector<16x16xf32>
    %c0_157 = arith.constant 0 : index
    %c1_158 = arith.constant 1 : index
    %c0_159 = arith.constant 0 : index
    %c0_160 = arith.constant 0 : index
    %1241 = vector.load %arg4[%c0_157, %c1_158, %c0_159, %c0_160] : memref<1x8x16x16xf32, #tpu.memory_space<vmem>>, vector<1x1x16x16xf32>
    %1242 = vector.shape_cast %1241 : vector<1x1x16x16xf32> to vector<16x16xf32>
    %1243 = vector.shape_cast %1240 : vector<16x16xf32> to vector<1x1x16x16xf32>
    tpu.vector_store %arg4[%c0_157, %c1_158, %c0_159, %c0_160], %1243 {strides = array<i32>} : memref<1x8x16x16xf32, #tpu.memory_space<vmem>>, vector<1x1x16x16xf32>,
    %c2_161 = arith.constant 2 : index
    %1244 = memref.load %arg2[%c2_161] : memref<8xf32, #tpu.memory_space<smem>>
    %1245 = vector.broadcast %1244 : f32 to vector<16x16xf32>
    %1246 = arith.addf %1211, %1245 : vector<16x16xf32>
    %c0_162 = arith.constant 0 : index
    %c2_163 = arith.constant 2 : index
    %c0_164 = arith.constant 0 : index
    %c0_165 = arith.constant 0 : index
    %1247 = vector.load %arg4[%c0_162, %c2_163, %c0_164, %c0_165] : memref<1x8x16x16xf32, #tpu.memory_space<vmem>>, vector<1x1x16x16xf32>
    %1248 = vector.shape_cast %1247 : vector<1x1x16x16xf32> to vector<16x16xf32>
    %1249 = vector.shape_cast %1246 : vector<16x16xf32> to vector<1x1x16x16xf32>
    tpu.vector_store %arg4[%c0_162, %c2_163, %c0_164, %c0_165], %1249 {strides = array<i32>} : memref<1x8x16x16xf32, #tpu.memory_space<vmem>>, vector<1x1x16x16xf32>,
    %c3_166 = arith.constant 3 : index
    %1250 = memref.load %arg2[%c3_166] : memref<8xf32, #tpu.memory_space<smem>>
    %1251 = vector.broadcast %1250 : f32 to vector<16x16xf32>
    %1252 = arith.addf %1215, %1251 : vector<16x16xf32>
    %c0_167 = arith.constant 0 : index
    %c3_168 = arith.constant 3 : index
    %c0_169 = arith.constant 0 : index
    %c0_170 = arith.constant 0 : index
    %1253 = vector.load %arg4[%c0_167, %c3_168, %c0_169, %c0_170] : memref<1x8x16x16xf32, #tpu.memory_space<vmem>>, vector<1x1x16x16xf32>
    %1254 = vector.shape_cast %1253 : vector<1x1x16x16xf32> to vector<16x16xf32>
    %1255 = vector.shape_cast %1252 : vector<16x16xf32> to vector<1x1x16x16xf32>
    tpu.vector_store %arg4[%c0_167, %c3_168, %c0_169, %c0_170], %1255 {strides = array<i32>} : memref<1x8x16x16xf32, #tpu.memory_space<vmem>>, vector<1x1x16x16xf32>,
    %c4_171 = arith.constant 4 : index
    %1256 = memref.load %arg2[%c4_171] : memref<8xf32, #tpu.memory_space<smem>>
    %1257 = vector.broadcast %1256 : f32 to vector<16x16xf32>
    %1258 = arith.addf %1219, %1257 : vector<16x16xf32>
    %c0_172 = arith.constant 0 : index
    %c4_173 = arith.constant 4 : index
    %c0_174 = arith.constant 0 : index
    %c0_175 = arith.constant 0 : index
    %1259 = vector.load %arg4[%c0_172, %c4_173, %c0_174, %c0_175] : memref<1x8x16x16xf32, #tpu.memory_space<vmem>>, vector<1x1x16x16xf32>
    %1260 = vector.shape_cast %1259 : vector<1x1x16x16xf32> to vector<16x16xf32>
    %1261 = vector.shape_cast %1258 : vector<16x16xf32> to vector<1x1x16x16xf32>
    tpu.vector_store %arg4[%c0_172, %c4_173, %c0_174, %c0_175], %1261 {strides = array<i32>} : memref<1x8x16x16xf32, #tpu.memory_space<vmem>>, vector<1x1x16x16xf32>,
    %c5_176 = arith.constant 5 : index
    %1262 = memref.load %arg2[%c5_176] : memref<8xf32, #tpu.memory_space<smem>>
    %1263 = vector.broadcast %1262 : f32 to vector<16x16xf32>
    %1264 = arith.addf %1223, %1263 : vector<16x16xf32>
    %c0_177 = arith.constant 0 : index
    %c5_178 = arith.constant 5 : index
    %c0_179 = arith.constant 0 : index
    %c0_180 = arith.constant 0 : index
    %1265 = vector.load %arg4[%c0_177, %c5_178, %c0_179, %c0_180] : memref<1x8x16x16xf32, #tpu.memory_space<vmem>>, vector<1x1x16x16xf32>
    %1266 = vector.shape_cast %1265 : vector<1x1x16x16xf32> to vector<16x16xf32>
    %1267 = vector.shape_cast %1264 : vector<16x16xf32> to vector<1x1x16x16xf32>
    tpu.vector_store %arg4[%c0_177, %c5_178, %c0_179, %c0_180], %1267 {strides = array<i32>} : memref<1x8x16x16xf32, #tpu.memory_space<vmem>>, vector<1x1x16x16xf32>,
    %c6_181 = arith.constant 6 : index
    %1268 = memref.load %arg2[%c6_181] : memref<8xf32, #tpu.memory_space<smem>>
    %1269 = vector.broadcast %1268 : f32 to vector<16x16xf32>
    %1270 = arith.addf %1227, %1269 : vector<16x16xf32>
    %c0_182 = arith.constant 0 : index
    %c6_183 = arith.constant 6 : index
    %c0_184 = arith.constant 0 : index
    %c0_185 = arith.constant 0 : index
    %1271 = vector.load %arg4[%c0_182, %c6_183, %c0_184, %c0_185] : memref<1x8x16x16xf32, #tpu.memory_space<vmem>>, vector<1x1x16x16xf32>
    %1272 = vector.shape_cast %1271 : vector<1x1x16x16xf32> to vector<16x16xf32>
    %1273 = vector.shape_cast %1270 : vector<16x16xf32> to vector<1x1x16x16xf32>
    tpu.vector_store %arg4[%c0_182, %c6_183, %c0_184, %c0_185], %1273 {strides = array<i32>} : memref<1x8x16x16xf32, #tpu.memory_space<vmem>>, vector<1x1x16x16xf32>,
    %c7_186 = arith.constant 7 : index
    %1274 = memref.load %arg2[%c7_186] : memref<8xf32, #tpu.memory_space<smem>>
    %1275 = vector.broadcast %1274 : f32 to vector<16x16xf32>
    %1276 = arith.addf %1231, %1275 : vector<16x16xf32>
    %c0_187 = arith.constant 0 : index
    %c7_188 = arith.constant 7 : index
    %c0_189 = arith.constant 0 : index
    %c0_190 = arith.constant 0 : index
    %1277 = vector.load %arg4[%c0_187, %c7_188, %c0_189, %c0_190] : memref<1x8x16x16xf32, #tpu.memory_space<vmem>>, vector<1x1x16x16xf32>
    %1278 = vector.shape_cast %1277 : vector<1x1x16x16xf32> to vector<16x16xf32>
    %1279 = vector.shape_cast %1276 : vector<16x16xf32> to vector<1x1x16x16xf32>
    tpu.vector_store %arg4[%c0_187, %c7_188, %c0_189, %c0_190], %1279 {strides = array<i32>} : memref<1x8x16x16xf32, #tpu.memory_space<vmem>>, vector<1x1x16x16xf32>,
    return
  }
  func.func @transform_0(%arg0: i32) -> i32 {
    %c0_i32 = arith.constant 0 : i32
    %c0_i32_0 = arith.constant 0 : i32
    return %c0_i32 : i32
  }
  func.func @transform_1(%arg0: i32) -> i32 {
    %c0_i32 = arith.constant 0 : i32
    %c0_i32_0 = arith.constant 0 : i32
    return %c0_i32 : i32
  }
  func.func @transform_2(%arg0: i32) -> (i32, i32, i32, i32) {
    %c0_i32 = arith.constant 0 : i32
    %c0_i32_0 = arith.constant 0 : i32
    %c0_i32_1 = arith.constant 0 : i32
    %c0_i32_2 = arith.constant 0 : i32
    return %arg0, %c0_i32, %c0_i32_0, %c0_i32_1 : i32, i32, i32, i32
  }
  func.func @transform_3(%arg0: i32) -> (i32, i32, i32, i32) {
    %c0_i32 = arith.constant 0 : i32
    %c0_i32_0 = arith.constant 0 : i32
    %c0_i32_1 = arith.constant 0 : i32
    %c0_i32_2 = arith.constant 0 : i32
    return %arg0, %c0_i32, %c0_i32_0, %c0_i32_1 : i32, i32, i32, i32
  }
}

</mosaic_0001>

<bundles_post_ra>
// kernel: tpu_custom_call.1
= control target key start
LH: loop header
LB: loop body
LE: loop exit
PB: predicated region body
PF: predicated region fallthrough
CT: control target
= control target key end

     0   :  { %8 = vsyncpa [#allocation4], 0  ;;  %s7610_s0 = inlined_call_operand.vmem [shape: f32[288], index: 0, kind: input, shape index: {}]   ;;  %s7611_s1 = inlined_call_operand.vmem [shape: f32[8], index: 1, kind: input, shape index: {}]   ;;  %s7612_s2 = inlined_call_operand.vmem [shape: f32[2,4,18,18], index: 2, kind: input, shape index: {}]   ;;  %s7613_s3 = inlined_call_operand.hbm [shape: f32[2,8,16,16], index: 3, kind: output, shape index: {}]  }
   0x1   :  { %9 = vsyncpa [#allocation6], 0 }
   0x2   :  { %10 = vsyncpa [#allocation3], 0 }
   0x3   :  { %12 = vsyncpa [#allocation3 + $0x1], 0  ;;  %s4195_s12 = smov 0   ;;  %s4197_s13 = smov 0  }
   0x4   :  { %s4199_s14 = smov 0   ;;  %s4201_s15 = smov 0  }
   0x5 LB: > { %s4216_s16 = sadd.s32 4294967295, %s4166_s15   ;;  %s3641_s17 = sadd.s32 4294967294, %s4166_s15   ;;  %s4166_s15 = sphi %s4201_s15, %s8163_s15   ;;  %s4162_s14 = sphi %s4199_s14, %s8162_s14   ;;  %s4158_s13 = sphi %s4197_s13, %s8161_s13   ;;  %s4154_s12 = sphi %s4195_s12, %s8160_s12  }
   0x6   : > { %s4220_s18 = sadd.s32 1, %s4166_s15   ;;  %s93_s19 = sadd.s32 1, %s4162_s14 }
   0x7   : > { %s90_s20 = ssub.s32 %s4166_s15, %s4220_s18  ;;  %p103_p0 = scmp.ne.s32.totalorder %s4162_s14, %s4158_s13 }
   0x8   : > { %p91_p1 = scmp.eq.s32.totalorder %s90_s20, 0  ;;  %p104_p2 = scmp.eq.s32.totalorder %s4216_s16, 1 }
   0x9   : > { %p109_p3 = scmp.ne.s32.totalorder %s4158_s13, %s4154_s12  ;;  %p110_p4 = scmp.eq.s32.totalorder %s3641_s17, 1 }
   0xa   : > { %s4231_s21 = scalar_select %p91_p1, %s4162_s14, %s93_s19  }
   0xb   : > { %p4233_p5 = por %p104_p2, %p103_p0  ;;  %p4237_p6 = por %p110_p4, %p109_p3 }
   0xc   : > { %p3642_p7 = scmp.ge.s32.totalorder %s4166_s15, 1  ;;  %p117_p8 = scmp.lt.s32.totalorder %s4166_s15, 3 }
   0xd   : > { %s7621_s22 = scalar_select %p4233_p5, 1, 0 }
   0xe   : > { %s7622_s23 = scalar_select %p4237_p6, 1, 0 }
   0xf   : > { %p7614_p9 = scmp.eq.s32.totalorder %s4216_s16, 0  ;;  %p4244_p10 = pnand %p3642_p7, %p117_p8 }
  0x10   : > { %s130_s27 = sshll.u32 %s7610_s0, 4  ;;  %s141_s30 = sshll.u32 %s7611_s1, 4  ;;  %s131_s27 = int_to_ptr.vmem [resolvable:$true] %s130_s27  ;;  %s142_s30 = int_to_ptr.vmem [resolvable:$true] %s141_s30 }
  0x11   : > { %s7623_s24 = scalar_select %p4244_p10, 1, 0 }
  0x12   : > { %p3994_p11 = pneg %p4244_p10  ;;  %s4066_s5 = scalar_lea.vmem %s131_s27, 48 }
  0x13   : > { %p4067_p13 = scmp.ne.s32.totalorder %s131_s27, %s4066_s5  ;;  %s4073_s6 = scalar_lea.vmem %s131_s27, 64 }
  0x14   : > { %p4258_p12 = pnand %p7614_p9, %p3994_p11  ;;  %p4074_p3 = scmp.lt.s32.totalorder %s131_s27, %s131_s27 }
  0x15   : > { %p4075_p4 = scmp.lt.s32.totalorder %s4073_s6, %s4066_s5 }
  0x16   : > { %p4068_p0 = pneg %p4258_p12 }
  0x17   : > { %p4076_p7 = por %p4075_p4, %p4074_p3 }
  0x18   : > { %p4069_p1 = pnand %p4068_p0, %p4067_p13 }
  0x1a   : > { %p4070_p2 = pneg %p4069_p1 }
  0x1c   : > { %p4077_p8 = pnand %p4076_p7, %p4070_p2 }
  0x1e   : > { %4080 = shalt.err (!%p4077_p8)
}
  0x1f   : > { %s4168_s7 = smov [#allocation2]   ;;  %s4081_s8 = scalar_lea.vmem %s142_s30, 16 }
  0x20   : > { %3997 = dma.vmem_to_smem (!%p4258_p12), %s131_s27, 48, %s4168_s7, [#allocation4]  }
  0x21   : > { %p4082_p11 = scmp.ne.s32.totalorder %s142_s30, %s4081_s8  ;;  %p4089_p5 = scmp.lt.s32.totalorder %s142_s30, %s142_s30 }
  0x22   : > { %p4090_p13 = scmp.lt.s32.totalorder %s4081_s8, %s4081_s8 }
  0x23   : > { %p4084_p9 = pnand %p4082_p11, %p4068_p0 }
  0x24   : > { %p4091_p1 = por %p4090_p13, %p4089_p5 }
  0x25   : > { %p4085_p6 = pneg %p4084_p9 }
  0x27   : > { %p4092_p10 = pnand %p4091_p1, %p4085_p6 }
  0x29   : > { %4095 = shalt.err (!%p4092_p10)
}
  0x2a   : > { %s4169_s9 = smov [#allocation5]   ;;  %p7625_p2 = scmp.ne.s32.totalorder %s7623_s24, 0 }
  0x2b   : > { %4000 = dma.vmem_to_smem (!%p4258_p12), %s142_s30, 16, %s4169_s9, [#allocation6]  }
  0x2c   : > { %162 = sbr.rel (%p7625_p2) target bundleno = 968 (0x3c8), region = 32 }
  0x33   : > { %p7626_p3 = scmp.eq.s32.totalorder %s4216_s16, 0 }
  0x35   : > { %4141 = dma.done.wait (%p7626_p3), [#allocation4], 48   ;;  %p7627_p4 = pmov %p7626_p3 }
  0x36   : > { %p7628_p9 = pmov %p7626_p3 }
  0x37   : > { %4143 = vsyncadd (%p7627_p4), [#allocation4], 4294967248 }
  0x38   : > { %4145 = dma.done.wait (%p7628_p9), [#allocation6], 16   ;;  %p7629_p5 = pmov %p7626_p3 }
  0x3a   : > { %4147 = vsyncadd (%p7629_p5), [#allocation6], 4294967280 }
  0x3b   : > { %172 = sfence }
  0x3c   : > { %p191_p6 = scmp.lt.s32.totalorder %s4216_s16, 1  ;;  %s3659_s10 = sld [smem:[#allocation2 + $0x9]]  ;;  %vm3491_vm0 = vcmask 130048  }
  0x3d   : > { %s3658_s11 = sld [smem:[#allocation2 + $0x8]]  ;;  %s3660_s19 = sld [smem:[#allocation2 + $0xa]] }
  0x3e   : > { %s192_s17 = scalar_select %p191_p6, %s4216_s16, 1 }
  0x3f   : > { %s3661_s27 = sld [smem:[#allocation2 + $0xb]]  ;;  %s4170_s28 = smov 127  }
  0x40   : > { %s3983_s20 = smul.u32 96, %s192_s17  ;;  %s3662_s29 = sld [smem:[#allocation2 + $0xc]] }
  0x41   : > { %s3663_s30 = sld [smem:[#allocation2 + $0xd]]  ;;  %s3664_s4 = sld [smem:[#allocation2 + $0xe]] }
  0x42   : > { %s4289_s26 = scalar_lea.vmem %s7612_s2, %s3983_s20  ;;  %v261_v2 = vstv %s3659_s10  ;;  %s3665_s5 = sld [smem:[#allocation2 + $0xf]] }
  0x43   : > { %v4292_v0 = vld [vmem:[%s4289_s26] sm:$0xff]  ;;  %v4295_v1 = vld [vmem:[%s4289_s26 + $0x8] sm:$0xff]  ;;  %v247_v3 = vstv %s3658_s11  ;;  %v275_v8 = vstv %s3660_s19  ;;  %s3666_s6 = sld [smem:[#allocation2 + $0x10]]  ;;  %s3667_s7 = sld [smem:[#allocation2 + $0x11]] }
  0x44   : > { %v262_v4 = vmul.f32 %v261_v2, %v4292_v0  ;;  %v248_v5 = vmul.f32 %v247_v3, %v4292_v0  ;;  %v263_v6 = vmul.f32 %v261_v2, %v4295_v1  ;;  %v249_v7 = vmul.f32 %v247_v3, %v4295_v1  ;;  %s3668_s8 = sld [smem:[#allocation2 + $0x12]]  ;;  %s3669_s9 = sld [smem:[#allocation2 + $0x13]]  ;;  %v4360_v50 = vld [vmem:[%s4289_s26 + $0x9] sm:$0xff]  ;;  %v4363_v52 = vld [vmem:[%s4289_s26 + $0x1] sm:$0xff] }
  0x45   : > { %v277_v9 = vmul.f32 %v275_v8, %v4295_v1  ;;  %v276_v10 = vmul.f32 %v275_v8, %v4292_v0  ;;  %v289_v11 = vstv %s3661_s27  ;;  %s4171_s10 = smov 126   ;;  %s3670_s11 = sld [smem:[#allocation2 + $0x14]] }
  0x46   : > { %266 = vrot.lane.b32.xlu1 %v262_v4, %s4170_s28  ;;  %252 = vrot.lane.b32.xlu0 %v248_v5, %s4170_s28  ;;  %v291_v12 = vmul.f32 %v289_v11, %v4295_v1  ;;  %v290_v13 = vmul.f32 %v289_v11, %v4292_v0  ;;  %v303_v14 = vstv %s3662_s29  ;;  %s3671_s17 = sld [smem:[#allocation2 + $0x15]]  ;;  %s3672_s19 = sld [smem:[#allocation2 + $0x16]] }
  0x47   : > { %v305_v15 = vmul.f32 %v303_v14, %v4295_v1  ;;  %v304_v16 = vmul.f32 %v303_v14, %v4292_v0  ;;  %v317_v17 = vstv %s3663_s30  ;;  %v331_v20 = vstv %s3664_s4  ;;  %s3673_s20 = sld [smem:[#allocation2 + $0x17]]  ;;  %s3682_s24 = sld [smem:[#allocation2 + $0x20]] }
  0x48   : > { %v319_v18 = vmul.f32 %v317_v17, %v4295_v1  ;;  %v318_v19 = vmul.f32 %v317_v17, %v4292_v0  ;;  %v333_v21 = vmul.f32 %v331_v20, %v4295_v1  ;;  %v332_v22 = vmul.f32 %v331_v20, %v4292_v0  ;;  %s3683_s25 = sld [smem:[#allocation2 + $0x21]]  ;;  %s3684_s27 = sld [smem:[#allocation2 + $0x22]] }
  0x49   : > { %v345_v23 = vstv %s3665_s5  ;;  %v359_v26 = vstv %s3666_s6  ;;  %v373_v29 = vstv %s3667_s7  ;;  %s3685_s29 = sld [smem:[#allocation2 + $0x23]]  ;;  %s3686_s30 = sld [smem:[#allocation2 + $0x24]] }
  0x4a   : > { %268 = vrot.lane.b32.xlu1 %v263_v6, %s4170_s28  ;;  %254 = vrot.lane.b32.xlu0 %v249_v7, %s4170_s28  ;;  %v347_v24 = vmul.f32 %v345_v23, %v4295_v1  ;;  %v346_v25 = vmul.f32 %v345_v23, %v4292_v0  ;;  %v361_v27 = vmul.f32 %v359_v26, %v4295_v1  ;;  %v387_v32 = vstv %s3668_s8  ;;  %s3687_s4 = sld [smem:[#allocation2 + $0x25]]  ;;  %s3688_s5 = sld [smem:[#allocation2 + $0x26]] }
  0x4b   : > { %v360_v28 = vmul.f32 %v359_v26, %v4292_v0  ;;  %v375_v30 = vmul.f32 %v373_v29, %v4295_v1  ;;  %v374_v31 = vmul.f32 %v373_v29, %v4292_v0  ;;  %v389_v33 = vmul.f32 %v387_v32, %v4295_v1  ;;  %s3689_s6 = sld [smem:[#allocation2 + $0x27]]  ;;  %s3690_s7 = sld [smem:[#allocation2 + $0x28]] }
  0x4c   : > { %v388_v34 = vmul.f32 %v387_v32, %v4292_v0  ;;  %v401_v35 = vstv %s3669_s9  ;;  %v415_v38 = vstv %s3670_s11  ;;  %v429_v41 = vstv %s3671_s17  ;;  %s3691_s8 = sld [smem:[#allocation2 + $0x29]]  ;;  %s3692_s9 = sld [smem:[#allocation2 + $0x2a]] }
  0x4d   : > { %v403_v36 = vmul.f32 %v401_v35, %v4295_v1  ;;  %v402_v37 = vmul.f32 %v401_v35, %v4292_v0  ;;  %v417_v39 = vmul.f32 %v415_v38, %v4295_v1  ;;  %v416_v40 = vmul.f32 %v415_v38, %v4292_v0  ;;  %s3693_s11 = sld [smem:[#allocation2 + $0x2b]]  ;;  %s3694_s17 = sld [smem:[#allocation2 + $0x2c]] }
  0x4e   : > { %282 = vrot.lane.b32.xlu1 %v277_v9, %s4170_s28  ;;  %280 = vrot.lane.b32.xlu0 %v276_v10, %s4170_s28  ;;  %v431_v42 = vmul.f32 %v429_v41, %v4295_v1  ;;  %v430_v43 = vmul.f32 %v429_v41, %v4292_v0  ;;  %v443_v44 = vstv %s3672_s19  ;;  %v457_v47 = vstv %s3673_s20  ;;  %s3695_s19 = sld [smem:[#allocation2 + $0x2d]]  ;;  %s3696_s20 = sld [smem:[#allocation2 + $0x2e]] }
  0x4f   : > { %v445_v45 = vmul.f32 %v443_v44, %v4295_v1  ;;  %v444_v46 = vmul.f32 %v443_v44, %v4292_v0  ;;  %v459_v48 = vmul.f32 %v457_v47, %v4295_v1  ;;  %v458_v49 = vmul.f32 %v457_v47, %v4292_v0  ;;  %v4441_v44 = vld [vmem:[%s4289_s26 + $0x2] sm:$0xff]  ;;  %p8158_p12 = scmp.ne.s32.totalorder %s7621_s22, 0 }
  0x50   : > { %v521_v51 = vstv %s3682_s24  ;;  %v535_v55 = vstv %s3683_s25  ;;  %v549_v58 = vstv %s3684_s27  ;;  %v563_v61 = vstv %s3685_s29  ;;  %s3697_s24 = sld [smem:[#allocation2 + $0x2f]]  ;;  %s3706_s25 = sld [smem:[#allocation2 + $0x38]] }
  0x51   : > { %v523_v53 = vmul.f32 %v521_v51, %v4360_v50  ;;  %v522_v54 = vmul.f32 %v521_v51, %v4363_v52  ;;  %v537_v56 = vmul.f32 %v535_v55, %v4360_v50  ;;  %v536_v57 = vmul.f32 %v535_v55, %v4363_v52  ;;  %s3707_s27 = sld [smem:[#allocation2 + $0x39]]  ;;  %s3708_s29 = sld [smem:[#allocation2 + $0x3a]] }
  0x52   : > { %296 = vrot.lane.b32.xlu1 %v291_v12, %s4170_s28  ;;  %294 = vrot.lane.b32.xlu0 %v290_v13, %s4170_s28  ;;  %v551_v59 = vmul.f32 %v549_v58, %v4360_v50  ;;  %v550_v60 = vmul.f32 %v549_v58, %v4363_v52  ;;  %v565_v62 = vmul.f32 %v563_v61, %v4360_v50  ;;  %v577_v2 = vstv %s3686_s30  ;;  %s3709_s30 = sld [smem:[#allocation2 + $0x3b]] }
  0x53   : > { %v564_v63 = vmul.f32 %v563_v61, %v4363_v52  ;;  %v579_v3 = vmul.f32 %v577_v2, %v4360_v50  ;;  %v578_v4 = vmul.f32 %v577_v2, %v4363_v52  ;;  %v591_v5 = vstv %s3687_s4  ;;  %s4459_s4 = sld [smem:[#allocation2 + $0x3c]] }
  0x54   : > { %v593_v6 = vmul.f32 %v591_v5, %v4360_v50  ;;  %v592_v7 = vmul.f32 %v591_v5, %v4363_v52  ;;  %v605_v8 = vstv %s3688_s5  ;;  %v619_v11 = vstv %s3689_s6  ;;  %s4461_s5 = sld [smem:[#allocation2]]  ;;  %s4467_s6 = sld [smem:[#allocation2 + $0x1]] }
  0x55   : > { %v607_v9 = vmul.f32 %v605_v8, %v4360_v50  ;;  %v606_v10 = vmul.f32 %v605_v8, %v4363_v52  ;;  %v621_v12 = vmul.f32 %v619_v11, %v4360_v50  ;;  %v620_v13 = vmul.f32 %v619_v11, %v4363_v52 }
  0x56   : > { %310 = vrot.lane.b32.xlu1 %v305_v15, %s4170_s28  ;;  %308 = vrot.lane.b32.xlu0 %v304_v16, %s4170_s28  ;;  %v633_v14 = vstv %s3690_s7  ;;  %v647_v17 = vstv %s3691_s8  ;;  %s4473_s7 = sld [smem:[#allocation2 + $0x3d]]  ;;  %s4479_s8 = sld [smem:[#allocation2 + $0x18]] }
  0x57   : > { %v635_v15 = vmul.f32 %v633_v14, %v4360_v50  ;;  %v634_v16 = vmul.f32 %v633_v14, %v4363_v52  ;;  %v661_v20 = vstv %s3692_s9  ;;  %v675_v23 = vstv %s3693_s11  ;;  %s4481_s9 = sld [smem:[#allocation2 + $0x2]]  ;;  %s4487_s11 = sld [smem:[#allocation2 + $0x3e]] }
  0x58   : > { %v689_v26 = vstv %s3694_s17  ;;  %v703_v29 = vstv %s3695_s19  ;;  %v717_v32 = vstv %s3696_s20  ;;  %v837_v61 = vstv %s3709_s30  ;;  %s4489_s17 = sld [smem:[#allocation2 + $0x19]]  ;;  %s4493_s19 = sld [smem:[#allocation2 + $0x3]] }
  0x59   : > { %v719_v35 = vmul.f32 %v717_v32, %v4360_v50  ;;  %s4499_s20 = sld [smem:[#allocation2 + $0x3f]]  ;;  %s4538_s30 = sld [smem:[#allocation2 + $0x5]] }
  0x5a   : > { %324 = vrot.lane.b32.xlu1 %v319_v18, %s4170_s28  ;;  %322 = vrot.lane.b32.xlu0 %v318_v19, %s4170_s28  ;;  %v649_v18 = vmul.f32 %v647_v17, %v4360_v50  ;;  %v648_v19 = vmul.f32 %v647_v17, %v4363_v52  ;;  %v199_v5 = vstv %s4461_s5  ;;  %v205_v8 = vstv %s4467_s6  ;;  %s4550_s5 = sld [smem:[#allocation2 + $0x1c]]  ;;  %s4561_s6 = sld [smem:[#allocation2 + $0x6]] }
  0x5b   : > { %v200_v11 = vmul.f32 %v199_v5, %v4292_v0  ;;  %v206_v17 = vmul.f32 %v205_v8, %v4292_v0 }
  0x5e   : > { %338 = vrot.lane.b32.xlu1 %v333_v21, %s4170_s28  ;;  %336 = vrot.lane.b32.xlu0 %v332_v22, %s4170_s28  ;;  %v663_v21 = vmul.f32 %v661_v20, %v4360_v50  ;;  %v662_v22 = vmul.f32 %v661_v20, %v4363_v52 }
  0x62   : > { %352 = vrot.lane.b32.xlu1 %v347_v24, %s4170_s28  ;;  %350 = vrot.lane.b32.xlu0 %v346_v25, %s4170_s28  ;;  %v677_v24 = vmul.f32 %v675_v23, %v4360_v50  ;;  %v676_v25 = vmul.f32 %v675_v23, %v4363_v52  ;;  %v479_v23 = vstv %s4489_s17  ;;  %s4596_s17 = sld [smem:[#allocation2 + $0x1e]] }
  0x66   : > { %366 = vrot.lane.b32.xlu1 %v361_v27, %s4171_s10  ;;  %364 = vrot.lane.b32.xlu0 %v360_v28, %s4171_s10  ;;  %v691_v27 = vmul.f32 %v689_v26, %v4360_v50  ;;  %v690_v28 = vmul.f32 %v689_v26, %v4363_v52 }
  0x6a   : > { %380 = vrot.lane.b32.xlu1 %v375_v30, %s4171_s10  ;;  %378 = vrot.lane.b32.xlu0 %v374_v31, %s4171_s10  ;;  %v705_v30 = vmul.f32 %v703_v29, %v4360_v50  ;;  %v704_v31 = vmul.f32 %v703_v29, %v4363_v52 }
  0x6e   : > { %394 = vrot.lane.b32.xlu1 %v389_v33, %s4171_s10  ;;  %392 = vrot.lane.b32.xlu0 %v388_v34, %s4171_s10 }
  0x72   : > { %408 = vrot.lane.b32.xlu1 %v403_v36, %s4171_s10  ;;  %406 = vrot.lane.b32.xlu0 %v402_v37, %s4171_s10  ;;  %v718_v36 = vmul.f32 %v717_v32, %v4363_v52  ;;  %v731_v37 = vstv %s3697_s24  ;;  %s4506_s24 = sld [smem:[#allocation2 + $0x1a]] }
  0x73   : > { %v732_v41 = vmul.f32 %v731_v37, %v4363_v52 }
  0x76   : > { %422 = vrot.lane.b32.xlu1 %v417_v39, %s4171_s10  ;;  %420 = vrot.lane.b32.xlu0 %v416_v40, %s4171_s10  ;;  %v733_v40 = vmul.f32 %v731_v37, %v4360_v50  ;;  %v893_v37 = vstv %s4499_s20  ;;  %s4617_s20 = sld [smem:[#allocation2 + $0x1f]] }
  0x7a   : > { %436 = vrot.lane.b32.xlu1 %v431_v42, %s4171_s10  ;;  %434 = vrot.lane.b32.xlu0 %v430_v43, %s4171_s10  ;;  %v4438_v42 = vld [vmem:[%s4289_s26 + $0xa] sm:$0xff]  ;;  %v795_v43 = vstv %s3706_s25  ;;  %s4511_s25 = sld [smem:[#allocation2 + $0x4]] }
  0x7b   : > { %v797_v47 = vmul.f32 %v795_v43, %v4438_v42  ;;  %v839_v2 = vmul.f32 %v837_v61, %v4438_v42 }
  0x7e   : > { %450 = vrot.lane.b32.xlu1 %v445_v45, %s4171_s10  ;;  %448 = vrot.lane.b32.xlu0 %v444_v46, %s4171_s10 }
  0x82   : > { %464 = vrot.lane.b32.xlu1 %v459_v48, %s4171_s10  ;;  %462 = vrot.lane.b32.xlu0 %v458_v49, %s4171_s10  ;;  %v796_v48 = vmul.f32 %v795_v43, %v4441_v44  ;;  %v809_v49 = vstv %s3707_s27  ;;  %s4526_s27 = sld [smem:[#allocation2 + $0x40]]  ;;  %v485_v43 = vstv %s4506_s24  ;;  %s4633_s24 = sld [smem:[#allocation2 + $0x45]] }
  0x83   : > { %v810_v55 = vmul.f32 %v809_v49, %v4441_v44 }
  0x86   : > { %528 = vrot.lane.b32.xlu1 %v523_v53, %s4170_s28  ;;  %526 = vrot.lane.b32.xlu0 %v522_v54, %s4170_s28  ;;  %v811_v54 = vmul.f32 %v809_v49, %v4438_v42 }
  0x8a   : > { %542 = vrot.lane.b32.xlu1 %v537_v56, %s4170_s28  ;;  %540 = vrot.lane.b32.xlu0 %v536_v57, %s4170_s28  ;;  %v823_v56 = vstv %s3708_s29  ;;  %s4529_s29 = sld [smem:[#allocation2 + $0x1b]] }
  0x8e   : > { %556 = vrot.lane.b32.xlu1 %v551_v59, %s4170_s28  ;;  %554 = vrot.lane.b32.xlu0 %v550_v60, %s4170_s28  ;;  %v825_v59 = vmul.f32 %v823_v56, %v4438_v42  ;;  %v824_v60 = vmul.f32 %v823_v56, %v4441_v44 }
  0x92   : > { %570 = vrot.lane.b32.xlu1 %v565_v62, %s4170_s28  ;;  %568 = vrot.lane.b32.xlu0 %v564_v63, %s4170_s28 }
  0x96   : > { %584 = vrot.lane.b32.xlu1 %v579_v3, %s4170_s28  ;;  %582 = vrot.lane.b32.xlu0 %v578_v4, %s4170_s28  ;;  %v838_v3 = vmul.f32 %v837_v61, %v4441_v44  ;;  %v851_v4 = vstv %s4459_s4  ;;  %s4542_s4 = sld [smem:[#allocation2 + $0x41]] }
  0x9a   : > { %598 = vrot.lane.b32.xlu1 %v593_v6, %s4170_s28  ;;  %596 = vrot.lane.b32.xlu0 %v592_v7, %s4170_s28 }
  0x9e   : > { %612 = vrot.lane.b32.xlu1 %v607_v9, %s4170_s28  ;;  %610 = vrot.lane.b32.xlu0 %v606_v10, %s4170_s28  ;;  %v853_v9 = vmul.f32 %v851_v4, %v4438_v42  ;;  %v852_v10 = vmul.f32 %v851_v4, %v4441_v44  ;;  %v907_v4 = vstv %s4526_s27  ;;  %s3721_s27 = sld [smem:[#allocation2 + $0x47]] }
  0xa2   : > { %626 = vrot.lane.b32.xlu1 %v621_v12, %s4170_s28  ;;  %624 = vrot.lane.b32.xlu0 %v620_v13, %s4170_s28  ;;  %v201_v12 = vmul.f32 %v199_v5, %v4295_v1  ;;  %v865_v13 = vstv %s4473_s7  ;;  %s4568_s7 = sld [smem:[#allocation2 + $0x42]]  ;;  %v487_v5 = vmul.f32 %v485_v43, %v4360_v50 }
  0xa3   : > { %v867_v20 = vmul.f32 %v865_v13, %v4438_v42 }
  0xa6   : > { %640 = vrot.lane.b32.xlu1 %v635_v15, %s4171_s10  ;;  %638 = vrot.lane.b32.xlu0 %v634_v16, %s4171_s10  ;;  %v473_v16 = vstv %s4479_s8  ;;  %s4573_s8 = sld [smem:[#allocation2 + $0x1d]] }
  0xa7   : > { %v475_v26 = vmul.f32 %v473_v16, %v4360_v50 }
  0xaa   : > { %654 = vrot.lane.b32.xlu1 %v649_v18, %s4171_s10  ;;  %652 = vrot.lane.b32.xlu0 %v648_v19, %s4171_s10  ;;  %v207_v18 = vmul.f32 %v205_v8, %v4295_v1  ;;  %v211_v19 = vstv %s4481_s9  ;;  %v486_v8 = vmul.f32 %v485_v43, %v4363_v52  ;;  %s4584_s9 = sld [smem:[#allocation2 + $0x7]] }
  0xab   : > { %v212_v29 = vmul.f32 %v211_v19, %v4292_v0 }
  0xae   : > { %668 = vrot.lane.b32.xlu1 %v663_v21, %s4171_s10  ;;  %666 = vrot.lane.b32.xlu0 %v662_v22, %s4171_s10  ;;  %v866_v21 = vmul.f32 %v865_v13, %v4441_v44  ;;  %v879_v22 = vstv %s4487_s11  ;;  %s4591_s11 = sld [smem:[#allocation2 + $0x43]] }
  0xb2   : > { %682 = vrot.lane.b32.xlu1 %v677_v24, %s4171_s10  ;;  %680 = vrot.lane.b32.xlu0 %v676_v25, %s4171_s10 }
  0xb6   : > { %696 = vrot.lane.b32.xlu1 %v691_v27, %s4171_s10  ;;  %694 = vrot.lane.b32.xlu0 %v690_v28, %s4171_s10  ;;  %v474_v27 = vmul.f32 %v473_v16, %v4363_v52  ;;  %v213_v28 = vmul.f32 %v211_v19, %v4295_v1 }
  0xb8   : > { %v4421_v33 = vpop.permute.xlu1 %266  ;;  %v4423_v34 = vpop.permute.xlu0 %252 }
  0xb9   : > { %v258_v24 = vadd.f32 %v4423_v34, %v200_v11  ;;  %v881_v34 = vmul.f32 %v879_v22, %v4438_v42 }
  0xba   : > { %710 = vrot.lane.b32.xlu1 %v705_v30, %s4171_s10  ;;  %708 = vrot.lane.b32.xlu0 %v704_v31, %s4171_s10  ;;  %v217_v30 = vstv %s4493_s19  ;;  %s4612_s19 = sld [smem:[#allocation2 + $0x44]] }
  0xbb   : > { %v218_v56 = vmul.f32 %v217_v30, %v4292_v0 }
  0xbc   : > { %v4429_v38 = vpop.permute.xlu1 %268  ;;  %v4431_v39 = vpop.permute.xlu0 %254 }
  0xbd   : > { %v259_v25 = vadd.f32 %v4431_v39, %v201_v12  ;;  %v880_v39 = vmul.f32 %v879_v22, %v4441_v44 }
  0xbe   : > { %724 = vrot.lane.b32.xlu1 %v719_v35, %s4171_s10  ;;  %722 = vrot.lane.b32.xlu0 %v718_v36, %s4171_s10 }
  0xc0   : > { %v4443_v45 = vpop.permute.xlu1 %282  ;;  %v4445_v46 = vpop.permute.xlu0 %280 }
  0xc1   : > { %v286_v11 = vadd.f32 %v4445_v46, %v212_v29  ;;  %v921_v46 = vstv %s4542_s4  ;;  %s3734_s4 = sld [smem:[#allocation2 + $0x52]] }
  0xc2   : > { %738 = vrot.lane.b32.xlu1 %v733_v40, %s4171_s10  ;;  %736 = vrot.lane.b32.xlu0 %v732_v41, %s4171_s10  ;;  %v481_v40 = vmul.f32 %v479_v23, %v4360_v50  ;;  %v480_v41 = vmul.f32 %v479_v23, %v4363_v52  ;;  %v908_v23 = vmul.f32 %v907_v4, %v4441_v44 }
  0xc4   : > { %v4451_v51 = vpop.permute.xlu1 %296  ;;  %v4453_v53 = vpop.permute.xlu0 %294 }
  0xc6   : > { %802 = vrot.lane.b32.xlu1 %v797_v47, %s4170_s28  ;;  %800 = vrot.lane.b32.xlu0 %v796_v48, %s4170_s28  ;;  %v272_v47 = vadd.f32 %v4421_v33, %v206_v17  ;;  %v273_v48 = vadd.f32 %v4429_v38, %v207_v18  ;;  %v895_v33 = vmul.f32 %v893_v37, %v4438_v42  ;;  %v229_v18 = vstv %s4538_s30  ;;  %s3733_s30 = sld [smem:[#allocation2 + $0x51]] }
  0xc7   : > { %v894_v38 = vmul.f32 %v893_v37, %v4441_v44 }
  0xc8   : > { %v4463_v57 = vpop.permute.xlu1 %310  ;;  %v4465_v58 = vpop.permute.xlu0 %308 }
  0xca   : > { %816 = vrot.lane.b32.xlu1 %v811_v54, %s4170_s28  ;;  %814 = vrot.lane.b32.xlu0 %v810_v55, %s4170_s28  ;;  %v219_v55 = vmul.f32 %v217_v30, %v4295_v1 }
  0xcc   : > { %v4475_v62 = vpop.permute.xlu1 %324  ;;  %v4477_v63 = vpop.permute.xlu0 %322 }
  0xce   : > { %830 = vrot.lane.b32.xlu1 %v825_v59, %s4170_s28  ;;  %828 = vrot.lane.b32.xlu0 %v824_v60, %s4170_s28  ;;  %v223_v59 = vstv %s4511_s25  ;;  %s4656_s25 = sld [smem:[#allocation2 + $0x46]] }
  0xcf   : > { %v225_v16 = vmul.f32 %v223_v59, %v4295_v1  ;;  %v224_v17 = vmul.f32 %v223_v59, %v4292_v0 }
  0xd0   : > { %v4495_v6 = vpop.permute.xlu1 %338  ;;  %v4497_v7 = vpop.permute.xlu0 %336 }
  0xd2   : > { %844 = vrot.lane.b32.xlu1 %v839_v2, %s4170_s28  ;;  %842 = vrot.lane.b32.xlu0 %v838_v3, %s4170_s28 }
  0xd4   : > { %v4513_v14 = vpop.permute.xlu1 %352  ;;  %v4515_v15 = vpop.permute.xlu0 %350 }
  0xd6   : > { %858 = vrot.lane.b32.xlu1 %v853_v9, %s4170_s28  ;;  %856 = vrot.lane.b32.xlu0 %v852_v10, %s4170_s28  ;;  %v491_v9 = vstv %s4529_s29  ;;  %v287_v10 = vadd.f32 %v4443_v45, %v213_v28  ;;  %v909_v45 = vmul.f32 %v907_v4, %v4438_v42  ;;  %v300_v28 = vadd.f32 %v4453_v53, %v218_v56  ;;  %s3732_s29 = sld [smem:[#allocation2 + $0x50]] }
  0xd7   : > { %v935_v53 = vstv %s4568_s7  ;;  %s3737_s7 = sld [smem:[#allocation2 + $0x55]] }
  0xd8   : > { %v367_v31 = vpop.permute.xlu1 %366  ;;  %v365_v32 = vpop.permute.xlu0 %364 }
  0xd9   : > { %v371_v35 = vadd.f32 %v367_v31, %v259_v25  ;;  %v370_v36 = vadd.f32 %v365_v32, %v258_v24  ;;  %v493_v24 = vmul.f32 %v491_v9, %v4360_v50  ;;  %v492_v25 = vmul.f32 %v491_v9, %v4363_v52 }
  0xda   : > { %872 = vrot.lane.b32.xlu1 %v867_v20, %s4170_s28  ;;  %870 = vrot.lane.b32.xlu0 %v866_v21, %s4170_s28  ;;  %v231_v31 = vmul.f32 %v229_v18, %v4295_v1  ;;  %v230_v32 = vmul.f32 %v229_v18, %v4292_v0 }
  0xdb   : > { %v4554_v49 = vadd.f32 %v475_v26, %v371_v35  ;;  %v4556_v54 = vadd.f32 %v474_v27, %v370_v36  ;;  %v497_v26 = vstv %s4550_s5  ;;  %v301_v27 = vadd.f32 %v4451_v51, %v219_v55  ;;  %s3735_s5 = sld [smem:[#allocation2 + $0x53]] }
  0xdc   : > { %v381_v60 = vpop.permute.xlu1 %380  ;;  %v379_v61 = vpop.permute.xlu0 %378  ;;  %v235_v35 = vstv %s4561_s6  ;;  %v922_v51 = vmul.f32 %v921_v46, %v4441_v44  ;;  %v498_v43 = vmul.f32 %v497_v26, %v4363_v52  ;;  %v314_v55 = vadd.f32 %v4465_v58, %v224_v17  ;;  %s3736_s6 = sld [smem:[#allocation2 + $0x54]] }
  0xdd   : > { %v385_v2 = vadd.f32 %v381_v60, %v273_v48  ;;  %v384_v3 = vadd.f32 %v379_v61, %v272_v47  ;;  %v503_v47 = vstv %s4573_s8  ;;  %v315_v48 = vadd.f32 %v4463_v57, %v225_v16  ;;  %s3738_s8 = sld [smem:[#allocation2 + $0x56]] }
  0xde   : > { %886 = vrot.lane.b32.xlu1 %v881_v34, %s4170_s28  ;;  %884 = vrot.lane.b32.xlu0 %v880_v39, %s4170_s28  ;;  %v237_v60 = vmul.f32 %v235_v35, %v4295_v1  ;;  %v236_v61 = vmul.f32 %v235_v35, %v4292_v0  ;;  %v936_v57 = vmul.f32 %v935_v53, %v4441_v44  ;;  %v949_v58 = vstv %s4591_s11  ;;  %s3740_s11 = sld [smem:[#allocation2 + $0x58]] }
  0xdf   : > { %v4577_v12 = vadd.f32 %v481_v40, %v385_v2  ;;  %v4579_v13 = vadd.f32 %v480_v41, %v384_v3  ;;  %v923_v40 = vmul.f32 %v921_v46, %v4438_v42  ;;  %v499_v41 = vmul.f32 %v497_v26, %v4360_v50 }
  0xe0   : > { %v395_v19 = vpop.permute.xlu1 %394  ;;  %v393_v20 = vpop.permute.xlu0 %392  ;;  %v241_v2 = vstv %s4584_s9  ;;  %v504_v9 = vmul.f32 %v503_v47, %v4363_v52  ;;  %v328_v16 = vadd.f32 %v4477_v63, %v230_v32  ;;  %v342_v26 = vadd.f32 %v4497_v7, %v236_v61  ;;  %s3739_s9 = sld [smem:[#allocation2 + $0x57]] }
  0xe1   : > { %v399_v21 = vadd.f32 %v395_v19, %v287_v10  ;;  %v398_v22 = vadd.f32 %v393_v20, %v286_v11  ;;  %v509_v10 = vstv %s4596_s17  ;;  %v329_v11 = vadd.f32 %v4475_v62, %v231_v31  ;;  %s3741_s17 = sld [smem:[#allocation2 + $0x59]] }
  0xe2   : > { %900 = vrot.lane.b32.xlu1 %v895_v33, %s4170_s28  ;;  %898 = vrot.lane.b32.xlu0 %v894_v38, %s4170_s28  ;;  %v243_v19 = vmul.f32 %v241_v2, %v4295_v1  ;;  %v242_v20 = vmul.f32 %v241_v2, %v4292_v0  ;;  %v963_v62 = vstv %s4612_s19  ;;  %v511_v63 = vmul.f32 %v509_v10, %v4360_v50  ;;  %s3742_s19 = sld [smem:[#allocation2 + $0x5a]] }
  0xe3   : > { %v4600_v29 = vadd.f32 %v487_v5, %v399_v21  ;;  %v4602_v30 = vadd.f32 %v486_v8, %v398_v22  ;;  %v937_v5 = vmul.f32 %v935_v53, %v4438_v42  ;;  %v505_v8 = vmul.f32 %v503_v47, %v4360_v50 }
  0xe4   : > { %v409_v36 = vpop.permute.xlu1 %408  ;;  %v407_v34 = vpop.permute.xlu0 %406  ;;  %v510_v1 = vmul.f32 %v509_v10, %v4363_v52  ;;  %v343_v0 = vadd.f32 %v4495_v6, %v237_v60  ;;  %v964_v6 = vmul.f32 %v963_v62, %v4441_v44  ;;  %v4704_v10 = vld [vmem:[%s4289_s26 + $0x18] sm:$0xff] }
  0xe5   : > { %v413_v37 = vadd.f32 %v409_v36, %v301_v27  ;;  %v412_v39 = vadd.f32 %v407_v34, %v300_v28  ;;  %v965_v34 = vmul.f32 %v963_v62, %v4438_v42 }
  0xe6   : > { %914 = vrot.lane.b32.xlu1 %v909_v45, %s4171_s10  ;;  %912 = vrot.lane.b32.xlu0 %v908_v23, %s4171_s10  ;;  %v951_v23 = vmul.f32 %v949_v58, %v4438_v42 }
  0xe7   : > { %v4621_v56 = vadd.f32 %v493_v24, %v413_v37  ;;  %v4623_v59 = vadd.f32 %v492_v25, %v412_v39  ;;  %v950_v24 = vmul.f32 %v949_v58, %v4441_v44  ;;  %v515_v25 = vstv %s4617_s20  ;;  %s3743_s20 = sld [smem:[#allocation2 + $0x5b]] }
  0xe8   : > { %v423_v3 = vpop.permute.xlu1 %422  ;;  %v421_v33 = vpop.permute.xlu0 %420  ;;  %v977_v37 = vstv %s4633_s24  ;;  %v517_v7 = vmul.f32 %v515_v25, %v4360_v50  ;;  %v516_v39 = vmul.f32 %v515_v25, %v4363_v52  ;;  %s3744_s24 = sld [smem:[#allocation2 + $0x5c]] }
  0xe9   : > { %v427_v38 = vadd.f32 %v423_v3, %v315_v48  ;;  %v426_v4 = vadd.f32 %v421_v33, %v314_v55  ;;  %v979_v50 = vmul.f32 %v977_v37, %v4438_v42  ;;  %v978_v52 = vmul.f32 %v977_v37, %v4441_v44 }
  0xea   : > { %928 = vrot.lane.b32.xlu1 %v923_v40, %s4171_s10  ;;  %926 = vrot.lane.b32.xlu0 %v922_v51, %s4171_s10  ;;  %v357_v40 = vadd.f32 %v4513_v14, %v243_v19  ;;  %v356_v51 = vadd.f32 %v4515_v15, %v242_v20  ;;  %v991_v14 = vstv %s4656_s25  ;;  %v1084_v20 = vstv %s3733_s30  ;;  %s3745_s25 = sld [smem:[#allocation2 + $0x5d]]  ;;  %s3758_s30 = sld [smem:[#allocation2 + $0x68]] }
  0xeb   : > { %v4640_v17 = vadd.f32 %v499_v41, %v427_v38  ;;  %v4642_v18 = vadd.f32 %v498_v43, %v426_v4  ;;  %v993_v3 = vmul.f32 %v991_v14, %v4438_v42  ;;  %v992_v33 = vmul.f32 %v991_v14, %v4441_v44 }
  0xec   : > { %v437_v21 = vpop.permute.xlu1 %436  ;;  %v435_v22 = vpop.permute.xlu0 %434  ;;  %v1005_v38 = vstv %s3721_s27  ;;  %v1140_v37 = vstv %s3737_s7  ;;  %s3746_s27 = sld [smem:[#allocation2 + $0x5e]]  ;;  %s3762_s7 = sld [smem:[#allocation2 + $0x6c]] }
  0xed   : > { %v441_v45 = vadd.f32 %v437_v21, %v329_v11  ;;  %v440_v46 = vadd.f32 %v435_v22, %v328_v16  ;;  %v1006_v58 = vmul.f32 %v1005_v38, %v4441_v44 }
  0xee   : > { %942 = vrot.lane.b32.xlu1 %v937_v5, %s4171_s10  ;;  %940 = vrot.lane.b32.xlu0 %v936_v57, %s4171_s10  ;;  %v1007_v57 = vmul.f32 %v1005_v38, %v4438_v42 }
  0xef   : > { %v4658_v27 = vadd.f32 %v505_v8, %v441_v45  ;;  %v4660_v28 = vadd.f32 %v504_v9, %v440_v46  ;;  %v4701_v8 = vld [vmem:[%s4289_s26 + $0x20] sm:$0xff]  ;;  %v1070_v9 = vstv %s3732_s29  ;;  %v1085_v45 = vmul.f32 %v4704_v10, %v1084_v20  ;;  %s3747_s29 = sld [smem:[#allocation2 + $0x5f]] }
  0xf0   : > { %v451_v31 = vpop.permute.xlu1 %450  ;;  %v449_v32 = vpop.permute.xlu0 %448  ;;  %v1072_v19 = vmul.f32 %v4701_v8, %v1070_v9  ;;  %v1071_v42 = vmul.f32 %v4704_v10, %v1070_v9  ;;  %v1086_v22 = vmul.f32 %v4701_v8, %v1084_v20  ;;  %v1098_v46 = vstv %s3734_s4  ;;  %s3759_s4 = sld [smem:[#allocation2 + $0x69]] }
  0xf1   : > { %v455_v35 = vadd.f32 %v451_v31, %v343_v0  ;;  %v454_v36 = vadd.f32 %v449_v32, %v342_v26  ;;  %v1100_v62 = vmul.f32 %v4701_v8, %v1098_v46  ;;  %v1126_v32 = vstv %s3736_s6  ;;  %s3761_s6 = sld [smem:[#allocation2 + $0x6b]] }
  0xf2   : > { %956 = vrot.lane.b32.xlu1 %v951_v23, %s4171_s10  ;;  %954 = vrot.lane.b32.xlu0 %v950_v24, %s4171_s10  ;;  %v1196_v20 = vstv %s3741_s17  ;;  %s3766_s17 = sld [smem:[#allocation2 + $0x70]] }
  0xf3   : > { %v4671_v53 = vadd.f32 %v511_v63, %v455_v35  ;;  %v4673_v41 = vadd.f32 %v510_v1, %v454_v36  ;;  %v1099_v63 = vmul.f32 %v4704_v10, %v1098_v46  ;;  %v1112_v1 = vstv %s3735_s5  ;;  %s3760_s5 = sld [smem:[#allocation2 + $0x6a]] }
  0xf4   : > { %v465_v43 = vpop.permute.xlu1 %464  ;;  %v463_v47 = vpop.permute.xlu0 %462  ;;  %v1114_v26 = vmul.f32 %v4701_v8, %v1112_v1  ;;  %v1113_v31 = vmul.f32 %v4704_v10, %v1112_v1  ;;  %v1198_v46 = vmul.f32 %v4701_v8, %v1196_v20 }
  0xf5   : > { %v469_v48 = vadd.f32 %v465_v43, %v357_v40  ;;  %v468_v55 = vadd.f32 %v463_v47, %v356_v51  ;;  %v1142_v40 = vmul.f32 %v4701_v8, %v1140_v37  ;;  %v1141_v51 = vmul.f32 %v4704_v10, %v1140_v37 }
  0xf6   : > { %970 = vrot.lane.b32.xlu1 %v965_v34, %s4171_s10  ;;  %968 = vrot.lane.b32.xlu0 %v964_v6, %s4171_s10  ;;  %v1128_v34 = vmul.f32 %v4701_v8, %v1126_v32  ;;  %v1127_v6 = vmul.f32 %v4704_v10, %v1126_v32  ;;  %v1154_v43 = vstv %s3738_s8  ;;  %s3763_s8 = sld [smem:[#allocation2 + $0x6d]] }
  0xf7   : > { %v4680_v15 = vadd.f32 %v517_v7, %v469_v48  ;;  %v4682_v60 = vadd.f32 %v516_v39, %v468_v55  ;;  %v1156_v55 = vmul.f32 %v4701_v8, %v1154_v43 }
  0xf8   : > { %v4684_v61 = vpop.permute.xlu1 %528  ;;  %v4686_v2 = vpop.permute.xlu0 %526 }
  0xfa   : > { %984 = vrot.lane.b32.xlu1 %v979_v50, %s4171_s10  ;;  %982 = vrot.lane.b32.xlu0 %v978_v52, %s4171_s10  ;;  %v1155_v50 = vmul.f32 %v4704_v10, %v1154_v43  ;;  %v1168_v52 = vstv %s3739_s9  ;;  %v1238_v43 = vstv %s3744_s24  ;;  %s3764_s9 = sld [smem:[#allocation2 + $0x6e]]  ;;  %s3769_s24 = sld [smem:[#allocation2 + $0x73]] }
  0xfb   : > { %v1169_v38 = vmul.f32 %v4704_v10, %v1168_v52 }
  0xfc   : > { %v4692_v4 = vpop.permute.xlu1 %542  ;;  %v4694_v5 = vpop.permute.xlu0 %540 }
  0xfe   : > { %998 = vrot.lane.b32.xlu1 %v993_v3, %s4171_s10  ;;  %996 = vrot.lane.b32.xlu0 %v992_v33, %s4171_s10  ;;  %v1170_v33 = vmul.f32 %v4701_v8, %v1168_v52  ;;  %v1240_v52 = vmul.f32 %v4701_v8, %v1238_v43 }
 0x100   : > { %v4706_v11 = vpop.permute.xlu1 %556  ;;  %v4708_v16 = vpop.permute.xlu0 %554 }
 0x102   : > { %1012 = vrot.lane.b32.xlu1 %v1007_v57, %s4171_s10  ;;  %1010 = vrot.lane.b32.xlu0 %v1006_v58, %s4171_s10  ;;  %v1182_v57 = vstv %s3740_s11  ;;  %s3765_s11 = sld [smem:[#allocation2 + $0x6f]] }
 0x104   : > { %v4714_v44 = vpop.permute.xlu1 %570  ;;  %v4716_v21 = vpop.permute.xlu0 %568 }
 0x106   : > { %1077 = vrot.lane.b32.xlu1 %v1072_v19, %s4170_s28  ;;  %1075 = vrot.lane.b32.xlu0 %v1071_v42, %s4170_s28  ;;  %v1184_v19 = vmul.f32 %v4701_v8, %v1182_v57  ;;  %v1183_v42 = vmul.f32 %v4704_v10, %v1182_v57 }
 0x108   : > { %v4722_v23 = vpop.permute.xlu1 %584  ;;  %v4724_v24 = vpop.permute.xlu0 %582 }
 0x10a   : > { %1091 = vrot.lane.b32.xlu1 %v1086_v22, %s4170_s28  ;;  %1089 = vrot.lane.b32.xlu0 %v1085_v45, %s4170_s28 }
 0x10c   : > { %v4730_v25 = vpop.permute.xlu1 %598  ;;  %v4732_v0 = vpop.permute.xlu0 %596 }
 0x10e   : > { %1105 = vrot.lane.b32.xlu1 %v1100_v62, %s4170_s28  ;;  %1103 = vrot.lane.b32.xlu0 %v1099_v63, %s4170_s28  ;;  %v1197_v62 = vmul.f32 %v4704_v10, %v1196_v20  ;;  %v1210_v63 = vstv %s3742_s19  ;;  %s3767_s19 = sld [smem:[#allocation2 + $0x71]] }
 0x10f   : > { %v1211_v32 = vmul.f32 %v4704_v10, %v1210_v63 }
 0x110   : > { %v4738_v35 = vpop.permute.xlu1 %612  ;;  %v4740_v36 = vpop.permute.xlu0 %610 }
 0x112   : > { %1119 = vrot.lane.b32.xlu1 %v1114_v26, %s4170_s28  ;;  %1117 = vrot.lane.b32.xlu0 %v1113_v31, %s4170_s28  ;;  %v1212_v31 = vmul.f32 %v4701_v8, %v1210_v63 }
 0x114   : > { %v4746_v7 = vpop.permute.xlu1 %626  ;;  %v4748_v39 = vpop.permute.xlu0 %624 }
 0x116   : > { %1133 = vrot.lane.b32.xlu1 %v1128_v34, %s4170_s28  ;;  %1131 = vrot.lane.b32.xlu0 %v1127_v6, %s4170_s28  ;;  %v1224_v34 = vstv %s3743_s20  ;;  %s3768_s20 = sld [smem:[#allocation2 + $0x72]] }
 0x118   : > { %v4754_v47 = vpop.permute.xlu1 %640  ;;  %v4756_v48 = vpop.permute.xlu0 %638 }
 0x11a   : > { %1147 = vrot.lane.b32.xlu1 %v1142_v40, %s4170_s28  ;;  %1145 = vrot.lane.b32.xlu0 %v1141_v51, %s4170_s28  ;;  %v1226_v40 = vmul.f32 %v4701_v8, %v1224_v34  ;;  %v1225_v51 = vmul.f32 %v4704_v10, %v1224_v34  ;;  %v1280_v34 = vstv %s3747_s29  ;;  %s3772_s29 = sld [smem:[#allocation2 + $0x76]] }
 0x11c   : > { %v4762_v14 = vpop.permute.xlu1 %654  ;;  %v4764_v3 = vpop.permute.xlu0 %652 }
 0x11e   : > { %1161 = vrot.lane.b32.xlu1 %v1156_v55, %s4170_s28  ;;  %1159 = vrot.lane.b32.xlu0 %v1155_v50, %s4170_s28 }
 0x120   : > { %v4770_v58 = vpop.permute.xlu1 %668  ;;  %v4772_v9 = vpop.permute.xlu0 %666 }
 0x122   : > { %1175 = vrot.lane.b32.xlu1 %v1170_v33, %s4170_s28  ;;  %1173 = vrot.lane.b32.xlu0 %v1169_v38, %s4170_s28  ;;  %v1239_v33 = vmul.f32 %v4704_v10, %v1238_v43  ;;  %v1252_v38 = vstv %s3745_s25  ;;  %v1282_v43 = vmul.f32 %v4701_v8, %v1280_v34  ;;  %s3770_s25 = sld [smem:[#allocation2 + $0x74]] }
 0x123   : > { %v1253_v20 = vmul.f32 %v4704_v10, %v1252_v38 }
 0x124   : > { %v4778_v22 = vpop.permute.xlu1 %682  ;;  %v4780_v45 = vpop.permute.xlu0 %680 }
 0x126   : > { %1189 = vrot.lane.b32.xlu1 %v1184_v19, %s4171_s10  ;;  %1187 = vrot.lane.b32.xlu0 %v1183_v42, %s4171_s10  ;;  %v1254_v42 = vmul.f32 %v4701_v8, %v1252_v38  ;;  %v1344_v38 = vstv %s3758_s30  ;;  %s3773_s30 = sld [smem:[#allocation2 + $0x77]] }
 0x128   : > { %v4786_v1 = vpop.permute.xlu1 %696  ;;  %v4788_v26 = vpop.permute.xlu0 %694 }
 0x129   : > { %7630 = vst [vmem:[#allocation11_spill] sm:$0xff] %v4786_v1  ;;  %7631 = vst [vmem:[#allocation12_spill] sm:$0xff] %v4788_v26 }
 0x12a   : > { %1203 = vrot.lane.b32.xlu1 %v1198_v46, %s4171_s10  ;;  %1201 = vrot.lane.b32.xlu0 %v1197_v62, %s4171_s10  ;;  %v1266_v46 = vstv %s3746_s27  ;;  %s3771_s27 = sld [smem:[#allocation2 + $0x75]] }
 0x12c   : > { %v4794_v6 = vpop.permute.xlu1 %710  ;;  %v4796_v37 = vpop.permute.xlu0 %708 }
 0x12d   : > { %7632 = vst [vmem:[#allocation13_spill] sm:$0xff] %v4794_v6  ;;  %7633 = vst [vmem:[#allocation14_spill] sm:$0xff] %v4796_v37 }
 0x12e   : > { %1217 = vrot.lane.b32.xlu1 %v1212_v31, %s4171_s10  ;;  %1215 = vrot.lane.b32.xlu0 %v1211_v32, %s4171_s10  ;;  %v1268_v31 = vmul.f32 %v4701_v8, %v1266_v46  ;;  %v1267_v32 = vmul.f32 %v4704_v10, %v1266_v46 }
 0x130   : > { %v4802_v55 = vpop.permute.xlu1 %724  ;;  %v4804_v50 = vpop.permute.xlu0 %722 }
 0x131   : > { %7634 = vst [vmem:[#allocation15_spill] sm:$0xff] %v4802_v55  ;;  %7635 = vst [vmem:[#allocation16_spill] sm:$0xff] %v4804_v50 }
 0x132   : > { %1231 = vrot.lane.b32.xlu1 %v1226_v40, %s4171_s10  ;;  %1229 = vrot.lane.b32.xlu0 %v1225_v51, %s4171_s10 }
 0x134   : > { %v4810_v57 = vpop.permute.xlu1 %738  ;;  %v4812_v19 = vpop.permute.xlu0 %736 }
 0x135   : > { %7636 = vst [vmem:[#allocation17_spill] sm:$0xff] %v4810_v57  ;;  %7637 = vst [vmem:[#allocation18_spill] sm:$0xff] %v4812_v19 }
 0x136   : > { %1245 = vrot.lane.b32.xlu1 %v1240_v52, %s4171_s10  ;;  %1243 = vrot.lane.b32.xlu0 %v1239_v33, %s4171_s10  ;;  %v1281_v52 = vmul.f32 %v4704_v10, %v1280_v34  ;;  %v4835_v33 = vld [vmem:[%s4289_s26 + $0x21] sm:$0xff] }
 0x138   : > { %v4818_v62 = vpop.permute.xlu1 %802  ;;  %v4820_v63 = vpop.permute.xlu0 %800 }
 0x139   : > { %7638 = vst [vmem:[#allocation19_spill] sm:$0xff] %v4818_v62  ;;  %7639 = vst [vmem:[#allocation20_spill] sm:$0xff] %v4820_v63  ;;  %v4049_v63 = vld [vmem:[%s4289_s26 + $0x2] sm:$0xff] }
 0x13a   : > { %1259 = vrot.lane.b32.xlu1 %v1254_v42, %s4171_s10  ;;  %1257 = vrot.lane.b32.xlu0 %v1253_v20, %s4171_s10  ;;  %v4838_v42 = vld [vmem:[%s4289_s26 + $0x19] sm:$0xff] }
 0x13b   : > { %v1345_v8 = vmul.f32 %v4838_v42, %v1344_v38 }
 0x13c   : > { %v4826_v40 = vpop.permute.xlu1 %816  ;;  %v4828_v51 = vpop.permute.xlu0 %814 }
 0x13d   : > { %7640 = vst [vmem:[#allocation21_spill] sm:$0xff] %v4826_v40  ;;  %7641 = vst [vmem:[#allocation22_spill] sm:$0xff] %v4828_v51 }
 0x13e   : > { %1273 = vrot.lane.b32.xlu1 %v1268_v31, %s4171_s10  ;;  %1271 = vrot.lane.b32.xlu0 %v1267_v32, %s4171_s10  ;;  %v1346_v31 = vmul.f32 %v4835_v33, %v1344_v38  ;;  %v1358_v32 = vstv %s3759_s4  ;;  %s3784_s4 = sld [smem:[#allocation2 + $0x80]] }
 0x140   : > { %v4840_v20 = vpop.permute.xlu1 %830  ;;  %v4842_v46 = vpop.permute.xlu0 %828 }
 0x141   : > { %7642 = vst [vmem:[#allocation23_spill] sm:$0xff] %v4840_v20  ;;  %7643 = vst [vmem:[#allocation24_spill] sm:$0xff] %v4842_v46  ;;  %v1360_v46 = vmul.f32 %v4835_v33, %v1358_v32  ;;  %v1372_v20 = vstv %s3760_s5  ;;  %s3785_s5 = sld [smem:[#allocation2 + $0x81]] }
 0x142   : > { %1287 = vrot.lane.b32.xlu1 %v1282_v43, %s4171_s10  ;;  %1285 = vrot.lane.b32.xlu0 %v1281_v52, %s4171_s10  ;;  %v1359_v43 = vmul.f32 %v4838_v42, %v1358_v32  ;;  %v1374_v38 = vmul.f32 %v4835_v33, %v1372_v20 }
 0x144   : > { %v4848_v10 = vpop.permute.xlu1 %844  ;;  %v4850_v34 = vpop.permute.xlu0 %842 }
 0x145   : > { %7644 = vst [vmem:[#allocation25_spill] sm:$0xff] %v4848_v10  ;;  %7645 = vst [vmem:[#allocation26_spill] sm:$0xff] %v4850_v34  ;;  %v1386_v34 = vstv %s3761_s6  ;;  %s3786_s6 = sld [smem:[#allocation2 + $0x82]] }
 0x146   : > { %1351 = vrot.lane.b32.xlu1 %v1346_v31, %s4170_s28  ;;  %1349 = vrot.lane.b32.xlu0 %v1345_v8, %s4170_s28  ;;  %v1373_v31 = vmul.f32 %v4838_v42, %v1372_v20  ;;  %v1388_v32 = vmul.f32 %v4835_v33, %v1386_v34 }
 0x148   : > { %v4856_v52 = vpop.permute.xlu1 %858  ;;  %v4858_v51 = vpop.permute.xlu0 %856 }
 0x149   : > { %7646 = vst [vmem:[#allocation27_spill] sm:$0xff] %v4856_v52  ;;  %7647 = vst [vmem:[#allocation28_spill] sm:$0xff] %v4858_v51  ;;  %v1400_v51 = vstv %s3762_s7  ;;  %s3787_s7 = sld [smem:[#allocation2 + $0x83]] }
 0x14a   : > { %1365 = vrot.lane.b32.xlu1 %v1360_v46, %s4170_s28  ;;  %1363 = vrot.lane.b32.xlu0 %v1359_v43, %s4170_s28  ;;  %v1387_v46 = vmul.f32 %v4838_v42, %v1386_v34  ;;  %v1402_v20 = vmul.f32 %v4835_v33, %v1400_v51 }
 0x14c   : > { %v4864_v8 = vpop.permute.xlu1 %872  ;;  %v4866_v10 = vpop.permute.xlu0 %870 }
 0x14d   : > { %7648 = vst [vmem:[#allocation29_spill] sm:$0xff] %v4864_v8  ;;  %7649 = vst [vmem:[#allocation30_spill] sm:$0xff] %v4866_v10  ;;  %v1414_v10 = vstv %s3763_s8  ;;  %s3788_s8 = sld [smem:[#allocation2 + $0x84]] }
 0x14e   : > { %1379 = vrot.lane.b32.xlu1 %v1374_v38, %s4170_s28  ;;  %1377 = vrot.lane.b32.xlu0 %v1373_v31, %s4170_s28  ;;  %v1401_v38 = vmul.f32 %v4838_v42, %v1400_v51  ;;  %v1416_v34 = vmul.f32 %v4835_v33, %v1414_v10 }
 0x150   : > { %v4872_v43 = vpop.permute.xlu1 %886  ;;  %v4874_v52 = vpop.permute.xlu0 %884 }
 0x151   : > { %7650 = vst [vmem:[#allocation31_spill] sm:$0xff] %v4872_v43  ;;  %7651 = vst [vmem:[#allocation32_spill] sm:$0xff] %v4874_v52  ;;  %v1428_v52 = vstv %s3764_s9  ;;  %s3789_s9 = sld [smem:[#allocation2 + $0x85]] }
 0x152   : > { %1393 = vrot.lane.b32.xlu1 %v1388_v32, %s4170_s28  ;;  %1391 = vrot.lane.b32.xlu0 %v1387_v46, %s4170_s28  ;;  %v1415_v32 = vmul.f32 %v4838_v42, %v1414_v10  ;;  %v1430_v51 = vmul.f32 %v4835_v33, %v1428_v52 }
 0x154   : > { %v4880_v31 = vpop.permute.xlu1 %900  ;;  %v4882_v8 = vpop.permute.xlu0 %898 }
 0x155   : > { %7652 = vst [vmem:[#allocation33_spill] sm:$0xff] %v4880_v31  ;;  %7653 = vst [vmem:[#allocation34_spill] sm:$0xff] %v4882_v8  ;;  %v1442_v8 = vstv %s3765_s11  ;;  %s3790_s11 = sld [smem:[#allocation2 + $0x86]] }
 0x156   : > { %1407 = vrot.lane.b32.xlu1 %v1402_v20, %s4170_s28  ;;  %1405 = vrot.lane.b32.xlu0 %v1401_v38, %s4170_s28  ;;  %v1429_v20 = vmul.f32 %v4838_v42, %v1428_v52  ;;  %v1444_v10 = vmul.f32 %v4835_v33, %v1442_v8 }
 0x158   : > { %v4888_v46 = vpop.permute.xlu1 %914  ;;  %v4890_v43 = vpop.permute.xlu0 %912 }
 0x159   : > { %7654 = vst [vmem:[#allocation35_spill] sm:$0xff] %v4888_v46  ;;  %7655 = vst [vmem:[#allocation36_spill] sm:$0xff] %v4890_v43  ;;  %v1456_v43 = vstv %s3766_s17  ;;  %s3791_s17 = sld [smem:[#allocation2 + $0x87]] }
 0x15a   : > { %1421 = vrot.lane.b32.xlu1 %v1416_v34, %s4170_s28  ;;  %1419 = vrot.lane.b32.xlu0 %v1415_v32, %s4170_s28  ;;  %v1443_v34 = vmul.f32 %v4838_v42, %v1442_v8  ;;  %v1458_v52 = vmul.f32 %v4835_v33, %v1456_v43 }
 0x15c   : > { %v4896_v38 = vpop.permute.xlu1 %928  ;;  %v4898_v31 = vpop.permute.xlu0 %926 }
 0x15d   : > { %7656 = vst [vmem:[#allocation37_spill] sm:$0xff] %v4896_v38  ;;  %7657 = vst [vmem:[#allocation38_spill] sm:$0xff] %v4898_v31  ;;  %v1470_v31 = vstv %s3767_s19  ;;  %s3792_s19 = sld [smem:[#allocation2 + $0x88]] }
 0x15e   : > { %1435 = vrot.lane.b32.xlu1 %v1430_v51, %s4170_s28  ;;  %1433 = vrot.lane.b32.xlu0 %v1429_v20, %s4170_s28  ;;  %v1457_v51 = vmul.f32 %v4838_v42, %v1456_v43  ;;  %v1472_v8 = vmul.f32 %v4835_v33, %v1470_v31 }
 0x160   : > { %v4904_v32 = vpop.permute.xlu1 %942  ;;  %v4906_v46 = vpop.permute.xlu0 %940 }
 0x161   : > { %7658 = vst [vmem:[#allocation39_spill] sm:$0xff] %v4904_v32  ;;  %7659 = vst [vmem:[#allocation40_spill] sm:$0xff] %v4906_v46  ;;  %v1484_v46 = vstv %s3768_s20  ;;  %s3793_s20 = sld [smem:[#allocation2 + $0x89]] }
 0x162   : > { %1449 = vrot.lane.b32.xlu1 %v1444_v10, %s4170_s28  ;;  %1447 = vrot.lane.b32.xlu0 %v1443_v34, %s4170_s28  ;;  %v1471_v10 = vmul.f32 %v4838_v42, %v1470_v31  ;;  %v1486_v43 = vmul.f32 %v4835_v33, %v1484_v46 }
 0x164   : > { %v4912_v20 = vpop.permute.xlu1 %956  ;;  %v4914_v38 = vpop.permute.xlu0 %954 }
 0x165   : > { %7660 = vst [vmem:[#allocation41_spill] sm:$0xff] %v4912_v20  ;;  %7661 = vst [vmem:[#allocation42_spill] sm:$0xff] %v4914_v38  ;;  %v1498_v38 = vstv %s3769_s24  ;;  %s3794_s24 = sld [smem:[#allocation2 + $0x8a]] }
 0x166   : > { %1463 = vrot.lane.b32.xlu1 %v1458_v52, %s4171_s10  ;;  %1461 = vrot.lane.b32.xlu0 %v1457_v51, %s4171_s10  ;;  %v1485_v52 = vmul.f32 %v4838_v42, %v1484_v46  ;;  %v1500_v31 = vmul.f32 %v4835_v33, %v1498_v38 }
 0x168   : > { %v4920_v34 = vpop.permute.xlu1 %970  ;;  %v4922_v32 = vpop.permute.xlu0 %968 }
 0x169   : > { %7662 = vst [vmem:[#allocation43_spill] sm:$0xff] %v4920_v34  ;;  %7663 = vst [vmem:[#allocation44_spill] sm:$0xff] %v4922_v32  ;;  %v1512_v32 = vstv %s3770_s25  ;;  %s3795_s25 = sld [smem:[#allocation2 + $0x8b]] }
 0x16a   : > { %1477 = vrot.lane.b32.xlu1 %v1472_v8, %s4171_s10  ;;  %1475 = vrot.lane.b32.xlu0 %v1471_v10, %s4171_s10  ;;  %v1499_v8 = vmul.f32 %v4838_v42, %v1498_v38  ;;  %v1514_v46 = vmul.f32 %v4835_v33, %v1512_v32 }
 0x16c   : > { %v4928_v51 = vpop.permute.xlu1 %984  ;;  %v4930_v20 = vpop.permute.xlu0 %982 }
 0x16d   : > { %7664 = vst [vmem:[#allocation45_spill] sm:$0xff] %v4928_v51  ;;  %7665 = vst [vmem:[#allocation46_spill] sm:$0xff] %v4930_v20  ;;  %v1526_v20 = vstv %s3771_s27  ;;  %s3796_s27 = sld [smem:[#allocation2 + $0x8c]] }
 0x16e   : > { %1491 = vrot.lane.b32.xlu1 %v1486_v43, %s4171_s10  ;;  %1489 = vrot.lane.b32.xlu0 %v1485_v52, %s4171_s10  ;;  %v1513_v43 = vmul.f32 %v4838_v42, %v1512_v32  ;;  %v1528_v38 = vmul.f32 %v4835_v33, %v1526_v20 }
 0x170   : > { %v4936_v10 = vpop.permute.xlu1 %998  ;;  %v4938_v34 = vpop.permute.xlu0 %996 }
 0x171   : > { %7666 = vst [vmem:[#allocation47_spill] sm:$0xff] %v4936_v10  ;;  %7667 = vst [vmem:[#allocation48_spill] sm:$0xff] %v4938_v34  ;;  %v1540_v34 = vstv %s3772_s29  ;;  %v4972_v10 = vld [vmem:[%s4289_s26 + $0x1a] sm:$0xff]  ;;  %s3797_s29 = sld [smem:[#allocation2 + $0x8d]] }
 0x172   : > { %1505 = vrot.lane.b32.xlu1 %v1500_v31, %s4171_s10  ;;  %1503 = vrot.lane.b32.xlu0 %v1499_v8, %s4171_s10  ;;  %v1527_v31 = vmul.f32 %v4838_v42, %v1526_v20 }
 0x174   : > { %v4944_v52 = vpop.permute.xlu1 %1012  ;;  %v4946_v51 = vpop.permute.xlu0 %1010 }
 0x175   : > { %7668 = vst [vmem:[#allocation49_spill] sm:$0xff] %v4944_v52  ;;  %7669 = vst [vmem:[#allocation50_spill] sm:$0xff] %v4946_v51  ;;  %v1554_v51 = vstv %s3773_s30  ;;  %s3798_s30 = sld [smem:[#allocation2 + $0x8e]] }
 0x176   : > { %1519 = vrot.lane.b32.xlu1 %v1514_v46, %s4171_s10  ;;  %1517 = vrot.lane.b32.xlu0 %v1513_v43, %s4171_s10  ;;  %v1542_v46 = vmul.f32 %v4835_v33, %v1540_v34  ;;  %v1541_v43 = vmul.f32 %v4838_v42, %v1540_v34 }
 0x178   : > { %v4952_v8 = vpop.permute.xlu1 %1077  ;;  %v4954_v32 = vpop.permute.xlu0 %1075 }
 0x179   : > { %7670 = vst [vmem:[#allocation51_spill] sm:$0xff] %v4952_v8  ;;  %7671 = vst [vmem:[#allocation52_spill] sm:$0xff] %v4954_v32  ;;  %v1556_v32 = vmul.f32 %v4835_v33, %v1554_v51  ;;  %v4969_v8 = vld [vmem:[%s4289_s26 + $0x22] sm:$0xff] }
 0x17a   : > { %1533 = vrot.lane.b32.xlu1 %v1528_v38, %s4171_s10  ;;  %1531 = vrot.lane.b32.xlu0 %v1527_v31, %s4171_s10  ;;  %v1555_v38 = vmul.f32 %v4838_v42, %v1554_v51  ;;  %v1618_v31 = vstv %s3784_s4  ;;  %s3799_s4 = sld [smem:[#allocation2 + $0x8f]] }
 0x17b   : > { %v1619_v33 = vmul.f32 %v4972_v10, %v1618_v31 }
 0x17c   : > { %v4960_v52 = vpop.permute.xlu1 %1091  ;;  %v4962_v20 = vpop.permute.xlu0 %1089 }
 0x17d   : > { %7672 = vst [vmem:[#allocation53_spill] sm:$0xff] %v4960_v52  ;;  %7673 = vst [vmem:[#allocation54_spill] sm:$0xff] %v4962_v20 }
 0x17e   : > { %1547 = vrot.lane.b32.xlu1 %v1542_v46, %s4171_s10  ;;  %1545 = vrot.lane.b32.xlu0 %v1541_v43, %s4171_s10  ;;  %v1620_v46 = vmul.f32 %v4969_v8, %v1618_v31  ;;  %v1632_v43 = vstv %s3785_s5  ;;  %s3810_s5 = sld [smem:[#allocation2 + $0x98]] }
 0x180   : > { %v4974_v34 = vpop.permute.xlu1 %1105  ;;  %v4976_v40 = vpop.permute.xlu0 %1103 }
 0x181   : > { %7674 = vst [vmem:[#allocation55_spill] sm:$0xff] %v4974_v34  ;;  %7675 = vst [vmem:[#allocation56_spill] sm:$0xff] %v4976_v40  ;;  %v1634_v40 = vmul.f32 %v4969_v8, %v1632_v43  ;;  %v1646_v34 = vstv %s3786_s6  ;;  %s3811_s6 = sld [smem:[#allocation2 + $0x99]] }
 0x182   : > { %1561 = vrot.lane.b32.xlu1 %v1556_v32, %s4171_s10  ;;  %1559 = vrot.lane.b32.xlu0 %v1555_v38, %s4171_s10  ;;  %v1633_v32 = vmul.f32 %v4972_v10, %v1632_v43  ;;  %v1648_v31 = vmul.f32 %v4969_v8, %v1646_v34 }
 0x184   : > { %v4982_v42 = vpop.permute.xlu1 %1119  ;;  %v4984_v51 = vpop.permute.xlu0 %1117 }
 0x185   : > { %7676 = vst [vmem:[#allocation57_spill] sm:$0xff] %v4982_v42  ;;  %7677 = vst [vmem:[#allocation58_spill] sm:$0xff] %v4984_v51  ;;  %v1660_v51 = vstv %s3787_s7  ;;  %s3812_s7 = sld [smem:[#allocation2 + $0x9a]] }
 0x186   : > { %1625 = vrot.lane.b32.xlu1 %v1620_v46, %s4170_s28  ;;  %1623 = vrot.lane.b32.xlu0 %v1619_v33, %s4170_s28  ;;  %v1647_v46 = vmul.f32 %v4972_v10, %v1646_v34  ;;  %v1662_v43 = vmul.f32 %v4969_v8, %v1660_v51 }
 0x188   : > { %v4990_v38 = vpop.permute.xlu1 %1133  ;;  %v4992_v20 = vpop.permute.xlu0 %1131 }
 0x189   : > { %7678 = vst [vmem:[#allocation59_spill] sm:$0xff] %v4990_v38  ;;  %7679 = vst [vmem:[#allocation60_spill] sm:$0xff] %v4992_v20  ;;  %v1674_v20 = vstv %s3788_s8  ;;  %s3813_s8 = sld [smem:[#allocation2 + $0x9b]] }
 0x18a   : > { %1639 = vrot.lane.b32.xlu1 %v1634_v40, %s4170_s28  ;;  %1637 = vrot.lane.b32.xlu0 %v1633_v32, %s4170_s28  ;;  %v1661_v40 = vmul.f32 %v4972_v10, %v1660_v51  ;;  %v1676_v34 = vmul.f32 %v4969_v8, %v1674_v20 }
 0x18c   : > { %v4998_v33 = vpop.permute.xlu1 %1147  ;;  %v5000_v42 = vpop.permute.xlu0 %1145 }
 0x18d   : > { %7680 = vst [vmem:[#allocation61_spill] sm:$0xff] %v4998_v33  ;;  %7681 = vst [vmem:[#allocation62_spill] sm:$0xff] %v5000_v42  ;;  %v1688_v42 = vstv %s3789_s9  ;;  %s3814_s9 = sld [smem:[#allocation2 + $0x9c]] }
 0x18e   : > { %1653 = vrot.lane.b32.xlu1 %v1648_v31, %s4170_s28  ;;  %1651 = vrot.lane.b32.xlu0 %v1647_v46, %s4170_s28  ;;  %v1675_v31 = vmul.f32 %v4972_v10, %v1674_v20  ;;  %v1690_v51 = vmul.f32 %v4969_v8, %v1688_v42 }
 0x190   : > { %v5006_v32 = vpop.permute.xlu1 %1161  ;;  %v5008_v38 = vpop.permute.xlu0 %1159 }
 0x191   : > { %7682 = vst [vmem:[#allocation63_spill] sm:$0xff] %v5006_v32  ;;  %7683 = vst [vmem:[#allocation64_spill] sm:$0xff] %v5008_v38  ;;  %v1702_v38 = vstv %s3790_s11  ;;  %s3815_s11 = sld [smem:[#allocation2 + $0x9d]] }
 0x192   : > { %1667 = vrot.lane.b32.xlu1 %v1662_v43, %s4170_s28  ;;  %1665 = vrot.lane.b32.xlu0 %v1661_v40, %s4170_s28  ;;  %v1689_v43 = vmul.f32 %v4972_v10, %v1688_v42  ;;  %v1704_v20 = vmul.f32 %v4969_v8, %v1702_v38 }
 0x194   : > { %v5014_v46 = vpop.permute.xlu1 %1175  ;;  %v5016_v33 = vpop.permute.xlu0 %1173 }
 0x195   : > { %7684 = vst [vmem:[#allocation65_spill] sm:$0xff] %v5014_v46  ;;  %7685 = vst [vmem:[#allocation66_spill] sm:$0xff] %v5016_v33  ;;  %v1716_v33 = vstv %s3791_s17  ;;  %s3816_s17 = sld [smem:[#allocation2 + $0x9e]] }
 0x196   : > { %1681 = vrot.lane.b32.xlu1 %v1676_v34, %s4170_s28  ;;  %1679 = vrot.lane.b32.xlu0 %v1675_v31, %s4170_s28  ;;  %v1703_v34 = vmul.f32 %v4972_v10, %v1702_v38  ;;  %v1718_v42 = vmul.f32 %v4969_v8, %v1716_v33 }
 0x198   : > { %v5022_v40 = vpop.permute.xlu1 %1189  ;;  %v5024_v32 = vpop.permute.xlu0 %1187 }
 0x199   : > { %7686 = vst [vmem:[#allocation67_spill] sm:$0xff] %v5022_v40  ;;  %7687 = vst [vmem:[#allocation68_spill] sm:$0xff] %v5024_v32  ;;  %v1730_v32 = vstv %s3792_s19  ;;  %s3817_s19 = sld [smem:[#allocation2 + $0x9f]] }
 0x19a   : > { %1695 = vrot.lane.b32.xlu1 %v1690_v51, %s4170_s28  ;;  %1693 = vrot.lane.b32.xlu0 %v1689_v43, %s4170_s28  ;;  %v1717_v51 = vmul.f32 %v4972_v10, %v1716_v33  ;;  %v1732_v38 = vmul.f32 %v4969_v8, %v1730_v32 }
 0x19c   : > { %v5030_v31 = vpop.permute.xlu1 %1203  ;;  %v5032_v46 = vpop.permute.xlu0 %1201 }
 0x19d   : > { %7688 = vst [vmem:[#allocation69_spill] sm:$0xff] %v5030_v31  ;;  %7689 = vst [vmem:[#allocation70_spill] sm:$0xff] %v5032_v46  ;;  %v1744_v46 = vstv %s3793_s20  ;;  %s3818_s20 = sld [smem:[#allocation2 + $0xa0]] }
 0x19e   : > { %1709 = vrot.lane.b32.xlu1 %v1704_v20, %s4170_s28  ;;  %1707 = vrot.lane.b32.xlu0 %v1703_v34, %s4170_s28  ;;  %v1731_v20 = vmul.f32 %v4972_v10, %v1730_v32  ;;  %v1746_v33 = vmul.f32 %v4969_v8, %v1744_v46 }
 0x1a0   : > { %v5038_v43 = vpop.permute.xlu1 %1217  ;;  %v5040_v40 = vpop.permute.xlu0 %1215 }
 0x1a1   : > { %7690 = vst [vmem:[#allocation71_spill] sm:$0xff] %v5038_v43  ;;  %7691 = vst [vmem:[#allocation72_spill] sm:$0xff] %v5040_v40  ;;  %v1758_v40 = vstv %s3794_s24  ;;  %s3819_s24 = sld [smem:[#allocation2 + $0xa1]] }
 0x1a2   : > { %1723 = vrot.lane.b32.xlu1 %v1718_v42, %s4170_s28  ;;  %1721 = vrot.lane.b32.xlu0 %v1717_v51, %s4170_s28  ;;  %v1745_v42 = vmul.f32 %v4972_v10, %v1744_v46  ;;  %v1760_v32 = vmul.f32 %v4969_v8, %v1758_v40 }
 0x1a4   : > { %v5046_v34 = vpop.permute.xlu1 %1231  ;;  %v5048_v31 = vpop.permute.xlu0 %1229 }
 0x1a5   : > { %7692 = vst [vmem:[#allocation73_spill] sm:$0xff] %v5046_v34  ;;  %7693 = vst [vmem:[#allocation74_spill] sm:$0xff] %v5048_v31  ;;  %v1772_v31 = vstv %s3795_s25  ;;  %s3820_s25 = sld [smem:[#allocation2 + $0xa2]] }
 0x1a6   : > { %1737 = vrot.lane.b32.xlu1 %v1732_v38, %s4171_s10  ;;  %1735 = vrot.lane.b32.xlu0 %v1731_v20, %s4171_s10  ;;  %v1759_v38 = vmul.f32 %v4972_v10, %v1758_v40  ;;  %v1774_v46 = vmul.f32 %v4969_v8, %v1772_v31 }
 0x1a8   : > { %v5054_v51 = vpop.permute.xlu1 %1245  ;;  %v5056_v43 = vpop.permute.xlu0 %1243 }
 0x1a9   : > { %7694 = vst [vmem:[#allocation75_spill] sm:$0xff] %v5054_v51  ;;  %7695 = vst [vmem:[#allocation76_spill] sm:$0xff] %v5056_v43  ;;  %v1786_v43 = vstv %s3796_s27  ;;  %s3821_s27 = sld [smem:[#allocation2 + $0xa3]] }
 0x1aa   : > { %1751 = vrot.lane.b32.xlu1 %v1746_v33, %s4171_s10  ;;  %1749 = vrot.lane.b32.xlu0 %v1745_v42, %s4171_s10  ;;  %v1773_v33 = vmul.f32 %v4972_v10, %v1772_v31  ;;  %v1788_v40 = vmul.f32 %v4969_v8, %v1786_v43 }
 0x1ac   : > { %v5062_v20 = vpop.permute.xlu1 %1259  ;;  %v5064_v34 = vpop.permute.xlu0 %1257 }
 0x1ad   : > { %7696 = vst [vmem:[#allocation77_spill] sm:$0xff] %v5062_v20  ;;  %7697 = vst [vmem:[#allocation78_spill] sm:$0xff] %v5064_v34  ;;  %v1800_v34 = vstv %s3797_s29  ;;  %s3822_s29 = sld [smem:[#allocation2 + $0xa4]] }
 0x1ae   : > { %1765 = vrot.lane.b32.xlu1 %v1760_v32, %s4171_s10  ;;  %1763 = vrot.lane.b32.xlu0 %v1759_v38, %s4171_s10  ;;  %v1787_v32 = vmul.f32 %v4972_v10, %v1786_v43  ;;  %v1802_v31 = vmul.f32 %v4969_v8, %v1800_v34 }
 0x1b0   : > { %v5070_v42 = vpop.permute.xlu1 %1273  ;;  %v5072_v51 = vpop.permute.xlu0 %1271 }
 0x1b1   : > { %7698 = vst [vmem:[#allocation79_spill] sm:$0xff] %v5070_v42  ;;  %7699 = vst [vmem:[#allocation80_spill] sm:$0xff] %v5072_v51  ;;  %v1814_v51 = vstv %s3798_s30  ;;  %v5106_v42 = vld [vmem:[%s4289_s26 + $0x30] sm:$0xff]  ;;  %s3823_s30 = sld [smem:[#allocation2 + $0xa5]] }
 0x1b2   : > { %1779 = vrot.lane.b32.xlu1 %v1774_v46, %s4171_s10  ;;  %1777 = vrot.lane.b32.xlu0 %v1773_v33, %s4171_s10  ;;  %v1801_v46 = vmul.f32 %v4972_v10, %v1800_v34 }
 0x1b4   : > { %v5078_v38 = vpop.permute.xlu1 %1287  ;;  %v5080_v20 = vpop.permute.xlu0 %1285 }
 0x1b5   : > { %7700 = vst [vmem:[#allocation81_spill] sm:$0xff] %v5078_v38  ;;  %7701 = vst [vmem:[#allocation82_spill] sm:$0xff] %v5080_v20  ;;  %v1828_v20 = vstv %s3799_s4  ;;  %s3824_s4 = sld [smem:[#allocation2 + $0xa6]] }
 0x1b6   : > { %1793 = vrot.lane.b32.xlu1 %v1788_v40, %s4171_s10  ;;  %1791 = vrot.lane.b32.xlu0 %v1787_v32, %s4171_s10  ;;  %v1816_v40 = vmul.f32 %v4969_v8, %v1814_v51  ;;  %v1815_v32 = vmul.f32 %v4972_v10, %v1814_v51 }
 0x1b8   : > { %v5086_v33 = vpop.permute.xlu1 %1351  ;;  %v5088_v43 = vpop.permute.xlu0 %1349 }
 0x1b9   : > { %7702 = vst [vmem:[#allocation83_spill] sm:$0xff] %v5086_v33  ;;  %7703 = vst [vmem:[#allocation84_spill] sm:$0xff] %v5088_v43  ;;  %v1830_v43 = vmul.f32 %v4969_v8, %v1828_v20  ;;  %v5103_v33 = vld [vmem:[%s4289_s26 + $0x38] sm:$0xff] }
 0x1ba   : > { %1807 = vrot.lane.b32.xlu1 %v1802_v31, %s4171_s10  ;;  %1805 = vrot.lane.b32.xlu0 %v1801_v46, %s4171_s10  ;;  %v1829_v31 = vmul.f32 %v4972_v10, %v1828_v20  ;;  %v1893_v46 = vstv %s3810_s5  ;;  %s3825_s5 = sld [smem:[#allocation2 + $0xa7]] }
 0x1bb   : > { %v1894_v8 = vmul.f32 %v5106_v42, %v1893_v46 }
 0x1bc   : > { %v5094_v38 = vpop.permute.xlu1 %1365  ;;  %v5096_v34 = vpop.permute.xlu0 %1363 }
 0x1bd   : > { %7704 = vst [vmem:[#allocation85_spill] sm:$0xff] %v5094_v38  ;;  %7705 = vst [vmem:[#allocation86_spill] sm:$0xff] %v5096_v34 }
 0x1be   : > { %1821 = vrot.lane.b32.xlu1 %v1816_v40, %s4171_s10  ;;  %1819 = vrot.lane.b32.xlu0 %v1815_v32, %s4171_s10  ;;  %v1895_v40 = vmul.f32 %v5103_v33, %v1893_v46  ;;  %v1907_v32 = vstv %s3811_s6  ;;  %s3836_s6 = sld [smem:[#allocation2 + $0xb0]] }
 0x1c0   : > { %v5108_v51 = vpop.permute.xlu1 %1379  ;;  %v5110_v52 = vpop.permute.xlu0 %1377 }
 0x1c1   : > { %7706 = vst [vmem:[#allocation87_spill] sm:$0xff] %v5108_v51  ;;  %7707 = vst [vmem:[#allocation88_spill] sm:$0xff] %v5110_v52  ;;  %v1909_v52 = vmul.f32 %v5103_v33, %v1907_v32  ;;  %v1921_v51 = vstv %s3812_s7  ;;  %s3837_s7 = sld [smem:[#allocation2 + $0xb1]] }
 0x1c2   : > { %1835 = vrot.lane.b32.xlu1 %v1830_v43, %s4171_s10  ;;  %1833 = vrot.lane.b32.xlu0 %v1829_v31, %s4171_s10  ;;  %v1908_v43 = vmul.f32 %v5106_v42, %v1907_v32  ;;  %v1923_v46 = vmul.f32 %v5103_v33, %v1921_v51 }
 0x1c4   : > { %v5116_v10 = vpop.permute.xlu1 %1393  ;;  %v5118_v20 = vpop.permute.xlu0 %1391 }
 0x1c5   : > { %7708 = vst [vmem:[#allocation89_spill] sm:$0xff] %v5116_v10  ;;  %7709 = vst [vmem:[#allocation90_spill] sm:$0xff] %v5118_v20  ;;  %v1935_v20 = vstv %s3813_s8  ;;  %s3838_s8 = sld [smem:[#allocation2 + $0xb2]] }
 0x1c6   : > { %1900 = vrot.lane.b32.xlu1 %v1895_v40, %s4170_s28  ;;  %1898 = vrot.lane.b32.xlu0 %v1894_v8, %s4170_s28  ;;  %v1922_v40 = vmul.f32 %v5106_v42, %v1921_v51  ;;  %v1937_v32 = vmul.f32 %v5103_v33, %v1935_v20 }
 0x1c8   : > { %v5124_v31 = vpop.permute.xlu1 %1407  ;;  %v5126_v34 = vpop.permute.xlu0 %1405 }
 0x1c9   : > { %7710 = vst [vmem:[#allocation91_spill] sm:$0xff] %v5124_v31  ;;  %7711 = vst [vmem:[#allocation92_spill] sm:$0xff] %v5126_v34  ;;  %v1949_v34 = vstv %s3814_s9  ;;  %s3839_s9 = sld [smem:[#allocation2 + $0xb3]] }
 0x1ca   : > { %1914 = vrot.lane.b32.xlu1 %v1909_v52, %s4170_s28  ;;  %1912 = vrot.lane.b32.xlu0 %v1908_v43, %s4170_s28  ;;  %v1936_v52 = vmul.f32 %v5106_v42, %v1935_v20  ;;  %v1951_v51 = vmul.f32 %v5103_v33, %v1949_v34 }
 0x1cc   : > { %v5132_v8 = vpop.permute.xlu1 %1421  ;;  %v5134_v10 = vpop.permute.xlu0 %1419 }
 0x1cd   : > { %7712 = vst [vmem:[#allocation93_spill] sm:$0xff] %v5132_v8  ;;  %7713 = vst [vmem:[#allocation94_spill] sm:$0xff] %v5134_v10  ;;  %v1963_v10 = vstv %s3815_s11  ;;  %s3840_s11 = sld [smem:[#allocation2 + $0xb4]] }
 0x1ce   : > { %1928 = vrot.lane.b32.xlu1 %v1923_v46, %s4170_s28  ;;  %1926 = vrot.lane.b32.xlu0 %v1922_v40, %s4170_s28  ;;  %v1950_v46 = vmul.f32 %v5106_v42, %v1949_v34  ;;  %v1965_v20 = vmul.f32 %v5103_v33, %v1963_v10 }
 0x1d0   : > { %v5140_v43 = vpop.permute.xlu1 %1435  ;;  %v5142_v31 = vpop.permute.xlu0 %1433 }
 0x1d1   : > { %7714 = vst [vmem:[#allocation95_spill] sm:$0xff] %v5140_v43  ;;  %7715 = vst [vmem:[#allocation96_spill] sm:$0xff] %v5142_v31  ;;  %v1977_v31 = vstv %s3816_s17  ;;  %s3841_s17 = sld [smem:[#allocation2 + $0xb5]] }
 0x1d2   : > { %1942 = vrot.lane.b32.xlu1 %v1937_v32, %s4170_s28  ;;  %1940 = vrot.lane.b32.xlu0 %v1936_v52, %s4170_s28  ;;  %v1964_v32 = vmul.f32 %v5106_v42, %v1963_v10  ;;  %v1979_v34 = vmul.f32 %v5103_v33, %v1977_v31 }
 0x1d4   : > { %v5148_v40 = vpop.permute.xlu1 %1449  ;;  %v5150_v8 = vpop.permute.xlu0 %1447 }
 0x1d5   : > { %7716 = vst [vmem:[#allocation97_spill] sm:$0xff] %v5148_v40  ;;  %7717 = vst [vmem:[#allocation98_spill] sm:$0xff] %v5150_v8  ;;  %v1991_v8 = vstv %s3817_s19  ;;  %s3842_s19 = sld [smem:[#allocation2 + $0xb6]] }
 0x1d6   : > { %1956 = vrot.lane.b32.xlu1 %v1951_v51, %s4170_s28  ;;  %1954 = vrot.lane.b32.xlu0 %v1950_v46, %s4170_s28  ;;  %v1978_v51 = vmul.f32 %v5106_v42, %v1977_v31  ;;  %v1993_v10 = vmul.f32 %v5103_v33, %v1991_v8 }
 0x1d8   : > { %v5156_v52 = vpop.permute.xlu1 %1463  ;;  %v5158_v43 = vpop.permute.xlu0 %1461 }
 0x1d9   : > { %7718 = vst [vmem:[#allocation99_spill] sm:$0xff] %v5156_v52  ;;  %7719 = vst [vmem:[#allocation100_spill] sm:$0xff] %v5158_v43  ;;  %v2005_v43 = vstv %s3818_s20  ;;  %s3843_s20 = sld [smem:[#allocation2 + $0xb7]] }
 0x1da   : > { %1970 = vrot.lane.b32.xlu1 %v1965_v20, %s4170_s28  ;;  %1968 = vrot.lane.b32.xlu0 %v1964_v32, %s4170_s28  ;;  %v1992_v20 = vmul.f32 %v5106_v42, %v1991_v8  ;;  %v2007_v31 = vmul.f32 %v5103_v33, %v2005_v43 }
 0x1dc   : > { %v5164_v46 = vpop.permute.xlu1 %1477  ;;  %v5166_v40 = vpop.permute.xlu0 %1475 }
 0x1dd   : > { %7720 = vst [vmem:[#allocation101_spill] sm:$0xff] %v5164_v46  ;;  %7721 = vst [vmem:[#allocation102_spill] sm:$0xff] %v5166_v40  ;;  %v2019_v40 = vstv %s3819_s24  ;;  %s3844_s24 = sld [smem:[#allocation2 + $0xb8]] }
 0x1de   : > { %1984 = vrot.lane.b32.xlu1 %v1979_v34, %s4170_s28  ;;  %1982 = vrot.lane.b32.xlu0 %v1978_v51, %s4170_s28  ;;  %v2006_v34 = vmul.f32 %v5106_v42, %v2005_v43  ;;  %v2021_v8 = vmul.f32 %v5103_v33, %v2019_v40 }
 0x1e0   : > { %v5172_v32 = vpop.permute.xlu1 %1491  ;;  %v5174_v52 = vpop.permute.xlu0 %1489 }
 0x1e1   : > { %7722 = vst [vmem:[#allocation103_spill] sm:$0xff] %v5172_v32  ;;  %7723 = vst [vmem:[#allocation104_spill] sm:$0xff] %v5174_v52  ;;  %v2033_v52 = vstv %s3820_s25  ;;  %s3845_s25 = sld [smem:[#allocation2 + $0xb9]] }
 0x1e2   : > { %1998 = vrot.lane.b32.xlu1 %v1993_v10, %s4170_s28  ;;  %1996 = vrot.lane.b32.xlu0 %v1992_v20, %s4170_s28  ;;  %v2020_v10 = vmul.f32 %v5106_v42, %v2019_v40  ;;  %v2035_v43 = vmul.f32 %v5103_v33, %v2033_v52 }
 0x1e4   : > { %v5180_v51 = vpop.permute.xlu1 %1505  ;;  %v5182_v46 = vpop.permute.xlu0 %1503 }
 0x1e5   : > { %7724 = vst [vmem:[#allocation105_spill] sm:$0xff] %v5180_v51  ;;  %7725 = vst [vmem:[#allocation106_spill] sm:$0xff] %v5182_v46  ;;  %v2047_v46 = vstv %s3821_s27  ;;  %s3846_s27 = sld [smem:[#allocation2 + $0xba]] }
 0x1e6   : > { %2012 = vrot.lane.b32.xlu1 %v2007_v31, %s4171_s10  ;;  %2010 = vrot.lane.b32.xlu0 %v2006_v34, %s4171_s10  ;;  %v2034_v31 = vmul.f32 %v5106_v42, %v2033_v52  ;;  %v2049_v40 = vmul.f32 %v5103_v33, %v2047_v46 }
 0x1e8   : > { %v5188_v20 = vpop.permute.xlu1 %1519  ;;  %v5190_v32 = vpop.permute.xlu0 %1517 }
 0x1e9   : > { %7726 = vst [vmem:[#allocation107_spill] sm:$0xff] %v5188_v20  ;;  %7727 = vst [vmem:[#allocation108_spill] sm:$0xff] %v5190_v32  ;;  %v2061_v32 = vstv %s3822_s29  ;;  %s3847_s29 = sld [smem:[#allocation2 + $0xbb]] }
 0x1ea   : > { %2026 = vrot.lane.b32.xlu1 %v2021_v8, %s4171_s10  ;;  %2024 = vrot.lane.b32.xlu0 %v2020_v10, %s4171_s10  ;;  %v2048_v8 = vmul.f32 %v5106_v42, %v2047_v46  ;;  %v2063_v52 = vmul.f32 %v5103_v33, %v2061_v32 }
 0x1ec   : > { %v5196_v34 = vpop.permute.xlu1 %1533  ;;  %v5198_v51 = vpop.permute.xlu0 %1531 }
 0x1ed   : > { %7728 = vst [vmem:[#allocation109_spill] sm:$0xff] %v5196_v34  ;;  %7729 = vst [vmem:[#allocation110_spill] sm:$0xff] %v5198_v51  ;;  %v2075_v51 = vstv %s3823_s30  ;;  %s3848_s30 = sld [smem:[#allocation2 + $0xbc]] }
 0x1ee   : > { %2040 = vrot.lane.b32.xlu1 %v2035_v43, %s4171_s10  ;;  %2038 = vrot.lane.b32.xlu0 %v2034_v31, %s4171_s10  ;;  %v2062_v43 = vmul.f32 %v5106_v42, %v2061_v32  ;;  %v2077_v46 = vmul.f32 %v5103_v33, %v2075_v51 }
 0x1f0   : > { %v5204_v10 = vpop.permute.xlu1 %1547  ;;  %v5206_v20 = vpop.permute.xlu0 %1545 }
 0x1f1   : > { %7730 = vst [vmem:[#allocation111_spill] sm:$0xff] %v5204_v10  ;;  %7731 = vst [vmem:[#allocation112_spill] sm:$0xff] %v5206_v20  ;;  %v2089_v20 = vstv %s3824_s4  ;;  %v5240_v10 = vld [vmem:[%s4289_s26 + $0x31] sm:$0xff]  ;;  %s3849_s4 = sld [smem:[#allocation2 + $0xbd]] }
 0x1f2   : > { %2054 = vrot.lane.b32.xlu1 %v2049_v40, %s4171_s10  ;;  %2052 = vrot.lane.b32.xlu0 %v2048_v8, %s4171_s10  ;;  %v2076_v40 = vmul.f32 %v5106_v42, %v2075_v51 }
 0x1f4   : > { %v5212_v31 = vpop.permute.xlu1 %1561  ;;  %v5214_v34 = vpop.permute.xlu0 %1559 }
 0x1f5   : > { %7732 = vst [vmem:[#allocation113_spill] sm:$0xff] %v5212_v31  ;;  %7733 = vst [vmem:[#allocation114_spill] sm:$0xff] %v5214_v34  ;;  %v2103_v34 = vstv %s3825_s5  ;;  %s3850_s5 = sld [smem:[#allocation2 + $0xbe]] }
 0x1f6   : > { %2068 = vrot.lane.b32.xlu1 %v2063_v52, %s4171_s10  ;;  %2066 = vrot.lane.b32.xlu0 %v2062_v43, %s4171_s10  ;;  %v2091_v52 = vmul.f32 %v5103_v33, %v2089_v20  ;;  %v2090_v43 = vmul.f32 %v5106_v42, %v2089_v20 }
 0x1f8   : > { %v5220_v8 = vpop.permute.xlu1 %1625  ;;  %v5222_v32 = vpop.permute.xlu0 %1623 }
 0x1f9   : > { %7734 = vst [vmem:[#allocation115_spill] sm:$0xff] %v5220_v8  ;;  %7735 = vst [vmem:[#allocation116_spill] sm:$0xff] %v5222_v32  ;;  %v2105_v32 = vmul.f32 %v5103_v33, %v2103_v34  ;;  %v5237_v8 = vld [vmem:[%s4289_s26 + $0x39] sm:$0xff] }
 0x1fa   : > { %2082 = vrot.lane.b32.xlu1 %v2077_v46, %s4171_s10  ;;  %2080 = vrot.lane.b32.xlu0 %v2076_v40, %s4171_s10  ;;  %v2104_v46 = vmul.f32 %v5106_v42, %v2103_v34  ;;  %v2167_v40 = vstv %s3836_s6  ;;  %s3851_s6 = sld [smem:[#allocation2 + $0xbf]] }
 0x1fb   : > { %v2168_v33 = vmul.f32 %v5240_v10, %v2167_v40 }
 0x1fc   : > { %v5228_v31 = vpop.permute.xlu1 %1639  ;;  %v5230_v51 = vpop.permute.xlu0 %1637 }
 0x1fd   : > { %7736 = vst [vmem:[#allocation117_spill] sm:$0xff] %v5228_v31  ;;  %7737 = vst [vmem:[#allocation118_spill] sm:$0xff] %v5230_v51 }
 0x1fe   : > { %2096 = vrot.lane.b32.xlu1 %v2091_v52, %s4171_s10  ;;  %2094 = vrot.lane.b32.xlu0 %v2090_v43, %s4171_s10  ;;  %v2169_v52 = vmul.f32 %v5237_v8, %v2167_v40  ;;  %v2181_v43 = vstv %s3837_s7  ;;  %s3862_s7 = sld [smem:[#allocation2 + $0xc8]] }
 0x200   : > { %v5242_v20 = vpop.permute.xlu1 %1653  ;;  %v5244_v38 = vpop.permute.xlu0 %1651 }
 0x201   : > { %7738 = vst [vmem:[#allocation119_spill] sm:$0xff] %v5242_v20  ;;  %7739 = vst [vmem:[#allocation120_spill] sm:$0xff] %v5244_v38  ;;  %v2183_v38 = vmul.f32 %v5237_v8, %v2181_v43  ;;  %v2195_v20 = vstv %s3838_s8  ;;  %s3863_s8 = sld [smem:[#allocation2 + $0xc9]] }
 0x202   : > { %2110 = vrot.lane.b32.xlu1 %v2105_v32, %s4171_s10  ;;  %2108 = vrot.lane.b32.xlu0 %v2104_v46, %s4171_s10  ;;  %v2182_v32 = vmul.f32 %v5240_v10, %v2181_v43  ;;  %v2197_v40 = vmul.f32 %v5237_v8, %v2195_v20 }
 0x204   : > { %v5250_v42 = vpop.permute.xlu1 %1667  ;;  %v5252_v34 = vpop.permute.xlu0 %1665 }
 0x205   : > { %7740 = vst [vmem:[#allocation121_spill] sm:$0xff] %v5250_v42  ;;  %7741 = vst [vmem:[#allocation122_spill] sm:$0xff] %v5252_v34  ;;  %v2209_v34 = vstv %s3839_s9  ;;  %s3864_s9 = sld [smem:[#allocation2 + $0xca]] }
 0x206   : > { %2174 = vrot.lane.b32.xlu1 %v2169_v52, %s4170_s28  ;;  %2172 = vrot.lane.b32.xlu0 %v2168_v33, %s4170_s28  ;;  %v2196_v52 = vmul.f32 %v5240_v10, %v2195_v20  ;;  %v2211_v43 = vmul.f32 %v5237_v8, %v2209_v34 }
 0x208   : > { %v5258_v46 = vpop.permute.xlu1 %1681  ;;  %v5260_v51 = vpop.permute.xlu0 %1679 }
 0x209   : > { %7742 = vst [vmem:[#allocation123_spill] sm:$0xff] %v5258_v46  ;;  %7743 = vst [vmem:[#allocation124_spill] sm:$0xff] %v5260_v51  ;;  %v2223_v51 = vstv %s3840_s11  ;;  %s5384_s11 = sld [smem:[#allocation2 + $0xcb]] }
 0x20a   : > { %2188 = vrot.lane.b32.xlu1 %v2183_v38, %s4170_s28  ;;  %2186 = vrot.lane.b32.xlu0 %v2182_v32, %s4170_s28  ;;  %v2210_v38 = vmul.f32 %v5240_v10, %v2209_v34  ;;  %v2225_v20 = vmul.f32 %v5237_v8, %v2223_v51 }
 0x20c   : > { %v5266_v33 = vpop.permute.xlu1 %1695  ;;  %v5268_v42 = vpop.permute.xlu0 %1693 }
 0x20d   : > { %7744 = vst [vmem:[#allocation125_spill] sm:$0xff] %v5266_v33  ;;  %7745 = vst [vmem:[#allocation126_spill] sm:$0xff] %v5268_v42  ;;  %v2237_v42 = vstv %s3841_s17  ;;  %s5390_s17 = sld [smem:[#allocation2 + $0x30]] }
 0x20e   : > { %2202 = vrot.lane.b32.xlu1 %v2197_v40, %s4170_s28  ;;  %2200 = vrot.lane.b32.xlu0 %v2196_v52, %s4170_s28  ;;  %v2224_v40 = vmul.f32 %v5240_v10, %v2223_v51  ;;  %v2239_v34 = vmul.f32 %v5237_v8, %v2237_v42 }
 0x210   : > { %v5274_v32 = vpop.permute.xlu1 %1709  ;;  %v5276_v46 = vpop.permute.xlu0 %1707 }
 0x211   : > { %7746 = vst [vmem:[#allocation127_spill] sm:$0xff] %v5274_v32  ;;  %7747 = vst [vmem:[#allocation128_spill] sm:$0xff] %v5276_v46  ;;  %v2251_v46 = vstv %s3842_s19  ;;  %s5396_s19 = sld [smem:[#allocation2 + $0xcc]] }
 0x212   : > { %2216 = vrot.lane.b32.xlu1 %v2211_v43, %s4170_s28  ;;  %2214 = vrot.lane.b32.xlu0 %v2210_v38, %s4170_s28  ;;  %v2238_v43 = vmul.f32 %v5240_v10, %v2237_v42  ;;  %v2253_v51 = vmul.f32 %v5237_v8, %v2251_v46 }
 0x214   : > { %v5282_v52 = vpop.permute.xlu1 %1723  ;;  %v5284_v33 = vpop.permute.xlu0 %1721 }
 0x215   : > { %7748 = vst [vmem:[#allocation129_spill] sm:$0xff] %v5282_v52  ;;  %7749 = vst [vmem:[#allocation130_spill] sm:$0xff] %v5284_v33  ;;  %v2265_v33 = vstv %s3843_s20  ;;  %s5398_s20 = sld [smem:[#allocation2 + $0x31]] }
 0x216   : > { %2230 = vrot.lane.b32.xlu1 %v2225_v20, %s4170_s28  ;;  %2228 = vrot.lane.b32.xlu0 %v2224_v40, %s4170_s28  ;;  %v2252_v20 = vmul.f32 %v5240_v10, %v2251_v46  ;;  %v2267_v42 = vmul.f32 %v5237_v8, %v2265_v33 }
 0x218   : > { %v5290_v38 = vpop.permute.xlu1 %1737  ;;  %v5292_v32 = vpop.permute.xlu0 %1735 }
 0x219   : > { %7750 = vst [vmem:[#allocation131_spill] sm:$0xff] %v5290_v38  ;;  %7751 = vst [vmem:[#allocation132_spill] sm:$0xff] %v5292_v32  ;;  %v2279_v32 = vstv %s3844_s24  ;;  %s5404_s24 = sld [smem:[#allocation2 + $0x32]] }
 0x21a   : > { %2244 = vrot.lane.b32.xlu1 %v2239_v34, %s4170_s28  ;;  %2242 = vrot.lane.b32.xlu0 %v2238_v43, %s4170_s28  ;;  %v2266_v34 = vmul.f32 %v5240_v10, %v2265_v33  ;;  %v2281_v46 = vmul.f32 %v5237_v8, %v2279_v32 }
 0x21c   : > { %v5298_v40 = vpop.permute.xlu1 %1751  ;;  %v5300_v52 = vpop.permute.xlu0 %1749 }
 0x21d   : > { %7752 = vst [vmem:[#allocation133_spill] sm:$0xff] %v5298_v40  ;;  %7753 = vst [vmem:[#allocation134_spill] sm:$0xff] %v5300_v52  ;;  %v2293_v52 = vstv %s3845_s25  ;;  %s5406_s25 = sld [smem:[#allocation2 + $0x33]] }
 0x21e   : > { %2258 = vrot.lane.b32.xlu1 %v2253_v51, %s4170_s28  ;;  %2256 = vrot.lane.b32.xlu0 %v2252_v20, %s4170_s28  ;;  %v2280_v51 = vmul.f32 %v5240_v10, %v2279_v32  ;;  %v2295_v33 = vmul.f32 %v5237_v8, %v2293_v52 }
 0x220   : > { %v5306_v43 = vpop.permute.xlu1 %1765  ;;  %v5308_v38 = vpop.permute.xlu0 %1763 }
 0x221   : > { %7754 = vst [vmem:[#allocation135_spill] sm:$0xff] %v5306_v43  ;;  %7755 = vst [vmem:[#allocation136_spill] sm:$0xff] %v5308_v38  ;;  %v2307_v38 = vstv %s3846_s27  ;;  %s5408_s27 = sld [smem:[#allocation2 + $0x34]] }
 0x222   : > { %2272 = vrot.lane.b32.xlu1 %v2267_v42, %s4170_s28  ;;  %2270 = vrot.lane.b32.xlu0 %v2266_v34, %s4170_s28  ;;  %v2294_v42 = vmul.f32 %v5240_v10, %v2293_v52  ;;  %v2309_v32 = vmul.f32 %v5237_v8, %v2307_v38 }
 0x224   : > { %v5314_v20 = vpop.permute.xlu1 %1779  ;;  %v5316_v40 = vpop.permute.xlu0 %1777 }
 0x225   : > { %7756 = vst [vmem:[#allocation137_spill] sm:$0xff] %v5314_v20  ;;  %7757 = vst [vmem:[#allocation138_spill] sm:$0xff] %v5316_v40  ;;  %v2321_v40 = vstv %s3847_s29  ;;  %s5415_s29 = sld [smem:[#allocation2 + $0xcd]] }
 0x226   : > { %2286 = vrot.lane.b32.xlu1 %v2281_v46, %s4171_s10  ;;  %2284 = vrot.lane.b32.xlu0 %v2280_v51, %s4171_s10  ;;  %v2308_v46 = vmul.f32 %v5240_v10, %v2307_v38  ;;  %v2323_v52 = vmul.f32 %v5237_v8, %v2321_v40 }
 0x228   : > { %v5322_v34 = vpop.permute.xlu1 %1793  ;;  %v5324_v43 = vpop.permute.xlu0 %1791 }
 0x229   : > { %7758 = vst [vmem:[#allocation139_spill] sm:$0xff] %v5322_v34  ;;  %7759 = vst [vmem:[#allocation140_spill] sm:$0xff] %v5324_v43  ;;  %v2335_v43 = vstv %s3848_s30  ;;  %s5417_s30 = sld [smem:[#allocation2 + $0x35]] }
 0x22a   : > { %2300 = vrot.lane.b32.xlu1 %v2295_v33, %s4171_s10  ;;  %2298 = vrot.lane.b32.xlu0 %v2294_v42, %s4171_s10  ;;  %v2322_v33 = vmul.f32 %v5240_v10, %v2321_v40  ;;  %v2337_v38 = vmul.f32 %v5237_v8, %v2335_v43 }
 0x22b   : > { %v2511_v50 = vstv %s5415_s29  ;;  %s5541_s29 = sld [smem:[#allocation2 + $0xd1]] }
 0x22c   : > { %v5330_v51 = vpop.permute.xlu1 %1807  ;;  %v5332_v20 = vpop.permute.xlu0 %1805 }
 0x22d   : > { %7760 = vst [vmem:[#allocation141_spill] sm:$0xff] %v5330_v51  ;;  %7761 = vst [vmem:[#allocation142_spill] sm:$0xff] %v5332_v20  ;;  %v2349_v20 = vstv %s3849_s4  ;;  %s5419_s4 = sld [smem:[#allocation2 + $0x36]] }
 0x22e   : > { %2314 = vrot.lane.b32.xlu1 %v2309_v32, %s4171_s10  ;;  %2312 = vrot.lane.b32.xlu0 %v2308_v46, %s4171_s10  ;;  %v2336_v32 = vmul.f32 %v5240_v10, %v2335_v43  ;;  %v2351_v40 = vmul.f32 %v5237_v8, %v2349_v20 }
 0x230   : > { %v5338_v42 = vpop.permute.xlu1 %1821  ;;  %v5340_v34 = vpop.permute.xlu0 %1819 }
 0x231   : > { %7762 = vst [vmem:[#allocation143_spill] sm:$0xff] %v5338_v42  ;;  %7763 = vst [vmem:[#allocation144_spill] sm:$0xff] %v5340_v34  ;;  %v2363_v34 = vstv %s3850_s5  ;;  %v5374_v42 = vld [vmem:[%s4289_s26 + $0x32] sm:$0xff]  ;;  %s5425_s5 = sld [smem:[#allocation2 + $0x37]] }
 0x232   : > { %2328 = vrot.lane.b32.xlu1 %v2323_v52, %s4171_s10  ;;  %2326 = vrot.lane.b32.xlu0 %v2322_v33, %s4171_s10  ;;  %v2350_v52 = vmul.f32 %v5240_v10, %v2349_v20 }
 0x233   : > { %v783_v37 = vstv %s5419_s4  ;;  %s5565_s4 = sld [smem:[#allocation2 + $0x61]] }
 0x234   : > { %v5346_v46 = vpop.permute.xlu1 %1835  ;;  %v5348_v51 = vpop.permute.xlu0 %1833 }
 0x235   : > { %7764 = vst [vmem:[#allocation145_spill] sm:$0xff] %v5346_v46  ;;  %7765 = vst [vmem:[#allocation146_spill] sm:$0xff] %v5348_v51  ;;  %v2377_v51 = vstv %s3851_s6  ;;  %s5428_s6 = sld [smem:[#allocation2 + $0x48]] }
 0x236   : > { %2342 = vrot.lane.b32.xlu1 %v2337_v38, %s4171_s10  ;;  %2340 = vrot.lane.b32.xlu0 %v2336_v32, %s4171_s10  ;;  %v2365_v38 = vmul.f32 %v5237_v8, %v2363_v34  ;;  %v2364_v32 = vmul.f32 %v5240_v10, %v2363_v34 }
 0x238   : > { %v5354_v33 = vpop.permute.xlu1 %1900  ;;  %v5356_v43 = vpop.permute.xlu0 %1898 }
 0x239   : > { %7766 = vst [vmem:[#allocation147_spill] sm:$0xff] %v5354_v33  ;;  %7767 = vst [vmem:[#allocation148_spill] sm:$0xff] %v5356_v43  ;;  %v2379_v43 = vmul.f32 %v5237_v8, %v2377_v51  ;;  %v5371_v33 = vld [vmem:[%s4289_s26 + $0x3a] sm:$0xff] }
 0x23a   : > { %2356 = vrot.lane.b32.xlu1 %v2351_v40, %s4171_s10  ;;  %2354 = vrot.lane.b32.xlu0 %v2350_v52, %s4171_s10  ;;  %v2378_v40 = vmul.f32 %v5240_v10, %v2377_v51  ;;  %v2441_v52 = vstv %s3862_s7  ;;  %s5435_s7 = sld [smem:[#allocation2 + $0xce]] }
 0x23b   : > { %v2442_v8 = vmul.f32 %v5374_v42, %v2441_v52 }
 0x23c   : > { %v5362_v46 = vpop.permute.xlu1 %1914  ;;  %v5364_v20 = vpop.permute.xlu0 %1912 }
 0x23d   : > { %7768 = vst [vmem:[#allocation149_spill] sm:$0xff] %v5362_v46  ;;  %7769 = vst [vmem:[#allocation150_spill] sm:$0xff] %v5364_v20  ;;  %v759_v20 = vstv %s5404_s24  ;;  %v771_v46 = vstv %s5408_s27  ;;  %s5478_s24 = sld [smem:[#allocation2 + $0x4e]]  ;;  %s5507_s27 = sld [smem:[#allocation2 + $0xd0]] }
 0x23e   : > { %2370 = vrot.lane.b32.xlu1 %v2365_v38, %s4171_s10  ;;  %2368 = vrot.lane.b32.xlu0 %v2364_v32, %s4171_s10  ;;  %v2443_v38 = vmul.f32 %v5371_v33, %v2441_v52  ;;  %v2455_v32 = vstv %s3863_s8  ;;  %s5438_s8 = sld [smem:[#allocation2 + $0x49]] }
 0x240   : > { %v5376_v34 = vpop.permute.xlu1 %1928  ;;  %v5378_v31 = vpop.permute.xlu0 %1926 }
 0x241   : > { %7770 = vst [vmem:[#allocation151_spill] sm:$0xff] %v5376_v34  ;;  %7771 = vst [vmem:[#allocation152_spill] sm:$0xff] %v5378_v31  ;;  %v2469_v31 = vstv %s3864_s9  ;;  %s5440_s9 = sld [smem:[#allocation2 + $0x4a]] }
 0x242   : > { %2384 = vrot.lane.b32.xlu1 %v2379_v43, %s4171_s10  ;;  %2382 = vrot.lane.b32.xlu0 %v2378_v40, %s4171_s10  ;;  %v2457_v43 = vmul.f32 %v5371_v33, %v2455_v32  ;;  %v2456_v40 = vmul.f32 %v5374_v42, %v2455_v32  ;;  %v2483_v32 = vstv %s5384_s11  ;;  %s5450_s11 = sld [smem:[#allocation2 + $0x4b]] }
 0x244   : > { %v5386_v10 = vpop.permute.xlu1 %1942  ;;  %v5388_v51 = vpop.permute.xlu0 %1940 }
 0x245   : > { %7772 = vst [vmem:[#allocation153_spill] sm:$0xff] %v5386_v10  ;;  %7773 = vst [vmem:[#allocation154_spill] sm:$0xff] %v5388_v51 }
 0x246   : > { %2448 = vrot.lane.b32.xlu1 %v2443_v38, %s4170_s28  ;;  %2446 = vrot.lane.b32.xlu0 %v2442_v8, %s4170_s28  ;;  %v2471_v38 = vmul.f32 %v5371_v33, %v2469_v31  ;;  %v2470_v8 = vmul.f32 %v5374_v42, %v2469_v31  ;;  %v2485_v31 = vmul.f32 %v5371_v33, %v2483_v32 }
 0x248   : > { %v5400_v52 = vpop.permute.xlu1 %1956  ;;  %v5402_v51 = vpop.permute.xlu0 %1954 }
 0x249   : > { %7774 = vst [vmem:[#allocation155_spill] sm:$0xff] %v5400_v52  ;;  %7775 = vst [vmem:[#allocation156_spill] sm:$0xff] %v5402_v51 }
 0x24a   : > { %2462 = vrot.lane.b32.xlu1 %v2457_v43, %s4170_s28  ;;  %2460 = vrot.lane.b32.xlu0 %v2456_v40, %s4170_s28  ;;  %v747_v43 = vstv %s5390_s17  ;;  %v2484_v40 = vmul.f32 %v5374_v42, %v2483_v32  ;;  %v765_v32 = vstv %s5406_s25  ;;  %s5454_s17 = sld [smem:[#allocation2 + $0x4c]]  ;;  %s5480_s25 = sld [smem:[#allocation2 + $0x4f]] }
 0x24b   : > { %v5463_v62 = vmul.f32 %v4049_v63, %v747_v43  ;;  %v5488_v6 = vmul.f32 %v4049_v63, %v765_v32 }
 0x24c   : > { %v5421_v51 = vpop.permute.xlu1 %1970  ;;  %v5423_v52 = vpop.permute.xlu0 %1968 }
 0x24d   : > { %7776 = vst [vmem:[#allocation157_spill] sm:$0xff] %v5421_v51  ;;  %7777 = vst [vmem:[#allocation158_spill] sm:$0xff] %v5423_v52  ;;  %v2497_v51 = vstv %s5396_s19  ;;  %v753_v52 = vstv %s5398_s20  ;;  %s5456_s19 = sld [smem:[#allocation2 + $0x4d]]  ;;  %s5470_s20 = sld [smem:[#allocation2 + $0xcf]] }
 0x24e   : > { %2476 = vrot.lane.b32.xlu1 %v2471_v38, %s4170_s28  ;;  %2474 = vrot.lane.b32.xlu0 %v2470_v8, %s4170_s28  ;;  %v4048_v38 = vld [vmem:[%s4289_s26 + $0xa] sm:$0xff]  ;;  %v5467_v57 = vmul.f32 %v4049_v63, %v753_v52  ;;  %7786 = vst [vmem:[#allocation167_spill] sm:$0xff] %v5488_v6 }
 0x24f   : > { %v5447_v8 = vmul.f32 %v4048_v38, %v747_v43  ;;  %v5465_v19 = vmul.f32 %v4048_v38, %v753_v52  ;;  %v5472_v55 = vmul.f32 %v4048_v38, %v759_v20  ;;  %v5486_v52 = vmul.f32 %v4048_v38, %v765_v32 }
 0x250   : > { %v5442_v10 = vpop.permute.xlu1 %1984  ;;  %v5444_v34 = vpop.permute.xlu0 %1982  ;;  %7780 = vst [vmem:[#allocation161_spill] sm:$0xff] %v5467_v57  ;;  %v5490_v26 = vmul.f32 %v4048_v38, %v771_v46 }
 0x251   : > { %7778 = vst [vmem:[#allocation159_spill] sm:$0xff] %v5442_v10  ;;  %7779 = vst [vmem:[#allocation160_spill] sm:$0xff] %v5444_v34  ;;  %v2499_v34 = vmul.f32 %v5371_v33, %v2497_v51  ;;  %v2498_v10 = vmul.f32 %v5374_v42, %v2497_v51 }
 0x252   : > { %2490 = vrot.lane.b32.xlu1 %v2485_v31, %s4170_s28  ;;  %2488 = vrot.lane.b32.xlu0 %v2484_v40, %s4170_s28  ;;  %7781 = vst [vmem:[#allocation162_spill] sm:$0xff] %v5472_v55  ;;  %v5474_v31 = vmul.f32 %v4049_v63, %v759_v20  ;;  %v777_v40 = vstv %s5417_s30  ;;  %7785 = vst [vmem:[#allocation166_spill] sm:$0xff] %v5486_v52  ;;  %v789_v20 = vstv %s5425_s5  ;;  %s5549_s30 = sld [smem:[#allocation2 + $0x60]]  ;;  %s5578_s5 = sld [smem:[#allocation2 + $0xd2]] }
 0x253   : > { %7787 = vst [vmem:[#allocation168_spill] sm:$0xff] %v5490_v26  ;;  %v1022_v55 = vstv %s5428_s6  ;;  %v5500_v32 = vmul.f32 %v4048_v38, %v777_v40  ;;  %v5502_v6 = vmul.f32 %v4049_v63, %v777_v40  ;;  %v5504_v26 = vmul.f32 %v4048_v38, %v783_v37  ;;  %s5588_s6 = sld [smem:[#allocation2 + $0x62]] }
 0x254   : > { %7782 = vst [vmem:[#allocation163_spill] sm:$0xff] %v5474_v31  ;;  %v5482_v51 = vpop.permute.xlu1 %1998  ;;  %v5484_v43 = vpop.permute.xlu0 %1996  ;;  %v5493_v31 = vmul.f32 %v4049_v63, %v771_v46  ;;  %v2525_v46 = vstv %s5435_s7  ;;  %v1034_v52 = vstv %s5440_s9  ;;  %v5519_v40 = vmul.f32 %v4049_v63, %v789_v20  ;;  %s5604_s7 = sld [smem:[#allocation2 + $0x63]]  ;;  %s5628_s9 = sld [smem:[#allocation2 + $0x64]] }
 0x255   : > { %7783 = vst [vmem:[#allocation164_spill] sm:$0xff] %v5482_v51  ;;  %7784 = vst [vmem:[#allocation165_spill] sm:$0xff] %v5484_v43  ;;  %v2513_v51 = vmul.f32 %v5371_v33, %v2511_v50  ;;  %v2512_v43 = vmul.f32 %v5374_v42, %v2511_v50 }
 0x256   : > { %7788 = vst [vmem:[#allocation169_spill] sm:$0xff] %v5493_v31  ;;  %2504 = vrot.lane.b32.xlu1 %v2499_v34, %s4170_s28  ;;  %2502 = vrot.lane.b32.xlu0 %v2498_v10, %s4170_s28  ;;  %7789 = vst [vmem:[#allocation170_spill] sm:$0xff] %v5500_v32  ;;  %v5509_v34 = vmul.f32 %v4049_v63, %v783_v37  ;;  %v5511_v10 = vmul.f32 %v4048_v38, %v789_v20  ;;  %v1028_v31 = vstv %s5438_s8  ;;  %s5619_s8 = sld [smem:[#allocation2 + $0xd3]] }
 0x257   : > { %7790 = vst [vmem:[#allocation171_spill] sm:$0xff] %v5502_v6  ;;  %7791 = vst [vmem:[#allocation172_spill] sm:$0xff] %v5504_v26  ;;  %v4050_v6 = vld [vmem:[%s4289_s26 + $0x20] sm:$0xff]  ;;  %v4051_v26 = vld [vmem:[%s4289_s26 + $0x18] sm:$0xff]  ;;  %v1040_v37 = vstv %s5450_s11  ;;  %v1046_v38 = vstv %s5454_s17  ;;  %v2526_v63 = vmul.f32 %v5374_v42, %v2525_v46  ;;  %s5670_s11 = sld [smem:[#allocation2 + $0xd4]]  ;;  %s5680_s17 = sld [smem:[#allocation2 + $0x65]] }
 0x258   : > { %7792 = vst [vmem:[#allocation173_spill] sm:$0xff] %v5509_v34  ;;  %7793 = vst [vmem:[#allocation174_spill] sm:$0xff] %v5511_v10  ;;  %v5515_v1 = vpop.permute.xlu1 %2012  ;;  %v5517_v50 = vpop.permute.xlu0 %2010  ;;  %v5522_v32 = vmul.f32 %v4050_v6, %v1022_v55  ;;  %v5525_v57 = vmul.f32 %v4051_v26, %v1022_v55  ;;  %v1052_v10 = vstv %s5456_s19  ;;  %v5534_v20 = vmul.f32 %v4050_v6, %v1028_v31  ;;  %s5696_s19 = sld [smem:[#allocation2 + $0x66]] }
 0x259   : > { %7794 = vst [vmem:[#allocation175_spill] sm:$0xff] %v5515_v1  ;;  %7795 = vst [vmem:[#allocation176_spill] sm:$0xff] %v5517_v50  ;;  %v2527_v50 = vmul.f32 %v5371_v33, %v2525_v46  ;;  %v5536_v1 = vmul.f32 %v4051_v26, %v1028_v31  ;;  %v2539_v55 = vstv %s5470_s20  ;;  %v1064_v34 = vstv %s5480_s25  ;;  %s5700_s20 = sld [smem:[#allocation2 + $0x67]]  ;;  %s5749_s25 = sld [smem:[#allocation2 + $0xd6]] }
 0x25a   : > { %7796 = vst [vmem:[#allocation177_spill] sm:$0xff] %v5519_v40  ;;  %7797 = vst [vmem:[#allocation178_spill] sm:$0xff] %v5522_v32  ;;  %2518 = vrot.lane.b32.xlu1 %v2513_v51, %s4170_s28  ;;  %2516 = vrot.lane.b32.xlu0 %v2512_v43, %s4170_s28  ;;  %v5538_v32 = vmul.f32 %v4050_v6, %v1034_v52  ;;  %v5545_v40 = vmul.f32 %v4050_v6, %v1040_v37  ;;  %v1058_v51 = vstv %s5478_s24  ;;  %s5714_s24 = sld [smem:[#allocation2 + $0xd5]] }
 0x25b   : > { %7798 = vst [vmem:[#allocation179_spill] sm:$0xff] %v5525_v57  ;;  %7799 = vst [vmem:[#allocation180_spill] sm:$0xff] %v5534_v20  ;;  %v5543_v57 = vmul.f32 %v4051_v26, %v1034_v52  ;;  %v5555_v31 = vmul.f32 %v4051_v26, %v1040_v37  ;;  %v5561_v20 = vmul.f32 %v4050_v6, %v1052_v10 }
 0x25c   : > { %7800 = vst [vmem:[#allocation181_spill] sm:$0xff] %v5536_v1  ;;  %7801 = vst [vmem:[#allocation182_spill] sm:$0xff] %v5538_v32  ;;  %v5551_v43 = vpop.permute.xlu1 %2026  ;;  %v5553_v46 = vpop.permute.xlu0 %2024  ;;  %v5557_v1 = vmul.f32 %v4050_v6, %v1046_v38  ;;  %v5559_v32 = vmul.f32 %v4051_v26, %v1046_v38  ;;  %v5563_v52 = vmul.f32 %v4051_v26, %v1052_v10 }
 0x25d   : > { %7802 = vst [vmem:[#allocation183_spill] sm:$0xff] %v5551_v43  ;;  %7803 = vst [vmem:[#allocation184_spill] sm:$0xff] %v5553_v46  ;;  %v2541_v43 = vmul.f32 %v5371_v33, %v2539_v55  ;;  %v2540_v46 = vmul.f32 %v5374_v42, %v2539_v55  ;;  %v5571_v37 = vmul.f32 %v4050_v6, %v1058_v51 }
 0x25e   : > { %7804 = vst [vmem:[#allocation185_spill] sm:$0xff] %v5555_v31  ;;  %7805 = vst [vmem:[#allocation186_spill] sm:$0xff] %v5559_v32  ;;  %2532 = vrot.lane.b32.xlu1 %v2527_v50, %s4170_s28  ;;  %2530 = vrot.lane.b32.xlu0 %v2526_v63, %s4170_s28  ;;  %v5573_v31 = vmul.f32 %v4051_v26, %v1058_v51  ;;  %v5575_v38 = vmul.f32 %v4050_v6, %v1064_v34  ;;  %v2553_v32 = vstv %s5507_s27  ;;  %s5770_s27 = sld [smem:[#allocation2 + $0x78]] }
 0x25f   : > { %7806 = vst [vmem:[#allocation187_spill] sm:$0xff] %v5563_v52  ;;  %v533_v10 = vadd.f32 %v4684_v61, %v4554_v49  ;;  %v532_v50 = vadd.f32 %v4686_v2, %v4556_v54  ;;  %v547_v63 = vadd.f32 %v4692_v4, %v4577_v12  ;;  %v5586_v52 = vmul.f32 %v4051_v26, %v1064_v34 }
 0x260   : > { %v5590_v55 = vpop.permute.xlu1 %2040  ;;  %v5592_v6 = vpop.permute.xlu0 %2038  ;;  %v546_v51 = vadd.f32 %v4694_v5, %v4579_v13  ;;  %v561_v49 = vadd.f32 %v4706_v11, %v4600_v29  ;;  %v560_v54 = vadd.f32 %v4708_v16, %v4602_v30  ;;  %v575_v12 = vadd.f32 %v4714_v44, %v4621_v56 }
 0x261   : > { %7807 = vst [vmem:[#allocation188_spill] sm:$0xff] %v5590_v55  ;;  %7808 = vst [vmem:[#allocation189_spill] sm:$0xff] %v5592_v6  ;;  %v574_v61 = vadd.f32 %v4716_v21, %v4623_v59  ;;  %v2555_v13 = vmul.f32 %v5371_v33, %v2553_v32  ;;  %v2554_v29 = vmul.f32 %v5374_v42, %v2553_v32  ;;  %v2567_v59 = vstv %s5541_s29  ;;  %s5785_s29 = sld [smem:[#allocation2 + $0xd7]] }
 0x262   : > { %2546 = vrot.lane.b32.xlu1 %v2541_v43, %s4170_s28  ;;  %2544 = vrot.lane.b32.xlu0 %v2540_v46, %s4170_s28  ;;  %v589_v30 = vadd.f32 %v4722_v23, %v4640_v17  ;;  %v588_v2 = vadd.f32 %v4724_v24, %v4642_v18  ;;  %v5616_v56 = vadd.f32 %v4730_v25, %v4658_v27  ;;  %v1296_v17 = vstv %s5549_s30  ;;  %v7813_v46 = vld [vmem:[#allocation161_spill] sm:$0xff]  ;;  %s5795_s30 = sld [smem:[#allocation2 + $0x79]]  ;;  %v7873_v55 = vld [vmem:[#allocation180_spill] sm:$0xff] }
 0x263   : > { %v5623_v4 = vadd.f32 %v4732_v0, %v4660_v28  ;;  %v645_v5 = vadd.f32 %v4754_v47, %v533_v10  ;;  %v644_v11 = vadd.f32 %v4756_v48, %v532_v50  ;;  %v5636_v16 = vadd.f32 %v4738_v35, %v4671_v53  ;;  %v5664_v35 = vld [vmem:[%s4289_s26 + $0x19] sm:$0xff] }
 0x264   : > { %v5630_v18 = vpop.permute.xlu1 %2054  ;;  %v5632_v27 = vpop.permute.xlu0 %2052  ;;  %v5640_v28 = vadd.f32 %v4740_v36, %v4673_v41  ;;  %v5644_v44 = vadd.f32 %v4746_v7, %v4680_v15  ;;  %v659_v21 = vadd.f32 %v4762_v14, %v547_v63  ;;  %v5649_v23 = vadd.f32 %v4748_v39, %v4682_v60  ;;  %v5658_v15 = vld [vmem:[%s4289_s26 + $0x21] sm:$0xff] }
 0x265   : > { %7809 = vst [vmem:[#allocation190_spill] sm:$0xff] %v5630_v18  ;;  %7810 = vst [vmem:[#allocation191_spill] sm:$0xff] %v5632_v27  ;;  %v1302_v24 = vstv %s5565_s4  ;;  %v2569_v53 = vmul.f32 %v5371_v33, %v2567_v59  ;;  %v2568_v41 = vmul.f32 %v5374_v42, %v2567_v59  ;;  %v658_v25 = vadd.f32 %v4764_v3, %v546_v51  ;;  %v7814_v63 = vld [vmem:[#allocation11_spill] sm:$0xff]  ;;  %s5820_s4 = sld [smem:[#allocation2 + $0xe0]]  ;;  %v7872_v18 = vld [vmem:[#allocation42_spill] sm:$0xff] }
 0x266   : > { %2560 = vrot.lane.b32.xlu1 %v2555_v13, %s4171_s10  ;;  %2558 = vrot.lane.b32.xlu0 %v2554_v29, %s4171_s10  ;;  %v5661_v0 = vmul.f32 %v5658_v15, %v1296_v17  ;;  %v5667_v60 = vmul.f32 %v5664_v35, %v1296_v17  ;;  %v2581_v36 = vstv %s5578_s5  ;;  %v673_v7 = vadd.f32 %v4770_v58, %v561_v49  ;;  %v7815_v49 = vld [vmem:[#allocation162_spill] sm:$0xff]  ;;  %v7818_v29 = vld [vmem:[#allocation12_spill] sm:$0xff]  ;;  %s5829_s5 = sld [smem:[#allocation2 + $0x7a]] }
 0x267   : > { %v5674_v39 = vadd.f32 %v5447_v8, %v645_v5  ;;  %v5677_v47 = vadd.f32 %v5463_v62, %v644_v11  ;;  %v1308_v48 = vstv %s5588_s6  ;;  %v672_v26 = vadd.f32 %v4772_v9, %v560_v54  ;;  %v7819_v5 = vld [vmem:[#allocation163_spill] sm:$0xff]  ;;  %s5841_s6 = sld [smem:[#allocation2 + $0x7b]] }
 0x268   : > { %v5682_v14 = vpop.permute.xlu1 %2068  ;;  %v5684_v3 = vpop.permute.xlu0 %2066  ;;  %v5688_v32 = vadd.f32 %v5465_v19, %v659_v21  ;;  %v5691_v58 = vmul.f32 %v5658_v15, %v1302_v24  ;;  %v5694_v8 = vmul.f32 %v5664_v35, %v1302_v24  ;;  %v687_v62 = vadd.f32 %v4778_v22, %v575_v12  ;;  %v7820_v21 = vld [vmem:[#allocation166_spill] sm:$0xff] }
 0x269   : > { %7811 = vst [vmem:[#allocation192_spill] sm:$0xff] %v5682_v14  ;;  %7812 = vst [vmem:[#allocation193_spill] sm:$0xff] %v5684_v3  ;;  %v1314_v34 = vstv %s5604_s7  ;;  %v2583_v9 = vmul.f32 %v5371_v33, %v2581_v36  ;;  %v2582_v19 = vmul.f32 %v5374_v42, %v2581_v36  ;;  %v686_v43 = vadd.f32 %v4780_v45, %v574_v61  ;;  %v7851_v14 = vld [vmem:[#allocation28_spill] sm:$0xff]  ;;  %s5856_s7 = sld [smem:[#allocation2 + $0x7c]] }
 0x26a   : > { %2574 = vrot.lane.b32.xlu1 %v2569_v53, %s4171_s10  ;;  %2572 = vrot.lane.b32.xlu0 %v2568_v41, %s4171_s10  ;;  %v5708_v10 = vadd.f32 %v7813_v46, %v658_v25  ;;  %v5711_v50 = vmul.f32 %v5658_v15, %v1308_v48  ;;  %v2595_v22 = vstv %s5619_s8  ;;  %v701_v51 = vadd.f32 %v7814_v63, %v589_v30  ;;  %v7821_v41 = vld [vmem:[#allocation167_spill] sm:$0xff]  ;;  %s5859_s8 = sld [smem:[#allocation2 + $0xe1]] }
 0x26b   : > { %v5718_v54 = vadd.f32 %v7815_v49, %v673_v7  ;;  %v5721_v12 = vmul.f32 %v5664_v35, %v1308_v48  ;;  %v1320_v13 = vstv %s5628_s9  ;;  %v700_v59 = vadd.f32 %v7818_v29, %v588_v2  ;;  %v7827_v49 = vld [vmem:[#allocation15_spill] sm:$0xff]  ;;  %v7828_v29 = vld [vmem:[#allocation16_spill] sm:$0xff]  ;;  %s5905_s9 = sld [smem:[#allocation2 + $0x7d]] }
 0x26c   : > { %v5724_v45 = vpop.permute.xlu1 %2082  ;;  %v5726_v61 = vpop.permute.xlu0 %2080  ;;  %v762_v11 = vadd.f32 %v7819_v5, %v672_v26  ;;  %v5731_v17 = vmul.f32 %v5658_v15, %v1314_v34  ;;  %v5734_v30 = vmul.f32 %v5664_v35, %v1314_v34  ;;  %v769_v24 = vadd.f32 %v7820_v21, %v687_v62  ;;  %v7822_v26 = vld [vmem:[#allocation13_spill] sm:$0xff]  ;;  %v7823_v34 = vld [vmem:[#allocation14_spill] sm:$0xff] }
 0x26d   : > { %7816 = vst [vmem:[#allocation161_spill] sm:$0xff] %v5724_v45  ;;  %7817 = vst [vmem:[#allocation11_spill] sm:$0xff] %v5726_v61  ;;  %v2597_v53 = vmul.f32 %v5371_v33, %v2595_v22  ;;  %v2596_v2 = vmul.f32 %v5374_v42, %v2595_v22  ;;  %v768_v25 = vadd.f32 %v7821_v41, %v686_v43  ;;  %v2609_v48 = vstv %s5670_s11  ;;  %v7829_v21 = vld [vmem:[#allocation169_spill] sm:$0xff]  ;;  %v7845_v45 = vld [vmem:[#allocation24_spill] sm:$0xff]  ;;  %s5914_s11 = sld [smem:[#allocation2 + $0xe2]] }
 0x26e   : > { %2588 = vrot.lane.b32.xlu1 %v2583_v9, %s4171_s10  ;;  %2586 = vrot.lane.b32.xlu0 %v2582_v19, %s4171_s10  ;;  %v5743_v36 = vmul.f32 %v5658_v15, %v1320_v13  ;;  %v5746_v7 = vmul.f32 %v5664_v35, %v1320_v13  ;;  %v715_v62 = vadd.f32 %v7822_v26, %v5616_v56  ;;  %v7824_v19 = vld [vmem:[#allocation168_spill] sm:$0xff]  ;;  %v1326_v22 = vstv %s5680_s17  ;;  %v7830_v26 = vld [vmem:[#allocation17_spill] sm:$0xff]  ;;  %s5932_s17 = sld [smem:[#allocation2 + $0x7e]] }
 0x26f   : > { %v714_v9 = vadd.f32 %v7823_v34, %v5623_v4  ;;  %v775_v46 = vadd.f32 %v7824_v19, %v701_v51  ;;  %v729_v13 = vadd.f32 %v7827_v49, %v5636_v16  ;;  %v728_v5 = vadd.f32 %v7828_v29, %v5640_v28  ;;  %v7831_v19 = vld [vmem:[#allocation18_spill] sm:$0xff] }
 0x270   : > { %v5757_v43 = vpop.permute.xlu1 %2096  ;;  %v5759_v63 = vpop.permute.xlu0 %2094  ;;  %v774_v41 = vadd.f32 %v7829_v21, %v700_v59  ;;  %v1332_v56 = vstv %s5696_s19  ;;  %v743_v4 = vadd.f32 %v7830_v26, %v5644_v44  ;;  %v1338_v34 = vstv %s5700_s20  ;;  %v7832_v29 = vld [vmem:[#allocation170_spill] sm:$0xff]  ;;  %v7833_v21 = vld [vmem:[#allocation171_spill] sm:$0xff]  ;;  %s5937_s19 = sld [smem:[#allocation2 + $0x7f]]  ;;  %s5951_s20 = sld [smem:[#allocation2 + $0xe3]] }
 0x271   : > { %7825 = vst [vmem:[#allocation162_spill] sm:$0xff] %v5757_v43  ;;  %7826 = vst [vmem:[#allocation12_spill] sm:$0xff] %v5759_v63  ;;  %v2611_v51 = vmul.f32 %v5371_v33, %v2609_v48  ;;  %v2610_v16 = vmul.f32 %v5374_v42, %v2609_v48  ;;  %v742_v28 = vadd.f32 %v7831_v19, %v5649_v23  ;;  %v2623_v44 = vstv %s5714_s24  ;;  %v7836_v19 = vld [vmem:[#allocation172_spill] sm:$0xff]  ;;  %v7837_v43 = vld [vmem:[#allocation173_spill] sm:$0xff]  ;;  %s5987_s24 = sld [smem:[#allocation2 + $0xe4]] }
 0x272   : > { %2602 = vrot.lane.b32.xlu1 %v2597_v53, %s4171_s10  ;;  %2600 = vrot.lane.b32.xlu0 %v2596_v2, %s4171_s10  ;;  %v5779_v59 = vmul.f32 %v5658_v15, %v1326_v22  ;;  %v5782_v49 = vmul.f32 %v5664_v35, %v1326_v22  ;;  %v781_v53 = vadd.f32 %v7832_v29, %v715_v62  ;;  %v7838_v29 = vld [vmem:[#allocation174_spill] sm:$0xff] }
 0x273   : > { %v780_v2 = vadd.f32 %v7833_v21, %v714_v9  ;;  %v5790_v26 = vmul.f32 %v5658_v15, %v1332_v56  ;;  %v5793_v48 = vmul.f32 %v5664_v35, %v1332_v56  ;;  %v787_v63 = vadd.f32 %v7836_v19, %v729_v13  ;;  %v7839_v13 = vld [vmem:[#allocation19_spill] sm:$0xff] }
 0x274   : > { %v5797_v23 = vpop.permute.xlu1 %2110  ;;  %v5799_v22 = vpop.permute.xlu0 %2108  ;;  %v786_v61 = vadd.f32 %v7837_v43, %v728_v5  ;;  %v5804_v62 = vmul.f32 %v5658_v15, %v1338_v34  ;;  %v5807_v9 = vmul.f32 %v5664_v35, %v1338_v34  ;;  %v793_v56 = vadd.f32 %v7838_v29, %v743_v4  ;;  %v7840_v43 = vld [vmem:[#allocation20_spill] sm:$0xff]  ;;  %v7841_v5 = vld [vmem:[#allocation177_spill] sm:$0xff] }
 0x275   : > { %7834 = vst [vmem:[#allocation163_spill] sm:$0xff] %v5797_v23  ;;  %7835 = vst [vmem:[#allocation166_spill] sm:$0xff] %v5799_v22  ;;  %v2625_v21 = vmul.f32 %v5371_v33, %v2623_v44  ;;  %v2624_v22 = vmul.f32 %v5374_v42, %v2623_v44  ;;  %v807_v19 = vadd.f32 %v7839_v13, %v5674_v39  ;;  %v2637_v35 = vstv %s5749_s25  ;;  %v7842_v4 = vld [vmem:[#allocation21_spill] sm:$0xff]  ;;  %v7844_v44 = vld [vmem:[#allocation23_spill] sm:$0xff]  ;;  %s6011_s25 = sld [smem:[#allocation2 + $0x90]] }
 0x276   : > { %2616 = vrot.lane.b32.xlu1 %v2611_v51, %s4171_s10  ;;  %2614 = vrot.lane.b32.xlu0 %v2610_v16, %s4171_s10  ;;  %v806_v15 = vadd.f32 %v7840_v43, %v5677_v47  ;;  %v792_v23 = vadd.f32 %v7841_v5, %v742_v28  ;;  %v821_v34 = vadd.f32 %v7842_v4, %v5688_v32  ;;  %v7843_v51 = vld [vmem:[#allocation22_spill] sm:$0xff]  ;;  %v7848_v13 = vld [vmem:[#allocation25_spill] sm:$0xff]  ;;  %v7850_v32 = vld [vmem:[#allocation27_spill] sm:$0xff] }
 0x277   : > { %v820_v16 = vadd.f32 %v7843_v51, %v5708_v10  ;;  %v835_v29 = vadd.f32 %v7844_v44, %v5718_v54  ;;  %v834_v39 = vadd.f32 %v7845_v45, %v762_v11  ;;  %v849_v43 = vadd.f32 %v7848_v13, %v769_v24  ;;  %v7849_v5 = vld [vmem:[#allocation26_spill] sm:$0xff]  ;;  %v7852_v54 = vld [vmem:[#allocation29_spill] sm:$0xff]  ;;  %v7855_v44 = vld [vmem:[#allocation36_spill] sm:$0xff] }
 0x278   : > { %v5831_v47 = vpop.permute.xlu1 %2174  ;;  %v5833_v28 = vpop.permute.xlu0 %2172  ;;  %v848_v3 = vadd.f32 %v7849_v5, %v768_v25  ;;  %v863_v4 = vadd.f32 %v7850_v32, %v775_v46  ;;  %v5839_v10 = vadd.f32 %v7851_v14, %v774_v41  ;;  %v5844_v45 = vadd.f32 %v7852_v54, %v781_v53  ;;  %v7853_v46 = vld [vmem:[#allocation30_spill] sm:$0xff]  ;;  %v7854_v14 = vld [vmem:[#allocation35_spill] sm:$0xff]  ;;  %v7857_v5 = vld [vmem:[#allocation32_spill] sm:$0xff] }
 0x279   : > { %7846 = vst [vmem:[#allocation167_spill] sm:$0xff] %v5831_v47  ;;  %7847 = vst [vmem:[#allocation13_spill] sm:$0xff] %v5833_v28  ;;  %v1570_v11 = vstv %s5770_s27  ;;  %v2639_v24 = vmul.f32 %v5371_v33, %v2637_v35  ;;  %v2638_v25 = vmul.f32 %v5374_v42, %v2637_v35  ;;  %v5852_v51 = vadd.f32 %v7853_v46, %v780_v2  ;;  %v7858_v35 = vld [vmem:[#allocation33_spill] sm:$0xff]  ;;  %s6023_s27 = sld [smem:[#allocation2 + $0xe5]] }
 0x27a   : > { %2630 = vrot.lane.b32.xlu1 %v2625_v21, %s4171_s10  ;;  %2628 = vrot.lane.b32.xlu0 %v2624_v22, %s4171_s10  ;;  %v919_v41 = vadd.f32 %v7854_v14, %v807_v19  ;;  %v918_v13 = vadd.f32 %v7855_v44, %v806_v15  ;;  %v2651_v53 = vstv %s5785_s29  ;;  %v7856_v21 = vld [vmem:[#allocation31_spill] sm:$0xff]  ;;  %v5865_v32 = vadd.f32 %v7857_v5, %v786_v61  ;;  %v7861_v15 = vld [vmem:[#allocation34_spill] sm:$0xff]  ;;  %v7862_v44 = vld [vmem:[#allocation37_spill] sm:$0xff]  ;;  %s6033_s29 = sld [smem:[#allocation2 + $0x91]] }
 0x27b   : > { %v5862_v22 = vadd.f32 %v7856_v21, %v787_v63  ;;  %v5868_v54 = vadd.f32 %v7858_v35, %v793_v56  ;;  %v1576_v2 = vstv %s5795_s30  ;;  %v5876_v14 = vadd.f32 %v7861_v15, %v792_v23  ;;  %v5880_v63 = vld [vmem:[%s4289_s26 + $0x22] sm:$0xff]  ;;  %v5886_v56 = vld [vmem:[%s4289_s26 + $0x1a] sm:$0xff]  ;;  %v7871_v47 = vld [vmem:[#allocation41_spill] sm:$0xff]  ;;  %s6049_s30 = sld [smem:[#allocation2 + $0x92]] }
 0x27c   : > { %v5871_v46 = vpop.permute.xlu1 %2188  ;;  %v5873_v19 = vpop.permute.xlu0 %2186  ;;  %v933_v28 = vadd.f32 %v7862_v44, %v821_v34  ;;  %v5883_v61 = vmul.f32 %v5880_v63, %v1570_v11  ;;  %v5889_v21 = vmul.f32 %v5886_v56, %v1570_v11  ;;  %v7863_v5 = vld [vmem:[#allocation38_spill] sm:$0xff]  ;;  %v2653_v23 = vmul.f32 %v5371_v33, %v2651_v53 }
 0x27d   : > { %7859 = vst [vmem:[#allocation14_spill] sm:$0xff] %v5871_v46  ;;  %7860 = vst [vmem:[#allocation168_spill] sm:$0xff] %v5873_v19  ;;  %v932_v35 = vadd.f32 %v7863_v5, %v820_v16  ;;  %v2652_v34 = vmul.f32 %v5374_v42, %v2651_v53  ;;  %v7864_v15 = vld [vmem:[#allocation178_spill] sm:$0xff]  ;;  %v7865_v19 = vld [vmem:[#allocation179_spill] sm:$0xff]  ;;  %v5903_v11 = vmul.f32 %v5880_v63, %v1576_v2 }
 0x27e   : > { %2644 = vrot.lane.b32.xlu1 %v2639_v24, %s4171_s10  ;;  %2642 = vrot.lane.b32.xlu0 %v2638_v25, %s4171_s10  ;;  %v5897_v44 = vadd.f32 %v7864_v15, %v919_v41  ;;  %v5900_v46 = vadd.f32 %v7865_v19, %v918_v13  ;;  %v5908_v16 = vld [vmem:[%s4289_s26 + $0x50] sm:$0xff]  ;;  %v2716_v24 = vstv %s5820_s4  ;;  %v7867_v42 = vld [vmem:[#allocation39_spill] sm:$0xff]  ;;  %v7868_v41 = vld [vmem:[#allocation40_spill] sm:$0xff]  ;;  %v5919_v13 = vmul.f32 %v5886_v56, %v1576_v2  ;;  %s6062_s4 = sld [smem:[#allocation2 + $0xe6]] }
 0x27f   : > { %7866 = vst [vmem:[#allocation15_spill] sm:$0xff] %v5903_v11  ;;  %v5912_v25 = vld [vmem:[%s4289_s26 + $0x48] sm:$0xff]  ;;  %v947_v33 = vadd.f32 %v7867_v42, %v835_v29  ;;  %v946_v53 = vadd.f32 %v7868_v41, %v834_v39  ;;  %v1582_v19 = vstv %s5829_s5  ;;  %v961_v27 = vadd.f32 %v7871_v47, %v849_v43  ;;  %v7874_v39 = vld [vmem:[#allocation181_spill] sm:$0xff]  ;;  %v7876_v43 = vld [vmem:[#allocation43_spill] sm:$0xff]  ;;  %s6080_s5 = sld [smem:[#allocation2 + $0x93]] }
 0x280   : > { %v5922_v5 = vpop.permute.xlu1 %2202  ;;  %v5924_v15 = vpop.permute.xlu0 %2200  ;;  %v960_v6 = vadd.f32 %v7872_v18, %v848_v3  ;;  %v5929_v11 = vadd.f32 %v7873_v55, %v933_v28  ;;  %v1588_v29 = vstv %s5841_s6  ;;  %v5935_v2 = vadd.f32 %v7874_v39, %v932_v35  ;;  %v7877_v41 = vld [vmem:[#allocation182_spill] sm:$0xff]  ;;  %s6086_s6 = sld [smem:[#allocation2 + $0x94]] }
 0x281   : > { %7869 = vst [vmem:[#allocation16_spill] sm:$0xff] %v5922_v5  ;;  %7870 = vst [vmem:[#allocation169_spill] sm:$0xff] %v5924_v15  ;;  %v2718_v42 = vmul.f32 %v5908_v16, %v2716_v24  ;;  %v2717_v47 = vmul.f32 %v5912_v25, %v2716_v24  ;;  %v5944_v18 = vmul.f32 %v5880_v63, %v1582_v19  ;;  %v1594_v3 = vstv %s5856_s7  ;;  %v7881_v15 = vld [vmem:[#allocation44_spill] sm:$0xff]  ;;  %s6100_s7 = sld [smem:[#allocation2 + $0xe7]] }
 0x282   : > { %2658 = vrot.lane.b32.xlu1 %v2653_v23, %s4171_s10  ;;  %2656 = vrot.lane.b32.xlu0 %v2652_v34, %s4171_s10  ;;  %v5947_v55 = vmul.f32 %v5886_v56, %v1582_v19  ;;  %v2730_v28 = vstv %s5859_s8  ;;  %v975_v35 = vadd.f32 %v7876_v43, %v863_v4  ;;  %v5955_v23 = vadd.f32 %v7877_v41, %v947_v33  ;;  %v7882_v43 = vld [vmem:[#allocation185_spill] sm:$0xff]  ;;  %s6130_s8 = sld [smem:[#allocation2 + $0x95]] }
 0x283   : > { %v5958_v34 = vadd.f32 %v5543_v57, %v946_v53  ;;  %v5961_v24 = vmul.f32 %v5880_v63, %v1588_v29  ;;  %v974_v5 = vadd.f32 %v7881_v15, %v5839_v10  ;;  %v1044_v4 = vadd.f32 %v5545_v40, %v961_v27  ;;  %v7885_v10 = vld [vmem:[#allocation45_spill] sm:$0xff] }
 0x284   : > { %7875 = vst [vmem:[#allocation17_spill] sm:$0xff] %v5947_v55  ;;  %v5963_v39 = vpop.permute.xlu1 %2216  ;;  %v5965_v19 = vpop.permute.xlu0 %2214  ;;  %v1043_v33 = vadd.f32 %v7882_v43, %v960_v6  ;;  %v5972_v41 = vmul.f32 %v5886_v56, %v1588_v29  ;;  %v5975_v57 = vmul.f32 %v5880_v63, %v1594_v3  ;;  %v2732_v53 = vmul.f32 %v5908_v16, %v2730_v28  ;;  %v7886_v6 = vld [vmem:[#allocation46_spill] sm:$0xff] }
 0x285   : > { %7878 = vst [vmem:[#allocation18_spill] sm:$0xff] %v5961_v24  ;;  %7879 = vst [vmem:[#allocation170_spill] sm:$0xff] %v5963_v39  ;;  %v989_v40 = vadd.f32 %v7885_v10, %v5844_v45  ;;  %v988_v27 = vadd.f32 %v7886_v6, %v5852_v51  ;;  %v1600_v15 = vstv %s5905_s9  ;;  %v2744_v29 = vstv %s5914_s11  ;;  %v7891_v51 = vld [vmem:[#allocation49_spill] sm:$0xff]  ;;  %s6146_s9 = sld [smem:[#allocation2 + $0xe8]]  ;;  %s6156_s11 = sld [smem:[#allocation2 + $0x96]] }
 0x286   : > { %7880 = vst [vmem:[#allocation171_spill] sm:$0xff] %v5965_v19  ;;  %7883 = vst [vmem:[#allocation172_spill] sm:$0xff] %v5972_v41  ;;  %2723 = vrot.lane.b32.xlu1 %v2718_v42, %s4170_s28  ;;  %2721 = vrot.lane.b32.xlu0 %v2717_v47, %s4170_s28  ;;  %v2731_v19 = vmul.f32 %v5912_v25, %v2730_v28  ;;  %v7887_v42 = vld [vmem:[#allocation47_spill] sm:$0xff]  ;;  %v7888_v47 = vld [vmem:[#allocation48_spill] sm:$0xff]  ;;  %v5995_v28 = vmul.f32 %v5886_v56, %v1594_v3  ;;  %v1606_v55 = vstv %s5932_s17  ;;  %s6172_s17 = sld [smem:[#allocation2 + $0x97]] }
 0x287   : > { %7884 = vst [vmem:[#allocation173_spill] sm:$0xff] %v5975_v57  ;;  %v1003_v43 = vadd.f32 %v7887_v42, %v5862_v22  ;;  %v1002_v39 = vadd.f32 %v7888_v47, %v5865_v32  ;;  %v1050_v57 = vadd.f32 %v5557_v1, %v975_v35  ;;  %v1017_v6 = vadd.f32 %v7891_v51, %v5868_v54  ;;  %v7892_v41 = vld [vmem:[#allocation50_spill] sm:$0xff] }
 0x288   : > { %v5997_v45 = vpop.permute.xlu1 %2230  ;;  %v5999_v10 = vpop.permute.xlu0 %2228  ;;  %v1016_v24 = vadd.f32 %v7892_v41, %v5876_v14  ;;  %v7893_v22 = vld [vmem:[#allocation186_spill] sm:$0xff]  ;;  %v6008_v32 = vmul.f32 %v5880_v63, %v1600_v15  ;;  %v1612_v1 = vstv %s5937_s19  ;;  %v2746_v3 = vmul.f32 %v5908_v16, %v2744_v29  ;;  %v7894_v14 = vld [vmem:[#allocation187_spill] sm:$0xff]  ;;  %s6186_s19 = sld [smem:[#allocation2 + $0xe9]] }
 0x289   : > { %7889 = vst [vmem:[#allocation174_spill] sm:$0xff] %v5997_v45  ;;  %7890 = vst [vmem:[#allocation19_spill] sm:$0xff] %v5999_v10  ;;  %v1049_v42 = vadd.f32 %v7893_v22, %v974_v5  ;;  %v2745_v54 = vmul.f32 %v5912_v25, %v2744_v29  ;;  %v1056_v35 = vadd.f32 %v5561_v20, %v989_v40  ;;  %v2758_v47 = vstv %s5951_s20  ;;  %v7909_v10 = vld [vmem:[#allocation61_spill] sm:$0xff]  ;;  %s6220_s20 = sld [smem:[#allocation2 + $0xea]] }
 0x28a   : > { %2737 = vrot.lane.b32.xlu1 %v2732_v53, %s4170_s28  ;;  %2735 = vrot.lane.b32.xlu0 %v2731_v19, %s4170_s28  ;;  %v1055_v41 = vadd.f32 %v7894_v14, %v988_v27  ;;  %v6020_v5 = vmul.f32 %v5886_v56, %v1600_v15  ;;  %v1062_v51 = vadd.f32 %v5571_v37, %v1003_v43  ;;  %v7900_v43 = vld [vmem:[#allocation54_spill] sm:$0xff] }
 0x28b   : > { %v1061_v53 = vadd.f32 %v5573_v31, %v1002_v39  ;;  %v6028_v19 = vmul.f32 %v5880_v63, %v1606_v55  ;;  %v6031_v22 = vmul.f32 %v5886_v56, %v1606_v55  ;;  %v1068_v27 = vadd.f32 %v5575_v38, %v1017_v6  ;;  %v7897_v55 = vld [vmem:[#allocation51_spill] sm:$0xff] }
 0x28c   : > { %v6035_v20 = vpop.permute.xlu1 %2244  ;;  %v6037_v40 = vpop.permute.xlu0 %2242  ;;  %v1067_v15 = vadd.f32 %v5586_v52, %v1016_v24  ;;  %v6042_v37 = vmul.f32 %v5880_v63, %v1612_v1  ;;  %v6045_v31 = vmul.f32 %v5886_v56, %v1612_v1  ;;  %v1082_v39 = vadd.f32 %v7897_v55, %v5897_v44  ;;  %v7898_v52 = vld [vmem:[#allocation52_spill] sm:$0xff]  ;;  %v7899_v24 = vld [vmem:[#allocation53_spill] sm:$0xff]  ;;  %v7901_v1 = vld [vmem:[#allocation55_spill] sm:$0xff] }
 0x28d   : > { %7895 = vst [vmem:[#allocation20_spill] sm:$0xff] %v6035_v20  ;;  %7896 = vst [vmem:[#allocation177_spill] sm:$0xff] %v6037_v40  ;;  %v2760_v29 = vmul.f32 %v5908_v16, %v2758_v47  ;;  %v2759_v38 = vmul.f32 %v5912_v25, %v2758_v47  ;;  %v1081_v63 = vadd.f32 %v7898_v52, %v5900_v46  ;;  %v2772_v6 = vstv %s5987_s24  ;;  %v7903_v47 = vld [vmem:[#allocation57_spill] sm:$0xff]  ;;  %v7904_v40 = vld [vmem:[#allocation58_spill] sm:$0xff]  ;;  %s6241_s24 = sld [smem:[#allocation2 + $0xa8]] }
 0x28e   : > { %2751 = vrot.lane.b32.xlu1 %v2746_v3, %s4170_s28  ;;  %2749 = vrot.lane.b32.xlu0 %v2745_v54, %s4170_s28  ;;  %v1096_v56 = vadd.f32 %v7899_v24, %v5929_v11  ;;  %v1095_v44 = vadd.f32 %v7900_v43, %v5935_v2  ;;  %v1110_v3 = vadd.f32 %v7901_v1, %v5955_v23  ;;  %v7902_v54 = vld [vmem:[#allocation56_spill] sm:$0xff]  ;;  %v7907_v24 = vld [vmem:[#allocation59_spill] sm:$0xff] }
 0x28f   : > { %v1109_v14 = vadd.f32 %v7902_v54, %v5958_v34  ;;  %v1124_v55 = vadd.f32 %v7903_v47, %v1044_v4  ;;  %v1123_v46 = vadd.f32 %v7904_v40, %v1043_v33  ;;  %v1138_v2 = vadd.f32 %v7907_v24, %v1050_v57  ;;  %v7908_v43 = vld [vmem:[#allocation60_spill] sm:$0xff]  ;;  %v7910_v23 = vld [vmem:[#allocation67_spill] sm:$0xff]  ;;  %v7911_v34 = vld [vmem:[#allocation62_spill] sm:$0xff] }
 0x290   : > { %v6070_v52 = vpop.permute.xlu1 %2258  ;;  %v6072_v11 = vpop.permute.xlu0 %2256  ;;  %v1137_v20 = vadd.f32 %v7908_v43, %v1049_v42  ;;  %v6077_v45 = vadd.f32 %v7909_v10, %v1056_v35  ;;  %v1194_v1 = vadd.f32 %v7910_v23, %v1082_v39  ;;  %v6083_v4 = vadd.f32 %v7911_v34, %v1055_v41  ;;  %v7912_v42 = vld [vmem:[#allocation63_spill] sm:$0xff]  ;;  %v7913_v40 = vld [vmem:[#allocation64_spill] sm:$0xff]  ;;  %v7916_v24 = vld [vmem:[#allocation66_spill] sm:$0xff] }
 0x291   : > { %7905 = vst [vmem:[#allocation21_spill] sm:$0xff] %v6070_v52  ;;  %7906 = vst [vmem:[#allocation22_spill] sm:$0xff] %v6072_v11  ;;  %v1845_v33 = vstv %s6011_s25  ;;  %v2774_v57 = vmul.f32 %v5908_v16, %v2772_v6  ;;  %v2773_v10 = vmul.f32 %v5912_v25, %v2772_v6  ;;  %v6093_v35 = vadd.f32 %v7912_v42, %v1062_v51  ;;  %v7914_v41 = vld [vmem:[#allocation68_spill] sm:$0xff]  ;;  %v7917_v6 = vld [vmem:[#allocation69_spill] sm:$0xff]  ;;  %s6255_s25 = sld [smem:[#allocation2 + $0xa9]] }
 0x292   : > { %2765 = vrot.lane.b32.xlu1 %v2760_v29, %s4170_s28  ;;  %2763 = vrot.lane.b32.xlu0 %v2759_v38, %s4170_s28  ;;  %v6096_v39 = vadd.f32 %v7913_v40, %v1061_v53  ;;  %v1193_v54 = vadd.f32 %v7914_v41, %v1081_v63  ;;  %v2786_v47 = vstv %s6023_s27  ;;  %v7915_v29 = vld [vmem:[#allocation65_spill] sm:$0xff]  ;;  %v6106_v43 = vadd.f32 %v7916_v24, %v1067_v15  ;;  %v7920_v53 = vld [vmem:[#allocation70_spill] sm:$0xff]  ;;  %s6258_s27 = sld [smem:[#allocation2 + $0xeb]] }
 0x293   : > { %v6103_v38 = vadd.f32 %v7915_v29, %v1068_v27  ;;  %v1208_v23 = vadd.f32 %v7917_v6, %v1096_v56  ;;  %v1851_v34 = vstv %s6033_s29  ;;  %v1207_v40 = vadd.f32 %v7920_v53, %v1095_v44  ;;  %v6119_v41 = vld [vmem:[%s4289_s26 + $0x38] sm:$0xff]  ;;  %v6125_v15 = vld [vmem:[%s4289_s26 + $0x30] sm:$0xff]  ;;  %v7921_v29 = vld [vmem:[#allocation71_spill] sm:$0xff]  ;;  %s6281_s29 = sld [smem:[#allocation2 + $0xaa]] }
 0x294   : > { %v6110_v51 = vpop.permute.xlu1 %2272  ;;  %v6112_v42 = vpop.permute.xlu0 %2270  ;;  %v6116_v63 = vadd.f32 %v5661_v0, %v1194_v1  ;;  %v6122_v27 = vmul.f32 %v6119_v41, %v1845_v33  ;;  %v6128_v56 = vmul.f32 %v6125_v15, %v1845_v33  ;;  %v1222_v24 = vadd.f32 %v7921_v29, %v1110_v3  ;;  %v7922_v1 = vld [vmem:[#allocation72_spill] sm:$0xff] }
 0x295   : > { %7918 = vst [vmem:[#allocation23_spill] sm:$0xff] %v6110_v51  ;;  %7919 = vst [vmem:[#allocation24_spill] sm:$0xff] %v6112_v42  ;;  %v1857_v6 = vstv %s6049_s30  ;;  %v2788_v0 = vmul.f32 %v5908_v16, %v2786_v47  ;;  %v2787_v44 = vmul.f32 %v5912_v25, %v2786_v47  ;;  %v1221_v53 = vadd.f32 %v7922_v1, %v1109_v14  ;;  %v7927_v1 = vld [vmem:[#allocation75_spill] sm:$0xff]  ;;  %s6292_s30 = sld [smem:[#allocation2 + $0xec]] }
 0x296   : > { %2779 = vrot.lane.b32.xlu1 %v2774_v57, %s4170_s28  ;;  %2777 = vrot.lane.b32.xlu0 %v2773_v10, %s4170_s28  ;;  %v6140_v11 = vadd.f32 %v5667_v60, %v1193_v54  ;;  %v6143_v33 = vmul.f32 %v6119_v41, %v1851_v34  ;;  %v2800_v3 = vstv %s6062_s4  ;;  %v7923_v57 = vld [vmem:[#allocation73_spill] sm:$0xff]  ;;  %v7924_v10 = vld [vmem:[#allocation74_spill] sm:$0xff]  ;;  %v6151_v42 = vadd.f32 %v5691_v58, %v1208_v23  ;;  %s6300_s4 = sld [smem:[#allocation2 + $0xab]] }
 0x297   : > { %v1236_v29 = vadd.f32 %v7923_v57, %v1124_v55  ;;  %v1235_v52 = vadd.f32 %v7924_v10, %v1123_v46  ;;  %v6154_v47 = vmul.f32 %v6125_v15, %v1851_v34  ;;  %v6163_v54 = vadd.f32 %v5694_v8, %v1207_v40 }
 0x298   : > { %v6158_v60 = vpop.permute.xlu1 %2286  ;;  %v6160_v14 = vpop.permute.xlu0 %2284  ;;  %v6166_v55 = vmul.f32 %v6119_v41, %v1857_v6  ;;  %v6169_v46 = vmul.f32 %v6125_v15, %v1857_v6  ;;  %v1863_v58 = vstv %s6080_s5  ;;  %v6175_v23 = vadd.f32 %v5711_v50, %v1222_v24  ;;  %v7928_v6 = vld [vmem:[#allocation76_spill] sm:$0xff]  ;;  %s6312_s5 = sld [smem:[#allocation2 + $0xac]] }
 0x299   : > { %7925 = vst [vmem:[#allocation25_spill] sm:$0xff] %v6158_v60  ;;  %7926 = vst [vmem:[#allocation26_spill] sm:$0xff] %v6160_v14  ;;  %v1869_v34 = vstv %s6086_s6  ;;  %v2802_v8 = vmul.f32 %v5908_v16, %v2800_v3  ;;  %v2801_v40 = vmul.f32 %v5912_v25, %v2800_v3  ;;  %v1250_v57 = vadd.f32 %v7927_v1, %v1138_v2  ;;  %v7933_v1 = vld [vmem:[#allocation79_spill] sm:$0xff]  ;;  %s6327_s6 = sld [smem:[#allocation2 + $0xed]] }
 0x29a   : > { %2793 = vrot.lane.b32.xlu1 %v2788_v0, %s4170_s28  ;;  %2791 = vrot.lane.b32.xlu0 %v2787_v44, %s4170_s28  ;;  %v1249_v10 = vadd.f32 %v7928_v6, %v1137_v20  ;;  %v1311_v14 = vadd.f32 %v5721_v12, %v1221_v53  ;;  %v2814_v60 = vstv %s6100_s7  ;;  %v1318_v50 = vadd.f32 %v5731_v17, %v1236_v29  ;;  %v7931_v12 = vld [vmem:[#allocation77_spill] sm:$0xff]  ;;  %s6359_s7 = sld [smem:[#allocation2 + $0xad]] }
 0x29b   : > { %v1317_v24 = vadd.f32 %v5734_v30, %v1235_v52  ;;  %v6191_v0 = vmul.f32 %v6119_v41, %v1863_v58  ;;  %v6194_v44 = vmul.f32 %v6125_v15, %v1863_v58  ;;  %v1264_v20 = vadd.f32 %v7931_v12, %v6077_v45  ;;  %v7932_v52 = vld [vmem:[#allocation78_spill] sm:$0xff] }
 0x29c   : > { %v6196_v3 = vpop.permute.xlu1 %2300  ;;  %v6198_v2 = vpop.permute.xlu0 %2298  ;;  %v6203_v53 = vmul.f32 %v6119_v41, %v1869_v34  ;;  %v6206_v17 = vmul.f32 %v6125_v15, %v1869_v34  ;;  %v1875_v30 = vstv %s6130_s8  ;;  %v1263_v29 = vadd.f32 %v7932_v52, %v6083_v4  ;;  %v7934_v4 = vld [vmem:[#allocation80_spill] sm:$0xff]  ;;  %s6365_s8 = sld [smem:[#allocation2 + $0xae]] }
 0x29d   : > { %7929 = vst [vmem:[#allocation27_spill] sm:$0xff] %v6196_v3  ;;  %7930 = vst [vmem:[#allocation28_spill] sm:$0xff] %v6198_v2  ;;  %v2816_v58 = vmul.f32 %v5908_v16, %v2814_v60  ;;  %v2815_v45 = vmul.f32 %v5912_v25, %v2814_v60  ;;  %v1278_v6 = vadd.f32 %v7933_v1, %v6093_v35  ;;  %v2828_v2 = vstv %s6146_s9  ;;  %s6379_s9 = sld [smem:[#allocation2 + $0xee]] }
 0x29e   : > { %2807 = vrot.lane.b32.xlu1 %v2802_v8, %s4170_s28  ;;  %2805 = vrot.lane.b32.xlu0 %v2801_v40, %s4170_s28  ;;  %v1324_v12 = vadd.f32 %v5743_v36, %v1250_v57  ;;  %v1323_v34 = vadd.f32 %v5746_v7, %v1249_v10  ;;  %v1277_v8 = vadd.f32 %v7934_v4, %v6096_v39  ;;  %v7935_v40 = vld [vmem:[#allocation81_spill] sm:$0xff]  ;;  %v1881_v60 = vstv %s6156_s11  ;;  %v7938_v36 = vld [vmem:[#allocation82_spill] sm:$0xff]  ;;  %s6387_s11 = sld [smem:[#allocation2 + $0xaf]] }
 0x29f   : > { %v1292_v52 = vadd.f32 %v7935_v40, %v6103_v38  ;;  %v6227_v3 = vmul.f32 %v6119_v41, %v1875_v30  ;;  %v1291_v7 = vadd.f32 %v7938_v36, %v6106_v43  ;;  %v1330_v57 = vadd.f32 %v5779_v59, %v1264_v20 }
 0x2a0   : > { %v6230_v51 = vpop.permute.xlu1 %2314  ;;  %v6232_v35 = vpop.permute.xlu0 %2312  ;;  %v6238_v10 = vmul.f32 %v6125_v15, %v1875_v30  ;;  %v1887_v39 = vstv %s6172_s17  ;;  %v1329_v38 = vadd.f32 %v5782_v49, %v1263_v29  ;;  %v2830_v1 = vmul.f32 %v5908_v16, %v2828_v2  ;;  %s6414_s17 = sld [smem:[#allocation2 + $0xef]] }
 0x2a1   : > { %7936 = vst [vmem:[#allocation29_spill] sm:$0xff] %v6230_v51  ;;  %7937 = vst [vmem:[#allocation30_spill] sm:$0xff] %v6232_v35  ;;  %v2829_v4 = vmul.f32 %v5912_v25, %v2828_v2  ;;  %v1336_v43 = vadd.f32 %v5790_v26, %v1278_v6  ;;  %v6250_v59 = vmul.f32 %v6119_v41, %v1881_v60  ;;  %v2842_v30 = vstv %s6186_s19  ;;  %v7941_v6 = vld [vmem:[#allocation83_spill] sm:$0xff]  ;;  %s6448_s19 = sld [smem:[#allocation2 + $0xf8]] }
 0x2a2   : > { %2821 = vrot.lane.b32.xlu1 %v2816_v58, %s4170_s28  ;;  %2819 = vrot.lane.b32.xlu0 %v2815_v45, %s4170_s28  ;;  %v6253_v20 = vmul.f32 %v6125_v15, %v1881_v60  ;;  %v1335_v49 = vadd.f32 %v5793_v48, %v1277_v8  ;;  %v1342_v29 = vadd.f32 %v5804_v62, %v1292_v52  ;;  %v7942_v60 = vld [vmem:[#allocation84_spill] sm:$0xff]  ;;  %v7943_v48 = vld [vmem:[#allocation85_spill] sm:$0xff]  ;;  %v7944_v8 = vld [vmem:[#allocation86_spill] sm:$0xff] }
 0x2a3   : > { %v6263_v58 = vmul.f32 %v6119_v41, %v1887_v39  ;;  %v6266_v26 = vmul.f32 %v6125_v15, %v1887_v39  ;;  %v1356_v40 = vadd.f32 %v7941_v6, %v6116_v63  ;;  %v1355_v36 = vadd.f32 %v7942_v60, %v6140_v11  ;;  %v7945_v11 = vld [vmem:[#allocation87_spill] sm:$0xff] }
 0x2a4   : > { %v6268_v2 = vpop.permute.xlu1 %2328  ;;  %v6270_v45 = vpop.permute.xlu0 %2326  ;;  %v1370_v62 = vadd.f32 %v7943_v48, %v6151_v42  ;;  %v1341_v41 = vadd.f32 %v5807_v9, %v1291_v7  ;;  %v1369_v15 = vadd.f32 %v7944_v8, %v6163_v54  ;;  %v2844_v52 = vmul.f32 %v5908_v16, %v2842_v30  ;;  %v7946_v42 = vld [vmem:[#allocation88_spill] sm:$0xff]  ;;  %v7947_v9 = vld [vmem:[#allocation89_spill] sm:$0xff]  ;;  %v7948_v54 = vld [vmem:[#allocation90_spill] sm:$0xff] }
 0x2a5   : > { %7939 = vst [vmem:[#allocation35_spill] sm:$0xff] %v6268_v2  ;;  %7940 = vst [vmem:[#allocation36_spill] sm:$0xff] %v6270_v45  ;;  %v2843_v63 = vmul.f32 %v5912_v25, %v2842_v30  ;;  %v1384_v39 = vadd.f32 %v7945_v11, %v6175_v23  ;;  %v1383_v6 = vadd.f32 %v7946_v42, %v1311_v14  ;;  %v2856_v60 = vstv %s6220_s20  ;;  %v7951_v2 = vld [vmem:[#allocation93_spill] sm:$0xff]  ;;  %v7955_v11 = vld [vmem:[#allocation99_spill] sm:$0xff]  ;;  %s6458_s20 = sld [smem:[#allocation2 + $0xc0]] }
 0x2a6   : > { %2835 = vrot.lane.b32.xlu1 %v2830_v1, %s4171_s10  ;;  %2833 = vrot.lane.b32.xlu0 %v2829_v4, %s4171_s10  ;;  %v1398_v7 = vadd.f32 %v7947_v9, %v1318_v50  ;;  %v1397_v48 = vadd.f32 %v7948_v54, %v1317_v24  ;;  %v7949_v1 = vld [vmem:[#allocation91_spill] sm:$0xff]  ;;  %v7950_v4 = vld [vmem:[#allocation92_spill] sm:$0xff]  ;;  %v6298_v35 = vadd.f32 %v7951_v2, %v1330_v57  ;;  %v7954_v50 = vld [vmem:[#allocation94_spill] sm:$0xff] }
 0x2a7   : > { %v1412_v8 = vadd.f32 %v7949_v1, %v1324_v12  ;;  %v1411_v45 = vadd.f32 %v7950_v4, %v1323_v34  ;;  %v6307_v30 = vadd.f32 %v7954_v50, %v1329_v38  ;;  %v1468_v24 = vadd.f32 %v7955_v11, %v1356_v40  ;;  %v7956_v42 = vld [vmem:[#allocation100_spill] sm:$0xff]  ;;  %v7957_v57 = vld [vmem:[#allocation95_spill] sm:$0xff] }
 0x2a8   : > { %v6302_v23 = vpop.permute.xlu1 %2342  ;;  %v6304_v14 = vpop.permute.xlu0 %2340  ;;  %v1467_v12 = vadd.f32 %v7956_v42, %v1355_v36  ;;  %v2119_v34 = vstv %s6241_s24  ;;  %v6315_v2 = vadd.f32 %v7957_v57, %v1336_v43  ;;  %v2858_v9 = vmul.f32 %v5908_v16, %v2856_v60  ;;  %v7958_v54 = vld [vmem:[#allocation96_spill] sm:$0xff]  ;;  %v7959_v36 = vld [vmem:[#allocation101_spill] sm:$0xff]  ;;  %v7962_v42 = vld [vmem:[#allocation102_spill] sm:$0xff]  ;;  %s6477_s24 = sld [smem:[#allocation2 + $0xc1]] }
 0x2a9   : > { %7952 = vst [vmem:[#allocation31_spill] sm:$0xff] %v6302_v23  ;;  %7953 = vst [vmem:[#allocation32_spill] sm:$0xff] %v6304_v14  ;;  %v2857_v38 = vmul.f32 %v5912_v25, %v2856_v60  ;;  %v6322_v40 = vadd.f32 %v7958_v54, %v1335_v49  ;;  %v1482_v1 = vadd.f32 %v7959_v36, %v1370_v62  ;;  %v2125_v4 = vstv %s6255_s25  ;;  %v7960_v43 = vld [vmem:[#allocation97_spill] sm:$0xff]  ;;  %v6337_v60 = vld [vmem:[%s4289_s26 + $0x39] sm:$0xff]  ;;  %s6487_s25 = sld [smem:[#allocation2 + $0xf9]] }
 0x2aa   : > { %2849 = vrot.lane.b32.xlu1 %v2844_v52, %s4171_s10  ;;  %2847 = vrot.lane.b32.xlu0 %v2843_v63, %s4171_s10  ;;  %v2870_v50 = vstv %s6258_s27  ;;  %v6330_v11 = vadd.f32 %v7960_v43, %v1342_v29  ;;  %v7961_v52 = vld [vmem:[#allocation98_spill] sm:$0xff]  ;;  %v1481_v57 = vadd.f32 %v7962_v42, %v1369_v15  ;;  %v6340_v49 = vmul.f32 %v6337_v60, %v2119_v34  ;;  %v7965_v36 = vld [vmem:[#allocation103_spill] sm:$0xff]  ;;  %s6508_s27 = sld [smem:[#allocation2 + $0xc2]] }
 0x2ab   : > { %v6333_v63 = vadd.f32 %v7961_v52, %v1341_v41  ;;  %v1496_v14 = vadd.f32 %v7965_v36, %v1384_v39  ;;  %v6348_v29 = vadd.f32 %v5883_v61, %v1468_v24  ;;  %v6351_v41 = vadd.f32 %v5889_v21, %v1467_v12  ;;  %v6354_v43 = vld [vmem:[%s4289_s26 + $0x31] sm:$0xff]  ;;  %v7966_v39 = vld [vmem:[#allocation104_spill] sm:$0xff]  ;;  %v7967_v12 = vld [vmem:[#allocation15_spill] sm:$0xff] }
 0x2ac   : > { %v6342_v54 = vpop.permute.xlu1 %2356  ;;  %v6344_v62 = vpop.permute.xlu0 %2354  ;;  %v6357_v15 = vmul.f32 %v6354_v43, %v2119_v34  ;;  %v6362_v52 = vmul.f32 %v6337_v60, %v2125_v4  ;;  %v2131_v42 = vstv %s6281_s29  ;;  %v2872_v61 = vmul.f32 %v5908_v16, %v2870_v50  ;;  %v7969_v23 = vld [vmem:[#allocation106_spill] sm:$0xff]  ;;  %s6518_s29 = sld [smem:[#allocation2 + $0xc3]] }
 0x2ad   : > { %7963 = vst [vmem:[#allocation33_spill] sm:$0xff] %v6342_v54  ;;  %7964 = vst [vmem:[#allocation34_spill] sm:$0xff] %v6344_v62  ;;  %v2871_v21 = vmul.f32 %v5912_v25, %v2870_v50  ;;  %v1495_v24 = vadd.f32 %v7966_v39, %v1383_v6  ;;  %v6373_v34 = vadd.f32 %v7967_v12, %v1482_v1  ;;  %v2884_v62 = vstv %s6292_s30  ;;  %v7968_v54 = vld [vmem:[#allocation105_spill] sm:$0xff]  ;;  %s6527_s30 = sld [smem:[#allocation2 + $0xfa]] }
 0x2ae   : > { %2863 = vrot.lane.b32.xlu1 %v2858_v9, %s4171_s10  ;;  %2861 = vrot.lane.b32.xlu0 %v2857_v38, %s4171_s10  ;;  %v6376_v36 = vmul.f32 %v6354_v43, %v2125_v4  ;;  %v1510_v9 = vadd.f32 %v7968_v54, %v1398_v7  ;;  %v1509_v38 = vadd.f32 %v7969_v23, %v1397_v48  ;;  %v2137_v50 = vstv %s6300_s4  ;;  %v7976_v12 = vld [vmem:[#allocation17_spill] sm:$0xff]  ;;  %s6547_s4 = sld [smem:[#allocation2 + $0xc4]] }
 0x2af   : > { %v6384_v51 = vadd.f32 %v5919_v13, %v1481_v57  ;;  %v6394_v4 = vadd.f32 %v5944_v18, %v1496_v14  ;;  %v6397_v39 = vmul.f32 %v6337_v60, %v2131_v42  ;;  %v6400_v7 = vmul.f32 %v6354_v43, %v2131_v42  ;;  %v7974_v13 = vld [vmem:[#allocation107_spill] sm:$0xff]  ;;  %v7975_v18 = vld [vmem:[#allocation108_spill] sm:$0xff] }
 0x2b0   : > { %v6389_v6 = vpop.permute.xlu1 %2370  ;;  %v6391_v1 = vpop.permute.xlu0 %2368  ;;  %v2143_v48 = vstv %s6312_s5  ;;  %v1524_v23 = vadd.f32 %v7974_v13, %v1412_v8  ;;  %v2886_v57 = vmul.f32 %v5908_v16, %v2884_v62  ;;  %v2885_v54 = vmul.f32 %v5912_v25, %v2884_v62  ;;  %v7978_v8 = vld [vmem:[#allocation18_spill] sm:$0xff]  ;;  %v7979_v13 = vld [vmem:[#allocation172_spill] sm:$0xff]  ;;  %s6568_s5 = sld [smem:[#allocation2 + $0xfb]] }
 0x2b1   : > { %7970 = vst [vmem:[#allocation37_spill] sm:$0xff] %v6389_v6  ;;  %7971 = vst [vmem:[#allocation38_spill] sm:$0xff] %v6391_v1  ;;  %v1523_v14 = vadd.f32 %v7975_v18, %v1411_v45  ;;  %v1585_v1 = vadd.f32 %v7976_v12, %v1495_v24  ;;  %v6411_v42 = vmul.f32 %v6337_v60, %v2137_v50  ;;  %v2898_v6 = vstv %s6327_s6  ;;  %v7983_v18 = vld [vmem:[#allocation109_spill] sm:$0xff]  ;;  %s6587_s6 = sld [smem:[#allocation2 + $0xc5]] }
 0x2b2   : > { %7972 = vst [vmem:[#allocation178_spill] sm:$0xff] %v6397_v39  ;;  %7973 = vst [vmem:[#allocation179_spill] sm:$0xff] %v6400_v7  ;;  %2877 = vrot.lane.b32.xlu1 %v2872_v61, %s4171_s10  ;;  %2875 = vrot.lane.b32.xlu0 %v2871_v21, %s4171_s10  ;;  %v1592_v61 = vadd.f32 %v7978_v8, %v1510_v9  ;;  %v1591_v21 = vadd.f32 %v7979_v13, %v1509_v38  ;;  %v2149_v38 = vstv %s6359_s7  ;;  %s6602_s7 = sld [smem:[#allocation2 + $0xc6]] }
 0x2b3   : > { %7977 = vst [vmem:[#allocation39_spill] sm:$0xff] %v6411_v42  ;;  %v6419_v7 = vmul.f32 %v6354_v43, %v2137_v50  ;;  %v6422_v62 = vmul.f32 %v6337_v60, %v2143_v48  ;;  %v1538_v12 = vadd.f32 %v7983_v18, %v6298_v35  ;;  %v7984_v42 = vld [vmem:[#allocation110_spill] sm:$0xff]  ;;  %v6433_v9 = vmul.f32 %v6354_v43, %v2143_v48  ;;  %v7986_v50 = vld [vmem:[#allocation173_spill] sm:$0xff]  ;;  %v7987_v35 = vld [vmem:[#allocation111_spill] sm:$0xff] }
 0x2b4   : > { %v6424_v45 = vpop.permute.xlu1 %2384  ;;  %v6426_v24 = vpop.permute.xlu0 %2382  ;;  %v1537_v39 = vadd.f32 %v7984_v42, %v6307_v30  ;;  %v1598_v8 = vadd.f32 %v7986_v50, %v1524_v23  ;;  %v2155_v13 = vstv %s6365_s8  ;;  %v1552_v18 = vadd.f32 %v7987_v35, %v6315_v2  ;;  %v7988_v30 = vld [vmem:[#allocation112_spill] sm:$0xff]  ;;  %v7989_v23 = vld [vmem:[#allocation113_spill] sm:$0xff]  ;;  %s6610_s8 = sld [smem:[#allocation2 + $0xfc]] }
 0x2b5   : > { %7980 = vst [vmem:[#allocation40_spill] sm:$0xff] %v6422_v62  ;;  %7981 = vst [vmem:[#allocation41_spill] sm:$0xff] %v6424_v45  ;;  %v2899_v45 = vmul.f32 %v5912_v25, %v2898_v6  ;;  %v1551_v48 = vadd.f32 %v7988_v30, %v6322_v40  ;;  %v1597_v42 = vadd.f32 %v5995_v28, %v1523_v14 }
 0x2b6   : > { %7982 = vst [vmem:[#allocation42_spill] sm:$0xff] %v6426_v24  ;;  %7985 = vst [vmem:[#allocation180_spill] sm:$0xff] %v6433_v9  ;;  %2891 = vrot.lane.b32.xlu1 %v2886_v57, %s4171_s10  ;;  %2889 = vrot.lane.b32.xlu0 %v2885_v54, %s4171_s10  ;;  %v2900_v24 = vmul.f32 %v5908_v16, %v2898_v6  ;;  %v2912_v9 = vstv %s6379_s9  ;;  %v1566_v57 = vadd.f32 %v7989_v23, %v6330_v11  ;;  %v7990_v54 = vld [vmem:[#allocation114_spill] sm:$0xff]  ;;  %s6626_s9 = sld [smem:[#allocation2 + $0xc7]] }
 0x2b7   : > { %v1565_v50 = vadd.f32 %v7990_v54, %v6333_v63  ;;  %v6455_v62 = vmul.f32 %v6337_v60, %v2149_v38  ;;  %v2161_v6 = vstv %s6387_s11  ;;  %v1604_v28 = vadd.f32 %v6008_v32, %v1538_v12  ;;  %s6649_s11 = sld [smem:[#allocation2 + $0xfd]] }
 0x2b8   : > { %v6460_v2 = vpop.permute.xlu1 %2448  ;;  %v6462_v40 = vpop.permute.xlu0 %2446  ;;  %v1603_v14 = vadd.f32 %v6020_v5, %v1537_v39  ;;  %v6467_v11 = vmul.f32 %v6354_v43, %v2149_v38  ;;  %v6470_v63 = vmul.f32 %v6337_v60, %v2155_v13  ;;  %v6473_v35 = vmul.f32 %v6354_v43, %v2155_v13 }
 0x2b9   : > { %7991 = vst [vmem:[#allocation181_spill] sm:$0xff] %v6460_v2  ;;  %7992 = vst [vmem:[#allocation43_spill] sm:$0xff] %v6462_v40  ;;  %v2914_v30 = vmul.f32 %v5908_v16, %v2912_v9  ;;  %v2913_v32 = vmul.f32 %v5912_v25, %v2912_v9  ;;  %v1610_v5 = vadd.f32 %v6028_v19, %v1552_v18  ;;  %v2926_v38 = vstv %s6414_s17  ;;  %v7998_v18 = vld [vmem:[#allocation117_spill] sm:$0xff]  ;;  %v8012_v2 = vld [vmem:[#allocation127_spill] sm:$0xff]  ;;  %s6683_s17 = sld [smem:[#allocation2 + $0xfe]] }
 0x2ba   : > { %7993 = vst [vmem:[#allocation182_spill] sm:$0xff] %v6473_v35  ;;  %2905 = vrot.lane.b32.xlu1 %v2900_v24, %s4171_s10  ;;  %2903 = vrot.lane.b32.xlu0 %v2899_v45, %s4171_s10  ;;  %v1609_v39 = vadd.f32 %v6031_v22, %v1551_v48  ;;  %v6484_v12 = vmul.f32 %v6337_v60, %v2161_v6  ;;  %v7994_v24 = vld [vmem:[#allocation115_spill] sm:$0xff]  ;;  %v7997_v22 = vld [vmem:[#allocation116_spill] sm:$0xff] }
 0x2bb   : > { %v1630_v13 = vadd.f32 %v7994_v24, %v6348_v29  ;;  %v1616_v45 = vadd.f32 %v6042_v37, %v1566_v57  ;;  %v1615_v23 = vadd.f32 %v6045_v31, %v1565_v50  ;;  %v6494_v54 = vmul.f32 %v6354_v43, %v2161_v6  ;;  %v7999_v37 = vld [vmem:[#allocation118_spill] sm:$0xff]  ;;  %v8000_v31 = vld [vmem:[#allocation119_spill] sm:$0xff]  ;;  %v8001_v57 = vld [vmem:[#allocation120_spill] sm:$0xff] }
 0x2bc   : > { %v6496_v9 = vpop.permute.xlu1 %2462  ;;  %v6498_v19 = vpop.permute.xlu0 %2460  ;;  %v1629_v60 = vadd.f32 %v7997_v22, %v6351_v41  ;;  %v1644_v29 = vadd.f32 %v7998_v18, %v6373_v34  ;;  %v1643_v48 = vadd.f32 %v7999_v37, %v6384_v51  ;;  %v1658_v43 = vadd.f32 %v8000_v31, %v6394_v4  ;;  %v8002_v34 = vld [vmem:[#allocation121_spill] sm:$0xff]  ;;  %v8003_v22 = vld [vmem:[#allocation122_spill] sm:$0xff]  ;;  %v8004_v18 = vld [vmem:[#allocation123_spill] sm:$0xff] }
 0x2bd   : > { %7995 = vst [vmem:[#allocation44_spill] sm:$0xff] %v6496_v9  ;;  %7996 = vst [vmem:[#allocation185_spill] sm:$0xff] %v6498_v19  ;;  %v1657_v50 = vadd.f32 %v8001_v57, %v1585_v1  ;;  %v2928_v41 = vmul.f32 %v5908_v16, %v2926_v38  ;;  %v2927_v6 = vmul.f32 %v5912_v25, %v2926_v38  ;;  %v6521_v4 = vld [vmem:[%s4289_s26 + $0x51] sm:$0xff]  ;;  %v2990_v1 = vstv %s6448_s19  ;;  %v6525_v31 = vld [vmem:[%s4289_s26 + $0x49] sm:$0xff]  ;;  %s6696_s19 = sld [smem:[#allocation2 + $0xd8]] }
 0x2be   : > { %2919 = vrot.lane.b32.xlu1 %v2914_v30, %s4171_s10  ;;  %2917 = vrot.lane.b32.xlu0 %v2913_v32, %s4171_s10  ;;  %v1672_v24 = vadd.f32 %v8002_v34, %v1592_v61  ;;  %v1671_v51 = vadd.f32 %v8003_v22, %v1591_v21  ;;  %v1686_v37 = vadd.f32 %v8004_v18, %v1598_v8  ;;  %v8005_v30 = vld [vmem:[#allocation124_spill] sm:$0xff]  ;;  %v8006_v57 = vld [vmem:[#allocation131_spill] sm:$0xff]  ;;  %v2393_v34 = vstv %s6458_s20  ;;  %v8010_v22 = vld [vmem:[#allocation125_spill] sm:$0xff]  ;;  %s6711_s20 = sld [smem:[#allocation2 + $0xd9]] }
 0x2bf   : > { %v1685_v32 = vadd.f32 %v8005_v30, %v1597_v42  ;;  %v1742_v38 = vadd.f32 %v8006_v57, %v1630_v13  ;;  %v8007_v19 = vld [vmem:[#allocation132_spill] sm:$0xff]  ;;  %v1700_v18 = vadd.f32 %v8010_v22, %v1604_v28  ;;  %v8011_v9 = vld [vmem:[#allocation126_spill] sm:$0xff]  ;;  %v6542_v35 = vadd.f32 %v8012_v2, %v1610_v5  ;;  %v8014_v13 = vld [vmem:[#allocation129_spill] sm:$0xff] }
 0x2c0   : > { %v1741_v61 = vadd.f32 %v8007_v19, %v1629_v60  ;;  %v6533_v21 = vpop.permute.xlu1 %2476  ;;  %v6535_v8 = vpop.permute.xlu0 %2474  ;;  %v6539_v40 = vadd.f32 %v8011_v9, %v1603_v14  ;;  %v8013_v42 = vld [vmem:[#allocation128_spill] sm:$0xff]  ;;  %v6550_v19 = vadd.f32 %v8014_v13, %v1616_v45  ;;  %v2399_v60 = vstv %s6477_s24  ;;  %v8015_v2 = vld [vmem:[#allocation130_spill] sm:$0xff]  ;;  %s6721_s24 = sld [smem:[#allocation2 + $0xff]] }
 0x2c1   : > { %8008 = vst [vmem:[#allocation45_spill] sm:$0xff] %v6533_v21  ;;  %8009 = vst [vmem:[#allocation46_spill] sm:$0xff] %v6535_v8  ;;  %v6545_v30 = vadd.f32 %v8013_v42, %v1609_v39  ;;  %v2992_v28 = vmul.f32 %v6521_v4, %v2990_v1  ;;  %v2991_v14 = vmul.f32 %v6525_v31, %v2990_v1  ;;  %v8016_v39 = vld [vmem:[#allocation133_spill] sm:$0xff]  ;;  %v6562_v57 = vld [vmem:[%s4289_s26 + $0x3a] sm:$0xff]  ;;  %v3004_v22 = vstv %s6487_s25  ;;  %s6734_s25 = sld [smem:[#allocation2 + $0xda]] }
 0x2c2   : > { %2933 = vrot.lane.b32.xlu1 %v2928_v41, %s4171_s10  ;;  %2931 = vrot.lane.b32.xlu0 %v2927_v6, %s4171_s10  ;;  %v6558_v5 = vadd.f32 %v8015_v2, %v1615_v23  ;;  %v1756_v9 = vadd.f32 %v8016_v39, %v1644_v29  ;;  %v6565_v45 = vmul.f32 %v6562_v57, %v2393_v34  ;;  %v8017_v41 = vld [vmem:[#allocation134_spill] sm:$0xff]  ;;  %v2423_v21 = vstv %s6587_s6  ;;  %s6814_s6 = sld [smem:[#allocation2 + $0x103]] }
 0x2c3   : > { %v1755_v6 = vadd.f32 %v8017_v41, %v1643_v48  ;;  %v6572_v42 = vadd.f32 %v6122_v27, %v1742_v38  ;;  %v6575_v1 = vadd.f32 %v6128_v56, %v1741_v61  ;;  %v6578_v23 = vld [vmem:[%s4289_s26 + $0x32] sm:$0xff]  ;;  %v8020_v48 = vld [vmem:[#allocation135_spill] sm:$0xff]  ;;  %v8021_v27 = vld [vmem:[#allocation136_spill] sm:$0xff]  ;;  %v6592_v56 = vmul.f32 %v6562_v57, %v2399_v60 }
 0x2c4   : > { %v6581_v29 = vmul.f32 %v6578_v23, %v2393_v34  ;;  %v6583_v13 = vpop.permute.xlu1 %2490  ;;  %v6585_v2 = vpop.permute.xlu0 %2488  ;;  %v1770_v39 = vadd.f32 %v8020_v48, %v1658_v43  ;;  %v1769_v38 = vadd.f32 %v8021_v27, %v1657_v50  ;;  %v2405_v61 = vstv %s6508_s27  ;;  %v8022_v43 = vld [vmem:[#allocation137_spill] sm:$0xff]  ;;  %s6743_s27 = sld [smem:[#allocation2 + $0x100]] }
 0x2c5   : > { %8018 = vst [vmem:[#allocation47_spill] sm:$0xff] %v6583_v13  ;;  %8019 = vst [vmem:[#allocation48_spill] sm:$0xff] %v6585_v2  ;;  %v6596_v41 = vmul.f32 %v6578_v23, %v2399_v60  ;;  %v3006_v34 = vmul.f32 %v6521_v4, %v3004_v22  ;;  %v3005_v2 = vmul.f32 %v6525_v31, %v3004_v22  ;;  %v2411_v27 = vstv %s6518_s29  ;;  %v8023_v60 = vld [vmem:[#allocation138_spill] sm:$0xff]  ;;  %s6750_s29 = sld [smem:[#allocation2 + $0xdb]] }
 0x2c6   : > { %2997 = vrot.lane.b32.xlu1 %v2992_v28, %s4170_s28  ;;  %2995 = vrot.lane.b32.xlu0 %v2991_v14, %s4170_s28  ;;  %v1784_v50 = vadd.f32 %v8022_v43, %v1672_v24  ;;  %v6606_v48 = vadd.f32 %v6143_v33, %v1756_v9  ;;  %v3018_v13 = vstv %s6527_s30  ;;  %v1783_v28 = vadd.f32 %v8023_v60, %v1671_v51  ;;  %v8026_v9 = vld [vmem:[#allocation139_spill] sm:$0xff]  ;;  %s6780_s30 = sld [smem:[#allocation2 + $0x101]] }
 0x2c7   : > { %v6614_v14 = vadd.f32 %v6154_v47, %v1755_v6  ;;  %v6617_v8 = vmul.f32 %v6562_v57, %v2405_v61  ;;  %v6620_v22 = vmul.f32 %v6578_v23, %v2405_v61  ;;  %v1798_v43 = vadd.f32 %v8026_v9, %v1686_v37  ;;  %v8027_v37 = vld [vmem:[#allocation140_spill] sm:$0xff] }
 0x2c8   : > { %v6622_v24 = vpop.permute.xlu1 %2504  ;;  %v6624_v33 = vpop.permute.xlu0 %2502  ;;  %v6630_v51 = vadd.f32 %v6166_v55, %v1770_v39  ;;  %v6633_v47 = vadd.f32 %v6169_v46, %v1769_v38  ;;  %v2417_v6 = vstv %s6547_s4  ;;  %v6637_v61 = vmul.f32 %v6562_v57, %v2411_v27  ;;  %v8029_v38 = vld [vmem:[#allocation141_spill] sm:$0xff]  ;;  %s6782_s4 = sld [smem:[#allocation2 + $0xdc]] }
 0x2c9   : > { %8024 = vst [vmem:[#allocation49_spill] sm:$0xff] %v6622_v24  ;;  %8025 = vst [vmem:[#allocation50_spill] sm:$0xff] %v6624_v33  ;;  %v3020_v60 = vmul.f32 %v6521_v4, %v3018_v13  ;;  %v3019_v33 = vmul.f32 %v6525_v31, %v3018_v13  ;;  %v1797_v9 = vadd.f32 %v8027_v37, %v1685_v32  ;;  %v3032_v46 = vstv %s6568_s5  ;;  %s6807_s5 = sld [smem:[#allocation2 + $0x102]] }
 0x2ca   : > { %3011 = vrot.lane.b32.xlu1 %v3006_v34, %s4170_s28  ;;  %3009 = vrot.lane.b32.xlu0 %v3005_v2, %s4170_s28  ;;  %v1867_v55 = vadd.f32 %v6191_v0, %v1784_v50  ;;  %v6646_v39 = vmul.f32 %v6578_v23, %v2411_v27  ;;  %v1812_v24 = vadd.f32 %v8029_v38, %v1700_v18  ;;  %v8033_v0 = vld [vmem:[#allocation142_spill] sm:$0xff]  ;;  %v8034_v27 = vld [vmem:[#allocation143_spill] sm:$0xff]  ;;  %v2429_v38 = vstv %s6602_s7  ;;  %s6853_s7 = sld [smem:[#allocation2 + $0x104]] }
 0x2cb   : > { %v1866_v34 = vadd.f32 %v6194_v44, %v1783_v28  ;;  %v6654_v2 = vmul.f32 %v6562_v57, %v2417_v6  ;;  %v1811_v50 = vadd.f32 %v8033_v0, %v6539_v40  ;;  %v1826_v37 = vadd.f32 %v8034_v27, %v6542_v35  ;;  %v8036_v44 = vld [vmem:[#allocation144_spill] sm:$0xff]  ;;  %v8037_v35 = vld [vmem:[#allocation145_spill] sm:$0xff] }
 0x2cc   : > { %8028 = vst [vmem:[#allocation186_spill] sm:$0xff] %v6646_v39  ;;  %v6657_v13 = vpop.permute.xlu1 %2518  ;;  %v6659_v32 = vpop.permute.xlu0 %2516  ;;  %v1873_v39 = vadd.f32 %v6203_v53, %v1798_v43  ;;  %v6667_v18 = vmul.f32 %v6578_v23, %v2417_v6  ;;  %v1825_v28 = vadd.f32 %v8036_v44, %v6545_v30  ;;  %v3033_v40 = vmul.f32 %v6525_v31, %v3032_v46  ;;  %v8039_v30 = vld [vmem:[#allocation146_spill] sm:$0xff] }
 0x2cd   : > { %8030 = vst [vmem:[#allocation187_spill] sm:$0xff] %v6654_v2  ;;  %8031 = vst [vmem:[#allocation51_spill] sm:$0xff] %v6657_v13  ;;  %v1840_v0 = vadd.f32 %v8037_v35, %v6550_v19  ;;  %v1872_v53 = vadd.f32 %v6206_v17, %v1797_v9  ;;  %v6680_v43 = vmul.f32 %v6562_v57, %v2423_v21  ;;  %v3046_v6 = vstv %s6610_s8  ;;  %v8070_v13 = vld [vmem:[#allocation191_spill] sm:$0xff]  ;;  %s6868_s8 = sld [smem:[#allocation2 + $0x105]]  ;;  %v8090_v2 = vld [vmem:[#allocation180_spill] sm:$0xff] }
 0x2ce   : > { %8032 = vst [vmem:[#allocation52_spill] sm:$0xff] %v6659_v32  ;;  %8035 = vst [vmem:[#allocation53_spill] sm:$0xff] %v6667_v18  ;;  %3025 = vrot.lane.b32.xlu1 %v3020_v60, %s4170_s28  ;;  %3023 = vrot.lane.b32.xlu0 %v3019_v33, %s4170_s28  ;;  %v3034_v32 = vmul.f32 %v6521_v4, %v3032_v46  ;;  %v1839_v60 = vadd.f32 %v8039_v30, %v6558_v5  ;;  %v2435_v17 = vstv %s6626_s9  ;;  %s6870_s9 = sld [smem:[#allocation2 + $0x106]] }
 0x2cf   : > { %8038 = vst [vmem:[#allocation54_spill] sm:$0xff] %v6680_v43  ;;  %v1879_v33 = vadd.f32 %v6227_v3, %v1812_v24  ;;  %v6689_v27 = vmul.f32 %v6578_v23, %v2423_v21  ;;  %v1878_v19 = vadd.f32 %v6238_v10, %v1811_v50  ;;  %v1885_v9 = vadd.f32 %v6250_v59, %v1826_v37 }
 0x2d0   : > { %v6691_v46 = vpop.permute.xlu1 %2532  ;;  %v6693_v44 = vpop.permute.xlu0 %2530  ;;  %v6701_v35 = vmul.f32 %v6562_v57, %v2429_v38  ;;  %v6704_v3 = vmul.f32 %v6578_v23, %v2429_v38  ;;  %v1884_v21 = vadd.f32 %v6253_v20, %v1825_v28  ;;  %v3048_v5 = vmul.f32 %v6521_v4, %v3046_v6  ;;  %v8045_v20 = vld [vmem:[#allocation147_spill] sm:$0xff]  ;;  %v8046_v28 = vld [vmem:[#allocation148_spill] sm:$0xff] }
 0x2d1   : > { %8040 = vst [vmem:[#allocation55_spill] sm:$0xff] %v6689_v27  ;;  %8041 = vst [vmem:[#allocation56_spill] sm:$0xff] %v6691_v46  ;;  %v3047_v24 = vmul.f32 %v6525_v31, %v3046_v6  ;;  %v1891_v10 = vadd.f32 %v6263_v58, %v1840_v0  ;;  %v6715_v59 = vmul.f32 %v6562_v57, %v2435_v17  ;;  %v3060_v37 = vstv %s6649_s11  ;;  %s6921_s11 = sld [smem:[#allocation2 + $0x107]] }
 0x2d2   : > { %8042 = vst [vmem:[#allocation57_spill] sm:$0xff] %v6693_v44  ;;  %8043 = vst [vmem:[#allocation58_spill] sm:$0xff] %v6701_v35  ;;  %3039 = vrot.lane.b32.xlu1 %v3034_v32, %s4170_s28  ;;  %3037 = vrot.lane.b32.xlu0 %v3033_v40, %s4170_s28  ;;  %v6718_v50 = vmul.f32 %v6578_v23, %v2435_v17  ;;  %v1905_v32 = vadd.f32 %v8045_v20, %v6572_v42  ;;  %v8047_v40 = vld [vmem:[#allocation149_spill] sm:$0xff]  ;;  %v8048_v23 = vld [vmem:[#allocation150_spill] sm:$0xff] }
 0x2d3   : > { %8044 = vst [vmem:[#allocation59_spill] sm:$0xff] %v6704_v3  ;;  %v1904_v38 = vadd.f32 %v8046_v28, %v6575_v1  ;;  %v1919_v6 = vadd.f32 %v8047_v40, %v6606_v48  ;;  %v1890_v58 = vadd.f32 %v6266_v26, %v1839_v60  ;;  %v1918_v30 = vadd.f32 %v8048_v23, %v6614_v14  ;;  %v8049_v42 = vld [vmem:[#allocation151_spill] sm:$0xff]  ;;  %v8050_v1 = vld [vmem:[#allocation152_spill] sm:$0xff]  ;;  %v8051_v28 = vld [vmem:[#allocation153_spill] sm:$0xff] }
 0x2d4   : > { %v6730_v0 = vpop.permute.xlu1 %2546  ;;  %v6732_v57 = vpop.permute.xlu0 %2544  ;;  %v1933_v17 = vadd.f32 %v8049_v42, %v6630_v51  ;;  %v1932_v20 = vadd.f32 %v8050_v1, %v6633_v47  ;;  %v1947_v48 = vadd.f32 %v8051_v28, %v1867_v55  ;;  %v8052_v26 = vld [vmem:[#allocation154_spill] sm:$0xff]  ;;  %v3062_v40 = vmul.f32 %v6521_v4, %v3060_v37  ;;  %v8053_v51 = vld [vmem:[#allocation155_spill] sm:$0xff]  ;;  %v8054_v47 = vld [vmem:[#allocation156_spill] sm:$0xff] }
 0x2d5   : > { %v1946_v60 = vadd.f32 %v8052_v26, %v1866_v34  ;;  %v3061_v14 = vmul.f32 %v6525_v31, %v3060_v37  ;;  %v1961_v23 = vadd.f32 %v8053_v51, %v1873_v39  ;;  %v1960_v42 = vadd.f32 %v8054_v47, %v1872_v53  ;;  %v8055_v55 = vld [vmem:[#allocation157_spill] sm:$0xff]  ;;  %v8056_v44 = vld [vmem:[#allocation158_spill] sm:$0xff]  ;;  %v8059_v53 = vld [vmem:[#allocation160_spill] sm:$0xff] }
 0x2d6   : > { %3053 = vrot.lane.b32.xlu1 %v3048_v5, %s4170_s28  ;;  %3051 = vrot.lane.b32.xlu0 %v3047_v24, %s4170_s28  ;;  %v6755_v1 = vadd.f32 %v8055_v55, %v1879_v33  ;;  %v3074_v28 = vstv %s6683_s17  ;;  %v6759_v34 = vadd.f32 %v8056_v44, %v1878_v19  ;;  %v8057_v5 = vld [vmem:[#allocation159_spill] sm:$0xff]  ;;  %v2668_v39 = vstv %s6696_s19  ;;  %v8060_v33 = vld [vmem:[#allocation164_spill] sm:$0xff]  ;;  %v8061_v44 = vld [vmem:[#allocation165_spill] sm:$0xff]  ;;  %s6976_s17 = sld [smem:[#allocation2 + $0x110]]  ;;  %s7029_s19 = sld [smem:[#allocation2 + $0xdd]] }
 0x2d7   : > { %v6762_v26 = vadd.f32 %v8057_v5, %v1885_v9  ;;  %v8058_v24 = vld [vmem:[#allocation175_spill] sm:$0xff]  ;;  %v6771_v51 = vadd.f32 %v8059_v53, %v1884_v21  ;;  %v6774_v47 = vadd.f32 %v8060_v33, %v1891_v10  ;;  %v6777_v19 = vadd.f32 %v8061_v44, %v1890_v58  ;;  %v8062_v9 = vld [vmem:[#allocation176_spill] sm:$0xff] }
 0x2d8   : > { %v2017_v46 = vadd.f32 %v8058_v24, %v1905_v32  ;;  %v6765_v37 = vpop.permute.xlu1 %2560  ;;  %v6767_v3 = vpop.permute.xlu0 %2558  ;;  %v2016_v55 = vadd.f32 %v8062_v9, %v1904_v38  ;;  %v8063_v32 = vld [vmem:[#allocation183_spill] sm:$0xff]  ;;  %v3076_v21 = vmul.f32 %v6521_v4, %v3074_v28  ;;  %v3075_v10 = vmul.f32 %v6525_v31, %v3074_v28  ;;  %v8064_v24 = vld [vmem:[#allocation184_spill] sm:$0xff] }
 0x2d9   : > { %v2031_v5 = vadd.f32 %v8063_v32, %v1919_v6  ;;  %v2674_v58 = vstv %s6711_s20  ;;  %v2030_v38 = vadd.f32 %v8064_v24, %v1918_v30  ;;  %v3088_v53 = vstv %s6721_s24  ;;  %s7042_s20 = sld [smem:[#allocation2 + $0x111]]  ;;  %s7072_s24 = sld [smem:[#allocation2 + $0xde]] }
 0x2da   : > { %3067 = vrot.lane.b32.xlu1 %v3062_v40, %s4170_s28  ;;  %3065 = vrot.lane.b32.xlu0 %v3061_v14, %s4170_s28  ;;  %v6793_v33 = vmul.f32 %v5908_v16, %v2668_v39  ;;  %v6796_v6 = vmul.f32 %v5912_v25, %v2668_v39  ;;  %v8065_v40 = vld [vmem:[#allocation188_spill] sm:$0xff]  ;;  %v8066_v14 = vld [vmem:[#allocation189_spill] sm:$0xff]  ;;  %v6801_v32 = vadd.f32 %v6340_v49, %v2017_v46  ;;  %v2680_v30 = vstv %s6734_s25  ;;  %s7088_s25 = sld [smem:[#allocation2 + $0x112]] }
 0x2db   : > { %v2045_v44 = vadd.f32 %v8065_v40, %v1933_v17  ;;  %v2044_v9 = vadd.f32 %v8066_v14, %v1932_v20  ;;  %v6811_v16 = vadd.f32 %v6357_v15, %v2016_v55  ;;  %v3102_v25 = vstv %s6743_s27  ;;  %v6817_v17 = vld [vmem:[%s4289_s26 + $0x50] sm:$0xff]  ;;  %v6823_v49 = vld [vmem:[%s4289_s26 + $0x48] sm:$0xff]  ;;  %v8069_v40 = vld [vmem:[#allocation190_spill] sm:$0xff]  ;;  %s7113_s27 = sld [smem:[#allocation2 + $0x113]] }
 0x2dc   : > { %v6803_v28 = vpop.permute.xlu1 %2574  ;;  %v6805_v35 = vpop.permute.xlu0 %2572  ;;  %8067 = vst [vmem:[#allocation60_spill] sm:$0xff] %v6817_v17  ;;  %v6820_v20 = vmul.f32 %v6817_v17, %v2674_v58  ;;  %8068 = vst [vmem:[#allocation61_spill] sm:$0xff] %v6823_v49  ;;  %v6826_v46 = vmul.f32 %v6823_v49, %v2674_v58  ;;  %v2129_v39 = vadd.f32 %v6362_v52, %v2031_v5  ;;  %v2686_v24 = vstv %s6750_s29  ;;  %v8072_v5 = vld [vmem:[#allocation178_spill] sm:$0xff]  ;;  %s7115_s29 = sld [smem:[#allocation2 + $0xdf]] }
 0x2dd   : > { %v3090_v15 = vmul.f32 %v6521_v4, %v3088_v53  ;;  %v3089_v55 = vmul.f32 %v6525_v31, %v3088_v53  ;;  %v2059_v14 = vadd.f32 %v8069_v40, %v1947_v48  ;;  %v2058_v27 = vadd.f32 %v8070_v13, %v1946_v60 }
 0x2de   : > { %3081 = vrot.lane.b32.xlu1 %v3076_v21, %s4170_s28  ;;  %3079 = vrot.lane.b32.xlu0 %v3075_v10, %s4170_s28  ;;  %v6837_v58 = vadd.f32 %v6376_v36, %v2030_v38  ;;  %v6840_v52 = vmul.f32 %v6817_v17, %v2680_v30  ;;  %v6843_v21 = vadd.f32 %v8072_v5, %v2045_v44  ;;  %v8073_v10 = vld [vmem:[#allocation179_spill] sm:$0xff]  ;;  %v3116_v60 = vstv %s6780_s30  ;;  %v8077_v5 = vld [vmem:[#allocation193_spill] sm:$0xff]  ;;  %s7141_s30 = sld [smem:[#allocation2 + $0x114]] }
 0x2df   : > { %v6846_v43 = vadd.f32 %v8073_v10, %v2044_v9  ;;  %v3104_v48 = vmul.f32 %v6521_v4, %v3102_v25  ;;  %v6856_v36 = vmul.f32 %v6823_v49, %v2680_v30  ;;  %v3103_v13 = vmul.f32 %v6525_v31, %v3102_v25  ;;  %v8076_v9 = vld [vmem:[#allocation192_spill] sm:$0xff]  ;;  %v8079_v25 = vld [vmem:[#allocation161_spill] sm:$0xff] }
 0x2e0   : > { %8071 = vst [vmem:[#allocation67_spill] sm:$0xff] %v6840_v52  ;;  %v6848_v18 = vpop.permute.xlu1 %2588  ;;  %v6850_v53 = vpop.permute.xlu0 %2586  ;;  %v6861_v38 = vmul.f32 %v6817_v17, %v2686_v24  ;;  %v2692_v44 = vstv %s6782_s4  ;;  %v2073_v40 = vadd.f32 %v8076_v9, %v1961_v23  ;;  %v2072_v10 = vadd.f32 %v8077_v5, %v1960_v42  ;;  %v8081_v9 = vld [vmem:[#allocation39_spill] sm:$0xff]  ;;  %s7159_s4 = sld [smem:[#allocation2 + $0x115]] }
 0x2e1   : > { %8074 = vst [vmem:[#allocation62_spill] sm:$0xff] %v6856_v36  ;;  %v6873_v30 = vmul.f32 %v6823_v49, %v2686_v24  ;;  %v8080_v36 = vld [vmem:[#allocation11_spill] sm:$0xff]  ;;  %v6880_v42 = vadd.f32 %v8081_v9, %v2059_v14  ;;  %v3118_v52 = vmul.f32 %v6521_v4, %v3116_v60  ;;  %v3117_v24 = vmul.f32 %v6525_v31, %v3116_v60  ;;  %v8086_v14 = vld [vmem:[#allocation166_spill] sm:$0xff] }
 0x2e2   : > { %8075 = vst [vmem:[#allocation63_spill] sm:$0xff] %v6861_v38  ;;  %3095 = vrot.lane.b32.xlu1 %v3090_v15, %s4170_s28  ;;  %3093 = vrot.lane.b32.xlu0 %v3089_v55, %s4170_s28  ;;  %v2087_v38 = vadd.f32 %v8079_v25, %v6755_v1  ;;  %v2086_v23 = vadd.f32 %v8080_v36, %v6759_v34  ;;  %v8085_v34 = vld [vmem:[#allocation163_spill] sm:$0xff]  ;;  %v8088_v9 = vld [vmem:[#allocation162_spill] sm:$0xff] }
 0x2e3   : > { %8078 = vst [vmem:[#allocation64_spill] sm:$0xff] %v6873_v30  ;;  %v6883_v15 = vadd.f32 %v6419_v7, %v2058_v27  ;;  %v3130_v30 = vstv %s6807_s5  ;;  %v6893_v1 = vmul.f32 %v6817_v17, %v2692_v44  ;;  %v2115_v36 = vadd.f32 %v8085_v34, %v6774_v47  ;;  %s3946_s5 = sld [smem:[#allocation2 + $0x116]] }
 0x2e4   : > { %v6885_v55 = vpop.permute.xlu1 %2602  ;;  %v6887_v5 = vpop.permute.xlu0 %2600  ;;  %v2114_v25 = vadd.f32 %v8086_v14, %v6777_v19  ;;  %v3144_v7 = vstv %s6814_s6  ;;  %v6901_v27 = vmul.f32 %v6823_v49, %v2692_v44  ;;  %v6909_v17 = vadd.f32 %v8090_v2, %v2072_v10  ;;  %v8091_v2 = vld [vmem:[#allocation12_spill] sm:$0xff]  ;;  %v8092_v10 = vld [vmem:[#allocation167_spill] sm:$0xff]  ;;  %s3947_s6 = sld [smem:[#allocation2 + $0x117]] }
 0x2e5   : > { %8082 = vst [vmem:[#allocation68_spill] sm:$0xff] %v6885_v55  ;;  %8083 = vst [vmem:[#allocation65_spill] sm:$0xff] %v6887_v5  ;;  %v2101_v5 = vadd.f32 %v8088_v9, %v6762_v26  ;;  %v8089_v55 = vld [vmem:[#allocation40_spill] sm:$0xff]  ;;  %v6914_v47 = vadd.f32 %v6455_v62, %v2087_v38  ;;  %v6917_v19 = vadd.f32 %v6467_v11, %v2086_v23  ;;  %v3158_v38 = vstv %s6853_s7  ;;  %s3948_s7 = sld [smem:[#allocation2 + $0x118]] }
 0x2e6   : > { %8084 = vst [vmem:[#allocation66_spill] sm:$0xff] %v6893_v1  ;;  %8087 = vst [vmem:[#allocation69_spill] sm:$0xff] %v6901_v27  ;;  %v6906_v60 = vadd.f32 %v8089_v55, %v2073_v40  ;;  %3109 = vrot.lane.b32.xlu1 %v3104_v48, %s4171_s10  ;;  %3107 = vrot.lane.b32.xlu0 %v3103_v13, %s4171_s10  ;;  %v3132_v44 = vmul.f32 %v6521_v4, %v3130_v30  ;;  %v3186_v27 = vstv %s6870_s9  ;;  %v8095_v1 = vld [vmem:[#allocation23_spill] sm:$0xff]  ;;  %s3950_s9 = sld [smem:[#allocation2 + $0x11a]] }
 0x2e7   : > { %v3131_v26 = vmul.f32 %v6525_v31, %v3130_v30  ;;  %v2100_v40 = vadd.f32 %v8091_v2, %v6771_v51  ;;  %v3146_v62 = vmul.f32 %v6521_v4, %v3144_v7  ;;  %v3145_v11 = vmul.f32 %v6525_v31, %v3144_v7  ;;  %v8093_v30 = vld [vmem:[#allocation13_spill] sm:$0xff]  ;;  %v8094_v51 = vld [vmem:[#allocation14_spill] sm:$0xff] }
 0x2e8   : > { %v6925_v48 = vpop.permute.xlu1 %2616  ;;  %v6927_v13 = vpop.permute.xlu0 %2614  ;;  %v2179_v23 = vadd.f32 %v8092_v10, %v6801_v32  ;;  %v2178_v55 = vadd.f32 %v8093_v30, %v6811_v16  ;;  %v2165_v34 = vadd.f32 %v6484_v12, %v2115_v36  ;;  %v2164_v14 = vadd.f32 %v6494_v54, %v2114_v25  ;;  %v8096_v10 = vld [vmem:[#allocation24_spill] sm:$0xff]  ;;  %v8097_v16 = vld [vmem:[#allocation25_spill] sm:$0xff]  ;;  %v8098_v12 = vld [vmem:[#allocation26_spill] sm:$0xff] }
 0x2e9   : > { %v2193_v9 = vadd.f32 %v8094_v51, %v2129_v39  ;;  %v6940_v2 = vadd.f32 %v6470_v63, %v2101_v5  ;;  %v3172_v7 = vstv %s6868_s8  ;;  %v8099_v54 = vld [vmem:[#allocation168_spill] sm:$0xff]  ;;  %v8100_v25 = vld [vmem:[#allocation182_spill] sm:$0xff]  ;;  %v8101_v5 = vld [vmem:[#allocation27_spill] sm:$0xff]  ;;  %s3949_s8 = sld [smem:[#allocation2 + $0x119]] }
 0x2ea   : > { %3123 = vrot.lane.b32.xlu1 %v3118_v52, %s4171_s10  ;;  %3121 = vrot.lane.b32.xlu0 %v3117_v24, %s4171_s10  ;;  %v2277_v32 = vadd.f32 %v8095_v1, %v2165_v34  ;;  %v2276_v49 = vadd.f32 %v8096_v10, %v2164_v14  ;;  %v2291_v30 = vadd.f32 %v8097_v16, %v2179_v23  ;;  %v8103_v34 = vld [vmem:[#allocation41_spill] sm:$0xff]  ;;  %v8104_v23 = vld [vmem:[#allocation42_spill] sm:$0xff] }
 0x2eb   : > { %v2290_v36 = vadd.f32 %v8098_v12, %v2178_v55  ;;  %v2192_v39 = vadd.f32 %v8099_v54, %v6837_v58  ;;  %v6953_v63 = vadd.f32 %v8100_v25, %v2100_v40  ;;  %v2305_v52 = vadd.f32 %v8101_v5, %v2193_v9  ;;  %v8105_v40 = vld [vmem:[#allocation28_spill] sm:$0xff]  ;;  %v8108_v25 = vld [vmem:[#allocation170_spill] sm:$0xff] }
 0x2ec   : > { %v6956_v51 = vpop.permute.xlu1 %2630  ;;  %v6958_v24 = vpop.permute.xlu0 %2628  ;;  %v3160_v1 = vmul.f32 %v6521_v4, %v3158_v38  ;;  %v2389_v14 = vadd.f32 %v8103_v34, %v2277_v32  ;;  %v2388_v10 = vadd.f32 %v8104_v23, %v2276_v49  ;;  %v3159_v55 = vmul.f32 %v6525_v31, %v3158_v38 }
 0x2ed   : > { %8102 = vst [vmem:[#allocation70_spill] sm:$0xff] %v6958_v24  ;;  %v6965_v58 = vmul.f32 %v6521_v4, %v3172_v7  ;;  %v2304_v16 = vadd.f32 %v8105_v40, %v2192_v39  ;;  %v6971_v9 = vmul.f32 %v6525_v31, %v3172_v7  ;;  %v6974_v12 = vmul.f32 %v6521_v4, %v3186_v27 }
 0x2ee   : > { %3137 = vrot.lane.b32.xlu1 %v3132_v44, %s4171_s10  ;;  %3135 = vrot.lane.b32.xlu0 %v3131_v26, %s4171_s10  ;;  %v2397_v49 = vadd.f32 %v6565_v45, %v2291_v30  ;;  %v2396_v38 = vadd.f32 %v6581_v29, %v2290_v36  ;;  %v6981_v32 = vmul.f32 %v6525_v31, %v3186_v27  ;;  %v3200_v54 = vstv %s6921_s11  ;;  %v8106_v44 = vld [vmem:[#allocation16_spill] sm:$0xff]  ;;  %v8107_v26 = vld [vmem:[#allocation169_spill] sm:$0xff]  ;;  %v8110_v27 = vld [vmem:[#allocation43_spill] sm:$0xff]  ;;  %s3951_s11 = sld [smem:[#allocation2 + $0x11b]] }
 0x2ef   : > { %v2207_v39 = vadd.f32 %v8106_v44, %v6843_v21  ;;  %v2206_v7 = vadd.f32 %v8107_v26, %v6846_v43  ;;  %v2221_v5 = vadd.f32 %v8108_v25, %v6880_v42  ;;  %v2403_v34 = vadd.f32 %v6592_v56, %v2305_v52  ;;  %v8109_v29 = vld [vmem:[#allocation181_spill] sm:$0xff]  ;;  %v8112_v43 = vld [vmem:[#allocation30_spill] sm:$0xff]  ;;  %v8117_v25 = vld [vmem:[#allocation36_spill] sm:$0xff] }
 0x2f0   : > { %v6991_v23 = vpop.permute.xlu1 %2644  ;;  %v6993_v45 = vpop.permute.xlu0 %2642  ;;  %v2453_v30 = vadd.f32 %v8109_v29, %v2397_v49  ;;  %v2452_v36 = vadd.f32 %v8110_v27, %v2396_v38  ;;  %v2439_v40 = vadd.f32 %v6715_v59, %v2389_v14  ;;  %v2438_v21 = vadd.f32 %v6718_v50, %v2388_v10  ;;  %v8111_v44 = vld [vmem:[#allocation29_spill] sm:$0xff]  ;;  %v8113_v50 = vld [vmem:[#allocation171_spill] sm:$0xff] }
 0x2f1   : > { %v2319_v24 = vadd.f32 %v8111_v44, %v2207_v39  ;;  %v2318_v26 = vadd.f32 %v8112_v43, %v2206_v7  ;;  %v2402_v42 = vadd.f32 %v6596_v41, %v2304_v16  ;;  %v2220_v14 = vadd.f32 %v8113_v50, %v6883_v15  ;;  %v8114_v10 = vld [vmem:[#allocation35_spill] sm:$0xff]  ;;  %v8116_v16 = vld [vmem:[#allocation185_spill] sm:$0xff] }
 0x2f2   : > { %3151 = vrot.lane.b32.xlu1 %v3146_v62, %s4171_s10  ;;  %3149 = vrot.lane.b32.xlu0 %v3145_v11, %s4171_s10  ;;  %v2551_v56 = vadd.f32 %v6730_v0, %v2439_v40  ;;  %v2550_v52 = vadd.f32 %v6732_v57, %v2438_v21  ;;  %v2565_v49 = vadd.f32 %v6765_v37, %v2453_v30  ;;  %v8115_v0 = vld [vmem:[#allocation44_spill] sm:$0xff] }
 0x2f3   : > { %v2564_v59 = vadd.f32 %v6767_v3, %v2452_v36  ;;  %v2333_v38 = vadd.f32 %v8114_v10, %v2221_v5  ;;  %v7012_v62 = vmul.f32 %v6521_v4, %v3200_v54  ;;  %v7015_v11 = vmul.f32 %v6525_v31, %v3200_v54  ;;  %v8126_v10 = vld [vmem:[#allocation177_spill] sm:$0xff] }
 0x2f4   : > { %v2659_v39 = vpop.permute.xlu1 %2658  ;;  %v2657_v41 = vpop.permute.xlu0 %2656  ;;  %v2467_v57 = vadd.f32 %v8115_v0, %v2403_v34  ;;  %v2466_v37 = vadd.f32 %v8116_v16, %v2402_v42  ;;  %v2332_v15 = vadd.f32 %v8117_v25, %v2220_v14  ;;  %v2409_v5 = vadd.f32 %v6617_v8, %v2319_v24  ;;  %v8118_v8 = vld [vmem:[#allocation174_spill] sm:$0xff]  ;;  %v8119_v24 = vld [vmem:[#allocation19_spill] sm:$0xff]  ;;  %v8124_v42 = vld [vmem:[#allocation32_spill] sm:$0xff] }
 0x2f5   : > { %v7019_v7 = vadd.f32 %v2659_v39, %v2551_v56  ;;  %v7021_v3 = vadd.f32 %v2657_v41, %v2550_v52  ;;  %v2408_v29 = vadd.f32 %v6620_v22, %v2318_v26  ;;  %v3264_v4 = vstv %s6976_s17  ;;  %v8123_v26 = vld [vmem:[#allocation31_spill] sm:$0xff]  ;;  %v8125_v56 = vld [vmem:[#allocation186_spill] sm:$0xff]  ;;  %v8127_v39 = vld [vmem:[#allocation33_spill] sm:$0xff]  ;;  %s7233_s17 = sld [smem:[#allocation2 + $0xf0]] }
 0x2f6   : > { %3165 = vrot.lane.b32.xlu1 %v3160_v1, %s4171_s10  ;;  %3163 = vrot.lane.b32.xlu0 %v3159_v55, %s4171_s10  ;;  %v2579_v31 = vadd.f32 %v6803_v28, %v2467_v57  ;;  %v2578_v54 = vadd.f32 %v6805_v35, %v2466_v37  ;;  %v2672_v34 = vadd.f32 %v6793_v33, %v2565_v49  ;;  %v8120_v55 = vld [vmem:[#allocation20_spill] sm:$0xff]  ;;  %v8121_v35 = vld [vmem:[#allocation45_spill] sm:$0xff]  ;;  %v8122_v33 = vld [vmem:[#allocation46_spill] sm:$0xff] }
 0x2f7   : > { %v2671_v30 = vadd.f32 %v6796_v6, %v2564_v59  ;;  %v2235_v22 = vadd.f32 %v8118_v8, %v6906_v60  ;;  %v2234_v1 = vadd.f32 %v8119_v24, %v6909_v17  ;;  %v2249_v27 = vadd.f32 %v8120_v55, %v6914_v47  ;;  %v7051_v60 = vld [vmem:[%s4289_s26 + $0x52] sm:$0xff]  ;;  %v7054_v17 = vld [vmem:[%s4289_s26 + $0x4a] sm:$0xff] }
 0x2f8   : > { %v2415_v36 = vadd.f32 %v6637_v61, %v2333_v38  ;;  %v2724_v40 = vpop.permute.xlu1 %2723  ;;  %v2722_v28 = vpop.permute.xlu0 %2721  ;;  %v2481_v21 = vadd.f32 %v8121_v35, %v2409_v5  ;;  %v2480_v44 = vadd.f32 %v8122_v33, %v2408_v29  ;;  %v2414_v52 = vadd.f32 %v8125_v56, %v2332_v15  ;;  %v8129_v16 = vld [vmem:[#allocation48_spill] sm:$0xff]  ;;  %v8131_v15 = vld [vmem:[#allocation187_spill] sm:$0xff]  ;;  %v8132_v29 = vld [vmem:[#allocation53_spill] sm:$0xff] }
 0x2f9   : > { %v7046_v6 = vadd.f32 %v2724_v40, %v2672_v34  ;;  %v7048_v43 = vadd.f32 %v2722_v28, %v2671_v30  ;;  %v2347_v47 = vadd.f32 %v8123_v26, %v2235_v22  ;;  %v2346_v61 = vadd.f32 %v8124_v42, %v2234_v1  ;;  %v8134_v30 = vld [vmem:[#allocation65_spill] sm:$0xff]  ;;  %v8135_v22 = vld [vmem:[#allocation67_spill] sm:$0xff]  ;;  %v8136_v1 = vld [vmem:[#allocation62_spill] sm:$0xff] }
 0x2fa   : > { %3179 = vrot.lane.b32.xlu1 %v6965_v58, %s4171_s10  ;;  %3177 = vrot.lane.b32.xlu0 %v6971_v9, %s4171_s10  ;;  %v2593_v49 = vadd.f32 %v6848_v18, %v2481_v21  ;;  %v2592_v59 = vadd.f32 %v6850_v53, %v2480_v44  ;;  %v2678_v50 = vadd.f32 %v6820_v20, %v2579_v31  ;;  %v8128_v18 = vld [vmem:[#allocation47_spill] sm:$0xff]  ;;  %v8138_v40 = vld [vmem:[#allocation22_spill] sm:$0xff]  ;;  %v3278_v33 = vstv %s7042_s20  ;;  %v8140_v44 = vld [vmem:[#allocation49_spill] sm:$0xff]  ;;  %s7247_s20 = sld [smem:[#allocation2 + $0x11d]] }
 0x2fb   : > { %v2677_v14 = vadd.f32 %v6826_v46, %v2578_v54  ;;  %v2248_v38 = vadd.f32 %v8126_v10, %v6917_v19  ;;  %v2361_v41 = vadd.f32 %v8127_v39, %v2249_v27  ;;  %v3266_v58 = vmul.f32 %v7051_v60, %v3264_v4  ;;  %v8130_v19 = vld [vmem:[#allocation34_spill] sm:$0xff]  ;;  %v8133_v54 = vld [vmem:[#allocation68_spill] sm:$0xff]  ;;  %v8137_v27 = vld [vmem:[#allocation21_spill] sm:$0xff] }
 0x2fc   : > { %v2738_v0 = vpop.permute.xlu1 %2737  ;;  %v2736_v57 = vpop.permute.xlu0 %2735  ;;  %v3265_v9 = vmul.f32 %v7054_v17, %v3264_v4  ;;  %v2495_v53 = vadd.f32 %v8128_v18, %v2415_v36  ;;  %v2494_v20 = vadd.f32 %v8129_v16, %v2414_v52  ;;  %v2421_v5 = vadd.f32 %v8131_v15, %v2347_v47  ;;  %v8139_v28 = vld [vmem:[#allocation54_spill] sm:$0xff]  ;;  %v8142_v52 = vld [vmem:[#allocation37_spill] sm:$0xff] }
 0x2fd   : > { %v7076_v37 = vadd.f32 %v2738_v0, %v2678_v50  ;;  %v7078_v46 = vadd.f32 %v2736_v57, %v2677_v14  ;;  %v2360_v25 = vadd.f32 %v8130_v19, %v2248_v38  ;;  %v2420_v31 = vadd.f32 %v8132_v29, %v2346_v61  ;;  %v8141_v47 = vld [vmem:[#allocation50_spill] sm:$0xff]  ;;  %v8144_v50 = vld [vmem:[#allocation55_spill] sm:$0xff] }
 0x2fe   : > { %3193 = vrot.lane.b32.xlu1 %v6974_v12, %s4171_s10  ;;  %3191 = vrot.lane.b32.xlu0 %v6981_v32, %s4171_s10  ;;  %v2698_v4 = vstv %s7029_s19  ;;  %v2607_v34 = vadd.f32 %v8133_v54, %v2495_v53  ;;  %v2606_v8 = vadd.f32 %v8134_v30, %v2494_v20  ;;  %v2684_v24 = vadd.f32 %v8135_v22, %v2593_v49  ;;  %v8145_v38 = vld [vmem:[#allocation63_spill] sm:$0xff]  ;;  %v8147_v53 = vld [vmem:[#allocation60_spill] sm:$0xff]  ;;  %s7245_s19 = sld [smem:[#allocation2 + $0xf1]] }
 0x2ff   : > { %v2683_v55 = vadd.f32 %v8136_v1, %v2592_v59  ;;  %v2263_v36 = vadd.f32 %v8137_v27, %v6940_v2  ;;  %v2262_v12 = vadd.f32 %v8138_v40, %v6953_v63  ;;  %v2427_v35 = vadd.f32 %v8139_v28, %v2361_v41  ;;  %v8143_v59 = vld [vmem:[#allocation38_spill] sm:$0xff]  ;;  %v8146_v41 = vld [vmem:[#allocation64_spill] sm:$0xff] }
 0x300   : > { %v2752_v32 = vpop.permute.xlu1 %2751  ;;  %v2750_v21 = vpop.permute.xlu0 %2749  ;;  %v2509_v26 = vadd.f32 %v8140_v44, %v2421_v5  ;;  %v2508_v42 = vadd.f32 %v8141_v47, %v2420_v31  ;;  %v2426_v63 = vadd.f32 %v8144_v50, %v2360_v25  ;;  %v2690_v39 = vadd.f32 %v8145_v38, %v2607_v34  ;;  %v8149_v25 = vld [vmem:[#allocation51_spill] sm:$0xff]  ;;  %v8150_v5 = vld [vmem:[#allocation52_spill] sm:$0xff]  ;;  %v8151_v31 = vld [vmem:[#allocation58_spill] sm:$0xff] }
 0x301   : > { %v7102_v61 = vadd.f32 %v2752_v32, %v2684_v24  ;;  %v7104_v56 = vadd.f32 %v2750_v21, %v2683_v55  ;;  %v2375_v49 = vadd.f32 %v8142_v52, %v2263_v36  ;;  %v2374_v2 = vadd.f32 %v8143_v59, %v2262_v12  ;;  %v8152_v34 = vld [vmem:[#allocation59_spill] sm:$0xff]  ;;  %v8153_v24 = vld [vmem:[#allocation70_spill] sm:$0xff]  ;;  %v8155_v36 = vld [vmem:[#allocation69_spill] sm:$0xff] }
 0x302   : > { %3207 = vrot.lane.b32.xlu1 %v7012_v62, %s4171_s10  ;;  %3205 = vrot.lane.b32.xlu0 %v7015_v11, %s4171_s10  ;;  %v2621_v14 = vadd.f32 %v6925_v48, %v2509_v26  ;;  %v2620_v10 = vadd.f32 %v6927_v13, %v2508_v42  ;;  %v2689_v0 = vadd.f32 %v8146_v41, %v2606_v8  ;;  %v8148_v11 = vld [vmem:[#allocation61_spill] sm:$0xff]  ;;  %v2704_v19 = vstv %s7072_s24  ;;  %v8154_v55 = vld [vmem:[#allocation66_spill] sm:$0xff]  ;;  %s7260_s24 = sld [smem:[#allocation2 + $0x11e]] }
 0x303   : > { %v3280_v62 = vmul.f32 %v7051_v60, %v3278_v33  ;;  %v2700_v16 = vmul.f32 %v8147_v53, %v2698_v4  ;;  %v2699_v20 = vmul.f32 %v8148_v11, %v2698_v4  ;;  %v2523_v15 = vadd.f32 %v8149_v25, %v2427_v35  ;;  %v8156_v35 = vld [vmem:[#allocation56_spill] sm:$0xff]  ;;  %v8157_v21 = vld [vmem:[#allocation57_spill] sm:$0xff] }
 0x304   : > { %v2766_v57 = vpop.permute.xlu1 %2765  ;;  %v2764_v18 = vpop.permute.xlu0 %2763  ;;  %v2522_v48 = vadd.f32 %v8150_v5, %v2426_v63  ;;  %v2433_v54 = vadd.f32 %v8151_v31, %v2375_v49  ;;  %v2432_v30 = vadd.f32 %v8152_v34, %v2374_v2  ;;  %v3279_v8 = vmul.f32 %v7054_v17, %v3278_v33 }
 0x305   : > { %v7127_v29 = vadd.f32 %v2766_v57, %v2690_v39  ;;  %v7129_v13 = vadd.f32 %v2764_v18, %v2689_v0  ;;  %v3292_v4 = vstv %s7088_s25  ;;  %v2635_v22 = vadd.f32 %v6956_v51, %v2523_v15  ;;  %s7262_s25 = sld [smem:[#allocation2 + $0xf2]] }
 0x306   : > { %3271 = vrot.lane.b32.xlu1 %v3266_v58, %s4170_s28  ;;  %3269 = vrot.lane.b32.xlu0 %v3265_v9, %s4170_s28  ;;  %v2634_v1 = vadd.f32 %v8153_v24, %v2522_v48  ;;  %v2696_v27 = vadd.f32 %v8154_v55, %v2621_v14  ;;  %v2695_v40 = vadd.f32 %v8155_v36, %v2620_v10  ;;  %v3306_v42 = vstv %s7113_s27  ;;  %s7285_s27 = sld [smem:[#allocation2 + $0x11f]] }
 0x307   : > { %v2706_v58 = vmul.f32 %v8147_v53, %v2704_v19  ;;  %v2705_v9 = vmul.f32 %v8148_v11, %v2704_v19  ;;  %v2537_v32 = vadd.f32 %v8156_v35, %v2433_v54  ;;  %v2536_v51 = vadd.f32 %v8157_v21, %v2432_v30 }
 0x308   : > { %v2780_v12 = vpop.permute.xlu1 %2779  ;;  %v2778_v28 = vpop.permute.xlu0 %2777  ;;  %v3294_v26 = vmul.f32 %v7051_v60, %v3292_v4  ;;  %v3293_v47 = vmul.f32 %v7054_v17, %v3292_v4  ;;  %v2710_v52 = vstv %s7115_s29  ;;  %v2702_v2 = vadd.f32 %v2700_v16, %v2635_v22  ;;  %s7287_s29 = sld [smem:[#allocation2 + $0xf3]] }
 0x309   : > { %v7147_v33 = vadd.f32 %v2780_v12, %v2696_v27  ;;  %v7149_v44 = vadd.f32 %v2778_v28, %v2695_v40  ;;  %v2649_v49 = vadd.f32 %v6991_v23, %v2537_v32  ;;  %v2648_v59 = vadd.f32 %v6993_v45, %v2536_v51 }
 0x30a   : > { %3285 = vrot.lane.b32.xlu1 %v3280_v62, %s4170_s28  ;;  %3283 = vrot.lane.b32.xlu0 %v3279_v8, %s4170_s28  ;;  %v2701_v50 = vadd.f32 %v2699_v20, %v2634_v1  ;;  %v3308_v39 = vmul.f32 %v7051_v60, %v3306_v42  ;;  %v3307_v23 = vmul.f32 %v7054_v17, %v3306_v42  ;;  %v3320_v18 = vstv %s7141_s30  ;;  %s7321_s30 = sld [smem:[#allocation2 + $0xf5]] }
 0x30b   : > { %v2712_v45 = vmul.f32 %v8147_v53, %v2710_v52  ;;  %v2708_v41 = vadd.f32 %v2706_v58, %v2649_v49  ;;  %v2707_v0 = vadd.f32 %v2705_v9, %v2648_v59  ;;  %v2711_v57 = vmul.f32 %v8148_v11, %v2710_v52 }
 0x30c   : > { %v2794_v63 = vpop.permute.xlu1 %2793  ;;  %v2792_v14 = vpop.permute.xlu0 %2791  ;;  %v3322_v25 = vmul.f32 %v7051_v60, %v3320_v18  ;;  %v3321_v53 = vmul.f32 %v7054_v17, %v3320_v18  ;;  %v3334_v5 = vstv %s7159_s4  ;;  %v3348_v4 = vstv %s3946_s5  ;;  %s3912_s4 = sld [smem:[#allocation2 + $0xf6]]  ;;  %s3913_s5 = sld [smem:[#allocation2 + $0xf7]] }
 0x30d   : > { %v7161_v10 = vadd.f32 %v2794_v63, %v2702_v2  ;;  %v7163_v38 = vadd.f32 %v2792_v14, %v2701_v50  ;;  %v2714_v15 = vadd.f32 %v2712_v45, %v7019_v7  ;;  %v2713_v11 = vadd.f32 %v2711_v57, %v7021_v3 }
 0x30e   : > { %3299 = vrot.lane.b32.xlu1 %v3294_v26, %s4170_s28  ;;  %3297 = vrot.lane.b32.xlu0 %v3293_v47, %s4170_s28  ;;  %v3336_v30 = vmul.f32 %v7051_v60, %v3334_v5  ;;  %v3335_v8 = vmul.f32 %v7054_v17, %v3334_v5  ;;  %v3350_v1 = vmul.f32 %v7051_v60, %v3348_v4  ;;  %v3362_v27 = vstv %s3947_s6  ;;  %v7281_v5 = vld [vmem:[%s4289_s26 + $0x49] sm:$0xff]  ;;  %s3933_s6 = sld [smem:[#allocation2 + $0x109]] }
 0x30f   : > { %v3349_v55 = vmul.f32 %v7054_v17, %v3348_v4  ;;  %v3363_v28 = vmul.f32 %v7054_v17, %v3362_v27  ;;  %v3376_v58 = vstv %s3948_s7  ;;  %v3390_v51 = vstv %s3949_s8  ;;  %s7413_s7 = sld [smem:[#allocation2 + $0x10a]]  ;;  %s7419_s8 = sld [smem:[#allocation2 + $0x10b]] }
 0x310   : > { %v2808_v62 = vpop.permute.xlu1 %2807  ;;  %v2806_v16 = vpop.permute.xlu0 %2805  ;;  %v3377_v21 = vmul.f32 %v7054_v17, %v3376_v58  ;;  %v3391_v52 = vmul.f32 %v7054_v17, %v3390_v51  ;;  %v3404_v49 = vstv %s3950_s9  ;;  %v3418_v14 = vstv %s3951_s11  ;;  %s7426_s9 = sld [smem:[#allocation5]]  ;;  %s7431_s11 = sld [smem:[#allocation2 + $0x10c]] }
 0x311   : > { %v7172_v20 = vadd.f32 %v2808_v62, %v2708_v41  ;;  %v7174_v19 = vadd.f32 %v2806_v16, %v2707_v0  ;;  %v3406_v50 = vmul.f32 %v7051_v60, %v3404_v49  ;;  %v3405_v63 = vmul.f32 %v7054_v17, %v3404_v49 }
 0x312   : > { %3313 = vrot.lane.b32.xlu1 %v3308_v39, %s4170_s28  ;;  %3311 = vrot.lane.b32.xlu0 %v3307_v23, %s4170_s28  ;;  %v3420_v45 = vmul.f32 %v7051_v60, %v3418_v14  ;;  %v3419_v41 = vmul.f32 %v7054_v17, %v3418_v14  ;;  %v2942_v57 = vstv %s7233_s17  ;;  %s7441_s17 = sld [smem:[#allocation5 + $0x1]] }
 0x314   : > { %v2822_v48 = vpop.permute.xlu1 %2821  ;;  %v2820_v31 = vpop.permute.xlu0 %2819 }
 0x315   : > { %v7183_v54 = vadd.f32 %v2822_v48, %v2714_v15  ;;  %v7185_v34 = vadd.f32 %v2820_v31, %v2713_v11  ;;  %v7277_v15 = vld [vmem:[%s4289_s26 + $0x51] sm:$0xff]  ;;  %s7305_s26 = sld [smem:[#allocation2 + $0xf4]] }
 0x316   : > { %3327 = vrot.lane.b32.xlu1 %v3322_v25, %s4170_s28  ;;  %3325 = vrot.lane.b32.xlu0 %v3321_v53, %s4170_s28  ;;  %v2948_v53 = vstv %s7245_s19  ;;  %v2944_v11 = vmul.f32 %v7277_v15, %v2942_v57  ;;  %s7445_s19 = sld [smem:[#allocation2 + $0x10d]] }
 0x317   : > { %v2950_v4 = vmul.f32 %v7277_v15, %v2948_v53 }
 0x318   : > { %v2836_v7 = vpop.permute.xlu1 %2835  ;;  %v2834_v3 = vpop.permute.xlu0 %2833 }
 0x319   : > { %v7192_v22 = vadd.f32 %v2836_v7, %v7046_v6  ;;  %v7195_v24 = vadd.f32 %v2834_v3, %v7048_v43  ;;  %v3364_v43 = vmul.f32 %v7051_v60, %v3362_v27  ;;  %v3460_v27 = vstv %s7260_s24  ;;  %s7455_s24 = sld [smem:[#allocation5 + $0x2]] }
 0x31a   : > { %3341 = vrot.lane.b32.xlu1 %v3336_v30, %s4170_s28  ;;  %3339 = vrot.lane.b32.xlu0 %v3335_v8, %s4170_s28 }
 0x31c   : > { %v2850_v36 = vpop.permute.xlu1 %2849  ;;  %v2848_v40 = vpop.permute.xlu0 %2847 }
 0x31d   : > { %v7202_v12 = vadd.f32 %v2850_v36, %v7076_v37  ;;  %v7205_v6 = vadd.f32 %v2848_v40, %v7078_v46  ;;  %v3378_v46 = vmul.f32 %v7051_v60, %v3376_v58 }
 0x31e   : > { %3355 = vrot.lane.b32.xlu1 %v3350_v1, %s4170_s28  ;;  %3353 = vrot.lane.b32.xlu0 %v3349_v55, %s4170_s28  ;;  %v2949_v1 = vmul.f32 %v7281_v5, %v2948_v53  ;;  %v2946_v55 = vadd.f32 %v2944_v11, %v7192_v22  ;;  %v3462_v22 = vmul.f32 %v7051_v60, %v3460_v27 }
 0x320   : > { %v2864_v9 = vpop.permute.xlu1 %2863  ;;  %v2862_v35 = vpop.permute.xlu0 %2861 }
 0x321   : > { %v7212_v32 = vadd.f32 %v2864_v9, %v7102_v61  ;;  %v7215_v37 = vadd.f32 %v2862_v35, %v7104_v56  ;;  %v3392_v56 = vmul.f32 %v7051_v60, %v3390_v51  ;;  %v2952_v9 = vadd.f32 %v2950_v4, %v7202_v12 }
 0x322   : > { %3369 = vrot.lane.b32.xlu1 %v3364_v43, %s4170_s28  ;;  %3367 = vrot.lane.b32.xlu0 %v3363_v28, %s4170_s28  ;;  %s7231_s28 = sld [smem:[#allocation2 + $0x11c]]  ;;  %v2951_v35 = vadd.f32 %v2949_v1, %v7205_v6 }
 0x324   : > { %v2878_v26 = vpop.permute.xlu1 %2877  ;;  %v2876_v47 = vpop.permute.xlu0 %2875 }
 0x325   : > { %v7222_v42 = vadd.f32 %v2878_v26, %v7127_v29  ;;  %v7225_v61 = vadd.f32 %v2876_v47, %v7129_v13  ;;  %v2960_v47 = vstv %s7287_s29 }
 0x326   : > { %3383 = vrot.lane.b32.xlu1 %v3378_v46, %s4171_s10  ;;  %3381 = vrot.lane.b32.xlu0 %v3377_v21, %s4171_s10  ;;  %v3474_v21 = vstv %s7285_s27  ;;  %s7463_s27 = sld [smem:[#allocation5 + $0x3]] }
 0x327   : > { %v3476_v12 = vmul.f32 %v7051_v60, %v3474_v21  ;;  %v3475_v6 = vmul.f32 %v7054_v17, %v3474_v21 }
 0x328   : > { %v2892_v59 = vpop.permute.xlu1 %2891  ;;  %v2890_v2 = vpop.permute.xlu0 %2889  ;;  %v3432_v0 = vstv %s7231_s28  ;;  %s188_s28 = sand.u32 1, %s4158_s13  }
 0x329   : > { %v7236_v29 = vadd.f32 %v2892_v59, %v7147_v33  ;;  %v7239_v13 = vadd.f32 %v2890_v2, %v7149_v44  ;;  %v3434_v16 = vmul.f32 %v7051_v60, %v3432_v0  ;;  %v3433_v25 = vmul.f32 %v7054_v17, %v3432_v0 }
 0x32a   : > { %3397 = vrot.lane.b32.xlu1 %v3392_v56, %s4171_s10  ;;  %3395 = vrot.lane.b32.xlu0 %v3391_v52, %s4171_s10  ;;  %v2962_v2 = vmul.f32 %v7277_v15, %v2960_v47 }
 0x32c   : > { %v2906_v33 = vpop.permute.xlu1 %2905  ;;  %v2904_v39 = vpop.permute.xlu0 %2903 }
 0x32d   : > { %v7250_v44 = vadd.f32 %v2906_v33, %v7161_v10  ;;  %v7253_v23 = vadd.f32 %v2904_v39, %v7163_v38  ;;  %v2966_v33 = vstv %s7305_s26  ;;  %s7477_s26 = sld [smem:[#allocation2 + $0x10f]] }
 0x32e   : > { %3411 = vrot.lane.b32.xlu1 %v3406_v50, %s4171_s10  ;;  %3409 = vrot.lane.b32.xlu0 %v3405_v63, %s4171_s10  ;;  %v2961_v50 = vmul.f32 %v7281_v5, %v2960_v47  ;;  %v2967_v0 = vmul.f32 %v7281_v5, %v2966_v33 }
 0x330   : > { %v2920_v10 = vpop.permute.xlu1 %2919  ;;  %v2918_v38 = vpop.permute.xlu0 %2917  ;;  %v2969_v11 = vadd.f32 %v2967_v0, %v7239_v13 }
 0x331   : > { %v7266_v18 = vadd.f32 %v2920_v10, %v7172_v20  ;;  %v7269_v62 = vadd.f32 %v2918_v38, %v7174_v19  ;;  %v2943_v20 = vmul.f32 %v7281_v5, %v2942_v57  ;;  %v3446_v19 = vstv %s7247_s20  ;;  %s3649_s20 = sshll.u32 %s188_s28, 7 }
 0x332   : > { %3425 = vrot.lane.b32.xlu1 %v3420_v45, %s4171_s10  ;;  %3423 = vrot.lane.b32.xlu0 %v3419_v41, %s4171_s10  ;;  %v3448_v7 = vmul.f32 %v7051_v60, %v3446_v19  ;;  %v3447_v3 = vmul.f32 %v7054_v17, %v3446_v19  ;;  %v2968_v41 = vmul.f32 %v7277_v15, %v2966_v33  ;;  %v2972_v57 = vstv %s7321_s30  ;;  %s7469_s29 = scalar_lea.vmem [#allocation7], %s3649_s20  ;;  %s7487_s30 = sld [smem:[#allocation5 + $0x4]] }
 0x334   : > { %v2934_v48 = vpop.permute.xlu1 %2933  ;;  %v2932_v31 = vpop.permute.xlu0 %2931  ;;  %v2970_v53 = vadd.f32 %v2968_v41, %v7236_v29 }
 0x335   : > { %v7290_v30 = vadd.f32 %v2934_v48, %v7183_v54  ;;  %v7293_v8 = vadd.f32 %v2932_v31, %v7185_v34  ;;  %v2945_v54 = vadd.f32 %v2943_v20, %v7195_v24  ;;  %v2954_v34 = vstv %s7262_s25  ;;  %s7459_s25 = sld [smem:[#allocation2 + $0x10e]] }
 0x336   : > { %3439 = vrot.lane.b32.xlu1 %v3434_v16, %s4171_s10  ;;  %3437 = vrot.lane.b32.xlu0 %v3433_v25, %s4171_s10  ;;  %v3461_v24 = vmul.f32 %v7054_v17, %v3460_v27  ;;  %v2956_v58 = vmul.f32 %v7277_v15, %v2954_v34  ;;  %v2955_v46 = vmul.f32 %v7281_v5, %v2954_v34  ;;  %v2978_v48 = vstv %s3912_s4  ;;  %s7499_s4 = sld [smem:[#allocation5 + $0x5]] }
 0x337   : > { %v2980_v1 = vmul.f32 %v7277_v15, %v2978_v48  ;;  %v2979_v29 = vmul.f32 %v7281_v5, %v2978_v48 }
 0x338   : > { %v2998_v36 = vpop.permute.xlu1 %2997  ;;  %v2996_v40 = vpop.permute.xlu0 %2995  ;;  %v2958_v49 = vadd.f32 %v2956_v58, %v7212_v32  ;;  %v2957_v59 = vadd.f32 %v2955_v46, %v7215_v37  ;;  %v2964_v32 = vadd.f32 %v2962_v2, %v7222_v42  ;;  %v2963_v37 = vadd.f32 %v2961_v50, %v7225_v61 }
 0x339   : > { %v7307_v43 = vadd.f32 %v2998_v36, %v2946_v55  ;;  %v7309_v28 = vadd.f32 %v2996_v40, %v2945_v54  ;;  %v2974_v42 = vmul.f32 %v7277_v15, %v2972_v57  ;;  %v2973_v61 = vmul.f32 %v7281_v5, %v2972_v57 }
 0x33a   : > { %3453 = vrot.lane.b32.xlu1 %v3448_v7, %s4171_s10  ;;  %3451 = vrot.lane.b32.xlu0 %v3447_v3, %s4171_s10  ;;  %v2984_v54 = vstv %s3913_s5  ;;  %v2982_v36 = vadd.f32 %v2980_v1, %v7266_v18  ;;  %v2981_v40 = vadd.f32 %v2979_v29, %v7269_v62  ;;  %s7519_s5 = sld [smem:[#allocation5 + $0x6]] }
 0x33b   : > { %v2976_v7 = vadd.f32 %v2974_v42, %v7250_v44  ;;  %v2975_v3 = vadd.f32 %v2973_v61, %v7253_v23  ;;  %v2985_v44 = vmul.f32 %v7281_v5, %v2984_v54 }
 0x33c   : > { %v3012_v51 = vpop.permute.xlu1 %3011  ;;  %v3010_v26 = vpop.permute.xlu0 %3009 }
 0x33d   : > { %v7323_v56 = vadd.f32 %v3012_v51, %v2952_v9  ;;  %v7325_v52 = vadd.f32 %v3010_v26, %v2951_v35  ;;  %v2987_v46 = vadd.f32 %v2985_v44, %v7293_v8 }
 0x33e   : > { %3467 = vrot.lane.b32.xlu1 %v3462_v22, %s4171_s10  ;;  %3465 = vrot.lane.b32.xlu0 %v3461_v24, %s4171_s10  ;;  %v2986_v22 = vmul.f32 %v7277_v15, %v2984_v54  ;;  %v3222_v54 = vstv %s3933_s6  ;;  %s3982_s6 = sshll.u32 %s4216_s16, 11  ;;  %s7569_s16 = scalar_lea.sflag [#allocation3], %s188_s28 }
 0x340   : > { %v3026_v63 = vpop.permute.xlu1 %3025  ;;  %v3024_v14 = vpop.permute.xlu0 %3023  ;;  %v2988_v35 = vadd.f32 %v2986_v22, %v7290_v30  ;;  %v3228_v22 = vstv %s7413_s7  ;;  %s3557_s7 = sshll.u32 %s7469_s29, 4  ;;  %s7561_s7 = int_to_ptr.vmem [resolvable:$true] %s3557_s7 }
 0x341   : > { %v7336_v39 = vadd.f32 %v3026_v63, %v2958_v49  ;;  %v7338_v45 = vadd.f32 %v3024_v14, %v2957_v59 }
 0x342   : > { %3481 = vrot.lane.b32.xlu1 %v3476_v12, %s4171_s10  ;;  %3479 = vrot.lane.b32.xlu0 %v3475_v6, %s4171_s10  ;;  %s3932_s10 = sld [smem:[#allocation2 + $0x108]] }
 0x344   : > { %v3040_v10 = vpop.permute.xlu1 %3039  ;;  %v3038_v38 = vpop.permute.xlu0 %3037 }
 0x345   : > { %v7347_v16 = vadd.f32 %v3040_v10, %v2964_v32  ;;  %v7349_v25 = vadd.f32 %v3038_v38, %v2963_v37 }
 0x348   : > { %v3054_v20 = vpop.permute.xlu1 %3053  ;;  %v3052_v19 = vpop.permute.xlu0 %3051  ;;  %v3216_v48 = vstv %s3932_s10  ;;  %s7530_s10 = sld [smem:[#allocation5 + $0x7]] }
 0x349   : > { %v7355_v31 = vadd.f32 %v3054_v20, %v2970_v53  ;;  %v7357_v4 = vadd.f32 %v3052_v19, %v2969_v11 }
 0x34c   : > { %v3068_v13 = vpop.permute.xlu1 %3067  ;;  %v3066_v55 = vpop.permute.xlu0 %3065 }
 0x34d   : > { %v7363_v27 = vadd.f32 %v3068_v13, %v2976_v7  ;;  %v7365_v34 = vadd.f32 %v3066_v55, %v2975_v3  ;;  %v3218_v7 = vmul.f32 %v7051_v60, %v3216_v48  ;;  %v3217_v55 = vmul.f32 %v7054_v17, %v3216_v48 }
 0x350   : > { %v3082_v23 = vpop.permute.xlu1 %3081  ;;  %v3080_v24 = vpop.permute.xlu0 %3079 }
 0x351   : > { %v7371_v58 = vadd.f32 %v3082_v23, %v2982_v36  ;;  %v7373_v9 = vadd.f32 %v3080_v24, %v2981_v40  ;;  %v3224_v36 = vmul.f32 %v7051_v60, %v3222_v54  ;;  %v3223_v40 = vmul.f32 %v7054_v17, %v3222_v54 }
 0x354   : > { %v3096_v21 = vpop.permute.xlu1 %3095  ;;  %v3094_v51 = vpop.permute.xlu0 %3093 }
 0x355   : > { %v7377_v26 = vadd.f32 %v3096_v21, %v2988_v35  ;;  %v7379_v18 = vadd.f32 %v3094_v51, %v2987_v46  ;;  %v3230_v51 = vmul.f32 %v7051_v60, %v3228_v22 }
 0x358   : > { %v3110_v62 = vpop.permute.xlu1 %3109  ;;  %v3108_v15 = vpop.permute.xlu0 %3107 }
 0x359   : > { %v3114_v29 = vadd.f32 %v3110_v62, %v7307_v43  ;;  %v3113_v13 = vadd.f32 %v3108_v15, %v7309_v28  ;;  %v3234_v62 = vstv %s7419_s8 }
 0x35b   : > { %v3220_v24 = vadd.f32 %v3218_v7, %v3114_v29  ;;  %v3219_v35 = vadd.f32 %v3217_v55, %v3113_v13  ;;  %v3236_v13 = vmul.f32 %v7051_v60, %v3234_v62  ;;  %v3240_v55 = vstv %s7431_s11  ;;  %s7559_s11 = scalar_lea.hbm %s7613_s3, %s3982_s6 }
 0x35c   : > { %v3124_v47 = vpop.permute.xlu1 %3123  ;;  %v3122_v5 = vpop.permute.xlu0 %3121 }
 0x35d   : > { %v3128_v43 = vadd.f32 %v3124_v47, %v7323_v56  ;;  %v3127_v28 = vadd.f32 %v3122_v5, %v7325_v52  ;;  %v3229_v56 = vmul.f32 %v7054_v17, %v3228_v22  ;;  %v3488_v47 = vstv %s7426_s9 }
 0x360   : > { %v3138_v12 = vpop.permute.xlu1 %3137  ;;  %v3136_v6 = vpop.permute.xlu0 %3135 }
 0x361   : > { %v3142_v15 = vadd.f32 %v3138_v12, %v7336_v39  ;;  %v3141_v48 = vadd.f32 %v3136_v6, %v7338_v45 }
 0x363   : > { %v3232_v54 = vadd.f32 %v3230_v51, %v3142_v15  ;;  %v3231_v22 = vadd.f32 %v3229_v56, %v3141_v48  ;;  %v3241_v15 = vmul.f32 %v7054_v17, %v3240_v55  ;;  %v3502_v48 = vstv %s7455_s24 }
 0x364   : > { %v7381_v49 = vpop.permute.xlu1 %3151  ;;  %v7383_v59 = vpop.permute.xlu0 %3149 }
 0x368   : > { %v7385_v2 = vpop.permute.xlu1 %3165  ;;  %v7387_v30 = vpop.permute.xlu0 %3163 }
 0x369   : > { %v3170_v51 = vadd.f32 %v7385_v2, %v7355_v31 }
 0x36c   : > { %v7389_v8 = vpop.permute.xlu1 %3179  ;;  %v7391_v50 = vpop.permute.xlu0 %3177 }
 0x370   : > { %v7393_v63 = vpop.permute.xlu1 %3193  ;;  %v7395_v14 = vpop.permute.xlu0 %3191 }
 0x374   : > { %v7397_v33 = vpop.permute.xlu1 %3207  ;;  %v7399_v32 = vpop.permute.xlu0 %3205 }
 0x378   : > { %v3272_v37 = vpop.permute.xlu1 %3271  ;;  %v3270_v41 = vpop.permute.xlu0 %3269 }
 0x379   : > { %v3276_v46 = vadd.f32 %v3272_v37, %v3220_v24  ;;  %v3275_v21 = vadd.f32 %v3270_v41, %v3219_v35  ;;  %v3226_v37 = vadd.f32 %v3224_v36, %v3128_v43  ;;  %v3225_v41 = vadd.f32 %v3223_v40, %v3127_v28 }
 0x37a   : > { %v3235_v24 = vmul.f32 %v7054_v17, %v3234_v62  ;;  %v3495_v35 = vstv %s7441_s17  ;;  %v3156_v43 = vadd.f32 %v7381_v49, %v7347_v16  ;;  %v3155_v28 = vadd.f32 %v7383_v59, %v7349_v25  ;;  %s4096_s17 = scalar_lea.vmem %s7561_s7, 2048 }
 0x37b   : > { %v3169_v62 = vadd.f32 %v7387_v30, %v7357_v4  ;;  %v3252_v4 = vstv %s7459_s25  ;;  %p4097_p10 = scmp.ne.s32.totalorder %s7561_s7, %s4096_s17 }
 0x37c   : > { %v3286_v0 = vpop.permute.xlu1 %3285  ;;  %v3284_v10 = vpop.permute.xlu0 %3283 }
 0x37d   : > { %v3290_v39 = vadd.f32 %v3286_v0, %v3226_v37  ;;  %v3289_v45 = vadd.f32 %v3284_v10, %v3225_v41  ;;  %p4098_p0 = pnand %p4097_p10, %p8158_p12 }
 0x37f   : > { %p4099_p7 = pneg %p4098_p0 }
 0x380   : > { %v7401_v38 = vpop.permute.xlu1 %3299  ;;  %v7403_v57 = vpop.permute.xlu0 %3297 }
 0x381   : > { %v3304_v16 = vadd.f32 %v7401_v38, %v3232_v54  ;;  %v3303_v25 = vadd.f32 %v7403_v57, %v3231_v22  ;;  %v3238_v38 = vadd.f32 %v3236_v13, %v3156_v43  ;;  %v3254_v54 = vmul.f32 %v7051_v60, %v3252_v4 }
 0x382   : > { %v3258_v22 = vstv %s7477_s26 }
 0x384   : > { %v7405_v53 = vpop.permute.xlu1 %3313  ;;  %v7407_v11 = vpop.permute.xlu0 %3311 }
 0x385   : > { %v3318_v2 = vadd.f32 %v7405_v53, %v3238_v38  ;;  %v3183_v53 = vadd.f32 %v7391_v50, %v7365_v34  ;;  %v3198_v34 = vadd.f32 %v7393_v63, %v7371_v58  ;;  %v3253_v50 = vmul.f32 %v7054_v17, %v3252_v4 }
 0x388   : > { %v7409_v42 = vpop.permute.xlu1 %3327  ;;  %v7411_v61 = vpop.permute.xlu0 %3325 }
 0x38c   : > { %v7415_v20 = vpop.permute.xlu1 %3341  ;;  %v7417_v19 = vpop.permute.xlu0 %3339 }
 0x390   : > { %v7422_v3 = vpop.permute.xlu1 %3355  ;;  %v7424_v1 = vpop.permute.xlu0 %3353 }
 0x394   : > { %v7436_v44 = vpop.permute.xlu1 %3369  ;;  %v7438_v23 = vpop.permute.xlu0 %3367 }
 0x398   : > { %v3384_v52 = vpop.permute.xlu1 %3383  ;;  %v3382_v5 = vpop.permute.xlu0 %3381 }
 0x399   : > { %v3388_v7 = vadd.f32 %v3384_v52, %v3276_v46  ;;  %v3387_v29 = vadd.f32 %v3382_v5, %v3275_v21  ;;  %v3242_v46 = vmul.f32 %v7051_v60, %v3240_v55  ;;  %v3246_v21 = vstv %s7445_s19  ;;  %s4172_s19 = smov [#allocation7]  }
 0x39a   : > { %v3237_v52 = vadd.f32 %v3235_v24, %v3155_v28  ;;  %v3248_v31 = vmul.f32 %v7051_v60, %v3246_v21  ;;  %v3247_v13 = vmul.f32 %v7054_v17, %v3246_v21  ;;  %v3509_v55 = vstv %s7463_s27  ;;  %s4100_s20 = sshll.u32 %s4172_s19, 4  ;;  %s4101_s20 = int_to_ptr.vmem [resolvable:$false] %s4100_s20 }
 0x39b   : > { %v3490_v12 = vadd.f32 %v3488_v47, %v3388_v7  ;;  %v3489_v6 = vadd.f32 %v3488_v47, %v3387_v29  ;;  %v3244_v7 = vadd.f32 %v3242_v46, %v3170_v51  ;;  %v3243_v29 = vadd.f32 %v3241_v15, %v3169_v62  ;;  %s4102_s24 = scalar_lea.vmem %s4101_s20, 4096  ;;  %p4103_p8 = scmp.lt.s32.totalorder %s7561_s7, %s4101_s20 }
 0x39c   : > { %v3398_v36 = vpop.permute.xlu1 %3397  ;;  %v3396_v40 = vpop.permute.xlu0 %3395  ;;  %v3317_v30 = vadd.f32 %v7407_v11, %v3237_v52  ;;  %v3256_v21 = vadd.f32 %v3254_v54, %v3198_v34  ;;  %p4104_p11 = scmp.lt.s32.totalorder %s4102_s24, %s4096_s17 }
 0x39d   : > { %3493 = vst.msk [vmem:[%s7469_s29 + $0x8] sm:$0xff] %vm3491_vm0, %v3490_v12  ;;  %3492 = vst.msk [vmem:[%s7469_s29] sm:$0xff] %vm3491_vm0, %v3489_v6  ;;  %v3402_v0 = vadd.f32 %v3398_v36, %v3290_v39  ;;  %v3401_v10 = vadd.f32 %v3396_v40, %v3289_v45  ;;  %v3184_v12 = vadd.f32 %v7389_v8, %v7363_v27  ;;  %v3516_v40 = vstv %s7487_s30 }
 0x39e   : > { %v3332_v24 = vadd.f32 %v7409_v42, %v3244_v7  ;;  %v3197_v8 = vadd.f32 %v7395_v14, %v7373_v9  ;;  %v3249_v42 = vadd.f32 %v3247_v13, %v3183_v53  ;;  %v3260_v9 = vmul.f32 %v7051_v60, %v3258_v22  ;;  %p4105_p13 = por %p4104_p11, %p4103_p8 }
 0x39f   : > { %v3497_v49 = vadd.f32 %v3495_v35, %v3402_v0  ;;  %v3496_v59 = vadd.f32 %v3495_v35, %v3401_v10  ;;  %v3331_v35 = vadd.f32 %v7411_v61, %v3243_v29  ;;  %v3250_v0 = vadd.f32 %v3248_v31, %v3184_v12 }
 0x3a0   : > { %v3412_v56 = vpop.permute.xlu1 %3411  ;;  %v3410_v47 = vpop.permute.xlu0 %3409  ;;  %v3345_v14 = vadd.f32 %v7417_v19, %v3249_v42  ;;  %v3212_v60 = vadd.f32 %v7397_v33, %v7377_v26  ;;  %v3530_v26 = vstv %s7519_s5  ;;  %v3537_v31 = vstv %s7530_s10  ;;  %p4106_p1 = pnand %p4105_p13, %p4099_p7 }
 0x3a1   : > { %3958 = vst.msk [vmem:[%s7469_s29 + $0x18] sm:$0xff] %vm3491_vm0, %v3497_v49  ;;  %3957 = vst.msk [vmem:[%s7469_s29 + $0x10] sm:$0xff] %vm3491_vm0, %v3496_v59  ;;  %v3416_v57 = vadd.f32 %v3412_v56, %v3304_v16  ;;  %v3415_v5 = vadd.f32 %v3410_v47, %v3303_v25  ;;  %v3346_v63 = vadd.f32 %v7415_v20, %v3250_v0  ;;  %v3523_v49 = vstv %s7499_s4 }
 0x3a2   : > { %v3255_v16 = vadd.f32 %v3253_v50, %v3197_v8  ;;  %v3259_v25 = vmul.f32 %v7054_v17, %v3258_v22  ;;  %v3211_v20 = vadd.f32 %v7399_v32, %v7379_v18  ;;  %v3360_v17 = vadd.f32 %v7422_v3, %v3256_v21 }
 0x3a3   : > { %v3504_v37 = vadd.f32 %v3502_v48, %v3416_v57  ;;  %v3503_v41 = vadd.f32 %v3502_v48, %v3415_v5  ;;  %v3262_v18 = vadd.f32 %v3260_v9, %v3212_v60 }
 0x3a4   : > { %v3426_v39 = vpop.permute.xlu1 %3425  ;;  %v3424_v45 = vpop.permute.xlu0 %3423  ;;  %v3359_v15 = vadd.f32 %v7424_v1, %v3255_v16  ;;  %v3261_v32 = vadd.f32 %v3259_v25, %v3211_v20 }
 0x3a5   : > { %3961 = vst.msk [vmem:[%s7469_s29 + $0x28] sm:$0xff] %vm3491_vm0, %v3504_v37  ;;  %3960 = vst.msk [vmem:[%s7469_s29 + $0x20] sm:$0xff] %vm3491_vm0, %v3503_v41  ;;  %v3430_v11 = vadd.f32 %v3426_v39, %v3318_v2  ;;  %v3429_v6 = vadd.f32 %v3424_v45, %v3317_v30  ;;  %v3374_v1 = vadd.f32 %v7436_v44, %v3262_v18 }
 0x3a6   : > { %v3373_v52 = vadd.f32 %v7438_v23, %v3261_v32 }
 0x3a7   : > { %v3511_v36 = vadd.f32 %v3509_v55, %v3430_v11  ;;  %v3510_v27 = vadd.f32 %v3509_v55, %v3429_v6 }
 0x3a8   : > { %v3440_v43 = vpop.permute.xlu1 %3439  ;;  %v3438_v28 = vpop.permute.xlu0 %3437 }
 0x3a9   : > { %3964 = vst.msk [vmem:[%s7469_s29 + $0x38] sm:$0xff] %vm3491_vm0, %v3511_v36  ;;  %3963 = vst.msk [vmem:[%s7469_s29 + $0x30] sm:$0xff] %vm3491_vm0, %v3510_v27  ;;  %v3444_v61 = vadd.f32 %v3440_v43, %v3332_v24  ;;  %v3443_v58 = vadd.f32 %v3438_v28, %v3331_v35 }
 0x3ab   : > { %v3518_v10 = vadd.f32 %v3516_v40, %v3444_v61  ;;  %v3517_v46 = vadd.f32 %v3516_v40, %v3443_v58 }
 0x3ac   : > { %v3454_v59 = vpop.permute.xlu1 %3453  ;;  %v3452_v51 = vpop.permute.xlu0 %3451 }
 0x3ad   : > { %3967 = vst.msk [vmem:[%s7469_s29 + $0x48] sm:$0xff] %vm3491_vm0, %v3518_v10  ;;  %3966 = vst.msk [vmem:[%s7469_s29 + $0x40] sm:$0xff] %vm3491_vm0, %v3517_v46  ;;  %v3458_v19 = vadd.f32 %v3454_v59, %v3346_v63  ;;  %v3457_v62 = vadd.f32 %v3452_v51, %v3345_v14 }
 0x3af   : > { %v3525_v48 = vadd.f32 %v3523_v49, %v3458_v19  ;;  %v3524_v56 = vadd.f32 %v3523_v49, %v3457_v62 }
 0x3b0   : > { %v3468_v33 = vpop.permute.xlu1 %3467  ;;  %v3466_v47 = vpop.permute.xlu0 %3465 }
 0x3b1   : > { %3970 = vst.msk [vmem:[%s7469_s29 + $0x58] sm:$0xff] %vm3491_vm0, %v3525_v48  ;;  %3969 = vst.msk [vmem:[%s7469_s29 + $0x50] sm:$0xff] %vm3491_vm0, %v3524_v56  ;;  %v3472_v38 = vadd.f32 %v3468_v33, %v3360_v17  ;;  %v3471_v3 = vadd.f32 %v3466_v47, %v3359_v15 }
 0x3b3   : > { %v3532_v57 = vadd.f32 %v3530_v26, %v3472_v38  ;;  %v3531_v5 = vadd.f32 %v3530_v26, %v3471_v3 }
 0x3b4   : > { %v3482_v4 = vpop.permute.xlu1 %3481  ;;  %v3480_v2 = vpop.permute.xlu0 %3479 }
 0x3b5   : > { %3973 = vst.msk [vmem:[%s7469_s29 + $0x68] sm:$0xff] %vm3491_vm0, %v3532_v57  ;;  %3972 = vst.msk [vmem:[%s7469_s29 + $0x60] sm:$0xff] %vm3491_vm0, %v3531_v5  ;;  %v3486_v30 = vadd.f32 %v3482_v4, %v3374_v1  ;;  %v3485_v37 = vadd.f32 %v3480_v2, %v3373_v52 }
 0x3b7   : > { %v3539_v44 = vadd.f32 %v3537_v31, %v3486_v30  ;;  %v3538_v23 = vadd.f32 %v3537_v31, %v3485_v37 }
 0x3b9   : > { %3976 = vst.msk [vmem:[%s7469_s29 + $0x78] sm:$0xff] %vm3491_vm0, %v3539_v44  ;;  %3975 = vst.msk [vmem:[%s7469_s29 + $0x70] sm:$0xff] %vm3491_vm0, %v3538_v23 }
 0x3ba   : > { %4109 = shalt.err (!%p4106_p1)
}
 0x3bb   : > { %s4110_s28 = scalar_lea.hbm %s7559_s11, 2048  ;;  %s4114_s29 = scalar_lea.hbm %s7613_s3, 4096 }
 0x3bc   : > { %p4111_p2 = scmp.ne.s32.totalorder %s7559_s11, %s4110_s28  ;;  %p4115_p9 = scmp.lt.u32.totalorder %s7559_s11, %s7613_s3 }
 0x3bd   : > { %p4116_p5 = scmp.lt.u32.totalorder %s4114_s29, %s4110_s28  ;;  %p4118_p10 = scmp.lt.u32.totalorder %s4110_s28, %s7559_s11 }
 0x3be   : > { %p4112_p3 = pnand %p4111_p2, %p8158_p12 }
 0x3bf   : > { %p4117_p6 = por %p4116_p5, %p4115_p9 }
 0x3c0   : > { %p4113_p4 = pneg %p4112_p3 }
 0x3c1   : > { %p4119_p0 = por %p4118_p10, %p4117_p6 }
 0x3c3   : > { %p4120_p7 = pnand %p4119_p0, %p4113_p4 }
 0x3c5   : > { %4123 = shalt.err (!%p4120_p7)
}
 0x3c6   : > { %s4173_s4 = smov 128   ;;  %s4174_s5 = smov 8  }
 0x3c7   : > { %3992 = dma.vmem_to_hbm [thread:$0]  (%p8158_p12), %s7561_s7, 2048, %s7559_s11, %s7569_s16, %s4173_s4, %s4173_s4, %s4174_s5  }
 0x3c8 PF: > { %p4009_p8 = scmp.ge.s32.totalorder %s4166_s15, 2  ;;  %s3572_s10 = sand.u32 1, %s4154_s12  }
 0x3c9   : > { %p8159_p11 = scmp.ne.s32.totalorder %s7622_s23, 0  ;;  %s3573_s6 = scalar_lea.sflag [#allocation3], %s3572_s10 }
 0x3cb   : > { %p4002_p13 = pnand %p4009_p8, %p8159_p11 }
 0x3cd   : > { %4149 = dma.done.wait (!%p4002_p13), %s3573_s6, 2048  }
 0x3ce   : > { %4151 = vsyncadd (!%p4002_p13), %s3573_s6, 4294965248  ;;  %p15_p1 = scmp.ge.s32.totalorder %s4220_s18, 4   ;;  %s8160_s12 = smov %s4158_s13 }
 0x3cf   : > { %s8161_s13 = smov %s4162_s14  ;;  %s8162_s14 = smov %s4231_s21 }
 0x3d0   : > { %s8163_s15 = smov %s4220_s18  ;;  %17 = sbr.rel (!%p15_p1) target bundleno = 5 (0x5), region = 86 }
 0x3d7   :  { %3578 = vsyncpa [#allocation3], 1 }
 0x3d8   :  { %3580 = vsyncpa [#allocation3 + $0x1], 1 }
 0x3d9   :  { %3581 = vsyncpa [#allocation4], 1 }
 0x3da   :  { %3583 = vsyncpa [#allocation4 + $0x1], 1 }
 0x3db   :  { %3584 = vsyncpa [#allocation6], 1 }

</bundles_post_ra>
